<compile_context>
chip_gen: v7x
topology: tpu7x:2x2x1
jax: 0.10.0
libtpu: 0.0.40
codegen_flags: <defaults>
</compile_context>

<pallas_src>
import functools
import numpy as np

import jax
import jax.numpy as jnp
from jax import lax
from jax.experimental import pallas as pl
from jax.experimental.pallas import tpu as pltpu


# ----------------------------------------------------------------------------- kernel
def _dblock_kernel(x_ref, w1_ref, b1_ref, wa_ref, ba_ref, wb_ref, bb_ref, mask_ref,
                   out_ref, *, H, W, first_relu, keep_same_output, identity_skip):
    """One grid step == `batch_tile` samples.

    x_ref   : (B, Cin, Lp)   zero-padded input, flattened with row stride W2=W+2,
                             Lp = (H+3)*W2 (1 top + 2 bottom pad rows, 1+1 pad cols)
    w1_ref  : (Cout, Cin)    1x1 conv weight (bf16)
    wa_ref  : (Cout, 9*Cin)  first 3x3 conv, im2col-packed (tap-major, bf16)
    wb_ref  : (Cout, 9*Cout) second 3x3 conv, im2col-packed (bf16)
    b*_ref  : (Cout, 1)      biases (f32)
    mask_ref: (1, L)         1.0 on valid columns of the stride-W2 layout, else 0.0
    out_ref : (B, Cout, Ho*Wo)
    """
    B, Cin, Lp = x_ref.shape
    Cout = wa_ref.shape[0]
    W2 = W + 2
    L = H * W2                      # conv-output length in the row-stride-W2 layout
    cdt = wa_ref.dtype              # MXU compute dtype (bf16)

    x = x_ref[...]                  # (B, Cin, Lp) f32

    def conv3x3(xpad, w_ref, b_ref):
        # xpad: (B, C, Lp) f32, zero borders, row stride W2.
        C = xpad.shape[1]
        # im2col: 9 lane-offset slices concatenated along the channel axis -> one matmul.
        taps = jnp.concatenate(
            [xpad[:, :, dy * W2 + dx: dy * W2 + dx + L]
             for dy in range(3) for dx in range(3)], axis=1).astype(cdt)   # (B, 9C, L)
        wfull = jnp.broadcast_to(w_ref[...][None], (B, Cout, 9 * C))
        y = jnp.einsum('bok,bkn->bon', wfull, taps,
                       preferred_element_type=jnp.float32)                 # (B, Cout, L)
        return y + b_ref[...][None]                                        # bias (1,Cout,1)

    # ---- skip branch (un-relu'd input) ------------------------------------------------
    xc = x[:, :, W2 + 1: W2 + 1 + L]                 # (B, Cin, L) centre pixels
    if identity_skip:
        skip = xc
    else:
        w1full = jnp.broadcast_to(w1_ref[...][None], (B, Cout, Cin))
        skip = jnp.einsum('bok,bkn->bon', w1full, xc.astype(cdt),
                          preferred_element_type=jnp.float32) + b1_ref[...][None]

    # ---- main branch -------------------------------------------------------------------
    xm = jnp.maximum(x, 0.0) if first_relu else x    # relu(zero padding) == zero padding
    h = conv3x3(xm, wa_ref, ba_ref)                  # (B, Cout, L)
    h = jnp.maximum(h, 0.0)

    # re-pad (zero border) in the same flattened layout: mask the 2 junk columns per row,
    # then shift by one padded row + one padded column via a lane concatenate.
    h = h * mask_ref[...][None]
    hpad = jnp.concatenate(
        [jnp.zeros((B, Cout, W2 + 1), jnp.float32),
         h,
         jnp.zeros((B, Cout, Lp - L - (W2 + 1)), jnp.float32)], axis=2)    # (B, Cout, Lp)

    h2 = conv3x3(hpad, wb_ref, bb_ref)               # (B, Cout, L)

    # pooling is linear -> add the two branches first, pool once.
    total = skip + h2                                # (B, Cout, L) f32

    # ---- 2x2 average pooling on the VPU / valid-column extraction ----------------------
    t = total.reshape(B, Cout, H, W2)[:, :, :, :W]   # (B, Cout, H, W) drop junk columns
    if keep_same_output:
        out = t.reshape(B, Cout, H * W)
    else:
        t = t.reshape(B, Cout, H // 2, 2, W)
        t = t[:, :, :, 0, :] + t[:, :, :, 1, :]      # vertical pair sum
        t = t.reshape(B, Cout, H // 2, W // 2, 2)
        t = (t[:, :, :, :, 0] + t[:, :, :, :, 1]) * 0.25
        out = t.reshape(B, Cout, (H // 2) * (W // 2))

    out_ref[...] = out.astype(out_ref.dtype)


# ----------------------------------------------------------------------------- wrapper
def dblock_pallas(x_nchw, params, *, first_relu=True, keep_same_output=False,
                  compute_dtype=jnp.bfloat16, batch_tile=None):
    """params = (w1, b1, wa, ba, wb, bb) in PyTorch OIHW layout (already spectral-normed)."""
    w1, b1, wa, ba, wb, bb = params
    N, Cin, H, W = x_nchw.shape
    Cout = wa.shape[0]
    assert H % 2 == 0 and W % 2 == 0

    identity_skip = (Cin == Cout)
    if identity_skip:
        # PyTorch's identity skip only yields compatible shapes when keep_same_output=True.
        assert keep_same_output, "Cin == Cout requires keep_same_output=True"

    W2 = W + 2
    L = H * W2
    Lp = (H + 3) * W2                       # 1 top + 2 bottom zero rows (tap-slice slack)
    Ho, Wo = (H, W) if keep_same_output else (H // 2, W // 2)

    # batch tile: largest divisor of N that is <= 8 and leaves >= 2 grid steps (megacore)
    if batch_tile is None:
        batch_tile = 1
        for cand in range(min(8, max(1, N // 2)), 0, -1):
            if N % cand == 0:
                batch_tile = cand
                break
    assert N % batch_tile == 0
    grid = (N // batch_tile,)

    # ---- glue: padding / flattening / weight packing (one-time XLA ops, no transposes) --
    xpad = jnp.pad(x_nchw.astype(jnp.float32), ((0, 0), (0, 0), (1, 2), (1, 1)))
    xflat = xpad.reshape(N, Cin, Lp)                                    # (N, Cin, Lp)

    w1_k = w1[:, :, 0, 0].astype(compute_dtype)                         # (Cout, Cin)
    wa_k = jnp.transpose(wa, (0, 2, 3, 1)).reshape(Cout, 9 * Cin).astype(compute_dtype)
    wb_k = jnp.transpose(wb, (0, 2, 3, 1)).reshape(Cout, 9 * Cout).astype(compute_dtype)
    b1_k = b1.reshape(Cout, 1).astype(jnp.float32)
    ba_k = ba.reshape(Cout, 1).astype(jnp.float32)
    bb_k = bb.reshape(Cout, 1).astype(jnp.float32)

    # valid-column mask for the flattened row-stride-W2 layout
    mask_np = np.zeros((H, W2), np.float32)
    mask_np[:, :W] = 1.0
    mask = jnp.asarray(mask_np.reshape(1, L))

    kernel = functools.partial(_dblock_kernel, H=H, W=W,
                               first_relu=first_relu,
                               keep_same_output=keep_same_output,
                               identity_skip=identity_skip)

    grid_spec = pltpu.PrefetchScalarGridSpec(
        num_scalar_prefetch=0,
        grid=grid,
        in_specs=[
            pl.BlockSpec((batch_tile, Cin, Lp), lambda n: (n, 0, 0)),
            pl.BlockSpec((Cout, Cin), lambda n: (0, 0)),
            pl.BlockSpec((Cout, 1), lambda n: (0, 0)),
            pl.BlockSpec((Cout, 9 * Cin), lambda n: (0, 0)),
            pl.BlockSpec((Cout, 1), lambda n: (0, 0)),
            pl.BlockSpec((Cout, 9 * Cout), lambda n: (0, 0)),
            pl.BlockSpec((Cout, 1), lambda n: (0, 0)),
            pl.BlockSpec((1, L), lambda n: (0, 0)),
        ],
        out_specs=pl.BlockSpec((batch_tile, Cout, Ho * Wo), lambda n: (n, 0, 0)),
    )

    out = pl.pallas_call(
        kernel,
        out_shape=jax.ShapeDtypeStruct((N, Cout, Ho * Wo), jnp.float32),
        grid_spec=grid_spec,
        compiler_params=pltpu.CompilerParams(dimension_semantics=("parallel",)),
    )(xflat, w1_k, b1_k, wa_k, ba_k, wb_k, bb_k, mask)

    # lane-dense output is already (N, Cout, Ho*Wo): NCHW needs only a reshape.
    return out.reshape(N, Cout, Ho, Wo)


# ----------------------------------------------------------------------------- helpers
def spectral_normalize(w):
    """Divide conv weight (OIHW) by its spectral norm (largest singular value of (O, I*kh*kw)).

    # TODO(synk): torch spectral_norm uses a stateful 1-step power iteration per forward;
    # here we use the exact sigma (same mathematical intent).
    """
    m = w.reshape(w.shape[0], -1)
    sigma = jnp.linalg.svd(m, compute_uv=False)[0]
    return w / sigma


def _avgpool2_nchw(x):
    n, c, h, w = x.shape
    return x.reshape(n, c, h // 2, 2, w // 2, 2).mean(axis=(3, 5))


def dblock_ref(x, params, *, first_relu=True, keep_same_output=False,
               compute_dtype=jnp.float32):
    """Pure-JAX reference of the PyTorch forward (NCHW).  `compute_dtype` lets the
    reference use the same MXU operand precision (bf16 in, f32 accumulate) as the kernel."""
    w1, b1, wa, ba, wb, bb = params

    def conv(inp, w, b, pad):
        y = lax.conv_general_dilated(
            inp.astype(compute_dtype), w.astype(compute_dtype), (1, 1),
            [(pad, pad), (pad, pad)],
            dimension_numbers=('NCHW', 'OIHW', 'NCHW'),
            preferred_element_type=jnp.float32)
        return y + b.astype(jnp.float32)[None, :, None, None]

    if x.shape[1] != wa.shape[0]:
        x1 = conv(x, w1, b1, 0)
        if not keep_same_output:
            x1 = _avgpool2_nchw(x1)
    else:
        x1 = x
    h = jnp.maximum(x, 0.0) if first_relu else x
    h = conv(h, wa, ba, 1)
    h = jnp.maximum(h, 0.0)
    h = conv(h, wb, bb, 1)
    if not keep_same_output:
        h = _avgpool2_nchw(h)
    return x1 + h


# ----------------------------------------------------------------------------- main
if __name__ == "__main__":
    key = jax.random.PRNGKey(0)
    N, Cin, Cout, H, W = 2, 4, 8, 16, 16

    ks = jax.random.split(key, 7)
    x = jax.random.normal(ks[0], (N, Cin, H, W), jnp.float32)
    w1 = jax.random.normal(ks[1], (Cout, Cin, 1, 1), jnp.float32) * 0.3
    b1 = jax.random.normal(ks[2], (Cout,), jnp.float32) * 0.1
    wa = jax.random.normal(ks[3], (Cout, Cin, 3, 3), jnp.float32) * 0.3
    ba = jax.random.normal(ks[4], (Cout,), jnp.float32) * 0.1
    wb = jax.random.normal(ks[5], (Cout, Cout, 3, 3), jnp.float32) * 0.3
    bb = jax.random.normal(ks[6], (Cout,), jnp.float32) * 0.1

    params = (spectral_normalize(w1), b1,
              spectral_normalize(wa), ba,
              spectral_normalize(wb), bb)

    out = dblock_pallas(x, params, first_relu=True, keep_same_output=False,
                        compute_dtype=jnp.bfloat16)
    out = jax.block_until_ready(out)
    assert out.shape == (N, Cout, H // 2, W // 2), out.shape

    # matched-precision reference (bf16 MXU operands, f32 accumulation)
    ref_bf16 = dblock_ref(x, params, first_relu=True, keep_same_output=False,
                          compute_dtype=jnp.bfloat16)
    err = float(jnp.max(jnp.abs(out - ref_bf16)))
    assert jnp.allclose(out, ref_bf16, atol=2e-3, rtol=2e-3), f"max abs err vs bf16 ref = {err}"

    # looser sanity check against the full-f32 reference (bf16 rounding of operands)
    ref_f32 = dblock_ref(x, params, first_relu=True, keep_same_output=False,
                         compute_dtype=jnp.float32)
    err32 = float(jnp.max(jnp.abs(out - ref_f32)))
    assert err32 < 5e-2, f"max abs err vs f32 ref = {err32}"

    print("KERNEL_OK")
</pallas_src>

<mosaic_0001>
module attributes {stable_mosaic.version = 11 : i64} {
  func.func @_dblock_kernel(%arg0: i32, %arg1: memref<1x4x342xf32, #tpu.memory_space<vmem>>, %arg2: memref<8x4xbf16, #tpu.memory_space<vmem>>, %arg3: memref<8x1xf32, #tpu.memory_space<vmem>>, %arg4: memref<8x36xbf16, #tpu.memory_space<vmem>>, %arg5: memref<8x1xf32, #tpu.memory_space<vmem>>, %arg6: memref<8x72xbf16, #tpu.memory_space<vmem>>, %arg7: memref<8x1xf32, #tpu.memory_space<vmem>>, %arg8: memref<1x288xf32, #tpu.memory_space<vmem>>, %arg9: memref<1x8x64xf32, #tpu.memory_space<vmem>>) attributes {dimension_semantics = [#tpu.dimension_semantics<parallel>], iteration_bounds = array<i64: 2>, scalar_prefetch = 0 : i64, scratch_operands = 0 : i64, tpu.core_type = #tpu.core_type<tc>, window_params = [{transform_indices = @transform_0, window_bounds = array<i64: 1, 4, 342>}, {pipeline_mode = #tpu.pipeline_mode<synchronous>, transform_indices = @transform_1, window_bounds = array<i64: 8, 4>}, {pipeline_mode = #tpu.pipeline_mode<synchronous>, transform_indices = @transform_2, window_bounds = array<i64: 8, 1>}, {pipeline_mode = #tpu.pipeline_mode<synchronous>, transform_indices = @transform_3, window_bounds = array<i64: 8, 36>}, {pipeline_mode = #tpu.pipeline_mode<synchronous>, transform_indices = @transform_4, window_bounds = array<i64: 8, 1>}, {pipeline_mode = #tpu.pipeline_mode<synchronous>, transform_indices = @transform_5, window_bounds = array<i64: 8, 72>}, {pipeline_mode = #tpu.pipeline_mode<synchronous>, transform_indices = @transform_6, window_bounds = array<i64: 8, 1>}, {pipeline_mode = #tpu.pipeline_mode<synchronous>, transform_indices = @transform_7, window_bounds = array<i64: 1, 288>}, {transform_indices = @transform_8, window_bounds = array<i64: 1, 8, 64>}]} {
    %c0 = arith.constant 0 : index
    %c0_0 = arith.constant 0 : index
    %c0_1 = arith.constant 0 : index
    %0 = vector.load %arg1[%c0, %c0_0, %c0_1] : memref<1x4x342xf32, #tpu.memory_space<vmem>>, vector<1x4x342xf32>
    %1 = vector.extract_strided_slice %0 {offsets = [0, 0, 19], sizes = [1, 4, 288], strides = [1, 1, 1]} : vector<1x4x342xf32> to vector<1x4x288xf32>
    %c0_2 = arith.constant 0 : index
    %c0_3 = arith.constant 0 : index
    %2 = vector.load %arg2[%c0_2, %c0_3] : memref<8x4xbf16, #tpu.memory_space<vmem>>, vector<8x4xbf16>
    %3 = vector.shape_cast %2 : vector<8x4xbf16> to vector<1x8x4xbf16>
    %4 = arith.truncf %1 : vector<1x4x288xf32> to vector<1x4x288xbf16>
    "tpu.trace_start"() <{level = 10 : i32, message = "bok,bkn->bon"}> : () -> ()
    %cst = arith.constant dense<0.000000e+00> : vector<1x8x288xf32>
    %5 = tpu.matmul %3, %4, %cst {dimension_numbers = #tpu.dot_dimension_numbers<[2], [1], [1], [2], [0, 0, 0, 1, 1, 2], [0], [0]>} : vector<1x8x4xbf16>, vector<1x4x288xbf16>, vector<1x8x288xf32> -> vector<1x8x288xf32>
    "tpu.trace_stop"() : () -> ()
    %c0_4 = arith.constant 0 : index
    %c0_5 = arith.constant 0 : index
    %6 = vector.load %arg3[%c0_4, %c0_5] : memref<8x1xf32, #tpu.memory_space<vmem>>, vector<8x1xf32>
    %7 = vector.shape_cast %6 : vector<8x1xf32> to vector<1x8x1xf32>
    %8 = vector.broadcast %7 : vector<1x8x1xf32> to vector<1x8x288xf32>
    %9 = arith.addf %5, %8 : vector<1x8x288xf32>
    %cst_6 = arith.constant 0.000000e+00 : f32
    %10 = vector.broadcast %cst_6 : f32 to vector<1x4x342xf32>
    %11 = arith.maximumf %0, %10 : vector<1x4x342xf32>
    %12 = vector.extract_strided_slice %11 {offsets = [0, 0, 0], sizes = [1, 4, 288], strides = [1, 1, 1]} : vector<1x4x342xf32> to vector<1x4x288xf32>
    %13 = vector.extract_strided_slice %11 {offsets = [0, 0, 1], sizes = [1, 4, 288], strides = [1, 1, 1]} : vector<1x4x342xf32> to vector<1x4x288xf32>
    %14 = vector.extract_strided_slice %11 {offsets = [0, 0, 2], sizes = [1, 4, 288], strides = [1, 1, 1]} : vector<1x4x342xf32> to vector<1x4x288xf32>
    %15 = vector.extract_strided_slice %11 {offsets = [0, 0, 18], sizes = [1, 4, 288], strides = [1, 1, 1]} : vector<1x4x342xf32> to vector<1x4x288xf32>
    %16 = vector.extract_strided_slice %11 {offsets = [0, 0, 19], sizes = [1, 4, 288], strides = [1, 1, 1]} : vector<1x4x342xf32> to vector<1x4x288xf32>
    %17 = vector.extract_strided_slice %11 {offsets = [0, 0, 20], sizes = [1, 4, 288], strides = [1, 1, 1]} : vector<1x4x342xf32> to vector<1x4x288xf32>
    %18 = vector.extract_strided_slice %11 {offsets = [0, 0, 36], sizes = [1, 4, 288], strides = [1, 1, 1]} : vector<1x4x342xf32> to vector<1x4x288xf32>
    %19 = vector.extract_strided_slice %11 {offsets = [0, 0, 37], sizes = [1, 4, 288], strides = [1, 1, 1]} : vector<1x4x342xf32> to vector<1x4x288xf32>
    %20 = vector.extract_strided_slice %11 {offsets = [0, 0, 38], sizes = [1, 4, 288], strides = [1, 1, 1]} : vector<1x4x342xf32> to vector<1x4x288xf32>
    %21 = tpu.concatenate %12, %13, %14, %15, %16, %17, %18, %19, %20 in 1 : vector<1x4x288xf32>, vector<1x4x288xf32>, vector<1x4x288xf32>, vector<1x4x288xf32>, vector<1x4x288xf32>, vector<1x4x288xf32>, vector<1x4x288xf32>, vector<1x4x288xf32>, vector<1x4x288xf32> -> vector<1x36x288xf32>
    %22 = arith.truncf %21 : vector<1x36x288xf32> to vector<1x36x288xbf16>
    %c0_7 = arith.constant 0 : index
    %c0_8 = arith.constant 0 : index
    %23 = vector.load %arg4[%c0_7, %c0_8] : memref<8x36xbf16, #tpu.memory_space<vmem>>, vector<8x36xbf16>
    %24 = vector.shape_cast %23 : vector<8x36xbf16> to vector<1x8x36xbf16>
    "tpu.trace_start"() <{level = 10 : i32, message = "bok,bkn->bon"}> : () -> ()
    %cst_9 = arith.constant dense<0.000000e+00> : vector<1x8x288xf32>
    %25 = tpu.matmul %24, %22, %cst_9 {dimension_numbers = #tpu.dot_dimension_numbers<[2], [1], [1], [2], [0, 0, 0, 1, 1, 2], [0], [0]>} : vector<1x8x36xbf16>, vector<1x36x288xbf16>, vector<1x8x288xf32> -> vector<1x8x288xf32>
    "tpu.trace_stop"() : () -> ()
    %c0_10 = arith.constant 0 : index
    %c0_11 = arith.constant 0 : index
    %26 = vector.load %arg5[%c0_10, %c0_11] : memref<8x1xf32, #tpu.memory_space<vmem>>, vector<8x1xf32>
    %27 = vector.shape_cast %26 : vector<8x1xf32> to vector<1x8x1xf32>
    %28 = vector.broadcast %27 : vector<1x8x1xf32> to vector<1x8x288xf32>
    %29 = arith.addf %25, %28 : vector<1x8x288xf32>
    %cst_12 = arith.constant 0.000000e+00 : f32
    %30 = vector.broadcast %cst_12 : f32 to vector<1x8x288xf32>
    %31 = arith.maximumf %29, %30 : vector<1x8x288xf32>
    %c0_13 = arith.constant 0 : index
    %c0_14 = arith.constant 0 : index
    %32 = vector.load %arg8[%c0_13, %c0_14] : memref<1x288xf32, #tpu.memory_space<vmem>>, vector<1x288xf32>
    %33 = vector.shape_cast %32 : vector<1x288xf32> to vector<1x1x288xf32>
    %34 = vector.broadcast %33 : vector<1x1x288xf32> to vector<1x8x288xf32>
    %35 = arith.mulf %31, %34 : vector<1x8x288xf32>
    %cst_15 = arith.constant 0.000000e+00 : f32
    %36 = vector.broadcast %cst_15 : f32 to vector<1x8x19xf32>
    %cst_16 = arith.constant 0.000000e+00 : f32
    %37 = vector.broadcast %cst_16 : f32 to vector<1x8x35xf32>
    %38 = tpu.concatenate %36, %35, %37 in 2 : vector<1x8x19xf32>, vector<1x8x288xf32>, vector<1x8x35xf32> -> vector<1x8x342xf32>
    %39 = vector.extract_strided_slice %38 {offsets = [0, 0, 0], sizes = [1, 8, 288], strides = [1, 1, 1]} : vector<1x8x342xf32> to vector<1x8x288xf32>
    %40 = vector.extract_strided_slice %38 {offsets = [0, 0, 1], sizes = [1, 8, 288], strides = [1, 1, 1]} : vector<1x8x342xf32> to vector<1x8x288xf32>
    %41 = vector.extract_strided_slice %38 {offsets = [0, 0, 2], sizes = [1, 8, 288], strides = [1, 1, 1]} : vector<1x8x342xf32> to vector<1x8x288xf32>
    %42 = vector.extract_strided_slice %38 {offsets = [0, 0, 18], sizes = [1, 8, 288], strides = [1, 1, 1]} : vector<1x8x342xf32> to vector<1x8x288xf32>
    %43 = vector.extract_strided_slice %38 {offsets = [0, 0, 19], sizes = [1, 8, 288], strides = [1, 1, 1]} : vector<1x8x342xf32> to vector<1x8x288xf32>
    %44 = vector.extract_strided_slice %38 {offsets = [0, 0, 20], sizes = [1, 8, 288], strides = [1, 1, 1]} : vector<1x8x342xf32> to vector<1x8x288xf32>
    %45 = vector.extract_strided_slice %38 {offsets = [0, 0, 36], sizes = [1, 8, 288], strides = [1, 1, 1]} : vector<1x8x342xf32> to vector<1x8x288xf32>
    %46 = vector.extract_strided_slice %38 {offsets = [0, 0, 37], sizes = [1, 8, 288], strides = [1, 1, 1]} : vector<1x8x342xf32> to vector<1x8x288xf32>
    %47 = vector.extract_strided_slice %38 {offsets = [0, 0, 38], sizes = [1, 8, 288], strides = [1, 1, 1]} : vector<1x8x342xf32> to vector<1x8x288xf32>
    %48 = tpu.concatenate %39, %40, %41, %42, %43, %44, %45, %46, %47 in 1 : vector<1x8x288xf32>, vector<1x8x288xf32>, vector<1x8x288xf32>, vector<1x8x288xf32>, vector<1x8x288xf32>, vector<1x8x288xf32>, vector<1x8x288xf32>, vector<1x8x288xf32>, vector<1x8x288xf32> -> vector<1x72x288xf32>
    %49 = arith.truncf %48 : vector<1x72x288xf32> to vector<1x72x288xbf16>
    %c0_17 = arith.constant 0 : index
    %c0_18 = arith.constant 0 : index
    %50 = vector.load %arg6[%c0_17, %c0_18] : memref<8x72xbf16, #tpu.memory_space<vmem>>, vector<8x72xbf16>
    %51 = vector.shape_cast %50 : vector<8x72xbf16> to vector<1x8x72xbf16>
    "tpu.trace_start"() <{level = 10 : i32, message = "bok,bkn->bon"}> : () -> ()
    %cst_19 = arith.constant dense<0.000000e+00> : vector<1x8x288xf32>
    %52 = tpu.matmul %51, %49, %cst_19 {dimension_numbers = #tpu.dot_dimension_numbers<[2], [1], [1], [2], [0, 0, 0, 1, 1, 2], [0], [0]>} : vector<1x8x72xbf16>, vector<1x72x288xbf16>, vector<1x8x288xf32> -> vector<1x8x288xf32>
    "tpu.trace_stop"() : () -> ()
    %c0_20 = arith.constant 0 : index
    %c0_21 = arith.constant 0 : index
    %53 = vector.load %arg7[%c0_20, %c0_21] : memref<8x1xf32, #tpu.memory_space<vmem>>, vector<8x1xf32>
    %54 = vector.shape_cast %53 : vector<8x1xf32> to vector<1x8x1xf32>
    %55 = vector.broadcast %54 : vector<1x8x1xf32> to vector<1x8x288xf32>
    %56 = arith.addf %52, %55 : vector<1x8x288xf32>
    %57 = arith.addf %9, %56 : vector<1x8x288xf32>
    %58 = vector.shape_cast %57 : vector<1x8x288xf32> to vector<1x8x16x18xf32>
    %59 = vector.extract_strided_slice %58 {offsets = [0, 0, 0, 0], sizes = [1, 8, 16, 16], strides = [1, 1, 1, 1]} : vector<1x8x16x18xf32> to vector<1x8x16x16xf32>
    %60 = vector.shape_cast %59 : vector<1x8x16x16xf32> to vector<1x8x8x2x16xf32>
    %61 = vector.extract_strided_slice %60 {offsets = [0, 0, 0, 0, 0], sizes = [1, 8, 8, 1, 16], strides = [1, 1, 1, 1, 1]} : vector<1x8x8x2x16xf32> to vector<1x8x8x1x16xf32>
    %62 = vector.shape_cast %61 : vector<1x8x8x1x16xf32> to vector<1x8x8x16xf32>
    %63 = vector.extract_strided_slice %60 {offsets = [0, 0, 0, 1, 0], sizes = [1, 8, 8, 1, 16], strides = [1, 1, 1, 1, 1]} : vector<1x8x8x2x16xf32> to vector<1x8x8x1x16xf32>
    %64 = vector.shape_cast %63 : vector<1x8x8x1x16xf32> to vector<1x8x8x16xf32>
    %65 = arith.addf %62, %64 : vector<1x8x8x16xf32>
    %66 = vector.shape_cast %65 : vector<1x8x8x16xf32> to vector<1x8x8x8x2xf32>
    %67 = vector.extract_strided_slice %66 {offsets = [0, 0, 0, 0, 0], sizes = [1, 8, 8, 8, 1], strides = [1, 1, 1, 1, 1]} : vector<1x8x8x8x2xf32> to vector<1x8x8x8x1xf32>
    %68 = vector.shape_cast %67 : vector<1x8x8x8x1xf32> to vector<1x8x8x8xf32>
    %69 = vector.extract_strided_slice %66 {offsets = [0, 0, 0, 0, 1], sizes = [1, 8, 8, 8, 1], strides = [1, 1, 1, 1, 1]} : vector<1x8x8x8x2xf32> to vector<1x8x8x8x1xf32>
    %70 = vector.shape_cast %69 : vector<1x8x8x8x1xf32> to vector<1x8x8x8xf32>
    %71 = arith.addf %68, %70 : vector<1x8x8x8xf32>
    %cst_22 = arith.constant 2.500000e-01 : f32
    %72 = vector.broadcast %cst_22 : f32 to vector<1x8x8x8xf32>
    %73 = arith.mulf %71, %72 : vector<1x8x8x8xf32>
    %74 = vector.shape_cast %73 : vector<1x8x8x8xf32> to vector<1x8x64xf32>
    %c0_23 = arith.constant 0 : index
    %c0_24 = arith.constant 0 : index
    %c0_25 = arith.constant 0 : index
    %75 = vector.load %arg9[%c0_23, %c0_24, %c0_25] : memref<1x8x64xf32, #tpu.memory_space<vmem>>, vector<1x8x64xf32>
    tpu.vector_store %arg9[%c0_23, %c0_24, %c0_25], %74 {strides = array<i32>} : memref<1x8x64xf32, #tpu.memory_space<vmem>>, vector<1x8x64xf32>,
    return
  }
  func.func @transform_0(%arg0: i32) -> (i32, i32, i32) {
    %c0_i32 = arith.constant 0 : i32
    %c0_i32_0 = arith.constant 0 : i32
    %c0_i32_1 = arith.constant 0 : i32
    return %arg0, %c0_i32, %c0_i32_0 : i32, i32, i32
  }
  func.func @transform_1(%arg0: i32) -> (i32, i32) {
    %c0_i32 = arith.constant 0 : i32
    %c0_i32_0 = arith.constant 0 : i32
    %c0_i32_1 = arith.constant 0 : i32
    return %c0_i32, %c0_i32_0 : i32, i32
  }
  func.func @transform_2(%arg0: i32) -> (i32, i32) {
    %c0_i32 = arith.constant 0 : i32
    %c0_i32_0 = arith.constant 0 : i32
    %c0_i32_1 = arith.constant 0 : i32
    return %c0_i32, %c0_i32_0 : i32, i32
  }
  func.func @transform_3(%arg0: i32) -> (i32, i32) {
    %c0_i32 = arith.constant 0 : i32
    %c0_i32_0 = arith.constant 0 : i32
    %c0_i32_1 = arith.constant 0 : i32
    return %c0_i32, %c0_i32_0 : i32, i32
  }
  func.func @transform_4(%arg0: i32) -> (i32, i32) {
    %c0_i32 = arith.constant 0 : i32
    %c0_i32_0 = arith.constant 0 : i32
    %c0_i32_1 = arith.constant 0 : i32
    return %c0_i32, %c0_i32_0 : i32, i32
  }
  func.func @transform_5(%arg0: i32) -> (i32, i32) {
    %c0_i32 = arith.constant 0 : i32
    %c0_i32_0 = arith.constant 0 : i32
    %c0_i32_1 = arith.constant 0 : i32
    return %c0_i32, %c0_i32_0 : i32, i32
  }
  func.func @transform_6(%arg0: i32) -> (i32, i32) {
    %c0_i32 = arith.constant 0 : i32
    %c0_i32_0 = arith.constant 0 : i32
    %c0_i32_1 = arith.constant 0 : i32
    return %c0_i32, %c0_i32_0 : i32, i32
  }
  func.func @transform_7(%arg0: i32) -> (i32, i32) {
    %c0_i32 = arith.constant 0 : i32
    %c0_i32_0 = arith.constant 0 : i32
    %c0_i32_1 = arith.constant 0 : i32
    return %c0_i32, %c0_i32_0 : i32, i32
  }
  func.func @transform_8(%arg0: i32) -> (i32, i32, i32) {
    %c0_i32 = arith.constant 0 : i32
    %c0_i32_0 = arith.constant 0 : i32
    %c0_i32_1 = arith.constant 0 : i32
    return %arg0, %c0_i32, %c0_i32_0 : i32, i32, i32
  }
}

</mosaic_0001>

<bundles_post_ra>
// kernel: tpu_custom_call.1
= control target key start
LH: loop header
LB: loop body
LE: loop exit
PB: predicated region body
PF: predicated region fallthrough
CT: control target
= control target key end

     0   :  { %13 = vsyncpa [#allocation3], 0  ;;  %s19093_s0 = inlined_call_operand.vmem [shape: f32[2,4,342], index: 0, kind: input, shape index: {}]   ;;  %s19094_s1 = inlined_call_operand.vmem [shape: bf16[8,4], index: 1, kind: input, shape index: {}]   ;;  %s19095_s2 = inlined_call_operand.vmem [shape: f32[8,1], index: 2, kind: input, shape index: {}]   ;;  %s19096_s3 = inlined_call_operand.vmem [shape: bf16[8,36], index: 3, kind: input, shape index: {}]   ;;  %s19097_s4 = inlined_call_operand.vmem [shape: f32[8,1], index: 4, kind: input, shape index: {}]   ;;  %s19098_s5 = inlined_call_operand.vmem [shape: bf16[8,72], index: 5, kind: input, shape index: {}]   ;;  %s19099_s6 = inlined_call_operand.vmem [shape: f32[8,1], index: 6, kind: input, shape index: {}]   ;;  %s19100_s7 = inlined_call_operand.vmem [shape: f32[1,288], index: 7, kind: input, shape index: {}]   ;;  %s19101_s8 = inlined_call_operand.hbm [shape: f32[2,8,64], index: 8, kind: output, shape index: {}]  }
   0x1   :  { %15 = vsyncpa [#allocation3 + $0x1], 0  ;;  %s10475_s27 = smov 0   ;;  %s10477_s28 = smov 0  }
   0x2   :  { %s10479_s29 = smov 0   ;;  %s10481_s30 = smov 0  }
   0x3 LB: > { %s10496_s9 = sadd.s32 4294967295, %s10389_s30   ;;  %s9983_s10 = sadd.s32 4294967294, %s10389_s30   ;;  %s10389_s30 = sphi %s10481_s30, %s21492_s30   ;;  %s10385_s29 = sphi %s10479_s29, %s21491_s29   ;;  %s10381_s28 = sphi %s10477_s28, %s21490_s28   ;;  %s10377_s27 = sphi %s10475_s27, %s21489_s27  }
   0x4   : > { %s10500_s11 = sadd.s32 1, %s10389_s30   ;;  %s201_s12 = sadd.s32 1, %s10385_s29 }
   0x5   : > { %s198_s13 = ssub.s32 %s10389_s30, %s10500_s11  ;;  %p211_p0 = scmp.ne.s32.totalorder %s10385_s29, %s10381_s28 }
   0x6   : > { %p199_p1 = scmp.eq.s32.totalorder %s198_s13, 0  ;;  %p212_p2 = scmp.eq.s32.totalorder %s10496_s9, 1 }
   0x7   : > { %p217_p3 = scmp.ne.s32.totalorder %s10381_s28, %s10377_s27  ;;  %p218_p4 = scmp.eq.s32.totalorder %s9983_s10, 1 }
   0x8   : > { %s10511_s14 = scalar_select %p199_p1, %s10385_s29, %s201_s12  }
   0x9   : > { %p10513_p5 = por %p212_p2, %p211_p0  ;;  %p10517_p6 = por %p218_p4, %p217_p3 }
   0xa   : > { %p9986_p7 = scmp.ge.s32.totalorder %s10389_s30, 1  ;;  %p265_p8 = scmp.lt.s32.totalorder %s10389_s30, 3 }
   0xc   : > { %p266_p9 = pnand %p9986_p7, %p265_p8 }
   0xe   : > { %269 = sbr.rel (%p266_p9) target bundleno = 2902 (0xb56), region = 52 }
  0x15   : > { %v314_v0 = vld [vmem:[%s19095_s2] sm:$0xff]  ;;  %p299_p10 = scmp.lt.s32.totalorder %s10496_s9, 1  ;;  %v10391_v1 = vmov 0   ;;  %v19104_v2 = vmov 0.0   ;;  %s10393_s24 = smov 109   ;;  %vm10396_vm0 = vmmov 0  }
  0x16   : > { %10239 = vset.pattern.permute.xlu0 %v10391_v1  ;;  %10280 = vset.pattern.permute.xlu1 %v10391_v1  ;;  %s10394_s25 = smov 126   ;;  %s10395_s26 = smov 127   ;;  %v554_v16 = vld [vmem:[%s19097_s4] sm:$0xff]  ;;  %vm336_vm1 = vcmask 1041408   ;;  %vm332_vm2 = vcmask 31744   ;;  %vm329_vm3 = vcmask 891904  }
  0x17   : > { %317 = vperm.xlu0 %10239, %v314_v0   ;;  %s300_s19 = scalar_select %p299_p10, %s10496_s9, 1  ;;  %10117 = vmatprep.subr.bf16.mxu1 %v19104_v2  ;;  %v801_v17 = vld [vmem:[%s19099_s6] sm:$0xff]  ;;  %vm531_vm4 = vcmask 1043456   ;;  %vm441_vm5 = vcmask 1039360   ;;  %vm453_vm6 = vcmask 1031168   ;;  %vm465_vm7 = vcmask 900096  }
  0x18   : > { %378 = vmatprep.mubr.bf16.mxu0 %v10391_v1  ;;  %10119 = vmatprep.mubr.msk.bf16.mxu1 %vm10396_vm0, %v19104_v2  ;;  %s10397_s10 = smov 110   ;;  %s10398_s12 = smov 108   ;;  %v307_v20 = vld [vmem:[%s19094_s1] sm:$0xf]  ;;  %vm489_vm8 = vcmask 883712   ;;  %vm501_vm9 = vcmask 752640  }
  0x19   : > { %s10161_s20 = smul.u32 12, %s300_s19  ;;  %s10399_s13 = smov 92   ;;  %vm513_vm10 = vcmask 744448   ;;  %vm560_vm11 = vcmask 293888   ;;  %vm525_vm12 = vcmask 736256   ;;  %vm686_vm13 = vcmask 154624  }
  0x1a   : > { %s19102_s17 = smov 91   ;;  %s10401_s18 = smov 90   ;;  %vm693_vm14 = vcmask 416768   ;;  %vm10403_vm15 = vmmov 1  }
  0x1b   : > { %s303_s23 = scalar_lea.vmem %s19093_s0, %s10161_s20  ;;  %s10402_s22 = smov 19  }
  0x1c   : > { %v306_v3 = vld [vmem:[%s303_s23 + $0x8] sm:$0xf]  ;;  %v305_v4 = vld [vmem:[%s303_s23] sm:$0xff]  ;;  %s19493_s23 = smov 91   ;;  %s10406_s19 = smov 56  }
  0x1d   : > { %v313_v5 = vpack.c.bf16 %v306_v3, %v306_v3  ;;  %v10535_v6 = vmax.f32 %v305_v4, 0.0  ;;  %v311_v7 = vpack.c.bf16 %v305_v4, %v305_v4  ;;  %v10537_v8 = vmax.f32 %v306_v3, 0.0  ;;  %s10407_s20 = smov 74   ;;  %s10408_s21 = smov 20  }
  0x1e   : > { %v309_v11 = vcombine.high %v305_v4, %v305_v4 }
  0x1f   : > { %327 = vrot.lane.b32.xlu1 %v313_v5, %s10393_s24  ;;  %323 = vrot.lane.b32.xlu0 %v311_v7, %s10393_s24  ;;  %v433_v9 = vcombine.low %v10535_v6, %v10535_v6  ;;  %v10545_v10 = vcombine.high %v10535_v6, %v10535_v6  ;;  %v434_v15 = vcombine.low %v10537_v8, %v10537_v8 }
  0x20   : > { %v312_v14 = vpack.c.bf16 %v309_v11, %v309_v11 }
  0x21   : > { %v10240_v12 = vpack.i.bf16 %v10535_v6, %v433_v9  ;;  %v10245_v13 = vpack.i.bf16 %v10545_v10, %v10535_v6 }
  0x23   : > { %451 = vrot.lane.b32.xlu1 %v10537_v8, %s10394_s25  ;;  %10241 = vrot.lane.b32.xlu0 %v10240_v12, %s10395_s26 }
  0x27   : > { %10246 = vrot.lane.b32.xlu0 %v10245_v13, %s10394_s25  ;;  %325 = vrot.lane.b32.xlu1 %v312_v14, %s10393_s24 }
  0x2b   : > { %10251 = vrot.lane.b32.xlu0 %v10240_v12, %s10397_s10  ;;  %439 = vrot.lane.b32.xlu1 %v434_v15, %s10395_s26 }
  0x2f   : > { %10256 = vrot.lane.b32.xlu0 %v10245_v13, %s10393_s24  ;;  %463 = vrot.lane.b32.xlu1 %v434_v15, %s10397_s10 }
  0x33   : > { %10261 = vrot.lane.b32.xlu0 %v10240_v12, %s10398_s12  ;;  %475 = vrot.lane.b32.xlu1 %v10537_v8, %s10393_s24 }
  0x37   : > { %10266 = vrot.lane.b32.xlu0 %v10245_v13, %s10399_s13  ;;  %487 = vrot.lane.b32.xlu1 %v434_v15, %s10398_s12 }
  0x3b   : > { %10271 = vrot.lane.b32.xlu0 %v10240_v12, %s19102_s17  ;;  %499 = vrot.lane.b32.xlu1 %v10537_v8, %s10399_s13 }
  0x3f   : > { %10276 = vrot.lane.b32.xlu0 %v10245_v13, %s10401_s18  ;;  %511 = vrot.lane.b32.xlu1 %v434_v15, %s19102_s17  ;;  %s10405_s17 = smov 4  }
  0x43   : > { %557 = vperm.xlu0 %10239, %v554_v16   ;;  %523 = vrot.lane.b32.xlu1 %v10537_v8, %s10401_s18 }
  0x47   : > { %804 = vperm.xlu1 %10280, %v801_v17  }
  0x91   : > { %v328_v18 = vpop.permute.xlu1 %327 }
  0x92   : > { %v344_v19 = vsel %vm336_vm1, %v328_v18, 0 }
  0x93   : > { %10118 = vmatpush3.bf16.msra.mxu1 %v344_v19 }
  0x94   : > { %10123 = vmatprep.subr.bf16.mxu1 %v19104_v2 }
  0x95   : > { %v452_v21 = vpop.permute.xlu1 %451 }
  0x96   : > { %v10586_v22 = vpop.permute.xlu0 %317  ;;  %10120 = vmatmul.mubr.msk.bf16.vlgmr.msra.gmra.mrb[0].mxu1 %vm332_vm2, %v307_v20 }
  0x97   : > { %10129 = vmatprep.mubr.msk.bf16.mxu1 %vm10396_vm0, %v19104_v2 }
  0x99   : > { %v326_v23 = vpop.permute.xlu1 %325 }
  0x9a   : > { %v324_v24 = vpop.permute.xlu0 %323  ;;  %v331_v25 = vsel %vm329_vm3, %v326_v23, %v328_v18 }
  0x9b   : > { %9989 = vmatprep.subr.msk.bf16.mxu0 %vm336_vm1, %v331_v25  ;;  %v330_v26 = vsel %vm329_vm3, %v324_v24, %v326_v23 }
  0x9c   : > { %v338_v27 = vsel %vm336_vm1, %v330_v26, 0 }
  0x9d   : > { %347 = vmatpush1.bf16.msra.mxu0 %v338_v27  ;;  %v440_v28 = vpop.permute.xlu1 %439 }
  0x9e   : > { %v10242_v29 = vpop.permute.xlu0 %10241  ;;  %v534_v30 = vsel %vm531_vm4, %v10537_v8, %v440_v28 }
  0x9f   : > { %v10244_v34 = vunpack.i.h.bf16 %v10242_v29  ;;  %v10243_v35 = vunpack.i.l.bf16 %v10242_v29 }
  0xa0   : > { %9990 = vmatmul.mubr.msk.bf16.vlgmr.msra.gmra.mrb[0].mxu0 %vm332_vm2, %v307_v20  ;;  %v553_v20 = vld [vmem:[%s19096_s3] sm:$0xf] }
  0xa1   : > { %v464_v31 = vpop.permute.xlu1 %463  ;;  %605 = vmatprep.mubr.bf16.mxu0 %v10391_v1  ;;  %v442_v41 = vsel %vm441_vm5, %v10243_v35, %v10244_v34  ;;  %v443_v44 = vsel %vm441_vm5, %v10244_v34, %v440_v28 }
  0xa2   : > { %v537_v32 = vsel %vm531_vm4, %v452_v21, %v464_v31  ;;  %v10247_v33 = vpop.permute.xlu0 %10246  ;;  %v533_v51 = vsel %vm531_vm4, %v10545_v10, %v443_v44  ;;  %v532_v53 = vsel %vm531_vm4, %v10535_v6, %v442_v41 }
  0xa3   : > { %v546_v36 = vpack.c.bf16 %v537_v32, %v534_v30  ;;  %v10249_v37 = vunpack.i.h.bf16 %v10247_v33  ;;  %v10248_v38 = vunpack.i.l.bf16 %v10247_v33 }
  0xa5   : > { %10124 = vmatpush3.bf16.msra.mxu1 %v546_v36  ;;  %v476_v39 = vpop.permute.xlu1 %475  ;;  %v454_v45 = vsel %vm453_vm6, %v10248_v38, %v10249_v37  ;;  %v455_v48 = vsel %vm453_vm6, %v10249_v37, %v452_v21  ;;  %v659_v38 = vlaneseq }
  0xa6   : > { %v10252_v40 = vpop.permute.xlu0 %10251  ;;  %10125 = vmatprep.subr.bf16.mxu1 %v19104_v2 }
  0xa7   : > { %v10254_v42 = vunpack.i.h.bf16 %v10252_v40  ;;  %v10253_v43 = vunpack.i.l.bf16 %v10252_v40  ;;  %v9079_v40 = vand.u32 127, %v659_v38 }
  0xa9   : > { %v466_v46 = vsel %vm465_vm7, %v10253_v43, %v10254_v42  ;;  %v488_v47 = vpop.permute.xlu1 %487  ;;  %v467_v49 = vsel %vm465_vm7, %v10254_v42, %v464_v31  ;;  %v657_v43 = vld [vmem:[%s19100_s7] sm:$0x7] }
  0xaa   : > { %v10257_v50 = vpop.permute.xlu0 %10256  ;;  %v536_v52 = vsel %vm531_vm4, %v455_v48, %v467_v49  ;;  %v535_v54 = vsel %vm531_vm4, %v454_v45, %v466_v46  ;;  %v540_v60 = vsel %vm531_vm4, %v476_v39, %v488_v47 }
  0xab   : > { %v545_v55 = vpack.c.bf16 %v536_v52, %v533_v51  ;;  %v544_v56 = vpack.c.bf16 %v535_v54, %v532_v53  ;;  %v10259_v4 = vunpack.i.h.bf16 %v10257_v50  ;;  %v10258_v5 = vunpack.i.l.bf16 %v10257_v50 }
  0xad   : > { %573 = vmatprep.subr.bf16.mxu0 %v545_v55  ;;  %v500_v57 = vpop.permute.xlu1 %499  ;;  %v478_v15 = vsel %vm329_vm3, %v10258_v5, %v10259_v4  ;;  %v479_v17 = vsel %vm329_vm3, %v10259_v4, %v476_v39  ;;  %v10642_v39 = vshrl.u32 %v659_v38, 7 }
  0xae   : > { %v10262_v58 = vpop.permute.xlu0 %10261  ;;  %574 = vmatpush1.bf16.msra.mxu0 %v544_v56 }
  0xaf   : > { %v10264_v63 = vunpack.i.h.bf16 %v10262_v58  ;;  %v10263_v0 = vunpack.i.l.bf16 %v10262_v58  ;;  %v10645_v41 = vsub.s32 %v9079_v40, %v10642_v39  ;;  %v669_v42 = vsub.s32 2, %v10642_v39 }
  0xb0   : > { %v661_v52 = vsub.s32 0, %v10642_v39  ;;  %v665_v53 = vsub.s32 1, %v10642_v39 }
  0xb1   : > { %v512_v59 = vpop.permute.xlu1 %511  ;;  %v490_v11 = vsel %vm489_vm8, %v10263_v0, %v10264_v63  ;;  %v491_v14 = vsel %vm489_vm8, %v10264_v63, %v488_v47  ;;  %19492 = vst [vmem:[#allocation5_spill] sm:$0xff] %v10645_v41  ;;  %v670_v47 = vrot.slane %v657_v43, %v669_v42 }
  0xb2   : > { %v543_v61 = vsel %vm531_vm4, %v500_v57, %v512_v59  ;;  %v10267_v62 = vpop.permute.xlu0 %10266  ;;  %v539_v25 = vsel %vm531_vm4, %v479_v17, %v491_v14  ;;  %v538_v27 = vsel %vm531_vm4, %v478_v15, %v490_v11  ;;  %v662_v56 = vrot.slane %v657_v43, %v661_v52 }
  0xb3   : > { %v549_v3 = vpack.c.bf16 %v543_v61, %v540_v60  ;;  %v10269_v6 = vunpack.i.h.bf16 %v10267_v62  ;;  %v10268_v7 = vunpack.i.l.bf16 %v10267_v62 }
  0xb5   : > { %10126 = vmatpush3.bf16.msra.mxu1 %v549_v3  ;;  %v524_v8 = vpop.permute.xlu1 %523  ;;  %v502_v18 = vsel %vm501_vm9, %v10268_v7, %v10269_v6  ;;  %v503_v21 = vsel %vm501_vm9, %v10269_v6, %v500_v57 }
  0xb6   : > { %v552_v9 = vpack.c.bf16 %v524_v8, %v524_v8  ;;  %v10272_v10 = vpop.permute.xlu0 %10271  ;;  %10127 = vmatprep.subr.bf16.mxu1 %v19104_v2 }
  0xb7   : > { %v10274_v12 = vunpack.i.h.bf16 %v10272_v10  ;;  %v10273_v13 = vunpack.i.l.bf16 %v10272_v10 }
  0xb8   : > { %v571_v16 = vsel %vm336_vm1, %v552_v9, 0 }
  0xb9   : > { %v514_v19 = vsel %vm513_vm10, %v10273_v13, %v10274_v12  ;;  %10128 = vmatpush3.bf16.msra.mxu1 %v571_v16  ;;  %v515_v23 = vsel %vm513_vm10, %v10274_v12, %v512_v59  ;;  %v666_v59 = vrot.slane %v657_v43, %v665_v53 }
  0xba   : > { %v10277_v24 = vpop.permute.xlu0 %10276  ;;  %v542_v26 = vsel %vm531_vm4, %v503_v21, %v515_v23  ;;  %v541_v28 = vsel %vm531_vm4, %v502_v18, %v514_v19  ;;  %10133 = vmatprep.subr.bf16.mxu1 %v19104_v2 }
  0xbb   : > { %v10279_v29 = vunpack.i.h.bf16 %v10277_v24  ;;  %v10278_v30 = vunpack.i.l.bf16 %v10277_v24  ;;  %v548_v31 = vpack.c.bf16 %v542_v26, %v539_v25  ;;  %v547_v32 = vpack.c.bf16 %v541_v28, %v538_v27 }
  0xbc   : > { %10130 = vmatmul.mubr.msk.bf16.vlgmr.msra.gmra.mrb[4].mxu1 %vm560_vm11, %v553_v20 }
  0xbd   : > { %575 = vmatprep.subr.bf16.mxu0 %v548_v31  ;;  %v527_v33 = vsel %vm525_vm12, %v10279_v29, %v524_v8  ;;  %v526_v34 = vsel %vm525_vm12, %v10278_v30, %v10279_v29  ;;  %10143 = vmatprep.mubr.msk.bf16.mxu1 %vm10396_vm0, %v19104_v2  ;;  %vm10001_vm0 = vmpackc.low %vm10403_vm15, %vm693_vm14 }
  0xbe   : > { %576 = vmatpush1.bf16.msra.mxu0 %v547_v32  ;;  %v551_v35 = vpack.c.bf16 %v527_v33, %v527_v33  ;;  %v550_v36 = vpack.c.bf16 %v526_v34, %v526_v34 }
  0xc0   : > { %9992 = vmatprep.subr.msk.bf16.mxu0 %vm336_vm1, %v551_v35  ;;  %v565_v37 = vsel %vm336_vm1, %v550_v36, 0  ;;  %vm9995_vm1 = vmneg %vm686_vm13 }
  0xc2   : > { %578 = vmatpush1.bf16.msra.mxu0 %v565_v37  ;;  %v558_v44 = vpop.permute.xlu0 %557 }
  0xc5   : > { %9993 = vmatmul.mubr.msk.bf16.vlgmr.msra.gmra.mrb[4].mxu0 %vm560_vm11, %v553_v20  ;;  %vm9996_vm11 = vmpackc.low %vm10403_vm15, %vm9995_vm1  ;;  %vm9900_vm15 = vcmask 261120   ;;  %vm9904_vm1 = vcmask 392192  }
  0xc6   : > { %852 = vmatprep.mubr.bf16.mxu0 %v10391_v1  ;;  %v10653_v5 = vpop.permute.xlu1 %804 }
 0x18f   : > { %v648_v45 = vpop.f32.mrb[4].mxu1 }
 0x190   : > { %v649_v46 = vadd.f32 %v648_v45, %v558_v44  ;;  %v10131_v48 = vpop.f32.mrb[5].mxu1 }
 0x191   : > { %v651_v49 = vpop.f32.mrb[6].mxu1 }
 0x192   : > { %v656_v1 = vmax.f32 %v649_v46, 0.0  ;;  %v10132_v50 = vpop.f32.mrb[7].mxu1 }
 0x194   : > { %v676_v51 = vmul.f32 %v670_v47, %v656_v1 }
 0x196   : > { %684 = vrot.lane.b32.xlu0 %v676_v51, %s10402_s22 }
 0x198   : > { %v607_v54 = vpop.f32.mrb[4].mxu0 }
 0x199   : > { %v608_v55 = vadd.f32 %v607_v54, %v558_v44  ;;  %v609_v57 = vpop.f32.mrb[5].mxu0 }
 0x19a   : > { %v610_v58 = vadd.f32 %v609_v57, %v558_v44  ;;  %v611_v60 = vpop.f32.mrb[6].mxu0 }
 0x19b   : > { %v654_v61 = vmax.f32 %v608_v55, 0.0  ;;  %v612_v62 = vpop.f32.mrb[7].mxu0 }
 0x19c   : > { %v655_v63 = vmax.f32 %v610_v58, 0.0 }
 0x19d   : > { %v674_v0 = vmul.f32 %v662_v56, %v654_v61 }
 0x19e   : > { %v675_v3 = vmul.f32 %v666_v59, %v655_v63 }
 0x1a0   : > { %v10281_v4 = vpack.i.bf16 %v675_v3, %v674_v0 }
 0x1a2   : > { %10282 = vrot.lane.b32.xlu1 %v10281_v4, %s10402_s22  ;;  %s10409_s22 = smov 38  }
 0x208   : > { %v685_v9 = vpop.permute.xlu0 %684 }
 0x214   : > { %v10283_v6 = vpop.permute.xlu1 %10282 }
 0x215   : > { %v10285_v7 = vunpack.i.h.bf16 %v10283_v6  ;;  %v10284_v8 = vunpack.i.l.bf16 %v10283_v6 }
 0x217   : > { %v688_v10 = vsel %vm686_vm13, %v10285_v7, %v685_v9  ;;  %v687_v11 = vsel %vm686_vm13, %v10284_v8, %v10285_v7  ;;  %v692_v12 = vsel %vm686_vm13, 0.0, %v10284_v8  ;;  %vm9896_vm13 = vcmask 130048  }
 0x218   : > { %v694_v13 = vsel %vm693_vm14, %v688_v10, 0.0  ;;  %v10286_v14 = vpack.i.bf16 %v687_v11, %v692_v12  ;;  %vm9898_vm14 = vcmask 195584  }
 0x219   : > { %701 = vrot.lane.b32.xlu0 %v694_v13, %s10395_s26 }
 0x21a   : > { %10287 = vrot.lane.b32.xlu1 %v10286_v14, %s10395_s26 }
 0x21d   : > { %712 = vrot.lane.b32.xlu0 %v694_v13, %s10394_s25 }
 0x21e   : > { %10292 = vrot.lane.b32.xlu1 %v10286_v14, %s10394_s25 }
 0x221   : > { %723 = vrot.lane.b32.xlu0 %v694_v13, %s10397_s10 }
 0x222   : > { %10297 = vrot.lane.b32.xlu1 %v10286_v14, %s10397_s10 }
 0x225   : > { %734 = vrot.lane.b32.xlu0 %v694_v13, %s10393_s24 }
 0x226   : > { %10302 = vrot.lane.b32.xlu1 %v10286_v14, %s10393_s24  ;;  %s10413_s24 = smov 76  }
 0x229   : > { %745 = vrot.lane.b32.xlu0 %v694_v13, %s10398_s12 }
 0x22a   : > { %10307 = vrot.lane.b32.xlu1 %v10286_v14, %s10398_s12  ;;  %s10414_s12 = smov 58  }
 0x22d   : > { %756 = vrot.lane.b32.xlu0 %v694_v13, %s10399_s13 }
 0x22e   : > { %10312 = vrot.lane.b32.xlu1 %v10286_v14, %s10399_s13 }
 0x231   : > { %767 = vrot.lane.b32.xlu0 %v694_v13, %s19493_s23 }
 0x232   : > { %10317 = vrot.lane.b32.xlu1 %v10286_v14, %s19493_s23  ;;  %s10410_s23 = smov 2  }
 0x235   : > { %778 = vrot.lane.b32.xlu0 %v694_v13, %s10401_s18 }
 0x236   : > { %10322 = vrot.lane.b32.xlu1 %v10286_v14, %s10401_s18  ;;  %s10404_s18 = smov 114  }
 0x28b   : > { %v702_v15 = vpop.permute.xlu0 %701 }
 0x28c   : > { %v10002_v16 = vpack.c.bf16 %v702_v15, %v688_v10  ;;  %v10288_v17 = vpop.permute.xlu1 %10287 }
 0x28d   : > { %v10290_v18 = vunpack.i.h.bf16 %v10288_v17  ;;  %v10289_v19 = vunpack.i.l.bf16 %v10288_v17  ;;  %v800_v17 = vld [vmem:[%s19098_s5] sm:$0xf] }
 0x28e   : > { %10134 = vmatpush3.bf16.msk.msra.mxu1 %vm10001_vm0, %v10002_v16  ;;  %vm9902_vm0 = vcmask 326656  }
 0x28f   : > { %v703_v20 = vsel %vm441_vm5, %v10289_v19, %v10290_v18  ;;  %v713_v21 = vpop.permute.xlu0 %712  ;;  %v704_v23 = vsel %vm441_vm5, %v10290_v18, %v702_v15  ;;  %10135 = vmatprep.subr.bf16.mxu1 %v19104_v2  ;;  %vm2807_vm5 = vcmask 1043459  }
 0x290   : > { %v9997_v24 = vpack.c.bf16 %v703_v20, %v10284_v8  ;;  %v10293_v25 = vpop.permute.xlu1 %10292  ;;  %v786_v26 = vpack.c.bf16 %v704_v23, %v687_v11  ;;  %v10147_v23 = vadd.f32 %v10653_v5, %v10586_v22 }
 0x291   : > { %v10295_v27 = vunpack.i.h.bf16 %v10293_v25  ;;  %v10294_v28 = vunpack.i.l.bf16 %v10293_v25 }
 0x292   : > { %820 = vmatprep.subr.bf16.mxu0 %v786_v26 }
 0x293   : > { %v724_v29 = vpop.permute.xlu0 %723  ;;  %9998 = vmatpush1.bf16.msk.msra.mxu0 %vm9996_vm11, %v9997_v24  ;;  %v714_v34 = vsel %vm453_vm6, %v10294_v28, %v10295_v27  ;;  %v715_v37 = vsel %vm453_vm6, %v10295_v27, %v713_v21  ;;  %vm2809_vm6 = vcmask 1045509   ;;  %vm9906_vm11 = vcmask 457728  }
 0x294   : > { %v790_v30 = vpack.c.bf16 %v724_v29, %v713_v21  ;;  %v10298_v31 = vpop.permute.xlu1 %10297 }
 0x295   : > { %v10300_v32 = vunpack.i.h.bf16 %v10298_v31  ;;  %v10299_v33 = vunpack.i.l.bf16 %v10298_v31 }
 0x296   : > { %10136 = vmatpush3.bf16.msra.mxu1 %v790_v30 }
 0x297   : > { %v725_v35 = vsel %vm465_vm7, %v10299_v33, %v10300_v32  ;;  %v735_v36 = vpop.permute.xlu0 %734  ;;  %v726_v38 = vsel %vm465_vm7, %v10300_v32, %v724_v29  ;;  %10137 = vmatprep.subr.bf16.mxu1 %v19104_v2  ;;  %v10417_v33 = vmov 1983009808   ;;  %vm2811_vm7 = vcmask 1047559  }
 0x298   : > { %v10303_v40 = vpop.permute.xlu1 %10302  ;;  %v789_v42 = vpack.c.bf16 %v726_v38, %v715_v37  ;;  %v788_v43 = vpack.c.bf16 %v725_v35, %v714_v34  ;;  %v962_v34 = vunpack.c.l.s4 %v10417_v33 }
 0x299   : > { %v10305_v44 = vunpack.i.h.bf16 %v10303_v40  ;;  %v10304_v45 = vunpack.i.l.bf16 %v10303_v40 }
 0x29a   : > { %822 = vmatprep.subr.bf16.mxu0 %v789_v42  ;;  %v963_v37 = vunpack.c.0.s8 %v962_v34 }
 0x29b   : > { %v746_v46 = vpop.permute.xlu0 %745  ;;  %823 = vmatpush1.bf16.msra.mxu0 %v788_v43  ;;  %v736_v50 = vsel %vm329_vm3, %v10304_v45, %v10305_v44  ;;  %v737_v53 = vsel %vm329_vm3, %v10305_v44, %v735_v36  ;;  %vm807_vm3 = vcmask 588800  }
 0x29c   : > { %v793_v47 = vpack.c.bf16 %v746_v46, %v735_v36  ;;  %v10308_v48 = vpop.permute.xlu1 %10307  ;;  %v10732_v42 = vsub.s32 %v963_v37, %v10642_v39 }
 0x29d   : > { %v10310_v49 = vunpack.i.h.bf16 %v10308_v48  ;;  %v10309_v1 = vunpack.i.l.bf16 %v10308_v48 }
 0x29e   : > { %10138 = vmatpush3.bf16.msra.mxu1 %v793_v47  ;;  %19494 = vst [vmem:[#allocation6_spill] sm:$0xff] %v10732_v42 }
 0x29f   : > { %v747_v51 = vsel %vm489_vm8, %v10309_v1, %v10310_v49  ;;  %v757_v52 = vpop.permute.xlu0 %756  ;;  %v748_v54 = vsel %vm489_vm8, %v10310_v49, %v746_v46  ;;  %10139 = vmatprep.subr.bf16.mxu1 %v19104_v2  ;;  %v10418_v49 = vmov 1934713408   ;;  %vm2799_vm8 = vcmask 1042434  }
 0x2a0   : > { %v10313_v55 = vpop.permute.xlu1 %10312  ;;  %v792_v56 = vpack.c.bf16 %v748_v54, %v737_v53  ;;  %v791_v57 = vpack.c.bf16 %v747_v51, %v736_v50  ;;  %v1026_v1 = vunpack.c.l.s4 %v10418_v49 }
 0x2a1   : > { %v10315_v58 = vunpack.i.h.bf16 %v10313_v55  ;;  %v10314_v59 = vunpack.i.l.bf16 %v10313_v55 }
 0x2a2   : > { %824 = vmatprep.subr.bf16.mxu0 %v792_v56  ;;  %v1027_v53 = vunpack.c.0.s8 %v1026_v1 }
 0x2a3   : > { %v768_v60 = vpop.permute.xlu0 %767  ;;  %825 = vmatpush1.bf16.msra.mxu0 %v791_v57  ;;  %v758_v3 = vsel %vm501_vm9, %v10314_v59, %v10315_v58  ;;  %v759_v7 = vsel %vm501_vm9, %v10315_v58, %v757_v52  ;;  %vm2800_vm9 = vcmask 1044484  }
 0x2a4   : > { %v796_v61 = vpack.c.bf16 %v768_v60, %v757_v52  ;;  %v10318_v62 = vpop.permute.xlu1 %10317  ;;  %v10755_v59 = vsub.s32 %v1027_v53, %v10642_v39 }
 0x2a5   : > { %v10320_v63 = vunpack.i.h.bf16 %v10318_v62  ;;  %v10319_v0 = vunpack.i.l.bf16 %v10318_v62 }
 0x2a6   : > { %10140 = vmatpush3.bf16.msra.mxu1 %v796_v61  ;;  %19495 = vst [vmem:[#allocation7_spill] sm:$0xff] %v10755_v59 }
 0x2a7   : > { %v769_v4 = vsel %vm513_vm10, %v10319_v0, %v10320_v63  ;;  %v779_v6 = vpop.permute.xlu0 %778  ;;  %v770_v8 = vsel %vm513_vm10, %v10320_v63, %v768_v60  ;;  %10141 = vmatprep.subr.bf16.mxu1 %v19104_v2  ;;  %vm2802_vm10 = vcmask 1046534  }
 0x2a8   : > { %v799_v9 = vpack.c.bf16 %v779_v6, %v779_v6  ;;  %v10323_v10 = vpop.permute.xlu1 %10322  ;;  %v795_v11 = vpack.c.bf16 %v770_v8, %v759_v7  ;;  %v794_v12 = vpack.c.bf16 %v769_v4, %v758_v3 }
 0x2a9   : > { %v10325_v13 = vunpack.i.h.bf16 %v10323_v10  ;;  %v10324_v14 = vunpack.i.l.bf16 %v10323_v10 }
 0x2aa   : > { %826 = vmatprep.subr.bf16.mxu0 %v795_v11  ;;  %v818_v15 = vsel %vm531_vm4, %v799_v9, 0 }
 0x2ab   : > { %827 = vmatpush1.bf16.msra.mxu0 %v794_v12  ;;  %10142 = vmatpush3.bf16.msra.mxu1 %v818_v15  ;;  %v781_v16 = vsel %vm525_vm12, %v10325_v13, %v779_v6  ;;  %v780_v18 = vsel %vm525_vm12, %v10324_v14, %v10325_v13  ;;  %vm9894_vm12 = vcmask 64512  }
 0x2ac   : > { %v798_v19 = vpack.c.bf16 %v781_v16, %v781_v16  ;;  %v797_v20 = vpack.c.bf16 %v780_v18, %v780_v18 }
 0x2ae   : > { %9999 = vmatprep.subr.msk.bf16.mxu0 %vm531_vm4, %v798_v19  ;;  %10144 = vmatmul.mubr.msk.bf16.vlgmr.msra.gmra.mrb[0].mxu1 %vm807_vm3, %v800_v17  ;;  %v812_v21 = vsel %vm531_vm4, %v797_v20, 0  ;;  %vm928_vm4 = vcmask 15360  }
 0x2af   : > { %829 = vmatpush1.bf16.msra.mxu0 %v812_v21 }
 0x2b2   : > { %10000 = vmatmul.mubr.msk.bf16.vlgmr.msra.gmra.mrb[0].mxu0 %vm807_vm3, %v800_v17  ;;  %vm9908_vm3 = vcmask 523264  }
 0x381   : > { %v895_v24 = vpop.f32.mrb[0].mxu1 }
 0x382   : > { %v10152_v25 = vadd.f32 %v10147_v23, %v895_v24  ;;  %v10145_v26 = vpop.f32.mrb[1].mxu1 }
 0x383   : > { %v898_v27 = vpop.f32.mrb[2].mxu1 }
 0x384   : > { %956 = vrot.lane.b32.xlu0 %v10152_v25, %s10404_s18  ;;  %v10146_v28 = vpop.f32.mrb[3].mxu1  ;;  %952 = vrot.lane.b32.xlu1 %v10152_v25, %s10405_s17 }
 0x385   : > { %v854_v29 = vpop.f32.mrb[0].mxu0 }
 0x386   : > { %v10709_v30 = vadd.f32 %v10147_v23, %v854_v29  ;;  %v856_v31 = vpop.f32.mrb[1].mxu0 }
 0x387   : > { %v858_v32 = vpop.f32.mrb[2].mxu0  ;;  %v10150_v5 = vadd.f32 %v10147_v23, %v856_v31 }
 0x388   : > { %908 = vrot.lane.b32.xlu1 %v10709_v30, %s10399_s13  ;;  %905 = vrot.lane.b32.xlu0 %v10709_v30, %s10397_s10  ;;  %v859_v22 = vpop.f32.mrb[3].mxu0  ;;  %s10411_s10 = smov 112   ;;  %s10412_s13 = smov 94  }
 0x38c   : > { %914 = vrot.lane.b32.xlu1 %v10709_v30, %s10406_s19  ;;  %911 = vrot.lane.b32.xlu0 %v10709_v30, %s10407_s20  ;;  %s10415_s20 = smov 40  }
 0x390   : > { %920 = vrot.lane.b32.xlu1 %v10709_v30, %s10408_s21  ;;  %917 = vrot.lane.b32.xlu0 %v10709_v30, %s10409_s22  ;;  %s10416_s21 = smov 22   ;;  %s10421_s22 = smov 120  }
 0x394   : > { %924 = vrot.lane.b32.xlu0 %v10709_v30, %s10410_s23  ;;  %926 = vrot.lane.b32.xlu1 %v10150_v5, %s10410_s23  ;;  %s10422_s23 = smov 118  }
 0x398   : > { %931 = vrot.lane.b32.xlu0 %v10150_v5, %s10411_s10  ;;  %934 = vrot.lane.b32.xlu1 %v10150_v5, %s10412_s13  ;;  %s10423_s10 = smov 116   ;;  %s10426_s13 = smov 24  }
 0x39c   : > { %937 = vrot.lane.b32.xlu0 %v10150_v5, %s10413_s24  ;;  %940 = vrot.lane.b32.xlu1 %v10150_v5, %s10414_s12  ;;  %s10427_s24 = smov 32   ;;  %s10428_s12 = smov 48  }
 0x3a0   : > { %943 = vrot.lane.b32.xlu0 %v10150_v5, %s10415_s20  ;;  %946 = vrot.lane.b32.xlu1 %v10150_v5, %s10416_s21  ;;  %s296_s21 = sand.u32 1, %s10381_s28  }
 0x3a4   : > { %950 = vrot.lane.b32.xlu0 %v10150_v5, %s10405_s17  ;;  %s10419_s17 = smov 124  }
 0x3f6   : > { %v10723_v35 = vpop.permute.xlu0 %956  ;;  %v10725_v36 = vpop.permute.xlu1 %952 }
 0x3fa   : > { %v10727_v38 = vpop.permute.xlu1 %908  ;;  %v10729_v40 = vpop.permute.xlu0 %905 }
 0x3fb   : > { %v959_v43 = vcombine.low %v10709_v30, %v10727_v38 }
 0x3fd   : > { %v967_v47 = vrot.slane %v959_v43, %v10732_v42 }
 0x3fe   : > { %v10736_v44 = vpop.permute.xlu1 %914  ;;  %v10738_v45 = vpop.permute.xlu0 %911 }
 0x3ff   : > { %v975_v46 = vcombine.low %v10729_v40, %v10738_v45 }
 0x401   : > { %v983_v48 = vrot.slane %v975_v46, %v10732_v42 }
 0x402   : > { %v10744_v50 = vpop.permute.xlu1 %920  ;;  %v10746_v51 = vpop.permute.xlu0 %917 }
 0x403   : > { %v1024_v52 = vcombine.high %v967_v47, %v983_v48  ;;  %v991_v54 = vcombine.low %v10736_v44, %v10744_v50  ;;  %v1023_v0 = vcombine.low %v967_v47, %v983_v48 }
 0x405   : > { %v999_v60 = vrot.slane %v991_v54, %v10732_v42  ;;  %v10760_v3 = vrot.slane %v1024_v52, %v10755_v59  ;;  %v1031_v8 = vrot.slane %v1023_v0, %v10755_v59 }
 0x406   : > { %v925_v55 = vpop.permute.xlu0 %924  ;;  %v927_v56 = vpop.permute.xlu1 %926 }
 0x407   : > { %v10750_v57 = vsel %vm928_vm4, %v925_v55, %v927_v56 }
 0x408   : > { %v1007_v58 = vcombine.low %v10746_v51, %v10750_v57 }
 0x40a   : > { %v1015_v61 = vrot.slane %v1007_v58, %v10732_v42  ;;  %v10772_v11 = vpop.permute.xlu0 %931  ;;  %v10775_v15 = vpop.permute.xlu1 %934 }
 0x40c   : > { %v1055_v62 = vcombine.low %v999_v60, %v1015_v61  ;;  %v1056_v63 = vcombine.high %v999_v60, %v1015_v61 }
 0x40e   : > { %v10763_v4 = vrot.slane %v1056_v63, %v10755_v59  ;;  %v1063_v6 = vrot.slane %v1055_v62, %v10755_v59  ;;  %v10777_v16 = vpop.permute.xlu0 %937  ;;  %v10783_v24 = vpop.permute.xlu1 %940 }
 0x40f   : > { %v1095_v32 = vcombine.low %v10772_v11, %v10777_v16  ;;  %v1111_v22 = vcombine.low %v10775_v15, %v10783_v24 }
 0x410   : > { %v1089_v7 = vcombine.low %v10760_v3, %v10763_v4  ;;  %v1090_v39 = vcombine.high %v10760_v3, %v10763_v4  ;;  %v1087_v9 = vcombine.low %v1031_v8, %v1063_v6  ;;  %v10005_v12 = vcombine.low %v1063_v6, %v1063_v6 }
 0x411   : > { %v1103_v37 = vrot.slane %v1095_v32, %v10732_v42  ;;  %v1119_v43 = vrot.slane %v1111_v22, %v10732_v42  ;;  %v1088_v56 = vcombine.high %v1031_v8, %v1063_v6  ;;  %v10007_v60 = vcombine.high %v1063_v6, %v1063_v6 }
 0x412   : > { %v1254_v10 = vrot.slane %v1087_v9, %v10732_v42  ;;  %v1261_v14 = vrot.slane %v10005_v12, %v10732_v42  ;;  %v10785_v25 = vpop.permute.xlu0 %943  ;;  %v10795_v29 = vpop.permute.xlu1 %946 }
 0x413   : > { %v1143_v5 = vcombine.low %v10795_v29, %v10723_v35  ;;  %v1159_v49 = vcombine.low %v1103_v37, %v1119_v43  ;;  %v1288_v63 = vrot.slane %v1088_v56, %v10732_v42  ;;  %v1295_v9 = vrot.slane %v10007_v60, %v10732_v42 }
 0x414   : > { %v1262_v13 = vcombine.high %v1254_v10, %v1254_v10  ;;  %v10021_v17 = vrot.slane %v1254_v10, 9  ;;  %v1263_v19 = vcombine.high %v1261_v14, %v1261_v14  ;;  %v10023_v20 = vrot.slane %v1261_v14, 9 }
 0x415   : > { %v1151_v46 = vrot.slane %v1143_v5, %v10732_v42  ;;  %v1167_v52 = vrot.slane %v1159_v49, %v10755_v59  ;;  %v1297_v6 = vcombine.high %v1295_v9, %v1295_v9  ;;  %v10029_v8 = vrot.slane %v1288_v63, 9 }
 0x416   : > { %v10022_v18 = vrot.slane %v1262_v13, 9  ;;  %v10779_v21 = vadd.f32 %v10021_v17, %v1254_v10  ;;  %v10024_v26 = vrot.slane %v1263_v19, 9  ;;  %v10791_v27 = vadd.f32 %v10023_v20, %v1261_v14  ;;  %v951_v31 = vpop.permute.xlu0 %950 }
 0x417   : > { %v10809_v33 = vsel %vm332_vm2, %v951_v31, %v10725_v36  ;;  %v1296_v14 = vcombine.high %v1288_v63, %v1288_v63  ;;  %v10031_v22 = vrot.slane %v1295_v9, 9  ;;  %v10032_v5 = vrot.slane %v1297_v6, 9 }
 0x418   : > { %v10781_v23 = vadd.f32 %v10022_v18, %v1262_v13  ;;  %1903 = vrot.lane.b32.xlu1 %v10779_v21, %s10394_s25  ;;  %v10793_v28 = vadd.f32 %v10024_v26, %v1263_v19  ;;  %v1127_v34 = vcombine.low %v10785_v25, %v10809_v33  ;;  %vm2805_vm2 = vcmask 1041409  }
 0x419   : > { %v10030_v20 = vrot.slane %v1296_v14, 9 }
 0x41a   : > { %1905 = vrot.lane.b32.xlu0 %v10781_v23, %s10394_s25  ;;  %v1135_v47 = vrot.slane %v1127_v34, %v10732_v42  ;;  %v10840_v34 = vadd.f32 %v10029_v8, %v1288_v63 }
 0x41c   : > { %1907 = vrot.lane.b32.xlu1 %v10791_v27, %s10394_s25  ;;  %v1191_v48 = vcombine.low %v1135_v47, %v1151_v46  ;;  %v1192_v49 = vcombine.high %v1135_v47, %v1151_v46  ;;  %v10857_v47 = vadd.f32 %v10032_v5, %v1297_v6 }
 0x41e   : > { %1909 = vrot.lane.b32.xlu0 %v10793_v28, %s10394_s25  ;;  %v1199_v1 = vrot.slane %v1191_v48, %v10755_v59  ;;  %v10842_v48 = vadd.f32 %v10030_v20, %v1296_v14  ;;  %v10860_v56 = vrot.slane %v1192_v49, %v10755_v59 }
 0x420   : > { %v1223_v53 = vcombine.low %v1167_v52, %v1199_v1  ;;  %v10006_v54 = vcombine.low %v1199_v1, %v1199_v1  ;;  %v1224_v17 = vcombine.high %v1167_v52, %v1199_v1  ;;  %v10008_v26 = vcombine.high %v1199_v1, %v1199_v1 }
 0x421   : > { %v10010_v6 = vcombine.low %v10860_v56, %v10860_v56 }
 0x422   : > { %v1271_v36 = vrot.slane %v1223_v53, %v10732_v42  ;;  %v1278_v58 = vrot.slane %v10006_v54, %v10732_v42  ;;  %v1305_v31 = vrot.slane %v1224_v17, %v10732_v42  ;;  %v1312_v52 = vrot.slane %v10008_v26, %v10732_v42 }
 0x423   : > { %v1160_v53 = vcombine.high %v1103_v37, %v1119_v43  ;;  %v1322_v54 = vrot.slane %v1089_v7, %v10732_v42  ;;  %v1008_v26 = vcombine.high %v10746_v51, %v10750_v57  ;;  %v960_v51 = vcombine.high %v10709_v30, %v10727_v38 }
 0x424   : > { %v1279_v55 = vcombine.high %v1271_v36, %v1271_v36  ;;  %v10025_v61 = vrot.slane %v1271_v36, 9  ;;  %v1280_v0 = vcombine.high %v1278_v58, %v1278_v58  ;;  %v10027_v10 = vrot.slane %v1278_v58, 9 }
 0x425   : > { %v1313_v1 = vcombine.high %v1305_v31, %v1305_v31  ;;  %v10033_v46 = vrot.slane %v1305_v31, 9  ;;  %v1314_v37 = vcombine.high %v1312_v52, %v1312_v52  ;;  %v10035_v60 = vrot.slane %v1312_v52, 9 }
 0x426   : > { %v10026_v62 = vrot.slane %v1279_v55, 9  ;;  %v10823_v12 = vadd.f32 %v10025_v61, %v1271_v36  ;;  %v10028_v18 = vrot.slane %v1280_v0, 9  ;;  %v10831_v19 = vadd.f32 %v10027_v10, %v1278_v58 }
 0x427   : > { %v10009_v36 = vcombine.low %v10763_v4, %v10763_v4  ;;  %v10034_v43 = vrot.slane %v1313_v1, 9  ;;  %v10865_v58 = vrot.slane %v1160_v53, %v10755_v59  ;;  %v10870_v61 = vadd.f32 %v10033_v46, %v1305_v31 }
 0x428   : > { %v10825_v13 = vadd.f32 %v10026_v62, %v1279_v55  ;;  %1911 = vrot.lane.b32.xlu1 %v10823_v12, %s10394_s25  ;;  %v10834_v32 = vadd.f32 %v10028_v18, %v1280_v0  ;;  %v10855_v55 = vadd.f32 %v10031_v22, %v1295_v9  ;;  %v1330_v62 = vcombine.high %v1322_v54, %v1322_v54 }
 0x429   : > { %v1329_v7 = vrot.slane %v10009_v36, %v10732_v42  ;;  %v1225_v63 = vcombine.low %v10865_v58, %v10860_v56  ;;  %v10036_v0 = vrot.slane %v1314_v37, 9  ;;  %v10874_v9 = vadd.f32 %v10034_v43, %v1313_v1 }
 0x42a   : > { %1913 = vrot.lane.b32.xlu0 %v10825_v13, %s10394_s25  ;;  %v10037_v14 = vrot.slane %v1322_v54, 9  ;;  %v10880_v17 = vadd.f32 %v10035_v60, %v1312_v52  ;;  %v10038_v18 = vrot.slane %v1330_v62, 9  ;;  %v992_v31 = vcombine.high %v10736_v44, %v10744_v50 }
 0x42b   : > { %v1331_v10 = vcombine.high %v1329_v7, %v1329_v7  ;;  %v1339_v8 = vrot.slane %v1225_v63, %v10732_v42  ;;  %v10885_v20 = vadd.f32 %v10036_v0, %v1314_v37  ;;  %v10039_v22 = vrot.slane %v1329_v7, 9 }
 0x42c   : > { %1915 = vrot.lane.b32.xlu1 %v10831_v19, %s10394_s25  ;;  %v10895_v5 = vadd.f32 %v10037_v14, %v1322_v54  ;;  %v10897_v52 = vadd.f32 %v10038_v18, %v1330_v62  ;;  %v1346_v1 = vrot.slane %v10010_v6, %v10732_v42  ;;  %v976_v36 = vcombine.high %v10729_v40, %v10738_v45 }
 0x42d   : > { %v10040_v49 = vrot.slane %v1331_v10, 9  ;;  %v1347_v53 = vcombine.high %v1339_v8, %v1339_v8  ;;  %v10907_v44 = vrot.slane %v1008_v26, %v10732_v42  ;;  %v10011_v50 = vcombine.high %v10763_v4, %v10763_v4 }
 0x42e   : > { %1917 = vrot.lane.b32.xlu0 %v10834_v32, %s10394_s25  ;;  %v1356_v40 = vrot.slane %v1090_v39, %v10732_v42  ;;  %v10917_v45 = vadd.f32 %v10039_v22, %v1329_v7  ;;  %v10041_v57 = vrot.slane %v1339_v8, 9  ;;  %v10920_v54 = vrot.slane %v992_v31, %v10732_v42 }
 0x42f   : > { %v10922_v30 = vadd.f32 %v10040_v49, %v1331_v10  ;;  %v1348_v38 = vcombine.high %v1346_v1, %v1346_v1  ;;  %v10042_v46 = vrot.slane %v1347_v53, 9  ;;  %v10925_v37 = vrot.slane %v976_v36, %v10732_v42 }
 0x430   : > { %1919 = vrot.lane.b32.xlu1 %v10840_v34, %s10394_s25  ;;  %19496 = vst [vmem:[#allocation8_spill] sm:$0xff] %v10917_v45  ;;  %v10930_v43 = vrot.slane %v960_v51, %v10732_v42  ;;  %v1071_v3 = vcombine.low %v10920_v54, %v10907_v44  ;;  %v1363_v4 = vrot.slane %v10011_v50, %v10732_v42  ;;  %v10043_v7 = vrot.slane %v1346_v1, 9 }
 0x431   : > { %v1364_v39 = vcombine.high %v1356_v40, %v1356_v40  ;;  %v10937_v60 = vadd.f32 %v10041_v57, %v1339_v8  ;;  %v1128_v62 = vcombine.high %v10785_v25, %v10809_v33  ;;  %v1226_v63 = vcombine.high %v10865_v58, %v10860_v56 }
 0x432   : > { %1921 = vrot.lane.b32.xlu0 %v10842_v48, %s10394_s25  ;;  %v10044_v0 = vrot.slane %v1348_v38, 9  ;;  %v10943_v10 = vadd.f32 %v10042_v46, %v1347_v53  ;;  %v1039_v14 = vcombine.low %v10930_v43, %v10925_v37  ;;  %v10950_v18 = vrot.slane %v1071_v3, %v10755_v59 }
 0x433   : > { %19497 = vst [vmem:[#allocation9_spill] sm:$0xff] %v10937_v60  ;;  %v1096_v6 = vcombine.high %v10772_v11, %v10777_v16  ;;  %v1112_v25 = vcombine.high %v10775_v15, %v10783_v24  ;;  %v1144_v33 = vcombine.high %v10795_v29, %v10723_v35  ;;  %v1365_v58 = vcombine.high %v1363_v4, %v1363_v4 }
 0x434   : > { %1923 = vrot.lane.b32.xlu1 %v10855_v55, %s10394_s25  ;;  %19498 = vst [vmem:[#allocation10_spill] sm:$0xff] %v10943_v10  ;;  %v10045_v8 = vrot.slane %v1356_v40, 9  ;;  %v10046_v26 = vrot.slane %v1364_v39, 9  ;;  %v10960_v31 = vadd.f32 %v10043_v7, %v1346_v1  ;;  %v10963_v22 = vrot.slane %v1128_v62, %v10732_v42 }
 0x435   : > { %v10012_v11 = vcombine.high %v10860_v56, %v10860_v56  ;;  %v1373_v16 = vrot.slane %v1226_v63, %v10732_v42  ;;  %v10968_v15 = vadd.f32 %v10044_v0, %v1348_v38  ;;  %v1047_v35 = vrot.slane %v1039_v14, %v10755_v59 }
 0x436   : > { %1925 = vrot.lane.b32.xlu0 %v10857_v47, %s10394_s25  ;;  %19499 = vst [vmem:[#allocation11_spill] sm:$0xff] %v10960_v31  ;;  %v10974_v24 = vrot.slane %v1096_v6, %v10732_v42  ;;  %v10977_v29 = vrot.slane %v1112_v25, %v10732_v42  ;;  %v10980_v49 = vrot.slane %v1144_v33, %v10732_v42  ;;  %v10047_v1 = vrot.slane %v1363_v4, 9 }
 0x437   : > { %19500 = vst [vmem:[#allocation12_spill] sm:$0xff] %v10968_v15  ;;  %v1091_v56 = vcombine.low %v1047_v35, %v10950_v18  ;;  %v10048_v53 = vrot.slane %v1365_v58, 9  ;;  %v10985_v36 = vadd.f32 %v10045_v8, %v1356_v40  ;;  %v10987_v51 = vadd.f32 %v10046_v26, %v1364_v39 }
 0x438   : > { %1927 = vrot.lane.b32.xlu1 %v10870_v61, %s10394_s25  ;;  %v1207_v50 = vcombine.low %v10963_v22, %v10980_v49  ;;  %v1380_v57 = vrot.slane %v10012_v11, %v10732_v42  ;;  %v1381_v38 = vcombine.high %v1373_v16, %v1373_v16  ;;  %v1175_v46 = vcombine.low %v10974_v24, %v10977_v29 }
 0x439   : > { %19501 = vst [vmem:[#allocation13_spill] sm:$0xff] %v10985_v36  ;;  %19502 = vst [vmem:[#allocation14_spill] sm:$0xff] %v10987_v51  ;;  %v10013_v40 = vcombine.low %v10950_v18, %v10950_v18  ;;  %v1390_v3 = vrot.slane %v1091_v56, %v10732_v42  ;;  %v11001_v39 = vadd.f32 %v10047_v1, %v1363_v4  ;;  %v10049_v7 = vrot.slane %v1373_v16, 9 }
 0x43a   : > { %1929 = vrot.lane.b32.xlu0 %v10874_v9, %s10394_s25  ;;  %v11003_v62 = vadd.f32 %v10048_v53, %v1365_v58  ;;  %v11006_v63 = vrot.slane %v1207_v50, %v10755_v59  ;;  %v1382_v0 = vcombine.high %v1380_v57, %v1380_v57  ;;  %v10050_v14 = vrot.slane %v1381_v38, 9 }
 0x43b   : > { %19503 = vst [vmem:[#allocation15_spill] sm:$0xff] %v11001_v39  ;;  %v1183_v6 = vrot.slane %v1175_v46, %v10755_v59  ;;  %v1397_v25 = vrot.slane %v10013_v40, %v10732_v42  ;;  %v10051_v4 = vrot.slane %v1380_v57, 9  ;;  %v11014_v33 = vadd.f32 %v10049_v7, %v1373_v16 }
 0x43c   : > { %1931 = vrot.lane.b32.xlu1 %v10880_v17, %s10394_s25  ;;  %19504 = vst [vmem:[#allocation16_spill] sm:$0xff] %v11003_v62  ;;  %v1398_v58 = vcombine.high %v1390_v3, %v1390_v3  ;;  %v10052_v26 = vrot.slane %v1382_v0, 9  ;;  %v11017_v11 = vadd.f32 %v10050_v14, %v1381_v38  ;;  %v10053_v1 = vrot.slane %v1390_v3, 9 }
 0x43d   : > { %19505 = vst [vmem:[#allocation17_spill] sm:$0xff] %v11014_v33  ;;  %v1227_v8 = vcombine.low %v1183_v6, %v11006_v63  ;;  %v1399_v56 = vcombine.high %v1397_v25, %v1397_v25  ;;  %v11023_v53 = vadd.f32 %v10051_v4, %v1380_v57  ;;  %v10014_v16 = vcombine.low %v11006_v63, %v11006_v63 }
 0x43e   : > { %1933 = vrot.lane.b32.xlu0 %v10885_v20, %s10394_s25  ;;  %19506 = vst [vmem:[#allocation18_spill] sm:$0xff] %v11017_v11  ;;  %v10054_v50 = vrot.slane %v1398_v58, 9  ;;  %v11028_v40 = vadd.f32 %v10052_v26, %v1382_v0  ;;  %v1092_v38 = vcombine.high %v1047_v35, %v10950_v18  ;;  %v10055_v7 = vrot.slane %v1397_v25, 9 }
 0x43f   : > { %19507 = vst [vmem:[#allocation19_spill] sm:$0xff] %v11023_v53  ;;  %v1407_v46 = vrot.slane %v1227_v8, %v10732_v42  ;;  %v11035_v14 = vadd.f32 %v10053_v1, %v1390_v3  ;;  %v10056_v57 = vrot.slane %v1399_v56, 9  ;;  %v1414_v2 = vrot.slane %v10014_v16, %v10732_v42 }
 0x440   : > { %1935 = vrot.lane.b32.xlu1 %v10895_v5, %s10394_s25  ;;  %19508 = vst [vmem:[#allocation20_spill] sm:$0xff] %v11028_v40  ;;  %v11037_v4 = vadd.f32 %v10054_v50, %v1398_v58  ;;  %v10015_v0 = vcombine.high %v10950_v18, %v10950_v18  ;;  %v11046_v8 = vadd.f32 %v10055_v7, %v1397_v25 }
 0x441   : > { %19509 = vst [vmem:[#allocation21_spill] sm:$0xff] %v11035_v14  ;;  %v1415_v41 = vcombine.high %v1407_v46, %v1407_v46  ;;  %v10057_v35 = vrot.slane %v1407_v46, 9  ;;  %v1424_v3 = vrot.slane %v1092_v38, %v10732_v42  ;;  %v11049_v26 = vadd.f32 %v10056_v57, %v1399_v56 }
 0x442   : > { %1937 = vrot.lane.b32.xlu0 %v10897_v52, %s10394_s25  ;;  %19510 = vst [vmem:[#allocation22_spill] sm:$0xff] %v11037_v4  ;;  %19511 = vst [vmem:[#allocation23_spill] sm:$0xff] %v11046_v8  ;;  %v1416_v58 = vcombine.high %v1414_v2, %v1414_v2  ;;  %v1072_v50 = vcombine.high %v10920_v54, %v10907_v44  ;;  %v1431_v18 = vrot.slane %v10015_v0, %v10732_v42 }
 0x443   : > { %19512 = vst [vmem:[#allocation24_spill] sm:$0xff] %v11049_v26  ;;  %v10058_v1 = vrot.slane %v1415_v41, 9  ;;  %v10059_v25 = vrot.slane %v1414_v2, 9  ;;  %v11058_v16 = vadd.f32 %v10057_v35, %v1407_v46  ;;  %v1432_v7 = vcombine.high %v1424_v3, %v1424_v3 }
 0x444   : > { %1939 = vrot.lane.b32.xlu1 %v10917_v45, %s10394_s25  ;;  %v1228_v56 = vcombine.high %v1183_v6, %v11006_v63  ;;  %v10060_v38 = vrot.slane %v1416_v58, 9  ;;  %v11070_v44 = vrot.slane %v1072_v50, %v10755_v59  ;;  %v1433_v54 = vcombine.high %v1431_v18, %v1431_v18 }
 0x445   : > { %19513 = vst [vmem:[#allocation25_spill] sm:$0xff] %v11058_v16  ;;  %v11061_v57 = vadd.f32 %v10058_v1, %v1415_v41  ;;  %v10061_v46 = vrot.slane %v1424_v3, 9  ;;  %v11072_v0 = vadd.f32 %v10059_v25, %v1414_v2  ;;  %v10062_v6 = vrot.slane %v1432_v7, 9 }
 0x446   : > { %1941 = vrot.lane.b32.xlu0 %v10922_v30, %s10394_s25  ;;  %v10016_v41 = vcombine.high %v11006_v63, %v11006_v63  ;;  %v1441_v35 = vrot.slane %v1228_v56, %v10732_v42  ;;  %v10063_v2 = vrot.slane %v1431_v18, 9  ;;  %v10064_v50 = vrot.slane %v1433_v54, 9 }
 0x447   : > { %19514 = vst [vmem:[#allocation26_spill] sm:$0xff] %v11061_v57  ;;  %19515 = vst [vmem:[#allocation27_spill] sm:$0xff] %v11072_v0  ;;  %v11085_v25 = vadd.f32 %v10061_v46, %v1424_v3  ;;  %v1208_v63 = vcombine.high %v10963_v22, %v10980_v49  ;;  %v1176_v56 = vcombine.high %v10974_v24, %v10977_v29 }
 0x448   : > { %1943 = vrot.lane.b32.xlu1 %v10937_v60, %s10394_s25  ;;  %v10017_v3 = vcombine.low %v11070_v44, %v11070_v44  ;;  %v10065_v22 = vrot.slane %v1441_v35, 9  ;;  %v11103_v49 = vadd.f32 %v10064_v50, %v1433_v54 }
 0x449   : > { %19517 = vst [vmem:[#allocation29_spill] sm:$0xff] %v11085_v25  ;;  %v11106_v46 = vrot.slane %v1208_v63, %v10755_v59  ;;  %v1190_v24 = vrot.slane %v1176_v56, %v10755_v59 }
 0x44a   : > { %1945 = vrot.lane.b32.xlu0 %v10943_v10, %s10394_s25  ;;  %19520 = vst [vmem:[#allocation32_spill] sm:$0xff] %v11103_v49  ;;  %v1465_v29 = vrot.slane %v10017_v3, %v10732_v42 }
 0x44c   : > { %1947 = vrot.lane.b32.xlu1 %v10960_v31, %s10394_s25  ;;  %v1467_v56 = vcombine.high %v1465_v29, %v1465_v29 }
 0x44e   : > { %1949 = vrot.lane.b32.xlu0 %v10968_v15, %s10394_s25 }
 0x450   : > { %1951 = vrot.lane.b32.xlu1 %v10985_v36, %s10394_s25 }
 0x452   : > { %1953 = vrot.lane.b32.xlu0 %v10987_v51, %s10394_s25 }
 0x454   : > { %1955 = vrot.lane.b32.xlu1 %v11001_v39, %s10394_s25 }
 0x456   : > { %1957 = vrot.lane.b32.xlu0 %v11003_v62, %s10394_s25 }
 0x458   : > { %1959 = vrot.lane.b32.xlu1 %v11014_v33, %s10394_s25 }
 0x45a   : > { %1961 = vrot.lane.b32.xlu0 %v11017_v11, %s10394_s25 }
 0x45c   : > { %1963 = vrot.lane.b32.xlu1 %v11023_v53, %s10394_s25 }
 0x45e   : > { %1965 = vrot.lane.b32.xlu0 %v11028_v40, %s10394_s25 }
 0x460   : > { %1967 = vrot.lane.b32.xlu1 %v11035_v14, %s10394_s25 }
 0x462   : > { %1969 = vrot.lane.b32.xlu0 %v11037_v4, %s10394_s25 }
 0x464   : > { %1971 = vrot.lane.b32.xlu1 %v11046_v8, %s10394_s25  ;;  %v1040_v8 = vcombine.high %v10930_v43, %v10925_v37  ;;  %v11077_v37 = vadd.f32 %v10060_v38, %v1416_v58  ;;  %v1448_v58 = vrot.slane %v10016_v41, %v10732_v42  ;;  %v11101_v38 = vadd.f32 %v10063_v2, %v1431_v18 }
 0x465   : > { %v1229_v2 = vcombine.low %v1190_v24, %v11106_v46 }
 0x466   : > { %1973 = vrot.lane.b32.xlu0 %v11049_v26, %s10394_s25  ;;  %19516 = vst [vmem:[#allocation28_spill] sm:$0xff] %v11077_v37  ;;  %v1054_v43 = vrot.slane %v1040_v8, %v10755_v59  ;;  %v1449_v8 = vcombine.high %v1441_v35, %v1441_v35  ;;  %19519 = vst [vmem:[#allocation31_spill] sm:$0xff] %v11101_v38  ;;  %v10067_v18 = vrot.slane %v1448_v58, 9 }
 0x468   : > { %1975 = vrot.lane.b32.xlu1 %v11058_v16, %s10394_s25  ;;  %v1093_v1 = vcombine.low %v1054_v43, %v11070_v44  ;;  %v10066_v41 = vrot.slane %v1449_v8, 9 }
 0x46a   : > { %1977 = vrot.lane.b32.xlu0 %v11061_v57, %s10394_s25  ;;  %v11087_v57 = vadd.f32 %v10062_v6, %v1432_v7  ;;  %v1458_v7 = vrot.slane %v1093_v1, %v10732_v42  ;;  %v1450_v6 = vcombine.high %v1448_v58, %v1448_v58  ;;  %v11114_v1 = vadd.f32 %v10065_v22, %v1441_v35 }
 0x46b   : > { %v11117_v63 = vadd.f32 %v10066_v41, %v1449_v8  ;;  %v10018_v35 = vcombine.low %v11106_v46, %v11106_v46  ;;  %v1475_v22 = vrot.slane %v1229_v2, %v10732_v42  ;;  %v1094_v8 = vcombine.high %v1054_v43, %v11070_v44 }
 0x46c   : > { %1979 = vrot.lane.b32.xlu1 %v11072_v0, %s10394_s25  ;;  %19518 = vst [vmem:[#allocation30_spill] sm:$0xff] %v11087_v57  ;;  %19521 = vst [vmem:[#allocation33_spill] sm:$0xff] %v11114_v1  ;;  %v1466_v54 = vcombine.high %v1458_v7, %v1458_v7  ;;  %v10068_v50 = vrot.slane %v1450_v6, 9  ;;  %v10069_v59 = vrot.slane %v1458_v7, 9  ;;  %v10071_v41 = vrot.slane %v1465_v29, 9 }
 0x46d   : > { %19522 = vst [vmem:[#allocation34_spill] sm:$0xff] %v11117_v63  ;;  %v10073_v43 = vrot.slane %v1475_v22, 9 }
 0x46e   : > { %1981 = vrot.lane.b32.xlu0 %v11077_v37, %s10394_s25  ;;  %v10070_v3 = vrot.slane %v1466_v54, 9  ;;  %v11146_v2 = vadd.f32 %v10071_v41, %v1465_v29  ;;  %v1230_v29 = vcombine.high %v1190_v24, %v11106_v46 }
 0x470   : > { %1983 = vrot.lane.b32.xlu1 %v11085_v25, %s10394_s25  ;;  %19527 = vst [vmem:[#allocation39_spill] sm:$0xff] %v11146_v2 }
 0x472   : > { %1985 = vrot.lane.b32.xlu0 %v11087_v57, %s10394_s25  ;;  %v1483_v57 = vcombine.high %v1475_v22, %v1475_v22 }
 0x474   : > { %1987 = vrot.lane.b32.xlu1 %v11101_v38, %s10394_s25  ;;  %v11128_v38 = vadd.f32 %v10068_v50, %v1450_v6  ;;  %v10019_v6 = vcombine.high %v11070_v44, %v11070_v44  ;;  %v10074_v50 = vrot.slane %v1483_v57, 9 }
 0x476   : > { %1989 = vrot.lane.b32.xlu0 %v11103_v49, %s10394_s25  ;;  %v11123_v49 = vadd.f32 %v10067_v18, %v1448_v58  ;;  %19524 = vst [vmem:[#allocation36_spill] sm:$0xff] %v11128_v38  ;;  %v10072_v58 = vrot.slane %v1467_v56, 9  ;;  %v11137_v18 = vadd.f32 %v10070_v3, %v1466_v54  ;;  %v1499_v3 = vrot.slane %v10019_v6, %v10732_v42 }
 0x478   : > { %1991 = vrot.lane.b32.xlu1 %v11114_v1, %s10394_s25  ;;  %19523 = vst [vmem:[#allocation35_spill] sm:$0xff] %v11123_v49  ;;  %19526 = vst [vmem:[#allocation38_spill] sm:$0xff] %v11137_v18  ;;  %v1482_v1 = vrot.slane %v10018_v35, %v10732_v42 }
 0x47a   : > { %1993 = vrot.lane.b32.xlu0 %v11117_v63, %s10394_s25  ;;  %v11135_v63 = vadd.f32 %v10069_v59, %v1458_v7  ;;  %v1492_v59 = vrot.slane %v1094_v8, %v10732_v42  ;;  %v11149_v7 = vadd.f32 %v10072_v58, %v1467_v56  ;;  %v1484_v54 = vcombine.high %v1482_v1, %v1482_v1 }
 0x47b   : > { %v10075_v35 = vrot.slane %v1482_v1, 9  ;;  %v11159_v8 = vadd.f32 %v10074_v50, %v1483_v57  ;;  %v1501_v56 = vcombine.high %v1499_v3, %v1499_v3  ;;  %v10079_v57 = vrot.slane %v1499_v3, 9 }
 0x47c   : > { %1995 = vrot.lane.b32.xlu1 %v11123_v49, %s10394_s25  ;;  %19525 = vst [vmem:[#allocation37_spill] sm:$0xff] %v11135_v63  ;;  %19528 = vst [vmem:[#allocation40_spill] sm:$0xff] %v11149_v7  ;;  %v1500_v44 = vcombine.high %v1492_v59, %v1492_v59  ;;  %v10076_v41 = vrot.slane %v1484_v54, 9  ;;  %v10077_v58 = vrot.slane %v1492_v59, 9 }
 0x47d   : > { %19530 = vst [vmem:[#allocation42_spill] sm:$0xff] %v11159_v8 }
 0x47e   : > { %1997 = vrot.lane.b32.xlu0 %v11128_v38, %s10394_s25  ;;  %v10078_v6 = vrot.slane %v1500_v44, 9  ;;  %v11170_v24 = vadd.f32 %v10076_v41, %v1484_v54  ;;  %v11176_v50 = vadd.f32 %v10077_v58, %v1492_v59 }
 0x480   : > { %1999 = vrot.lane.b32.xlu1 %v11135_v63, %s10394_s25  ;;  %19532 = vst [vmem:[#allocation44_spill] sm:$0xff] %v11170_v24  ;;  %19533 = vst [vmem:[#allocation45_spill] sm:$0xff] %v11176_v50 }
 0x482   : > { %2001 = vrot.lane.b32.xlu0 %v11137_v18, %s10394_s25  ;;  %v11156_v18 = vadd.f32 %v10073_v43, %v1475_v22  ;;  %v10020_v22 = vcombine.high %v11106_v46, %v11106_v46  ;;  %v1509_v43 = vrot.slane %v1230_v29, %v10732_v42  ;;  %v11189_v29 = vadd.f32 %v10079_v57, %v1499_v3 }
 0x484   : > { %2003 = vrot.lane.b32.xlu1 %v11146_v2, %s10394_s25  ;;  %19529 = vst [vmem:[#allocation41_spill] sm:$0xff] %v11156_v18  ;;  %19537 = vst [vmem:[#allocation49_spill] sm:$0xff] %v11189_v29  ;;  %v10081_v59 = vrot.slane %v1509_v43, 9 }
 0x486   : > { %2005 = vrot.lane.b32.xlu0 %v11149_v7, %s10394_s25  ;;  %v11165_v7 = vadd.f32 %v10075_v35, %v1482_v1  ;;  %v11178_v1 = vadd.f32 %v10078_v6, %v1500_v44  ;;  %v1516_v35 = vrot.slane %v10020_v22, %v10732_v42  ;;  %v11197_v22 = vadd.f32 %v10081_v59, %v1509_v43 }
 0x488   : > { %2007 = vrot.lane.b32.xlu1 %v11156_v18, %s10394_s25  ;;  %19531 = vst [vmem:[#allocation43_spill] sm:$0xff] %v11165_v7  ;;  %19534 = vst [vmem:[#allocation46_spill] sm:$0xff] %v11178_v1  ;;  %v1517_v18 = vcombine.high %v1509_v43, %v1509_v43  ;;  %v1518_v44 = vcombine.high %v1516_v35, %v1516_v35  ;;  %v10083_v6 = vrot.slane %v1516_v35, 9 }
 0x489   : > { %19539 = vst [vmem:[#allocation51_spill] sm:$0xff] %v11197_v22 }
 0x48a   : > { %2009 = vrot.lane.b32.xlu0 %v11159_v8, %s10394_s25  ;;  %v10080_v8 = vrot.slane %v1501_v56, 9  ;;  %v11181_v46 = vpop.permute.xlu1 %1903  ;;  %v10082_v58 = vrot.slane %v1517_v18, 9 }
 0x48b   : > { %19535 = vst [vmem:[#allocation47_spill] sm:$0xff] %v11181_v46  ;;  %v10084_v46 = vrot.slane %v1518_v44, 9 }
 0x48c   : > { %2011 = vrot.lane.b32.xlu1 %v11165_v7, %s10394_s25  ;;  %v11185_v54 = vpop.permute.xlu0 %1905  ;;  %v11191_v41 = vadd.f32 %v10080_v8, %v1501_v56  ;;  %v11209_v8 = vadd.f32 %v10083_v6, %v1516_v35 }
 0x48d   : > { %19536 = vst [vmem:[#allocation48_spill] sm:$0xff] %v11185_v54  ;;  %v11201_v54 = vadd.f32 %v10082_v58, %v1517_v18  ;;  %v11213_v57 = vadd.f32 %v10084_v46, %v1518_v44 }
 0x48e   : > { %2013 = vrot.lane.b32.xlu0 %v11170_v24, %s10394_s25  ;;  %19538 = vst [vmem:[#allocation50_spill] sm:$0xff] %v11191_v41  ;;  %v11199_v42 = vpop.permute.xlu1 %1907  ;;  %19543 = vst [vmem:[#allocation55_spill] sm:$0xff] %v11209_v8 }
 0x48f   : > { %19540 = vst [vmem:[#allocation52_spill] sm:$0xff] %v11199_v42  ;;  %19541 = vst [vmem:[#allocation53_spill] sm:$0xff] %v11201_v54 }
 0x490   : > { %2015 = vrot.lane.b32.xlu1 %v11176_v50, %s10394_s25  ;;  %v11203_v3 = vpop.permute.xlu0 %1909  ;;  %19545 = vst [vmem:[#allocation57_spill] sm:$0xff] %v11213_v57 }
 0x491   : > { %19542 = vst [vmem:[#allocation54_spill] sm:$0xff] %v11203_v3  ;;  %v19599_v3 = vld [vmem:[#allocation34_spill] sm:$0xff] }
 0x492   : > { %2017 = vrot.lane.b32.xlu0 %v11178_v1, %s10394_s25 }
 0x494   : > { %2019 = vrot.lane.b32.xlu1 %v11189_v29, %s10394_s25 }
 0x496   : > { %2021 = vrot.lane.b32.xlu0 %v11191_v41, %s10394_s25 }
 0x498   : > { %2023 = vrot.lane.b32.xlu1 %v11197_v22, %s10394_s25 }
 0x49a   : > { %2025 = vrot.lane.b32.xlu0 %v11201_v54, %s10394_s25  ;;  %v11211_v56 = vpop.permute.xlu1 %1911 }
 0x49b   : > { %19544 = vst [vmem:[#allocation56_spill] sm:$0xff] %v11211_v56 }
 0x49c   : > { %v11215_v43 = vpop.permute.xlu0 %1913  ;;  %2027 = vrot.lane.b32.xlu1 %v11209_v8, %s10394_s25 }
 0x49d   : > { %19546 = vst [vmem:[#allocation58_spill] sm:$0xff] %v11215_v43 }
 0x49e   : > { %2029 = vrot.lane.b32.xlu0 %v11213_v57, %s10394_s25  ;;  %v11221_v18 = vpop.permute.xlu1 %1915  ;;  %s10420_s25 = smov 122  }
 0x49f   : > { %19547 = vst [vmem:[#allocation59_spill] sm:$0xff] %v11221_v18 }
 0x4a0   : > { %v11223_v59 = vpop.permute.xlu0 %1917  ;;  %2031 = vrot.lane.b32.xlu1 %v10779_v21, %s10419_s17 }
 0x4a1   : > { %19548 = vst [vmem:[#allocation60_spill] sm:$0xff] %v11223_v59  ;;  %v19595_v59 = vld [vmem:[#allocation32_spill] sm:$0xff] }
 0x4a2   : > { %2033 = vrot.lane.b32.xlu0 %v10781_v23, %s10419_s17  ;;  %v11229_v35 = vpop.permute.xlu1 %1919 }
 0x4a3   : > { %19549 = vst [vmem:[#allocation61_spill] sm:$0xff] %v11229_v35 }
 0x4a4   : > { %v11231_v46 = vpop.permute.xlu0 %1921  ;;  %2035 = vrot.lane.b32.xlu1 %v10791_v27, %s10419_s17 }
 0x4a5   : > { %19550 = vst [vmem:[#allocation62_spill] sm:$0xff] %v11231_v46 }
 0x4a6   : > { %2037 = vrot.lane.b32.xlu0 %v10793_v28, %s10419_s17  ;;  %v11237_v44 = vpop.permute.xlu1 %1923 }
 0x4a7   : > { %19551 = vst [vmem:[#allocation63_spill] sm:$0xff] %v11237_v44 }
 0x4a8   : > { %v11239_v58 = vpop.permute.xlu0 %1925  ;;  %2039 = vrot.lane.b32.xlu1 %v10823_v12, %s10419_s17 }
 0x4a9   : > { %19552 = vst [vmem:[#allocation64_spill] sm:$0xff] %v11239_v58 }
 0x4aa   : > { %2041 = vrot.lane.b32.xlu0 %v10825_v13, %s10419_s17  ;;  %v11245_v6 = vpop.permute.xlu1 %1927 }
 0x4ab   : > { %19553 = vst [vmem:[#allocation65_spill] sm:$0xff] %v11245_v6 }
 0x4ac   : > { %v11247_v35 = vpop.permute.xlu0 %1929  ;;  %2043 = vrot.lane.b32.xlu1 %v10831_v19, %s10419_s17 }
 0x4ad   : > { %19554 = vst [vmem:[#allocation66_spill] sm:$0xff] %v11247_v35 }
 0x4ae   : > { %2045 = vrot.lane.b32.xlu0 %v10834_v32, %s10419_s17  ;;  %v11253_v46 = vpop.permute.xlu1 %1931 }
 0x4af   : > { %19555 = vst [vmem:[#allocation67_spill] sm:$0xff] %v11253_v46 }
 0x4b0   : > { %v11255_v44 = vpop.permute.xlu0 %1933  ;;  %2047 = vrot.lane.b32.xlu1 %v10840_v34, %s10419_s17 }
 0x4b1   : > { %19556 = vst [vmem:[#allocation68_spill] sm:$0xff] %v11255_v44 }
 0x4b2   : > { %2049 = vrot.lane.b32.xlu0 %v10842_v48, %s10419_s17  ;;  %v11261_v58 = vpop.permute.xlu1 %1935 }
 0x4b3   : > { %19557 = vst [vmem:[#allocation69_spill] sm:$0xff] %v11261_v58 }
 0x4b4   : > { %v11263_v6 = vpop.permute.xlu0 %1937  ;;  %2051 = vrot.lane.b32.xlu1 %v10855_v55, %s10419_s17 }
 0x4b5   : > { %19558 = vst [vmem:[#allocation70_spill] sm:$0xff] %v11263_v6 }
 0x4b6   : > { %2053 = vrot.lane.b32.xlu0 %v10857_v47, %s10419_s17  ;;  %v11269_v35 = vpop.permute.xlu1 %1939 }
 0x4b7   : > { %19559 = vst [vmem:[#allocation71_spill] sm:$0xff] %v11269_v35 }
 0x4b8   : > { %v11271_v46 = vpop.permute.xlu0 %1941  ;;  %2055 = vrot.lane.b32.xlu1 %v10870_v61, %s10419_s17 }
 0x4b9   : > { %19560 = vst [vmem:[#allocation72_spill] sm:$0xff] %v11271_v46 }
 0x4ba   : > { %2057 = vrot.lane.b32.xlu0 %v10874_v9, %s10419_s17  ;;  %v11277_v44 = vpop.permute.xlu1 %1943 }
 0x4bb   : > { %19561 = vst [vmem:[#allocation73_spill] sm:$0xff] %v11277_v44 }
 0x4bc   : > { %v11279_v58 = vpop.permute.xlu0 %1945  ;;  %2059 = vrot.lane.b32.xlu1 %v10880_v17, %s10419_s17 }
 0x4bd   : > { %19562 = vst [vmem:[#allocation74_spill] sm:$0xff] %v11279_v58 }
 0x4be   : > { %2061 = vrot.lane.b32.xlu0 %v10885_v20, %s10419_s17  ;;  %v11285_v6 = vpop.permute.xlu1 %1947 }
 0x4bf   : > { %19563 = vst [vmem:[#allocation75_spill] sm:$0xff] %v11285_v6 }
 0x4c0   : > { %v11287_v35 = vpop.permute.xlu0 %1949  ;;  %2063 = vrot.lane.b32.xlu1 %v10895_v5, %s10419_s17 }
 0x4c1   : > { %19564 = vst [vmem:[#allocation76_spill] sm:$0xff] %v11287_v35 }
 0x4c2   : > { %2065 = vrot.lane.b32.xlu0 %v10897_v52, %s10419_s17  ;;  %v11293_v46 = vpop.permute.xlu1 %1951 }
 0x4c3   : > { %19565 = vst [vmem:[#allocation77_spill] sm:$0xff] %v11293_v46 }
 0x4c4   : > { %v11295_v44 = vpop.permute.xlu0 %1953  ;;  %2067 = vrot.lane.b32.xlu1 %v10917_v45, %s10419_s17 }
 0x4c5   : > { %19566 = vst [vmem:[#allocation78_spill] sm:$0xff] %v11295_v44 }
 0x4c6   : > { %2069 = vrot.lane.b32.xlu0 %v10922_v30, %s10419_s17  ;;  %v11301_v58 = vpop.permute.xlu1 %1955 }
 0x4c7   : > { %19567 = vst [vmem:[#allocation79_spill] sm:$0xff] %v11301_v58 }
 0x4c8   : > { %v11303_v6 = vpop.permute.xlu0 %1957  ;;  %2071 = vrot.lane.b32.xlu1 %v10937_v60, %s10419_s17 }
 0x4c9   : > { %19568 = vst [vmem:[#allocation80_spill] sm:$0xff] %v11303_v6 }
 0x4ca   : > { %2073 = vrot.lane.b32.xlu0 %v10943_v10, %s10419_s17  ;;  %v11309_v35 = vpop.permute.xlu1 %1959 }
 0x4cb   : > { %19569 = vst [vmem:[#allocation81_spill] sm:$0xff] %v11309_v35 }
 0x4cc   : > { %v11311_v46 = vpop.permute.xlu0 %1961  ;;  %2075 = vrot.lane.b32.xlu1 %v10960_v31, %s10419_s17 }
 0x4cd   : > { %19570 = vst [vmem:[#allocation82_spill] sm:$0xff] %v11311_v46 }
 0x4ce   : > { %2077 = vrot.lane.b32.xlu0 %v10968_v15, %s10419_s17  ;;  %v11317_v44 = vpop.permute.xlu1 %1963 }
 0x4cf   : > { %19571 = vst [vmem:[#allocation83_spill] sm:$0xff] %v11317_v44 }
 0x4d0   : > { %v11319_v58 = vpop.permute.xlu0 %1965  ;;  %2079 = vrot.lane.b32.xlu1 %v10985_v36, %s10419_s17 }
 0x4d1   : > { %19572 = vst [vmem:[#allocation84_spill] sm:$0xff] %v11319_v58 }
 0x4d2   : > { %2081 = vrot.lane.b32.xlu0 %v10987_v51, %s10419_s17  ;;  %v11325_v6 = vpop.permute.xlu1 %1967 }
 0x4d3   : > { %19573 = vst [vmem:[#allocation85_spill] sm:$0xff] %v11325_v6 }
 0x4d4   : > { %v11327_v35 = vpop.permute.xlu0 %1969  ;;  %2083 = vrot.lane.b32.xlu1 %v11001_v39, %s10419_s17 }
 0x4d5   : > { %19574 = vst [vmem:[#allocation86_spill] sm:$0xff] %v11327_v35 }
 0x4d6   : > { %2085 = vrot.lane.b32.xlu0 %v11003_v62, %s10419_s17  ;;  %v11333_v46 = vpop.permute.xlu1 %1971 }
 0x4d7   : > { %19575 = vst [vmem:[#allocation87_spill] sm:$0xff] %v11333_v46 }
 0x4d8   : > { %v11335_v44 = vpop.permute.xlu0 %1973  ;;  %2087 = vrot.lane.b32.xlu1 %v11014_v33, %s10419_s17 }
 0x4d9   : > { %19576 = vst [vmem:[#allocation88_spill] sm:$0xff] %v11335_v44 }
 0x4da   : > { %2089 = vrot.lane.b32.xlu0 %v11017_v11, %s10419_s17  ;;  %v11341_v58 = vpop.permute.xlu1 %1975 }
 0x4db   : > { %19577 = vst [vmem:[#allocation89_spill] sm:$0xff] %v11341_v58 }
 0x4dc   : > { %v11343_v6 = vpop.permute.xlu0 %1977  ;;  %2091 = vrot.lane.b32.xlu1 %v11023_v53, %s10419_s17 }
 0x4dd   : > { %19578 = vst [vmem:[#allocation90_spill] sm:$0xff] %v11343_v6  ;;  %v19583_v6 = vld [vmem:[#allocation23_spill] sm:$0xff] }
 0x4de   : > { %2093 = vrot.lane.b32.xlu0 %v11028_v40, %s10419_s17  ;;  %v11349_v35 = vpop.permute.xlu1 %1979 }
 0x4df   : > { %19579 = vst [vmem:[#allocation91_spill] sm:$0xff] %v11349_v35 }
 0x4e0   : > { %v11351_v46 = vpop.permute.xlu0 %1981  ;;  %2095 = vrot.lane.b32.xlu1 %v11035_v14, %s10419_s17 }
 0x4e1   : > { %19580 = vst [vmem:[#allocation92_spill] sm:$0xff] %v11351_v46  ;;  %v19586_v46 = vld [vmem:[#allocation26_spill] sm:$0xff] }
 0x4e2   : > { %2097 = vrot.lane.b32.xlu0 %v11037_v4, %s10419_s17  ;;  %v11357_v44 = vpop.permute.xlu1 %1983 }
 0x4e3   : > { %19581 = vst [vmem:[#allocation93_spill] sm:$0xff] %v11357_v44 }
 0x4e4   : > { %v11359_v58 = vpop.permute.xlu0 %1985  ;;  %2099 = vrot.lane.b32.xlu1 %v19583_v6, %s10419_s17 }
 0x4e5   : > { %19582 = vst [vmem:[#allocation94_spill] sm:$0xff] %v11359_v58 }
 0x4e6   : > { %2101 = vrot.lane.b32.xlu0 %v11049_v26, %s10419_s17  ;;  %v11365_v18 = vpop.permute.xlu1 %1987 }
 0x4e7   : > { %19584 = vst [vmem:[#allocation95_spill] sm:$0xff] %v11365_v18 }
 0x4e8   : > { %v11367_v35 = vpop.permute.xlu0 %1989  ;;  %2103 = vrot.lane.b32.xlu1 %v11058_v16, %s10419_s17 }
 0x4e9   : > { %19585 = vst [vmem:[#allocation96_spill] sm:$0xff] %v11367_v35  ;;  %v19591_v35 = vld [vmem:[#allocation30_spill] sm:$0xff] }
 0x4ea   : > { %2105 = vrot.lane.b32.xlu0 %v19586_v46, %s10419_s17  ;;  %v11373_v56 = vpop.permute.xlu1 %1991 }
 0x4eb   : > { %19587 = vst [vmem:[#allocation97_spill] sm:$0xff] %v11373_v56 }
 0x4ec   : > { %v11375_v44 = vpop.permute.xlu0 %1993  ;;  %2107 = vrot.lane.b32.xlu1 %v11072_v0, %s10419_s17 }
 0x4ed   : > { %19588 = vst [vmem:[#allocation98_spill] sm:$0xff] %v11375_v44  ;;  %v19594_v44 = vld [vmem:[#allocation31_spill] sm:$0xff] }
 0x4ee   : > { %2109 = vrot.lane.b32.xlu0 %v11077_v37, %s10419_s17  ;;  %v11381_v58 = vpop.permute.xlu1 %1995 }
 0x4ef   : > { %19589 = vst [vmem:[#allocation99_spill] sm:$0xff] %v11381_v58 }
 0x4f0   : > { %v11383_v18 = vpop.permute.xlu0 %1997  ;;  %2111 = vrot.lane.b32.xlu1 %v11085_v25, %s10419_s17 }
 0x4f1   : > { %19590 = vst [vmem:[#allocation100_spill] sm:$0xff] %v11383_v18  ;;  %v19598_v18 = vld [vmem:[#allocation33_spill] sm:$0xff] }
 0x4f2   : > { %2113 = vrot.lane.b32.xlu0 %v19591_v35, %s10419_s17  ;;  %v11389_v42 = vpop.permute.xlu1 %1999 }
 0x4f3   : > { %19592 = vst [vmem:[#allocation101_spill] sm:$0xff] %v11389_v42 }
 0x4f4   : > { %v11391_v56 = vpop.permute.xlu0 %2001  ;;  %2115 = vrot.lane.b32.xlu1 %v19594_v44, %s10419_s17 }
 0x4f5   : > { %19593 = vst [vmem:[#allocation102_spill] sm:$0xff] %v11391_v56 }
 0x4f6   : > { %2117 = vrot.lane.b32.xlu0 %v19595_v59, %s10419_s17  ;;  %v11397_v43 = vpop.permute.xlu1 %2003 }
 0x4f7   : > { %19596 = vst [vmem:[#allocation103_spill] sm:$0xff] %v11397_v43 }
 0x4f8   : > { %v11399_v58 = vpop.permute.xlu0 %2005  ;;  %2119 = vrot.lane.b32.xlu1 %v19598_v18, %s10419_s17 }
 0x4f9   : > { %19597 = vst [vmem:[#allocation104_spill] sm:$0xff] %v11399_v58  ;;  %v19604_v58 = vld [vmem:[#allocation38_spill] sm:$0xff] }
 0x4fa   : > { %2121 = vrot.lane.b32.xlu0 %v19599_v3, %s10419_s17  ;;  %v11405_v35 = vpop.permute.xlu1 %2007 }
 0x4fb   : > { %19600 = vst [vmem:[#allocation105_spill] sm:$0xff] %v11405_v35 }
 0x4fc   : > { %v11407_v42 = vpop.permute.xlu0 %2009  ;;  %2123 = vrot.lane.b32.xlu1 %v11123_v49, %s10419_s17 }
 0x4fd   : > { %19601 = vst [vmem:[#allocation106_spill] sm:$0xff] %v11407_v42  ;;  %v19607_v42 = vld [vmem:[#allocation40_spill] sm:$0xff] }
 0x4fe   : > { %2125 = vrot.lane.b32.xlu0 %v11128_v38, %s10419_s17  ;;  %v11413_v56 = vpop.permute.xlu1 %2011 }
 0x4ff   : > { %19602 = vst [vmem:[#allocation107_spill] sm:$0xff] %v11413_v56 }
 0x500   : > { %v11415_v43 = vpop.permute.xlu0 %2013  ;;  %2127 = vrot.lane.b32.xlu1 %v11135_v63, %s10419_s17  ;;  %v19611_v63 = vld [vmem:[#allocation42_spill] sm:$0xff] }
 0x501   : > { %19603 = vst [vmem:[#allocation108_spill] sm:$0xff] %v11415_v43  ;;  %v19610_v43 = vld [vmem:[#allocation41_spill] sm:$0xff] }
 0x502   : > { %2129 = vrot.lane.b32.xlu0 %v19604_v58, %s10419_s17  ;;  %v11421_v3 = vpop.permute.xlu1 %2015 }
 0x503   : > { %19605 = vst [vmem:[#allocation109_spill] sm:$0xff] %v11421_v3 }
 0x504   : > { %v11423_v35 = vpop.permute.xlu0 %2017  ;;  %2131 = vrot.lane.b32.xlu1 %v11146_v2, %s10419_s17 }
 0x505   : > { %19606 = vst [vmem:[#allocation110_spill] sm:$0xff] %v11423_v35 }
 0x506   : > { %2133 = vrot.lane.b32.xlu0 %v19607_v42, %s10419_s17  ;;  %v11429_v38 = vpop.permute.xlu1 %2019 }
 0x507   : > { %19608 = vst [vmem:[#allocation111_spill] sm:$0xff] %v11429_v38 }
 0x508   : > { %v11431_v56 = vpop.permute.xlu0 %2021  ;;  %2135 = vrot.lane.b32.xlu1 %v19610_v43, %s10419_s17 }
 0x509   : > { %19609 = vst [vmem:[#allocation112_spill] sm:$0xff] %v11431_v56 }
 0x50a   : > { %2137 = vrot.lane.b32.xlu0 %v19611_v63, %s10419_s17  ;;  %v11437_v58 = vpop.permute.xlu1 %2023 }
 0x50b   : > { %19612 = vst [vmem:[#allocation113_spill] sm:$0xff] %v11437_v58 }
 0x50c   : > { %v11439_v3 = vpop.permute.xlu0 %2025  ;;  %2139 = vrot.lane.b32.xlu1 %v11165_v7, %s10419_s17 }
 0x50d   : > { %19613 = vst [vmem:[#allocation114_spill] sm:$0xff] %v11439_v3 }
 0x50e   : > { %2141 = vrot.lane.b32.xlu0 %v11170_v24, %s10419_s17  ;;  %v11445_v35 = vpop.permute.xlu1 %2027 }
 0x50f   : > { %19614 = vst [vmem:[#allocation115_spill] sm:$0xff] %v11445_v35 }
 0x510   : > { %v11447_v38 = vpop.permute.xlu0 %2029  ;;  %2143 = vrot.lane.b32.xlu1 %v11176_v50, %s10419_s17 }
 0x511   : > { %19615 = vst [vmem:[#allocation116_spill] sm:$0xff] %v11447_v38 }
 0x512   : > { %2145 = vrot.lane.b32.xlu0 %v11178_v1, %s10419_s17  ;;  %v11453_v56 = vpop.permute.xlu1 %2031 }
 0x513   : > { %19616 = vst [vmem:[#allocation117_spill] sm:$0xff] %v11453_v56 }
 0x514   : > { %v11455_v58 = vpop.permute.xlu0 %2033  ;;  %2147 = vrot.lane.b32.xlu1 %v11189_v29, %s10419_s17 }
 0x515   : > { %19617 = vst [vmem:[#allocation118_spill] sm:$0xff] %v11455_v58 }
 0x516   : > { %2149 = vrot.lane.b32.xlu0 %v11191_v41, %s10419_s17  ;;  %v11461_v3 = vpop.permute.xlu1 %2035 }
 0x517   : > { %19618 = vst [vmem:[#allocation119_spill] sm:$0xff] %v11461_v3 }
 0x518   : > { %v11463_v35 = vpop.permute.xlu0 %2037  ;;  %2151 = vrot.lane.b32.xlu1 %v11197_v22, %s10419_s17 }
 0x519   : > { %19619 = vst [vmem:[#allocation120_spill] sm:$0xff] %v11463_v35 }
 0x51a   : > { %2153 = vrot.lane.b32.xlu0 %v11201_v54, %s10419_s17  ;;  %v11469_v38 = vpop.permute.xlu1 %2039 }
 0x51b   : > { %19620 = vst [vmem:[#allocation121_spill] sm:$0xff] %v11469_v38 }
 0x51c   : > { %v11471_v56 = vpop.permute.xlu0 %2041  ;;  %2155 = vrot.lane.b32.xlu1 %v11209_v8, %s10419_s17 }
 0x51d   : > { %19621 = vst [vmem:[#allocation122_spill] sm:$0xff] %v11471_v56 }
 0x51e   : > { %2157 = vrot.lane.b32.xlu0 %v11213_v57, %s10419_s17  ;;  %v11477_v58 = vpop.permute.xlu1 %2043  ;;  %s9987_s17 = sshll.u32 %s296_s21, 3 }
 0x51f   : > { %19622 = vst [vmem:[#allocation123_spill] sm:$0xff] %v11477_v58 }
 0x520   : > { %v11479_v3 = vpop.permute.xlu0 %2045  ;;  %2159 = vrot.lane.b32.xlu1 %v10779_v21, %s10420_s25 }
 0x521   : > { %19623 = vst [vmem:[#allocation124_spill] sm:$0xff] %v11479_v3 }
 0x522   : > { %2161 = vrot.lane.b32.xlu0 %v10781_v23, %s10420_s25  ;;  %v11485_v38 = vpop.permute.xlu1 %2047 }
 0x523   : > { %19624 = vst [vmem:[#allocation125_spill] sm:$0xff] %v11485_v38 }
 0x524   : > { %v11487_v56 = vpop.permute.xlu0 %2049  ;;  %2163 = vrot.lane.b32.xlu1 %v10791_v27, %s10420_s25 }
 0x525   : > { %19625 = vst [vmem:[#allocation126_spill] sm:$0xff] %v11487_v56 }
 0x526   : > { %2165 = vrot.lane.b32.xlu0 %v10793_v28, %s10420_s25  ;;  %v11493_v58 = vpop.permute.xlu1 %2051 }
 0x527   : > { %19626 = vst [vmem:[#allocation127_spill] sm:$0xff] %v11493_v58 }
 0x528   : > { %v11495_v3 = vpop.permute.xlu0 %2053  ;;  %2167 = vrot.lane.b32.xlu1 %v10823_v12, %s10420_s25 }
 0x529   : > { %19627 = vst [vmem:[#allocation128_spill] sm:$0xff] %v11495_v3 }
 0x52a   : > { %2169 = vrot.lane.b32.xlu0 %v10825_v13, %s10420_s25  ;;  %v11501_v35 = vpop.permute.xlu1 %2055 }
 0x52b   : > { %19628 = vst [vmem:[#allocation129_spill] sm:$0xff] %v11501_v35 }
 0x52c   : > { %v11503_v38 = vpop.permute.xlu0 %2057  ;;  %2171 = vrot.lane.b32.xlu1 %v10831_v19, %s10420_s25 }
 0x52d   : > { %19629 = vst [vmem:[#allocation130_spill] sm:$0xff] %v11503_v38 }
 0x52e   : > { %2173 = vrot.lane.b32.xlu0 %v10834_v32, %s10420_s25  ;;  %v11509_v56 = vpop.permute.xlu1 %2059 }
 0x52f   : > { %19630 = vst [vmem:[#allocation131_spill] sm:$0xff] %v11509_v56 }
 0x530   : > { %v11511_v58 = vpop.permute.xlu0 %2061  ;;  %2175 = vrot.lane.b32.xlu1 %v10840_v34, %s10420_s25 }
 0x531   : > { %19631 = vst [vmem:[#allocation132_spill] sm:$0xff] %v11511_v58 }
 0x532   : > { %2177 = vrot.lane.b32.xlu0 %v10842_v48, %s10420_s25  ;;  %v11517_v3 = vpop.permute.xlu1 %2063 }
 0x533   : > { %19632 = vst [vmem:[#allocation133_spill] sm:$0xff] %v11517_v3 }
 0x534   : > { %v11519_v35 = vpop.permute.xlu0 %2065  ;;  %2179 = vrot.lane.b32.xlu1 %v10855_v55, %s10420_s25 }
 0x535   : > { %19633 = vst [vmem:[#allocation134_spill] sm:$0xff] %v11519_v35 }
 0x536   : > { %2181 = vrot.lane.b32.xlu0 %v10857_v47, %s10420_s25  ;;  %v11525_v38 = vpop.permute.xlu1 %2067 }
 0x537   : > { %19634 = vst [vmem:[#allocation135_spill] sm:$0xff] %v11525_v38 }
 0x538   : > { %v11527_v56 = vpop.permute.xlu0 %2069  ;;  %2183 = vrot.lane.b32.xlu1 %v10870_v61, %s10420_s25 }
 0x539   : > { %19635 = vst [vmem:[#allocation136_spill] sm:$0xff] %v11527_v56 }
 0x53a   : > { %2185 = vrot.lane.b32.xlu0 %v10874_v9, %s10420_s25  ;;  %v11533_v58 = vpop.permute.xlu1 %2071 }
 0x53b   : > { %19636 = vst [vmem:[#allocation137_spill] sm:$0xff] %v11533_v58 }
 0x53c   : > { %v11535_v3 = vpop.permute.xlu0 %2073  ;;  %2187 = vrot.lane.b32.xlu1 %v10880_v17, %s10420_s25 }
 0x53d   : > { %19637 = vst [vmem:[#allocation138_spill] sm:$0xff] %v11535_v3 }
 0x53e   : > { %2189 = vrot.lane.b32.xlu0 %v10885_v20, %s10420_s25  ;;  %v11541_v35 = vpop.permute.xlu1 %2075 }
 0x53f   : > { %19638 = vst [vmem:[#allocation139_spill] sm:$0xff] %v11541_v35 }
 0x540   : > { %v11543_v38 = vpop.permute.xlu0 %2077  ;;  %2191 = vrot.lane.b32.xlu1 %v10895_v5, %s10420_s25 }
 0x541   : > { %19639 = vst [vmem:[#allocation140_spill] sm:$0xff] %v11543_v38 }
 0x542   : > { %2193 = vrot.lane.b32.xlu0 %v10897_v52, %s10420_s25  ;;  %v11549_v56 = vpop.permute.xlu1 %2079 }
 0x543   : > { %19640 = vst [vmem:[#allocation141_spill] sm:$0xff] %v11549_v56 }
 0x544   : > { %v11551_v58 = vpop.permute.xlu0 %2081  ;;  %2195 = vrot.lane.b32.xlu1 %v10917_v45, %s10420_s25 }
 0x545   : > { %19641 = vst [vmem:[#allocation142_spill] sm:$0xff] %v11551_v58 }
 0x546   : > { %2197 = vrot.lane.b32.xlu0 %v10922_v30, %s10420_s25  ;;  %v11557_v3 = vpop.permute.xlu1 %2083 }
 0x547   : > { %19642 = vst [vmem:[#allocation143_spill] sm:$0xff] %v11557_v3 }
 0x548   : > { %v11559_v35 = vpop.permute.xlu0 %2085  ;;  %2199 = vrot.lane.b32.xlu1 %v10937_v60, %s10420_s25 }
 0x549   : > { %19643 = vst [vmem:[#allocation144_spill] sm:$0xff] %v11559_v35 }
 0x54a   : > { %2201 = vrot.lane.b32.xlu0 %v10943_v10, %s10420_s25  ;;  %v11565_v38 = vpop.permute.xlu1 %2087 }
 0x54b   : > { %19644 = vst [vmem:[#allocation145_spill] sm:$0xff] %v11565_v38 }
 0x54c   : > { %v11567_v56 = vpop.permute.xlu0 %2089  ;;  %2203 = vrot.lane.b32.xlu1 %v10960_v31, %s10420_s25 }
 0x54d   : > { %19645 = vst [vmem:[#allocation146_spill] sm:$0xff] %v11567_v56 }
 0x54e   : > { %2205 = vrot.lane.b32.xlu0 %v10968_v15, %s10420_s25  ;;  %v11573_v58 = vpop.permute.xlu1 %2091 }
 0x54f   : > { %19646 = vst [vmem:[#allocation147_spill] sm:$0xff] %v11573_v58 }
 0x550   : > { %v11575_v3 = vpop.permute.xlu0 %2093  ;;  %2207 = vrot.lane.b32.xlu1 %v10985_v36, %s10420_s25 }
 0x551   : > { %19647 = vst [vmem:[#allocation148_spill] sm:$0xff] %v11575_v3 }
 0x552   : > { %2209 = vrot.lane.b32.xlu0 %v10987_v51, %s10420_s25  ;;  %v11581_v35 = vpop.permute.xlu1 %2095 }
 0x553   : > { %19648 = vst [vmem:[#allocation149_spill] sm:$0xff] %v11581_v35 }
 0x554   : > { %v11583_v38 = vpop.permute.xlu0 %2097  ;;  %2211 = vrot.lane.b32.xlu1 %v11001_v39, %s10420_s25 }
 0x555   : > { %19649 = vst [vmem:[#allocation150_spill] sm:$0xff] %v11583_v38 }
 0x556   : > { %2213 = vrot.lane.b32.xlu0 %v11003_v62, %s10420_s25  ;;  %v11589_v56 = vpop.permute.xlu1 %2099 }
 0x557   : > { %19650 = vst [vmem:[#allocation151_spill] sm:$0xff] %v11589_v56 }
 0x558   : > { %v11591_v58 = vpop.permute.xlu0 %2101  ;;  %2215 = vrot.lane.b32.xlu1 %v11014_v33, %s10420_s25 }
 0x559   : > { %19651 = vst [vmem:[#allocation152_spill] sm:$0xff] %v11591_v58 }
 0x55a   : > { %2217 = vrot.lane.b32.xlu0 %v11017_v11, %s10420_s25  ;;  %v11597_v3 = vpop.permute.xlu1 %2103 }
 0x55b   : > { %19652 = vst [vmem:[#allocation153_spill] sm:$0xff] %v11597_v3 }
 0x55c   : > { %v11599_v35 = vpop.permute.xlu0 %2105  ;;  %2219 = vrot.lane.b32.xlu1 %v11023_v53, %s10420_s25 }
 0x55d   : > { %19653 = vst [vmem:[#allocation154_spill] sm:$0xff] %v11599_v35 }
 0x55e   : > { %2221 = vrot.lane.b32.xlu0 %v11028_v40, %s10420_s25  ;;  %v11605_v38 = vpop.permute.xlu1 %2107 }
 0x55f   : > { %19654 = vst [vmem:[#allocation155_spill] sm:$0xff] %v11605_v38 }
 0x560   : > { %v11607_v56 = vpop.permute.xlu0 %2109  ;;  %2223 = vrot.lane.b32.xlu1 %v11035_v14, %s10420_s25 }
 0x561   : > { %19655 = vst [vmem:[#allocation156_spill] sm:$0xff] %v11607_v56 }
 0x562   : > { %2225 = vrot.lane.b32.xlu0 %v11037_v4, %s10420_s25  ;;  %v11613_v58 = vpop.permute.xlu1 %2111 }
 0x563   : > { %19656 = vst [vmem:[#allocation157_spill] sm:$0xff] %v11613_v58 }
 0x564   : > { %v11615_v3 = vpop.permute.xlu0 %2113  ;;  %2227 = vrot.lane.b32.xlu1 %v19583_v6, %s10420_s25 }
 0x565   : > { %19657 = vst [vmem:[#allocation158_spill] sm:$0xff] %v11615_v3 }
 0x566   : > { %2229 = vrot.lane.b32.xlu0 %v11049_v26, %s10420_s25  ;;  %v11621_v35 = vpop.permute.xlu1 %2115 }
 0x567   : > { %19658 = vst [vmem:[#allocation159_spill] sm:$0xff] %v11621_v35 }
 0x568   : > { %v11623_v38 = vpop.permute.xlu0 %2117  ;;  %2231 = vrot.lane.b32.xlu1 %v11058_v16, %s10420_s25 }
 0x569   : > { %19659 = vst [vmem:[#allocation160_spill] sm:$0xff] %v11623_v38  ;;  %v19664_v38 = vld [vmem:[#allocation30_spill] sm:$0xff] }
 0x56a   : > { %2233 = vrot.lane.b32.xlu0 %v19586_v46, %s10420_s25  ;;  %v11629_v56 = vpop.permute.xlu1 %2119 }
 0x56b   : > { %19660 = vst [vmem:[#allocation161_spill] sm:$0xff] %v11629_v56 }
 0x56c   : > { %v11631_v58 = vpop.permute.xlu0 %2121  ;;  %2235 = vrot.lane.b32.xlu1 %v11072_v0, %s10420_s25 }
 0x56d   : > { %19661 = vst [vmem:[#allocation162_spill] sm:$0xff] %v11631_v58 }
 0x56e   : > { %2237 = vrot.lane.b32.xlu0 %v11077_v37, %s10420_s25  ;;  %v11637_v3 = vpop.permute.xlu1 %2123 }
 0x56f   : > { %19662 = vst [vmem:[#allocation163_spill] sm:$0xff] %v11637_v3 }
 0x570   : > { %v11639_v35 = vpop.permute.xlu0 %2125  ;;  %2239 = vrot.lane.b32.xlu1 %v11085_v25, %s10420_s25 }
 0x571   : > { %19663 = vst [vmem:[#allocation164_spill] sm:$0xff] %v11639_v35  ;;  %v19669_v35 = vld [vmem:[#allocation34_spill] sm:$0xff] }
 0x572   : > { %2241 = vrot.lane.b32.xlu0 %v19664_v38, %s10420_s25  ;;  %v11645_v46 = vpop.permute.xlu1 %2127 }
 0x573   : > { %19665 = vst [vmem:[#allocation165_spill] sm:$0xff] %v11645_v46 }
 0x574   : > { %v11647_v56 = vpop.permute.xlu0 %2129  ;;  %2243 = vrot.lane.b32.xlu1 %v19594_v44, %s10420_s25 }
 0x575   : > { %19666 = vst [vmem:[#allocation166_spill] sm:$0xff] %v11647_v56  ;;  %v19672_v56 = vld [vmem:[#allocation36_spill] sm:$0xff] }
 0x576   : > { %2245 = vrot.lane.b32.xlu0 %v19595_v59, %s10420_s25  ;;  %v11653_v58 = vpop.permute.xlu1 %2131 }
 0x577   : > { %19667 = vst [vmem:[#allocation167_spill] sm:$0xff] %v11653_v58 }
 0x578   : > { %v11655_v3 = vpop.permute.xlu0 %2133  ;;  %2247 = vrot.lane.b32.xlu1 %v19598_v18, %s10420_s25  ;;  %v19676_v18 = vld [vmem:[#allocation38_spill] sm:$0xff] }
 0x579   : > { %19668 = vst [vmem:[#allocation168_spill] sm:$0xff] %v11655_v3  ;;  %v19675_v3 = vld [vmem:[#allocation37_spill] sm:$0xff] }
 0x57a   : > { %2249 = vrot.lane.b32.xlu0 %v19669_v35, %s10420_s25  ;;  %v11661_v38 = vpop.permute.xlu1 %2135 }
 0x57b   : > { %19670 = vst [vmem:[#allocation169_spill] sm:$0xff] %v11661_v38 }
 0x57c   : > { %v11663_v46 = vpop.permute.xlu0 %2137  ;;  %2251 = vrot.lane.b32.xlu1 %v11123_v49, %s10420_s25 }
 0x57d   : > { %19671 = vst [vmem:[#allocation170_spill] sm:$0xff] %v11663_v46 }
 0x57e   : > { %2253 = vrot.lane.b32.xlu0 %v19672_v56, %s10420_s25  ;;  %v11669_v59 = vpop.permute.xlu1 %2139 }
 0x57f   : > { %19673 = vst [vmem:[#allocation171_spill] sm:$0xff] %v11669_v59 }
 0x580   : > { %v11671_v58 = vpop.permute.xlu0 %2141  ;;  %2255 = vrot.lane.b32.xlu1 %v19675_v3, %s10420_s25 }
 0x581   : > { %19674 = vst [vmem:[#allocation172_spill] sm:$0xff] %v11671_v58 }
 0x582   : > { %2257 = vrot.lane.b32.xlu0 %v19676_v18, %s10420_s25  ;;  %v11677_v35 = vpop.permute.xlu1 %2143 }
 0x583   : > { %19677 = vst [vmem:[#allocation173_spill] sm:$0xff] %v11677_v35 }
 0x584   : > { %v11679_v38 = vpop.permute.xlu0 %2145  ;;  %2259 = vrot.lane.b32.xlu1 %v11146_v2, %s10420_s25 }
 0x585   : > { %19678 = vst [vmem:[#allocation174_spill] sm:$0xff] %v11679_v38 }
 0x586   : > { %2261 = vrot.lane.b32.xlu0 %v19607_v42, %s10420_s25  ;;  %v11685_v46 = vpop.permute.xlu1 %2147 }
 0x587   : > { %19679 = vst [vmem:[#allocation175_spill] sm:$0xff] %v11685_v46 }
 0x588   : > { %v11687_v59 = vpop.permute.xlu0 %2149  ;;  %2263 = vrot.lane.b32.xlu1 %v19610_v43, %s10420_s25 }
 0x589   : > { %19680 = vst [vmem:[#allocation176_spill] sm:$0xff] %v11687_v59 }
 0x58a   : > { %2265 = vrot.lane.b32.xlu0 %v19611_v63, %s10420_s25  ;;  %v11693_v58 = vpop.permute.xlu1 %2151 }
 0x58b   : > { %19681 = vst [vmem:[#allocation177_spill] sm:$0xff] %v11693_v58 }
 0x58c   : > { %v11695_v35 = vpop.permute.xlu0 %2153  ;;  %2267 = vrot.lane.b32.xlu1 %v11165_v7, %s10420_s25 }
 0x58d   : > { %19682 = vst [vmem:[#allocation178_spill] sm:$0xff] %v11695_v35 }
 0x58e   : > { %2269 = vrot.lane.b32.xlu0 %v11170_v24, %s10420_s25  ;;  %v11701_v38 = vpop.permute.xlu1 %2155 }
 0x58f   : > { %19683 = vst [vmem:[#allocation179_spill] sm:$0xff] %v11701_v38 }
 0x590   : > { %v11703_v46 = vpop.permute.xlu0 %2157  ;;  %2271 = vrot.lane.b32.xlu1 %v11176_v50, %s10420_s25 }
 0x591   : > { %19684 = vst [vmem:[#allocation180_spill] sm:$0xff] %v11703_v46 }
 0x592   : > { %2273 = vrot.lane.b32.xlu0 %v11178_v1, %s10420_s25  ;;  %v11709_v59 = vpop.permute.xlu1 %2159 }
 0x593   : > { %19685 = vst [vmem:[#allocation181_spill] sm:$0xff] %v11709_v59 }
 0x594   : > { %v11711_v58 = vpop.permute.xlu0 %2161  ;;  %2275 = vrot.lane.b32.xlu1 %v11189_v29, %s10420_s25 }
 0x595   : > { %19686 = vst [vmem:[#allocation182_spill] sm:$0xff] %v11711_v58 }
 0x596   : > { %2277 = vrot.lane.b32.xlu0 %v11191_v41, %s10420_s25  ;;  %v11717_v35 = vpop.permute.xlu1 %2163 }
 0x597   : > { %19687 = vst [vmem:[#allocation183_spill] sm:$0xff] %v11717_v35 }
 0x598   : > { %v11719_v38 = vpop.permute.xlu0 %2165  ;;  %2279 = vrot.lane.b32.xlu1 %v11197_v22, %s10420_s25 }
 0x599   : > { %19688 = vst [vmem:[#allocation184_spill] sm:$0xff] %v11719_v38 }
 0x59a   : > { %2281 = vrot.lane.b32.xlu0 %v11201_v54, %s10420_s25  ;;  %v11725_v46 = vpop.permute.xlu1 %2167 }
 0x59b   : > { %19689 = vst [vmem:[#allocation185_spill] sm:$0xff] %v11725_v46 }
 0x59c   : > { %v11727_v59 = vpop.permute.xlu0 %2169  ;;  %2283 = vrot.lane.b32.xlu1 %v11209_v8, %s10420_s25 }
 0x59d   : > { %19690 = vst [vmem:[#allocation186_spill] sm:$0xff] %v11727_v59 }
 0x59e   : > { %2285 = vrot.lane.b32.xlu0 %v11213_v57, %s10420_s25  ;;  %v11733_v58 = vpop.permute.xlu1 %2171 }
 0x59f   : > { %19691 = vst [vmem:[#allocation187_spill] sm:$0xff] %v11733_v58 }
 0x5a0   : > { %v11735_v35 = vpop.permute.xlu0 %2173  ;;  %2287 = vrot.lane.b32.xlu1 %v10779_v21, %s10421_s22 }
 0x5a1   : > { %19692 = vst [vmem:[#allocation188_spill] sm:$0xff] %v11735_v35 }
 0x5a2   : > { %2289 = vrot.lane.b32.xlu0 %v10781_v23, %s10421_s22  ;;  %v11741_v46 = vpop.permute.xlu1 %2175 }
 0x5a3   : > { %19693 = vst [vmem:[#allocation189_spill] sm:$0xff] %v11741_v46 }
 0x5a4   : > { %v11743_v59 = vpop.permute.xlu0 %2177  ;;  %2291 = vrot.lane.b32.xlu1 %v10791_v27, %s10421_s22 }
 0x5a5   : > { %19694 = vst [vmem:[#allocation190_spill] sm:$0xff] %v11743_v59 }
 0x5a6   : > { %2293 = vrot.lane.b32.xlu0 %v10793_v28, %s10421_s22  ;;  %v11749_v58 = vpop.permute.xlu1 %2179 }
 0x5a7   : > { %19695 = vst [vmem:[#allocation191_spill] sm:$0xff] %v11749_v58 }
 0x5a8   : > { %v11751_v35 = vpop.permute.xlu0 %2181  ;;  %2295 = vrot.lane.b32.xlu1 %v10823_v12, %s10421_s22 }
 0x5a9   : > { %19696 = vst [vmem:[#allocation192_spill] sm:$0xff] %v11751_v35 }
 0x5aa   : > { %2297 = vrot.lane.b32.xlu0 %v10825_v13, %s10421_s22  ;;  %v11757_v38 = vpop.permute.xlu1 %2183 }
 0x5ab   : > { %19697 = vst [vmem:[#allocation193_spill] sm:$0xff] %v11757_v38 }
 0x5ac   : > { %v11759_v46 = vpop.permute.xlu0 %2185  ;;  %2299 = vrot.lane.b32.xlu1 %v10831_v19, %s10421_s22 }
 0x5ad   : > { %19698 = vst [vmem:[#allocation194_spill] sm:$0xff] %v11759_v46 }
 0x5ae   : > { %2301 = vrot.lane.b32.xlu0 %v10834_v32, %s10421_s22  ;;  %v11765_v59 = vpop.permute.xlu1 %2187 }
 0x5af   : > { %19699 = vst [vmem:[#allocation195_spill] sm:$0xff] %v11765_v59 }
 0x5b0   : > { %v11767_v58 = vpop.permute.xlu0 %2189  ;;  %2303 = vrot.lane.b32.xlu1 %v10840_v34, %s10421_s22 }
 0x5b1   : > { %19700 = vst [vmem:[#allocation196_spill] sm:$0xff] %v11767_v58 }
 0x5b2   : > { %2305 = vrot.lane.b32.xlu0 %v10842_v48, %s10421_s22  ;;  %v11773_v35 = vpop.permute.xlu1 %2191 }
 0x5b3   : > { %19701 = vst [vmem:[#allocation197_spill] sm:$0xff] %v11773_v35 }
 0x5b4   : > { %v11775_v38 = vpop.permute.xlu0 %2193  ;;  %2307 = vrot.lane.b32.xlu1 %v10855_v55, %s10421_s22 }
 0x5b5   : > { %19702 = vst [vmem:[#allocation198_spill] sm:$0xff] %v11775_v38 }
 0x5b6   : > { %2309 = vrot.lane.b32.xlu0 %v10857_v47, %s10421_s22  ;;  %v11781_v46 = vpop.permute.xlu1 %2195 }
 0x5b7   : > { %19703 = vst [vmem:[#allocation199_spill] sm:$0xff] %v11781_v46 }
 0x5b8   : > { %v11783_v59 = vpop.permute.xlu0 %2197  ;;  %2311 = vrot.lane.b32.xlu1 %v10870_v61, %s10421_s22 }
 0x5b9   : > { %19704 = vst [vmem:[#allocation200_spill] sm:$0xff] %v11783_v59 }
 0x5ba   : > { %2313 = vrot.lane.b32.xlu0 %v10874_v9, %s10421_s22  ;;  %v11789_v58 = vpop.permute.xlu1 %2199 }
 0x5bb   : > { %19705 = vst [vmem:[#allocation201_spill] sm:$0xff] %v11789_v58 }
 0x5bc   : > { %v11791_v35 = vpop.permute.xlu0 %2201  ;;  %2315 = vrot.lane.b32.xlu1 %v10880_v17, %s10421_s22 }
 0x5bd   : > { %19706 = vst [vmem:[#allocation202_spill] sm:$0xff] %v11791_v35 }
 0x5be   : > { %2317 = vrot.lane.b32.xlu0 %v10885_v20, %s10421_s22  ;;  %v11797_v38 = vpop.permute.xlu1 %2203 }
 0x5bf   : > { %19707 = vst [vmem:[#allocation203_spill] sm:$0xff] %v11797_v38 }
 0x5c0   : > { %v11799_v46 = vpop.permute.xlu0 %2205  ;;  %2319 = vrot.lane.b32.xlu1 %v10895_v5, %s10421_s22 }
 0x5c1   : > { %19708 = vst [vmem:[#allocation204_spill] sm:$0xff] %v11799_v46 }
 0x5c2   : > { %2321 = vrot.lane.b32.xlu0 %v10897_v52, %s10421_s22  ;;  %v11805_v59 = vpop.permute.xlu1 %2207 }
 0x5c3   : > { %19709 = vst [vmem:[#allocation205_spill] sm:$0xff] %v11805_v59 }
 0x5c4   : > { %v11807_v58 = vpop.permute.xlu0 %2209  ;;  %2323 = vrot.lane.b32.xlu1 %v10917_v45, %s10421_s22 }
 0x5c5   : > { %19710 = vst [vmem:[#allocation206_spill] sm:$0xff] %v11807_v58 }
 0x5c6   : > { %2325 = vrot.lane.b32.xlu0 %v10922_v30, %s10421_s22  ;;  %v11813_v35 = vpop.permute.xlu1 %2211 }
 0x5c7   : > { %19711 = vst [vmem:[#allocation207_spill] sm:$0xff] %v11813_v35 }
 0x5c8   : > { %v11815_v38 = vpop.permute.xlu0 %2213  ;;  %2327 = vrot.lane.b32.xlu1 %v10937_v60, %s10421_s22 }
 0x5c9   : > { %19712 = vst [vmem:[#allocation208_spill] sm:$0xff] %v11815_v38 }
 0x5ca   : > { %2329 = vrot.lane.b32.xlu0 %v10943_v10, %s10421_s22  ;;  %v11821_v46 = vpop.permute.xlu1 %2215 }
 0x5cb   : > { %19713 = vst [vmem:[#allocation209_spill] sm:$0xff] %v11821_v46 }
 0x5cc   : > { %v11823_v59 = vpop.permute.xlu0 %2217  ;;  %2331 = vrot.lane.b32.xlu1 %v10960_v31, %s10421_s22 }
 0x5cd   : > { %19714 = vst [vmem:[#allocation210_spill] sm:$0xff] %v11823_v59 }
 0x5ce   : > { %2333 = vrot.lane.b32.xlu0 %v10968_v15, %s10421_s22  ;;  %v11829_v58 = vpop.permute.xlu1 %2219 }
 0x5cf   : > { %19715 = vst [vmem:[#allocation211_spill] sm:$0xff] %v11829_v58 }
 0x5d0   : > { %v11831_v35 = vpop.permute.xlu0 %2221  ;;  %2335 = vrot.lane.b32.xlu1 %v10985_v36, %s10421_s22 }
 0x5d1   : > { %19716 = vst [vmem:[#allocation212_spill] sm:$0xff] %v11831_v35 }
 0x5d2   : > { %2337 = vrot.lane.b32.xlu0 %v10987_v51, %s10421_s22  ;;  %v11837_v38 = vpop.permute.xlu1 %2223 }
 0x5d3   : > { %19717 = vst [vmem:[#allocation213_spill] sm:$0xff] %v11837_v38 }
 0x5d4   : > { %v11839_v46 = vpop.permute.xlu0 %2225  ;;  %2339 = vrot.lane.b32.xlu1 %v11001_v39, %s10421_s22 }
 0x5d5   : > { %19718 = vst [vmem:[#allocation214_spill] sm:$0xff] %v11839_v46 }
 0x5d6   : > { %2341 = vrot.lane.b32.xlu0 %v11003_v62, %s10421_s22  ;;  %v11845_v59 = vpop.permute.xlu1 %2227 }
 0x5d7   : > { %19719 = vst [vmem:[#allocation215_spill] sm:$0xff] %v11845_v59 }
 0x5d8   : > { %v11847_v58 = vpop.permute.xlu0 %2229  ;;  %2343 = vrot.lane.b32.xlu1 %v11014_v33, %s10421_s22 }
 0x5d9   : > { %19720 = vst [vmem:[#allocation216_spill] sm:$0xff] %v11847_v58 }
 0x5da   : > { %2345 = vrot.lane.b32.xlu0 %v11017_v11, %s10421_s22  ;;  %v11853_v35 = vpop.permute.xlu1 %2231 }
 0x5db   : > { %19721 = vst [vmem:[#allocation217_spill] sm:$0xff] %v11853_v35 }
 0x5dc   : > { %v11855_v38 = vpop.permute.xlu0 %2233  ;;  %2347 = vrot.lane.b32.xlu1 %v11023_v53, %s10421_s22 }
 0x5dd   : > { %19722 = vst [vmem:[#allocation218_spill] sm:$0xff] %v11855_v38 }
 0x5de   : > { %2349 = vrot.lane.b32.xlu0 %v11028_v40, %s10421_s22  ;;  %v11861_v46 = vpop.permute.xlu1 %2235 }
 0x5df   : > { %19723 = vst [vmem:[#allocation219_spill] sm:$0xff] %v11861_v46 }
 0x5e0   : > { %v11863_v59 = vpop.permute.xlu0 %2237  ;;  %2351 = vrot.lane.b32.xlu1 %v11035_v14, %s10421_s22 }
 0x5e1   : > { %19724 = vst [vmem:[#allocation220_spill] sm:$0xff] %v11863_v59  ;;  %v19729_v59 = vld [vmem:[#allocation26_spill] sm:$0xff] }
 0x5e2   : > { %2353 = vrot.lane.b32.xlu0 %v11037_v4, %s10421_s22  ;;  %v11869_v58 = vpop.permute.xlu1 %2239 }
 0x5e3   : > { %19725 = vst [vmem:[#allocation221_spill] sm:$0xff] %v11869_v58 }
 0x5e4   : > { %v11871_v35 = vpop.permute.xlu0 %2241  ;;  %2355 = vrot.lane.b32.xlu1 %v19583_v6, %s10421_s22 }
 0x5e5   : > { %19726 = vst [vmem:[#allocation222_spill] sm:$0xff] %v11871_v35 }
 0x5e6   : > { %2357 = vrot.lane.b32.xlu0 %v11049_v26, %s10421_s22  ;;  %v11877_v38 = vpop.permute.xlu1 %2243 }
 0x5e7   : > { %19727 = vst [vmem:[#allocation223_spill] sm:$0xff] %v11877_v38 }
 0x5e8   : > { %v11879_v46 = vpop.permute.xlu0 %2245  ;;  %2359 = vrot.lane.b32.xlu1 %v11058_v16, %s10421_s22 }
 0x5e9   : > { %19728 = vst [vmem:[#allocation224_spill] sm:$0xff] %v11879_v46  ;;  %v19734_v46 = vld [vmem:[#allocation30_spill] sm:$0xff] }
 0x5ea   : > { %2361 = vrot.lane.b32.xlu0 %v19729_v59, %s10421_s22  ;;  %v11885_v4 = vpop.permute.xlu1 %2247 }
 0x5eb   : > { %19730 = vst [vmem:[#allocation225_spill] sm:$0xff] %v11885_v4 }
 0x5ec   : > { %v11887_v58 = vpop.permute.xlu0 %2249  ;;  %2363 = vrot.lane.b32.xlu1 %v11072_v0, %s10421_s22 }
 0x5ed   : > { %19731 = vst [vmem:[#allocation226_spill] sm:$0xff] %v11887_v58  ;;  %v19737_v58 = vld [vmem:[#allocation32_spill] sm:$0xff] }
 0x5ee   : > { %2365 = vrot.lane.b32.xlu0 %v11077_v37, %s10421_s22  ;;  %v11893_v35 = vpop.permute.xlu1 %2251 }
 0x5ef   : > { %19732 = vst [vmem:[#allocation227_spill] sm:$0xff] %v11893_v35 }
 0x5f0   : > { %v11895_v38 = vpop.permute.xlu0 %2253  ;;  %2367 = vrot.lane.b32.xlu1 %v11085_v25, %s10421_s22  ;;  %v19741_v25 = vld [vmem:[#allocation34_spill] sm:$0xff] }
 0x5f1   : > { %19733 = vst [vmem:[#allocation228_spill] sm:$0xff] %v11895_v38  ;;  %v19740_v38 = vld [vmem:[#allocation33_spill] sm:$0xff] }
 0x5f2   : > { %2369 = vrot.lane.b32.xlu0 %v19734_v46, %s10421_s22  ;;  %v11901_v59 = vpop.permute.xlu1 %2255 }
 0x5f3   : > { %19735 = vst [vmem:[#allocation229_spill] sm:$0xff] %v11901_v59 }
 0x5f4   : > { %v11903_v4 = vpop.permute.xlu0 %2257  ;;  %2371 = vrot.lane.b32.xlu1 %v19594_v44, %s10421_s22 }
 0x5f5   : > { %19736 = vst [vmem:[#allocation230_spill] sm:$0xff] %v11903_v4 }
 0x5f6   : > { %2373 = vrot.lane.b32.xlu0 %v19737_v58, %s10421_s22  ;;  %v11909_v37 = vpop.permute.xlu1 %2259 }
 0x5f7   : > { %19738 = vst [vmem:[#allocation231_spill] sm:$0xff] %v11909_v37 }
 0x5f8   : > { %v11911_v35 = vpop.permute.xlu0 %2261  ;;  %2375 = vrot.lane.b32.xlu1 %v19740_v38, %s10421_s22 }
 0x5f9   : > { %19739 = vst [vmem:[#allocation232_spill] sm:$0xff] %v11911_v35 }
 0x5fa   : > { %2377 = vrot.lane.b32.xlu0 %v19741_v25, %s10421_s22  ;;  %v11917_v46 = vpop.permute.xlu1 %2263 }
 0x5fb   : > { %19742 = vst [vmem:[#allocation233_spill] sm:$0xff] %v11917_v46 }
 0x5fc   : > { %v11919_v59 = vpop.permute.xlu0 %2265  ;;  %2379 = vrot.lane.b32.xlu1 %v11123_v49, %s10421_s22 }
 0x5fd   : > { %19743 = vst [vmem:[#allocation234_spill] sm:$0xff] %v11919_v59 }
 0x5fe   : > { %2381 = vrot.lane.b32.xlu0 %v19672_v56, %s10421_s22  ;;  %v11925_v4 = vpop.permute.xlu1 %2267 }
 0x5ff   : > { %19744 = vst [vmem:[#allocation235_spill] sm:$0xff] %v11925_v4 }
 0x600   : > { %v11927_v37 = vpop.permute.xlu0 %2269  ;;  %2383 = vrot.lane.b32.xlu1 %v19675_v3, %s10421_s22 }
 0x601   : > { %19745 = vst [vmem:[#allocation236_spill] sm:$0xff] %v11927_v37 }
 0x602   : > { %2385 = vrot.lane.b32.xlu0 %v19676_v18, %s10421_s22  ;;  %v11933_v35 = vpop.permute.xlu1 %2271 }
 0x603   : > { %19746 = vst [vmem:[#allocation237_spill] sm:$0xff] %v11933_v35 }
 0x604   : > { %v11935_v46 = vpop.permute.xlu0 %2273  ;;  %2387 = vrot.lane.b32.xlu1 %v11146_v2, %s10421_s22 }
 0x605   : > { %19747 = vst [vmem:[#allocation238_spill] sm:$0xff] %v11935_v46 }
 0x606   : > { %2389 = vrot.lane.b32.xlu0 %v19607_v42, %s10421_s22  ;;  %v11941_v59 = vpop.permute.xlu1 %2275 }
 0x607   : > { %19748 = vst [vmem:[#allocation239_spill] sm:$0xff] %v11941_v59 }
 0x608   : > { %v11943_v4 = vpop.permute.xlu0 %2277  ;;  %2391 = vrot.lane.b32.xlu1 %v19610_v43, %s10421_s22 }
 0x609   : > { %19749 = vst [vmem:[#allocation240_spill] sm:$0xff] %v11943_v4 }
 0x60a   : > { %2393 = vrot.lane.b32.xlu0 %v19611_v63, %s10421_s22  ;;  %v11949_v37 = vpop.permute.xlu1 %2279 }
 0x60b   : > { %19750 = vst [vmem:[#allocation241_spill] sm:$0xff] %v11949_v37 }
 0x60c   : > { %v11951_v35 = vpop.permute.xlu0 %2281  ;;  %2395 = vrot.lane.b32.xlu1 %v11165_v7, %s10421_s22 }
 0x60d   : > { %19751 = vst [vmem:[#allocation242_spill] sm:$0xff] %v11951_v35 }
 0x60e   : > { %2397 = vrot.lane.b32.xlu0 %v11170_v24, %s10421_s22  ;;  %v11957_v46 = vpop.permute.xlu1 %2283 }
 0x60f   : > { %19752 = vst [vmem:[#allocation243_spill] sm:$0xff] %v11957_v46 }
 0x610   : > { %v11959_v59 = vpop.permute.xlu0 %2285  ;;  %2399 = vrot.lane.b32.xlu1 %v11176_v50, %s10421_s22 }
 0x611   : > { %19753 = vst [vmem:[#allocation244_spill] sm:$0xff] %v11959_v59 }
 0x612   : > { %2401 = vrot.lane.b32.xlu0 %v11178_v1, %s10421_s22  ;;  %v11965_v4 = vpop.permute.xlu1 %2287 }
 0x613   : > { %19754 = vst [vmem:[#allocation245_spill] sm:$0xff] %v11965_v4 }
 0x614   : > { %v11967_v37 = vpop.permute.xlu0 %2289  ;;  %2403 = vrot.lane.b32.xlu1 %v11189_v29, %s10421_s22 }
 0x615   : > { %19755 = vst [vmem:[#allocation246_spill] sm:$0xff] %v11967_v37 }
 0x616   : > { %2405 = vrot.lane.b32.xlu0 %v11191_v41, %s10421_s22  ;;  %v11973_v35 = vpop.permute.xlu1 %2291 }
 0x617   : > { %19756 = vst [vmem:[#allocation247_spill] sm:$0xff] %v11973_v35 }
 0x618   : > { %v11975_v46 = vpop.permute.xlu0 %2293  ;;  %2407 = vrot.lane.b32.xlu1 %v11197_v22, %s10421_s22 }
 0x619   : > { %19757 = vst [vmem:[#allocation248_spill] sm:$0xff] %v11975_v46 }
 0x61a   : > { %2409 = vrot.lane.b32.xlu0 %v11201_v54, %s10421_s22  ;;  %v11981_v59 = vpop.permute.xlu1 %2295 }
 0x61b   : > { %19758 = vst [vmem:[#allocation249_spill] sm:$0xff] %v11981_v59 }
 0x61c   : > { %v11983_v4 = vpop.permute.xlu0 %2297  ;;  %2411 = vrot.lane.b32.xlu1 %v11209_v8, %s10421_s22 }
 0x61d   : > { %19759 = vst [vmem:[#allocation250_spill] sm:$0xff] %v11983_v4 }
 0x61e   : > { %2413 = vrot.lane.b32.xlu0 %v11213_v57, %s10421_s22  ;;  %v11989_v37 = vpop.permute.xlu1 %2299 }
 0x61f   : > { %19760 = vst [vmem:[#allocation251_spill] sm:$0xff] %v11989_v37 }
 0x620   : > { %v11991_v35 = vpop.permute.xlu0 %2301  ;;  %2415 = vrot.lane.b32.xlu1 %v10779_v21, %s10422_s23 }
 0x621   : > { %19761 = vst [vmem:[#allocation252_spill] sm:$0xff] %v11991_v35 }
 0x622   : > { %2417 = vrot.lane.b32.xlu0 %v10781_v23, %s10422_s23  ;;  %v11997_v59 = vpop.permute.xlu1 %2303 }
 0x623   : > { %19762 = vst [vmem:[#allocation253_spill] sm:$0xff] %v11997_v59 }
 0x624   : > { %v11999_v4 = vpop.permute.xlu0 %2305  ;;  %2419 = vrot.lane.b32.xlu1 %v10791_v27, %s10422_s23 }
 0x625   : > { %19763 = vst [vmem:[#allocation254_spill] sm:$0xff] %v11999_v4 }
 0x626   : > { %2421 = vrot.lane.b32.xlu0 %v10793_v28, %s10422_s23  ;;  %v12005_v37 = vpop.permute.xlu1 %2307 }
 0x627   : > { %19764 = vst [vmem:[#allocation255_spill] sm:$0xff] %v12005_v37 }
 0x628   : > { %v12007_v35 = vpop.permute.xlu0 %2309  ;;  %2423 = vrot.lane.b32.xlu1 %v10823_v12, %s10422_s23 }
 0x629   : > { %19765 = vst [vmem:[#allocation256_spill] sm:$0xff] %v12007_v35 }
 0x62a   : > { %2425 = vrot.lane.b32.xlu0 %v10825_v13, %s10422_s23  ;;  %v12013_v46 = vpop.permute.xlu1 %2311 }
 0x62b   : > { %19766 = vst [vmem:[#allocation257_spill] sm:$0xff] %v12013_v46 }
 0x62c   : > { %v12015_v59 = vpop.permute.xlu0 %2313  ;;  %2427 = vrot.lane.b32.xlu1 %v10831_v19, %s10422_s23 }
 0x62d   : > { %19767 = vst [vmem:[#allocation258_spill] sm:$0xff] %v12015_v59 }
 0x62e   : > { %2429 = vrot.lane.b32.xlu0 %v10834_v32, %s10422_s23  ;;  %v12021_v4 = vpop.permute.xlu1 %2315 }
 0x62f   : > { %19768 = vst [vmem:[#allocation259_spill] sm:$0xff] %v12021_v4 }
 0x630   : > { %v12023_v37 = vpop.permute.xlu0 %2317  ;;  %2431 = vrot.lane.b32.xlu1 %v10840_v34, %s10422_s23 }
 0x631   : > { %19769 = vst [vmem:[#allocation260_spill] sm:$0xff] %v12023_v37 }
 0x632   : > { %2433 = vrot.lane.b32.xlu0 %v10842_v48, %s10422_s23  ;;  %v12029_v35 = vpop.permute.xlu1 %2319 }
 0x633   : > { %19770 = vst [vmem:[#allocation261_spill] sm:$0xff] %v12029_v35 }
 0x634   : > { %v12031_v46 = vpop.permute.xlu0 %2321  ;;  %2435 = vrot.lane.b32.xlu1 %v10855_v55, %s10422_s23 }
 0x635   : > { %19771 = vst [vmem:[#allocation262_spill] sm:$0xff] %v12031_v46 }
 0x636   : > { %2437 = vrot.lane.b32.xlu0 %v10857_v47, %s10422_s23  ;;  %v12037_v59 = vpop.permute.xlu1 %2323 }
 0x637   : > { %19772 = vst [vmem:[#allocation263_spill] sm:$0xff] %v12037_v59 }
 0x638   : > { %v12039_v4 = vpop.permute.xlu0 %2325  ;;  %2439 = vrot.lane.b32.xlu1 %v10870_v61, %s10422_s23 }
 0x639   : > { %19773 = vst [vmem:[#allocation264_spill] sm:$0xff] %v12039_v4 }
 0x63a   : > { %2441 = vrot.lane.b32.xlu0 %v10874_v9, %s10422_s23  ;;  %v12045_v37 = vpop.permute.xlu1 %2327 }
 0x63b   : > { %19774 = vst [vmem:[#allocation265_spill] sm:$0xff] %v12045_v37 }
 0x63c   : > { %v12047_v35 = vpop.permute.xlu0 %2329  ;;  %2443 = vrot.lane.b32.xlu1 %v10880_v17, %s10422_s23 }
 0x63d   : > { %19775 = vst [vmem:[#allocation266_spill] sm:$0xff] %v12047_v35 }
 0x63e   : > { %2445 = vrot.lane.b32.xlu0 %v10885_v20, %s10422_s23  ;;  %v12053_v46 = vpop.permute.xlu1 %2331 }
 0x63f   : > { %19776 = vst [vmem:[#allocation267_spill] sm:$0xff] %v12053_v46 }
 0x640   : > { %v12055_v59 = vpop.permute.xlu0 %2333  ;;  %2447 = vrot.lane.b32.xlu1 %v10895_v5, %s10422_s23 }
 0x641   : > { %19777 = vst [vmem:[#allocation268_spill] sm:$0xff] %v12055_v59 }
 0x642   : > { %2449 = vrot.lane.b32.xlu0 %v10897_v52, %s10422_s23  ;;  %v12061_v4 = vpop.permute.xlu1 %2335 }
 0x643   : > { %19778 = vst [vmem:[#allocation269_spill] sm:$0xff] %v12061_v4 }
 0x644   : > { %v12063_v37 = vpop.permute.xlu0 %2337  ;;  %2451 = vrot.lane.b32.xlu1 %v10917_v45, %s10422_s23 }
 0x645   : > { %19779 = vst [vmem:[#allocation270_spill] sm:$0xff] %v12063_v37 }
 0x646   : > { %2453 = vrot.lane.b32.xlu0 %v10922_v30, %s10422_s23  ;;  %v12069_v35 = vpop.permute.xlu1 %2339 }
 0x647   : > { %19780 = vst [vmem:[#allocation271_spill] sm:$0xff] %v12069_v35 }
 0x648   : > { %v12071_v46 = vpop.permute.xlu0 %2341  ;;  %2455 = vrot.lane.b32.xlu1 %v10937_v60, %s10422_s23 }
 0x649   : > { %19781 = vst [vmem:[#allocation272_spill] sm:$0xff] %v12071_v46 }
 0x64a   : > { %2457 = vrot.lane.b32.xlu0 %v10943_v10, %s10422_s23  ;;  %v12077_v59 = vpop.permute.xlu1 %2343 }
 0x64b   : > { %19782 = vst [vmem:[#allocation273_spill] sm:$0xff] %v12077_v59 }
 0x64c   : > { %v12079_v4 = vpop.permute.xlu0 %2345  ;;  %2459 = vrot.lane.b32.xlu1 %v10960_v31, %s10422_s23 }
 0x64d   : > { %19783 = vst [vmem:[#allocation274_spill] sm:$0xff] %v12079_v4 }
 0x64e   : > { %2461 = vrot.lane.b32.xlu0 %v10968_v15, %s10422_s23  ;;  %v12085_v37 = vpop.permute.xlu1 %2347 }
 0x64f   : > { %19784 = vst [vmem:[#allocation275_spill] sm:$0xff] %v12085_v37 }
 0x650   : > { %v12087_v35 = vpop.permute.xlu0 %2349  ;;  %2463 = vrot.lane.b32.xlu1 %v10985_v36, %s10422_s23 }
 0x651   : > { %19785 = vst [vmem:[#allocation276_spill] sm:$0xff] %v12087_v35 }
 0x652   : > { %2465 = vrot.lane.b32.xlu0 %v10987_v51, %s10422_s23  ;;  %v12093_v46 = vpop.permute.xlu1 %2351 }
 0x653   : > { %19786 = vst [vmem:[#allocation277_spill] sm:$0xff] %v12093_v46 }
 0x654   : > { %v12095_v59 = vpop.permute.xlu0 %2353  ;;  %2467 = vrot.lane.b32.xlu1 %v11001_v39, %s10422_s23 }
 0x655   : > { %19787 = vst [vmem:[#allocation278_spill] sm:$0xff] %v12095_v59 }
 0x656   : > { %2469 = vrot.lane.b32.xlu0 %v11003_v62, %s10422_s23  ;;  %v12101_v4 = vpop.permute.xlu1 %2355 }
 0x657   : > { %19788 = vst [vmem:[#allocation279_spill] sm:$0xff] %v12101_v4 }
 0x658   : > { %v12103_v37 = vpop.permute.xlu0 %2357  ;;  %2471 = vrot.lane.b32.xlu1 %v11014_v33, %s10422_s23 }
 0x659   : > { %19789 = vst [vmem:[#allocation280_spill] sm:$0xff] %v12103_v37  ;;  %v19794_v37 = vld [vmem:[#allocation22_spill] sm:$0xff] }
 0x65a   : > { %2473 = vrot.lane.b32.xlu0 %v11017_v11, %s10422_s23  ;;  %v12109_v35 = vpop.permute.xlu1 %2359 }
 0x65b   : > { %19790 = vst [vmem:[#allocation281_spill] sm:$0xff] %v12109_v35 }
 0x65c   : > { %v12111_v46 = vpop.permute.xlu0 %2361  ;;  %2475 = vrot.lane.b32.xlu1 %v11023_v53, %s10422_s23 }
 0x65d   : > { %19791 = vst [vmem:[#allocation282_spill] sm:$0xff] %v12111_v46 }
 0x65e   : > { %2477 = vrot.lane.b32.xlu0 %v11028_v40, %s10422_s23  ;;  %v12117_v59 = vpop.permute.xlu1 %2363 }
 0x65f   : > { %19792 = vst [vmem:[#allocation283_spill] sm:$0xff] %v12117_v59 }
 0x660   : > { %v12119_v4 = vpop.permute.xlu0 %2365  ;;  %2479 = vrot.lane.b32.xlu1 %v11035_v14, %s10422_s23 }
 0x661   : > { %19793 = vst [vmem:[#allocation284_spill] sm:$0xff] %v12119_v4  ;;  %v19799_v4 = vld [vmem:[#allocation26_spill] sm:$0xff] }
 0x662   : > { %2481 = vrot.lane.b32.xlu0 %v19794_v37, %s10422_s23  ;;  %v12125_v11 = vpop.permute.xlu1 %2367 }
 0x663   : > { %19795 = vst [vmem:[#allocation285_spill] sm:$0xff] %v12125_v11 }
 0x664   : > { %v12127_v35 = vpop.permute.xlu0 %2369  ;;  %2483 = vrot.lane.b32.xlu1 %v19583_v6, %s10422_s23 }
 0x665   : > { %19796 = vst [vmem:[#allocation286_spill] sm:$0xff] %v12127_v35  ;;  %v19802_v35 = vld [vmem:[#allocation28_spill] sm:$0xff] }
 0x666   : > { %2485 = vrot.lane.b32.xlu0 %v11049_v26, %s10422_s23  ;;  %v12133_v46 = vpop.permute.xlu1 %2371 }
 0x667   : > { %19797 = vst [vmem:[#allocation287_spill] sm:$0xff] %v12133_v46 }
 0x668   : > { %v12135_v59 = vpop.permute.xlu0 %2373  ;;  %2487 = vrot.lane.b32.xlu1 %v11058_v16, %s10422_s23  ;;  %v19806_v16 = vld [vmem:[#allocation30_spill] sm:$0xff] }
 0x669   : > { %19798 = vst [vmem:[#allocation288_spill] sm:$0xff] %v12135_v59  ;;  %v19805_v59 = vld [vmem:[#allocation29_spill] sm:$0xff] }
 0x66a   : > { %2489 = vrot.lane.b32.xlu0 %v19799_v4, %s10422_s23  ;;  %v12141_v37 = vpop.permute.xlu1 %2375 }
 0x66b   : > { %19800 = vst [vmem:[#allocation289_spill] sm:$0xff] %v12141_v37 }
 0x66c   : > { %v12143_v11 = vpop.permute.xlu0 %2377  ;;  %2491 = vrot.lane.b32.xlu1 %v11072_v0, %s10422_s23 }
 0x66d   : > { %19801 = vst [vmem:[#allocation290_spill] sm:$0xff] %v12143_v11 }
 0x66e   : > { %2493 = vrot.lane.b32.xlu0 %v19802_v35, %s10422_s23  ;;  %v12149_v26 = vpop.permute.xlu1 %2379 }
 0x66f   : > { %19803 = vst [vmem:[#allocation291_spill] sm:$0xff] %v12149_v26 }
 0x670   : > { %v12151_v46 = vpop.permute.xlu0 %2381  ;;  %2495 = vrot.lane.b32.xlu1 %v19805_v59, %s10422_s23 }
 0x671   : > { %19804 = vst [vmem:[#allocation292_spill] sm:$0xff] %v12151_v46 }
 0x672   : > { %2497 = vrot.lane.b32.xlu0 %v19806_v16, %s10422_s23  ;;  %v12157_v4 = vpop.permute.xlu1 %2383 }
 0x673   : > { %19807 = vst [vmem:[#allocation293_spill] sm:$0xff] %v12157_v4 }
 0x674   : > { %v12159_v37 = vpop.permute.xlu0 %2385  ;;  %2499 = vrot.lane.b32.xlu1 %v19594_v44, %s10422_s23 }
 0x675   : > { %19808 = vst [vmem:[#allocation294_spill] sm:$0xff] %v12159_v37 }
 0x676   : > { %2501 = vrot.lane.b32.xlu0 %v19737_v58, %s10422_s23  ;;  %v12165_v11 = vpop.permute.xlu1 %2387 }
 0x677   : > { %19809 = vst [vmem:[#allocation295_spill] sm:$0xff] %v12165_v11 }
 0x678   : > { %v12167_v26 = vpop.permute.xlu0 %2389  ;;  %2503 = vrot.lane.b32.xlu1 %v19740_v38, %s10422_s23 }
 0x679   : > { %19810 = vst [vmem:[#allocation296_spill] sm:$0xff] %v12167_v26 }
 0x67a   : > { %2505 = vrot.lane.b32.xlu0 %v19741_v25, %s10422_s23  ;;  %v12173_v46 = vpop.permute.xlu1 %2391 }
 0x67b   : > { %19811 = vst [vmem:[#allocation297_spill] sm:$0xff] %v12173_v46 }
 0x67c   : > { %v12175_v4 = vpop.permute.xlu0 %2393  ;;  %2507 = vrot.lane.b32.xlu1 %v11123_v49, %s10422_s23 }
 0x67d   : > { %19812 = vst [vmem:[#allocation298_spill] sm:$0xff] %v12175_v4 }
 0x67e   : > { %2509 = vrot.lane.b32.xlu0 %v19672_v56, %s10422_s23  ;;  %v12181_v37 = vpop.permute.xlu1 %2395 }
 0x67f   : > { %19813 = vst [vmem:[#allocation299_spill] sm:$0xff] %v12181_v37 }
 0x680   : > { %v12183_v11 = vpop.permute.xlu0 %2397  ;;  %2511 = vrot.lane.b32.xlu1 %v19675_v3, %s10422_s23 }
 0x681   : > { %19814 = vst [vmem:[#allocation300_spill] sm:$0xff] %v12183_v11 }
 0x682   : > { %2513 = vrot.lane.b32.xlu0 %v19676_v18, %s10422_s23  ;;  %v12189_v26 = vpop.permute.xlu1 %2399 }
 0x683   : > { %19815 = vst [vmem:[#allocation301_spill] sm:$0xff] %v12189_v26 }
 0x684   : > { %v12191_v46 = vpop.permute.xlu0 %2401  ;;  %2515 = vrot.lane.b32.xlu1 %v11146_v2, %s10422_s23 }
 0x685   : > { %19816 = vst [vmem:[#allocation302_spill] sm:$0xff] %v12191_v46 }
 0x686   : > { %2517 = vrot.lane.b32.xlu0 %v19607_v42, %s10422_s23  ;;  %v12197_v4 = vpop.permute.xlu1 %2403 }
 0x687   : > { %19817 = vst [vmem:[#allocation303_spill] sm:$0xff] %v12197_v4 }
 0x688   : > { %v12199_v37 = vpop.permute.xlu0 %2405  ;;  %2519 = vrot.lane.b32.xlu1 %v19610_v43, %s10422_s23 }
 0x689   : > { %19818 = vst [vmem:[#allocation304_spill] sm:$0xff] %v12199_v37 }
 0x68a   : > { %2521 = vrot.lane.b32.xlu0 %v19611_v63, %s10422_s23  ;;  %v12205_v11 = vpop.permute.xlu1 %2407 }
 0x68b   : > { %19819 = vst [vmem:[#allocation305_spill] sm:$0xff] %v12205_v11 }
 0x68c   : > { %v12207_v26 = vpop.permute.xlu0 %2409  ;;  %2523 = vrot.lane.b32.xlu1 %v11165_v7, %s10422_s23 }
 0x68d   : > { %19820 = vst [vmem:[#allocation306_spill] sm:$0xff] %v12207_v26 }
 0x68e   : > { %2525 = vrot.lane.b32.xlu0 %v11170_v24, %s10422_s23  ;;  %v12213_v46 = vpop.permute.xlu1 %2411 }
 0x68f   : > { %19821 = vst [vmem:[#allocation307_spill] sm:$0xff] %v12213_v46 }
 0x690   : > { %v12215_v4 = vpop.permute.xlu0 %2413  ;;  %2527 = vrot.lane.b32.xlu1 %v11176_v50, %s10422_s23 }
 0x691   : > { %19822 = vst [vmem:[#allocation308_spill] sm:$0xff] %v12215_v4 }
 0x692   : > { %2529 = vrot.lane.b32.xlu0 %v11178_v1, %s10422_s23  ;;  %v12221_v37 = vpop.permute.xlu1 %2415 }
 0x693   : > { %19823 = vst [vmem:[#allocation309_spill] sm:$0xff] %v12221_v37 }
 0x694   : > { %v12223_v11 = vpop.permute.xlu0 %2417  ;;  %2531 = vrot.lane.b32.xlu1 %v11189_v29, %s10422_s23 }
 0x695   : > { %19824 = vst [vmem:[#allocation310_spill] sm:$0xff] %v12223_v11 }
 0x696   : > { %2533 = vrot.lane.b32.xlu0 %v11191_v41, %s10422_s23  ;;  %v12229_v26 = vpop.permute.xlu1 %2419 }
 0x697   : > { %19825 = vst [vmem:[#allocation311_spill] sm:$0xff] %v12229_v26 }
 0x698   : > { %v12231_v46 = vpop.permute.xlu0 %2421  ;;  %2535 = vrot.lane.b32.xlu1 %v11197_v22, %s10422_s23 }
 0x699   : > { %19826 = vst [vmem:[#allocation312_spill] sm:$0xff] %v12231_v46 }
 0x69a   : > { %2537 = vrot.lane.b32.xlu0 %v11201_v54, %s10422_s23  ;;  %v12237_v4 = vpop.permute.xlu1 %2423 }
 0x69b   : > { %19827 = vst [vmem:[#allocation313_spill] sm:$0xff] %v12237_v4 }
 0x69c   : > { %v12239_v37 = vpop.permute.xlu0 %2425  ;;  %2539 = vrot.lane.b32.xlu1 %v11209_v8, %s10422_s23 }
 0x69d   : > { %19828 = vst [vmem:[#allocation314_spill] sm:$0xff] %v12239_v37 }
 0x69e   : > { %2541 = vrot.lane.b32.xlu0 %v11213_v57, %s10422_s23  ;;  %v12245_v11 = vpop.permute.xlu1 %2427 }
 0x69f   : > { %19829 = vst [vmem:[#allocation315_spill] sm:$0xff] %v12245_v11 }
 0x6a0   : > { %v12247_v26 = vpop.permute.xlu0 %2429  ;;  %2543 = vrot.lane.b32.xlu1 %v10779_v21, %s10423_s10 }
 0x6a1   : > { %19830 = vst [vmem:[#allocation316_spill] sm:$0xff] %v12247_v26 }
 0x6a2   : > { %2545 = vrot.lane.b32.xlu0 %v10781_v23, %s10423_s10  ;;  %v12253_v4 = vpop.permute.xlu1 %2431 }
 0x6a3   : > { %19831 = vst [vmem:[#allocation317_spill] sm:$0xff] %v12253_v4 }
 0x6a4   : > { %v12255_v37 = vpop.permute.xlu0 %2433  ;;  %2547 = vrot.lane.b32.xlu1 %v10791_v27, %s10423_s10 }
 0x6a5   : > { %19832 = vst [vmem:[#allocation318_spill] sm:$0xff] %v12255_v37 }
 0x6a6   : > { %2549 = vrot.lane.b32.xlu0 %v10793_v28, %s10423_s10  ;;  %v12261_v11 = vpop.permute.xlu1 %2435 }
 0x6a7   : > { %19833 = vst [vmem:[#allocation319_spill] sm:$0xff] %v12261_v11 }
 0x6a8   : > { %v12263_v26 = vpop.permute.xlu0 %2437  ;;  %2551 = vrot.lane.b32.xlu1 %v10823_v12, %s10423_s10 }
 0x6a9   : > { %19834 = vst [vmem:[#allocation320_spill] sm:$0xff] %v12263_v26 }
 0x6aa   : > { %2553 = vrot.lane.b32.xlu0 %v10825_v13, %s10423_s10  ;;  %v12269_v46 = vpop.permute.xlu1 %2439 }
 0x6ab   : > { %19835 = vst [vmem:[#allocation321_spill] sm:$0xff] %v12269_v46 }
 0x6ac   : > { %v12271_v4 = vpop.permute.xlu0 %2441  ;;  %2555 = vrot.lane.b32.xlu1 %v10831_v19, %s10423_s10 }
 0x6ad   : > { %19836 = vst [vmem:[#allocation322_spill] sm:$0xff] %v12271_v4 }
 0x6ae   : > { %2557 = vrot.lane.b32.xlu0 %v10834_v32, %s10423_s10  ;;  %v12277_v37 = vpop.permute.xlu1 %2443 }
 0x6af   : > { %19837 = vst [vmem:[#allocation323_spill] sm:$0xff] %v12277_v37 }
 0x6b0   : > { %v12279_v11 = vpop.permute.xlu0 %2445  ;;  %2559 = vrot.lane.b32.xlu1 %v10840_v34, %s10423_s10 }
 0x6b1   : > { %19838 = vst [vmem:[#allocation324_spill] sm:$0xff] %v12279_v11 }
 0x6b2   : > { %2561 = vrot.lane.b32.xlu0 %v10842_v48, %s10423_s10  ;;  %v12285_v26 = vpop.permute.xlu1 %2447 }
 0x6b3   : > { %19839 = vst [vmem:[#allocation325_spill] sm:$0xff] %v12285_v26 }
 0x6b4   : > { %v12287_v46 = vpop.permute.xlu0 %2449  ;;  %2563 = vrot.lane.b32.xlu1 %v10855_v55, %s10423_s10 }
 0x6b5   : > { %19840 = vst [vmem:[#allocation326_spill] sm:$0xff] %v12287_v46 }
 0x6b6   : > { %2565 = vrot.lane.b32.xlu0 %v10857_v47, %s10423_s10  ;;  %v12293_v4 = vpop.permute.xlu1 %2451 }
 0x6b7   : > { %19841 = vst [vmem:[#allocation327_spill] sm:$0xff] %v12293_v4 }
 0x6b8   : > { %v12295_v37 = vpop.permute.xlu0 %2453  ;;  %2567 = vrot.lane.b32.xlu1 %v10870_v61, %s10423_s10 }
 0x6b9   : > { %19842 = vst [vmem:[#allocation328_spill] sm:$0xff] %v12295_v37 }
 0x6ba   : > { %2569 = vrot.lane.b32.xlu0 %v10874_v9, %s10423_s10  ;;  %v12301_v11 = vpop.permute.xlu1 %2455 }
 0x6bb   : > { %19843 = vst [vmem:[#allocation329_spill] sm:$0xff] %v12301_v11 }
 0x6bc   : > { %v12303_v26 = vpop.permute.xlu0 %2457  ;;  %2571 = vrot.lane.b32.xlu1 %v10880_v17, %s10423_s10 }
 0x6bd   : > { %19844 = vst [vmem:[#allocation330_spill] sm:$0xff] %v12303_v26 }
 0x6be   : > { %2573 = vrot.lane.b32.xlu0 %v10885_v20, %s10423_s10  ;;  %v12309_v46 = vpop.permute.xlu1 %2459 }
 0x6bf   : > { %19845 = vst [vmem:[#allocation331_spill] sm:$0xff] %v12309_v46 }
 0x6c0   : > { %v12311_v4 = vpop.permute.xlu0 %2461  ;;  %2575 = vrot.lane.b32.xlu1 %v10895_v5, %s10423_s10 }
 0x6c1   : > { %19846 = vst [vmem:[#allocation332_spill] sm:$0xff] %v12311_v4 }
 0x6c2   : > { %2577 = vrot.lane.b32.xlu0 %v10897_v52, %s10423_s10  ;;  %v12317_v37 = vpop.permute.xlu1 %2463 }
 0x6c3   : > { %19847 = vst [vmem:[#allocation333_spill] sm:$0xff] %v12317_v37 }
 0x6c4   : > { %v12319_v11 = vpop.permute.xlu0 %2465  ;;  %2579 = vrot.lane.b32.xlu1 %v10917_v45, %s10423_s10 }
 0x6c5   : > { %19848 = vst [vmem:[#allocation334_spill] sm:$0xff] %v12319_v11 }
 0x6c6   : > { %2581 = vrot.lane.b32.xlu0 %v10922_v30, %s10423_s10  ;;  %v12325_v26 = vpop.permute.xlu1 %2467 }
 0x6c7   : > { %19849 = vst [vmem:[#allocation335_spill] sm:$0xff] %v12325_v26 }
 0x6c8   : > { %v12327_v46 = vpop.permute.xlu0 %2469  ;;  %2583 = vrot.lane.b32.xlu1 %v10937_v60, %s10423_s10 }
 0x6c9   : > { %19850 = vst [vmem:[#allocation336_spill] sm:$0xff] %v12327_v46 }
 0x6ca   : > { %2585 = vrot.lane.b32.xlu0 %v10943_v10, %s10423_s10  ;;  %v12333_v4 = vpop.permute.xlu1 %2471 }
 0x6cb   : > { %19851 = vst [vmem:[#allocation337_spill] sm:$0xff] %v12333_v4 }
 0x6cc   : > { %v12335_v37 = vpop.permute.xlu0 %2473  ;;  %2587 = vrot.lane.b32.xlu1 %v10960_v31, %s10423_s10 }
 0x6cd   : > { %19852 = vst [vmem:[#allocation338_spill] sm:$0xff] %v12335_v37 }
 0x6ce   : > { %2589 = vrot.lane.b32.xlu0 %v10968_v15, %s10423_s10  ;;  %v12341_v11 = vpop.permute.xlu1 %2475 }
 0x6cf   : > { %19853 = vst [vmem:[#allocation339_spill] sm:$0xff] %v12341_v11 }
 0x6d0   : > { %v12343_v26 = vpop.permute.xlu0 %2477  ;;  %2591 = vrot.lane.b32.xlu1 %v10985_v36, %s10423_s10 }
 0x6d1   : > { %19854 = vst [vmem:[#allocation340_spill] sm:$0xff] %v12343_v26  ;;  %v19859_v26 = vld [vmem:[#allocation18_spill] sm:$0xff] }
 0x6d2   : > { %2593 = vrot.lane.b32.xlu0 %v10987_v51, %s10423_s10  ;;  %v12349_v46 = vpop.permute.xlu1 %2479 }
 0x6d3   : > { %19855 = vst [vmem:[#allocation341_spill] sm:$0xff] %v12349_v46 }
 0x6d4   : > { %v12351_v4 = vpop.permute.xlu0 %2481  ;;  %2595 = vrot.lane.b32.xlu1 %v11001_v39, %s10423_s10 }
 0x6d5   : > { %19856 = vst [vmem:[#allocation342_spill] sm:$0xff] %v12351_v4 }
 0x6d6   : > { %2597 = vrot.lane.b32.xlu0 %v11003_v62, %s10423_s10  ;;  %v12357_v37 = vpop.permute.xlu1 %2483 }
 0x6d7   : > { %19857 = vst [vmem:[#allocation343_spill] sm:$0xff] %v12357_v37 }
 0x6d8   : > { %v12359_v11 = vpop.permute.xlu0 %2485  ;;  %2599 = vrot.lane.b32.xlu1 %v11014_v33, %s10423_s10 }
 0x6d9   : > { %19858 = vst [vmem:[#allocation344_spill] sm:$0xff] %v12359_v11  ;;  %v19864_v11 = vld [vmem:[#allocation22_spill] sm:$0xff] }
 0x6da   : > { %2601 = vrot.lane.b32.xlu0 %v19859_v26, %s10423_s10  ;;  %v12365_v51 = vpop.permute.xlu1 %2487 }
 0x6db   : > { %19860 = vst [vmem:[#allocation345_spill] sm:$0xff] %v12365_v51 }
 0x6dc   : > { %v12367_v46 = vpop.permute.xlu0 %2489  ;;  %2603 = vrot.lane.b32.xlu1 %v11023_v53, %s10423_s10 }
 0x6dd   : > { %19861 = vst [vmem:[#allocation346_spill] sm:$0xff] %v12367_v46  ;;  %v19867_v46 = vld [vmem:[#allocation24_spill] sm:$0xff] }
 0x6de   : > { %2605 = vrot.lane.b32.xlu0 %v11028_v40, %s10423_s10  ;;  %v12373_v4 = vpop.permute.xlu1 %2491 }
 0x6df   : > { %19862 = vst [vmem:[#allocation347_spill] sm:$0xff] %v12373_v4 }
 0x6e0   : > { %v12375_v37 = vpop.permute.xlu0 %2493  ;;  %2607 = vrot.lane.b32.xlu1 %v11035_v14, %s10423_s10  ;;  %v19871_v14 = vld [vmem:[#allocation26_spill] sm:$0xff] }
 0x6e1   : > { %19863 = vst [vmem:[#allocation348_spill] sm:$0xff] %v12375_v37  ;;  %v19870_v37 = vld [vmem:[#allocation25_spill] sm:$0xff] }
 0x6e2   : > { %2609 = vrot.lane.b32.xlu0 %v19864_v11, %s10423_s10  ;;  %v12381_v26 = vpop.permute.xlu1 %2495 }
 0x6e3   : > { %19865 = vst [vmem:[#allocation349_spill] sm:$0xff] %v12381_v26 }
 0x6e4   : > { %v12383_v51 = vpop.permute.xlu0 %2497  ;;  %2611 = vrot.lane.b32.xlu1 %v19583_v6, %s10423_s10 }
 0x6e5   : > { %19866 = vst [vmem:[#allocation350_spill] sm:$0xff] %v12383_v51 }
 0x6e6   : > { %2613 = vrot.lane.b32.xlu0 %v19867_v46, %s10423_s10  ;;  %v12389_v40 = vpop.permute.xlu1 %2499 }
 0x6e7   : > { %19868 = vst [vmem:[#allocation351_spill] sm:$0xff] %v12389_v40 }
 0x6e8   : > { %v12391_v4 = vpop.permute.xlu0 %2501  ;;  %2615 = vrot.lane.b32.xlu1 %v19870_v37, %s10423_s10 }
 0x6e9   : > { %19869 = vst [vmem:[#allocation352_spill] sm:$0xff] %v12391_v4 }
 0x6ea   : > { %2617 = vrot.lane.b32.xlu0 %v19871_v14, %s10423_s10  ;;  %v12397_v11 = vpop.permute.xlu1 %2503 }
 0x6eb   : > { %19872 = vst [vmem:[#allocation353_spill] sm:$0xff] %v12397_v11 }
 0x6ec   : > { %v12399_v26 = vpop.permute.xlu0 %2505  ;;  %2619 = vrot.lane.b32.xlu1 %v11072_v0, %s10423_s10 }
 0x6ed   : > { %19873 = vst [vmem:[#allocation354_spill] sm:$0xff] %v12399_v26 }
 0x6ee   : > { %2621 = vrot.lane.b32.xlu0 %v19802_v35, %s10423_s10  ;;  %v12405_v51 = vpop.permute.xlu1 %2507 }
 0x6ef   : > { %19874 = vst [vmem:[#allocation355_spill] sm:$0xff] %v12405_v51 }
 0x6f0   : > { %v12407_v40 = vpop.permute.xlu0 %2509  ;;  %2623 = vrot.lane.b32.xlu1 %v19805_v59, %s10423_s10 }
 0x6f1   : > { %19875 = vst [vmem:[#allocation356_spill] sm:$0xff] %v12407_v40 }
 0x6f2   : > { %2625 = vrot.lane.b32.xlu0 %v19806_v16, %s10423_s10  ;;  %v12413_v4 = vpop.permute.xlu1 %2511 }
 0x6f3   : > { %19876 = vst [vmem:[#allocation357_spill] sm:$0xff] %v12413_v4 }
 0x6f4   : > { %v12415_v11 = vpop.permute.xlu0 %2513  ;;  %2627 = vrot.lane.b32.xlu1 %v19594_v44, %s10423_s10 }
 0x6f5   : > { %19877 = vst [vmem:[#allocation358_spill] sm:$0xff] %v12415_v11 }
 0x6f6   : > { %2629 = vrot.lane.b32.xlu0 %v19737_v58, %s10423_s10  ;;  %v12421_v26 = vpop.permute.xlu1 %2515 }
 0x6f7   : > { %19878 = vst [vmem:[#allocation359_spill] sm:$0xff] %v12421_v26 }
 0x6f8   : > { %v12423_v51 = vpop.permute.xlu0 %2517  ;;  %2631 = vrot.lane.b32.xlu1 %v19740_v38, %s10423_s10 }
 0x6f9   : > { %19879 = vst [vmem:[#allocation360_spill] sm:$0xff] %v12423_v51 }
 0x6fa   : > { %2633 = vrot.lane.b32.xlu0 %v19741_v25, %s10423_s10  ;;  %v12429_v40 = vpop.permute.xlu1 %2519 }
 0x6fb   : > { %19880 = vst [vmem:[#allocation361_spill] sm:$0xff] %v12429_v40 }
 0x6fc   : > { %v12431_v4 = vpop.permute.xlu0 %2521  ;;  %2635 = vrot.lane.b32.xlu1 %v11123_v49, %s10423_s10 }
 0x6fd   : > { %19881 = vst [vmem:[#allocation362_spill] sm:$0xff] %v12431_v4 }
 0x6fe   : > { %2637 = vrot.lane.b32.xlu0 %v19672_v56, %s10423_s10  ;;  %v12437_v11 = vpop.permute.xlu1 %2523 }
 0x6ff   : > { %19882 = vst [vmem:[#allocation363_spill] sm:$0xff] %v12437_v11 }
 0x700   : > { %v12439_v26 = vpop.permute.xlu0 %2525  ;;  %2639 = vrot.lane.b32.xlu1 %v19675_v3, %s10423_s10 }
 0x701   : > { %19883 = vst [vmem:[#allocation364_spill] sm:$0xff] %v12439_v26 }
 0x702   : > { %2641 = vrot.lane.b32.xlu0 %v19676_v18, %s10423_s10  ;;  %v12445_v51 = vpop.permute.xlu1 %2527 }
 0x703   : > { %19884 = vst [vmem:[#allocation365_spill] sm:$0xff] %v12445_v51 }
 0x704   : > { %v12447_v40 = vpop.permute.xlu0 %2529  ;;  %2643 = vrot.lane.b32.xlu1 %v11146_v2, %s10423_s10 }
 0x705   : > { %19885 = vst [vmem:[#allocation366_spill] sm:$0xff] %v12447_v40 }
 0x706   : > { %2645 = vrot.lane.b32.xlu0 %v19607_v42, %s10423_s10  ;;  %v12453_v4 = vpop.permute.xlu1 %2531 }
 0x707   : > { %19886 = vst [vmem:[#allocation367_spill] sm:$0xff] %v12453_v4 }
 0x708   : > { %v12455_v11 = vpop.permute.xlu0 %2533  ;;  %2647 = vrot.lane.b32.xlu1 %v19610_v43, %s10423_s10 }
 0x709   : > { %19887 = vst [vmem:[#allocation368_spill] sm:$0xff] %v12455_v11 }
 0x70a   : > { %2649 = vrot.lane.b32.xlu0 %v19611_v63, %s10423_s10  ;;  %v12461_v26 = vpop.permute.xlu1 %2535 }
 0x70b   : > { %19888 = vst [vmem:[#allocation369_spill] sm:$0xff] %v12461_v26 }
 0x70c   : > { %v12463_v51 = vpop.permute.xlu0 %2537  ;;  %2651 = vrot.lane.b32.xlu1 %v11165_v7, %s10423_s10 }
 0x70d   : > { %19889 = vst [vmem:[#allocation370_spill] sm:$0xff] %v12463_v51 }
 0x70e   : > { %2653 = vrot.lane.b32.xlu0 %v11170_v24, %s10423_s10  ;;  %v12469_v40 = vpop.permute.xlu1 %2539 }
 0x70f   : > { %19890 = vst [vmem:[#allocation371_spill] sm:$0xff] %v12469_v40 }
 0x710   : > { %v12471_v4 = vpop.permute.xlu0 %2541  ;;  %2655 = vrot.lane.b32.xlu1 %v11176_v50, %s10423_s10 }
 0x711   : > { %19891 = vst [vmem:[#allocation372_spill] sm:$0xff] %v12471_v4 }
 0x712   : > { %2657 = vrot.lane.b32.xlu0 %v11178_v1, %s10423_s10  ;;  %v12477_v11 = vpop.permute.xlu1 %2543 }
 0x713   : > { %19892 = vst [vmem:[#allocation373_spill] sm:$0xff] %v12477_v11 }
 0x714   : > { %v12479_v26 = vpop.permute.xlu0 %2545  ;;  %2659 = vrot.lane.b32.xlu1 %v11189_v29, %s10423_s10 }
 0x716   : > { %2661 = vrot.lane.b32.xlu0 %v11191_v41, %s10423_s10  ;;  %v12485_v51 = vpop.permute.xlu1 %2547 }
 0x717   : > { %19893 = vst [vmem:[#allocation374_spill] sm:$0xff] %v12485_v51 }
 0x718   : > { %v12487_v40 = vpop.permute.xlu0 %2549  ;;  %2663 = vrot.lane.b32.xlu1 %v11197_v22, %s10423_s10 }
 0x71a   : > { %2665 = vrot.lane.b32.xlu0 %v11201_v54, %s10423_s10  ;;  %v12493_v4 = vpop.permute.xlu1 %2551 }
 0x71b   : > { %19894 = vst [vmem:[#allocation375_spill] sm:$0xff] %v12493_v4 }
 0x71c   : > { %v12495_v11 = vpop.permute.xlu0 %2553  ;;  %2667 = vrot.lane.b32.xlu1 %v11209_v8, %s10423_s10 }
 0x71d   : > { %19895 = vst [vmem:[#allocation376_spill] sm:$0xff] %v12495_v11 }
 0x71e   : > { %2669 = vrot.lane.b32.xlu0 %v11213_v57, %s10423_s10  ;;  %v12501_v41 = vpop.permute.xlu1 %2555 }
 0x71f   : > { %19896 = vst [vmem:[#allocation377_spill] sm:$0xff] %v12501_v41 }
 0x720   : > { %v12503_v51 = vpop.permute.xlu0 %2557  ;;  %2671 = vrot.lane.b32.xlu1 %v10779_v21, %s10404_s18 }
 0x721   : > { %19897 = vst [vmem:[#allocation378_spill] sm:$0xff] %v12503_v51 }
 0x722   : > { %2673 = vrot.lane.b32.xlu0 %v10781_v23, %s10404_s18  ;;  %v12509_v54 = vpop.permute.xlu1 %2559 }
 0x723   : > { %19898 = vst [vmem:[#allocation379_spill] sm:$0xff] %v12509_v54 }
 0x724   : > { %v12511_v4 = vpop.permute.xlu0 %2561  ;;  %2675 = vrot.lane.b32.xlu1 %v10791_v27, %s10404_s18 }
 0x725   : > { %19899 = vst [vmem:[#allocation380_spill] sm:$0xff] %v12511_v4 }
 0x726   : > { %2677 = vrot.lane.b32.xlu0 %v10793_v28, %s10404_s18  ;;  %v12517_v11 = vpop.permute.xlu1 %2563 }
 0x727   : > { %19900 = vst [vmem:[#allocation381_spill] sm:$0xff] %v12517_v11 }
 0x728   : > { %v12519_v41 = vpop.permute.xlu0 %2565  ;;  %2679 = vrot.lane.b32.xlu1 %v10823_v12, %s10404_s18 }
 0x729   : > { %19901 = vst [vmem:[#allocation382_spill] sm:$0xff] %v12519_v41 }
 0x72a   : > { %2681 = vrot.lane.b32.xlu0 %v10825_v13, %s10404_s18  ;;  %v12525_v51 = vpop.permute.xlu1 %2567 }
 0x72b   : > { %19902 = vst [vmem:[#allocation383_spill] sm:$0xff] %v12525_v51 }
 0x72c   : > { %v12527_v54 = vpop.permute.xlu0 %2569  ;;  %2683 = vrot.lane.b32.xlu1 %v10831_v19, %s10404_s18 }
 0x72d   : > { %19903 = vst [vmem:[#allocation384_spill] sm:$0xff] %v12527_v54 }
 0x72e   : > { %2685 = vrot.lane.b32.xlu0 %v10834_v32, %s10404_s18  ;;  %v12533_v4 = vpop.permute.xlu1 %2571 }
 0x72f   : > { %19904 = vst [vmem:[#allocation385_spill] sm:$0xff] %v12533_v4 }
 0x730   : > { %v12535_v11 = vpop.permute.xlu0 %2573  ;;  %2687 = vrot.lane.b32.xlu1 %v10840_v34, %s10404_s18 }
 0x731   : > { %19905 = vst [vmem:[#allocation386_spill] sm:$0xff] %v12535_v11 }
 0x732   : > { %2689 = vrot.lane.b32.xlu0 %v10842_v48, %s10404_s18  ;;  %v12541_v41 = vpop.permute.xlu1 %2575 }
 0x733   : > { %19906 = vst [vmem:[#allocation387_spill] sm:$0xff] %v12541_v41 }
 0x734   : > { %v12543_v51 = vpop.permute.xlu0 %2577  ;;  %2691 = vrot.lane.b32.xlu1 %v10855_v55, %s10404_s18 }
 0x735   : > { %19907 = vst [vmem:[#allocation388_spill] sm:$0xff] %v12543_v51 }
 0x736   : > { %2693 = vrot.lane.b32.xlu0 %v10857_v47, %s10404_s18  ;;  %v12549_v54 = vpop.permute.xlu1 %2579 }
 0x737   : > { %19908 = vst [vmem:[#allocation389_spill] sm:$0xff] %v12549_v54 }
 0x738   : > { %v12551_v4 = vpop.permute.xlu0 %2581  ;;  %2695 = vrot.lane.b32.xlu1 %v10870_v61, %s10404_s18 }
 0x739   : > { %19909 = vst [vmem:[#allocation390_spill] sm:$0xff] %v12551_v4 }
 0x73a   : > { %2697 = vrot.lane.b32.xlu0 %v10874_v9, %s10404_s18  ;;  %v12557_v11 = vpop.permute.xlu1 %2583 }
 0x73b   : > { %19910 = vst [vmem:[#allocation391_spill] sm:$0xff] %v12557_v11 }
 0x73c   : > { %v12559_v41 = vpop.permute.xlu0 %2585  ;;  %2699 = vrot.lane.b32.xlu1 %v10880_v17, %s10404_s18 }
 0x73d   : > { %19911 = vst [vmem:[#allocation392_spill] sm:$0xff] %v12559_v41 }
 0x73e   : > { %2701 = vrot.lane.b32.xlu0 %v10885_v20, %s10404_s18  ;;  %v12565_v51 = vpop.permute.xlu1 %2587 }
 0x73f   : > { %19912 = vst [vmem:[#allocation393_spill] sm:$0xff] %v12565_v51 }
 0x740   : > { %v12567_v54 = vpop.permute.xlu0 %2589  ;;  %2703 = vrot.lane.b32.xlu1 %v10895_v5, %s10404_s18 }
 0x741   : > { %19913 = vst [vmem:[#allocation394_spill] sm:$0xff] %v12567_v54 }
 0x742   : > { %2705 = vrot.lane.b32.xlu0 %v10897_v52, %s10404_s18  ;;  %v12573_v4 = vpop.permute.xlu1 %2591 }
 0x743   : > { %19914 = vst [vmem:[#allocation395_spill] sm:$0xff] %v12573_v4 }
 0x744   : > { %v12575_v11 = vpop.permute.xlu0 %2593  ;;  %2707 = vrot.lane.b32.xlu1 %v10917_v45, %s10404_s18  ;;  %v20037_v45 = vld [vmem:[#allocation253_spill] sm:$0xff] }
 0x745   : > { %19915 = vst [vmem:[#allocation396_spill] sm:$0xff] %v12575_v11 }
 0x746   : > { %2709 = vrot.lane.b32.xlu0 %v10922_v30, %s10404_s18  ;;  %v12581_v41 = vpop.permute.xlu1 %2595 }
 0x747   : > { %19916 = vst [vmem:[#allocation397_spill] sm:$0xff] %v12581_v41 }
 0x748   : > { %v12583_v51 = vpop.permute.xlu0 %2597  ;;  %2711 = vrot.lane.b32.xlu1 %v10937_v60, %s10404_s18 }
 0x749   : > { %19917 = vst [vmem:[#allocation398_spill] sm:$0xff] %v12583_v51  ;;  %v19922_v51 = vld [vmem:[#allocation14_spill] sm:$0xff] }
 0x74a   : > { %2713 = vrot.lane.b32.xlu0 %v10943_v10, %s10404_s18  ;;  %v12589_v54 = vpop.permute.xlu1 %2599 }
 0x74b   : > { %19918 = vst [vmem:[#allocation399_spill] sm:$0xff] %v12589_v54 }
 0x74c   : > { %v12591_v4 = vpop.permute.xlu0 %2601  ;;  %2715 = vrot.lane.b32.xlu1 %v10960_v31, %s10404_s18 }
 0x74d   : > { %19919 = vst [vmem:[#allocation400_spill] sm:$0xff] %v12591_v4 }
 0x74e   : > { %2717 = vrot.lane.b32.xlu0 %v10968_v15, %s10404_s18  ;;  %v12597_v11 = vpop.permute.xlu1 %2603 }
 0x74f   : > { %19920 = vst [vmem:[#allocation401_spill] sm:$0xff] %v12597_v11 }
 0x750   : > { %v12599_v41 = vpop.permute.xlu0 %2605  ;;  %2719 = vrot.lane.b32.xlu1 %v10985_v36, %s10404_s18 }
 0x751   : > { %19921 = vst [vmem:[#allocation402_spill] sm:$0xff] %v12599_v41  ;;  %v19927_v41 = vld [vmem:[#allocation18_spill] sm:$0xff] }
 0x752   : > { %2721 = vrot.lane.b32.xlu0 %v19922_v51, %s10404_s18  ;;  %v12605_v60 = vpop.permute.xlu1 %2607 }
 0x753   : > { %19923 = vst [vmem:[#allocation403_spill] sm:$0xff] %v12605_v60 }
 0x754   : > { %v12607_v54 = vpop.permute.xlu0 %2609  ;;  %2723 = vrot.lane.b32.xlu1 %v11001_v39, %s10404_s18 }
 0x755   : > { %19924 = vst [vmem:[#allocation404_spill] sm:$0xff] %v12607_v54  ;;  %v19930_v54 = vld [vmem:[#allocation20_spill] sm:$0xff] }
 0x756   : > { %2725 = vrot.lane.b32.xlu0 %v11003_v62, %s10404_s18  ;;  %v12613_v4 = vpop.permute.xlu1 %2611 }
 0x757   : > { %19925 = vst [vmem:[#allocation405_spill] sm:$0xff] %v12613_v4 }
 0x758   : > { %v12615_v11 = vpop.permute.xlu0 %2613  ;;  %2727 = vrot.lane.b32.xlu1 %v11014_v33, %s10404_s18  ;;  %v19934_v33 = vld [vmem:[#allocation22_spill] sm:$0xff] }
 0x759   : > { %19926 = vst [vmem:[#allocation406_spill] sm:$0xff] %v12615_v11  ;;  %v19933_v11 = vld [vmem:[#allocation21_spill] sm:$0xff] }
 0x75a   : > { %2729 = vrot.lane.b32.xlu0 %v19927_v41, %s10404_s18  ;;  %v12621_v36 = vpop.permute.xlu1 %2615 }
 0x75b   : > { %19928 = vst [vmem:[#allocation407_spill] sm:$0xff] %v12621_v36 }
 0x75c   : > { %v12623_v60 = vpop.permute.xlu0 %2617  ;;  %2731 = vrot.lane.b32.xlu1 %v11023_v53, %s10404_s18  ;;  %v20012_v53 = vld [vmem:[#allocation249_spill] sm:$0xff] }
 0x75d   : > { %19929 = vst [vmem:[#allocation408_spill] sm:$0xff] %v12623_v60 }
 0x75e   : > { %2733 = vrot.lane.b32.xlu0 %v19930_v54, %s10404_s18  ;;  %v12629_v39 = vpop.permute.xlu1 %2619  ;;  %v20022_v54 = vld [vmem:[#allocation125_spill] sm:$0xff] }
 0x75f   : > { %19931 = vst [vmem:[#allocation409_spill] sm:$0xff] %v12629_v39 }
 0x760   : > { %v12631_v4 = vpop.permute.xlu0 %2621  ;;  %2735 = vrot.lane.b32.xlu1 %v19933_v11, %s10404_s18  ;;  %v19996_v11 = vld [vmem:[#allocation248_spill] sm:$0xff] }
 0x761   : > { %19932 = vst [vmem:[#allocation410_spill] sm:$0xff] %v12631_v4 }
 0x762   : > { %2737 = vrot.lane.b32.xlu0 %v19934_v33, %s10404_s18  ;;  %v12637_v41 = vpop.permute.xlu1 %2623 }
 0x763   : > { %19935 = vst [vmem:[#allocation411_spill] sm:$0xff] %v12637_v41 }
 0x764   : > { %v12639_v36 = vpop.permute.xlu0 %2625  ;;  %2739 = vrot.lane.b32.xlu1 %v19583_v6, %s10404_s18 }
 0x765   : > { %19936 = vst [vmem:[#allocation412_spill] sm:$0xff] %v12639_v36 }
 0x766   : > { %2741 = vrot.lane.b32.xlu0 %v19867_v46, %s10404_s18  ;;  %v12645_v60 = vpop.permute.xlu1 %2627 }
 0x767   : > { %19937 = vst [vmem:[#allocation413_spill] sm:$0xff] %v12645_v60 }
 0x768   : > { %v12647_v39 = vpop.permute.xlu0 %2629  ;;  %2743 = vrot.lane.b32.xlu1 %v19870_v37, %s10404_s18 }
 0x769   : > { %19938 = vst [vmem:[#allocation414_spill] sm:$0xff] %v12647_v39 }
 0x76a   : > { %2745 = vrot.lane.b32.xlu0 %v19871_v14, %s10404_s18  ;;  %v12653_v4 = vpop.permute.xlu1 %2631 }
 0x76b   : > { %19939 = vst [vmem:[#allocation415_spill] sm:$0xff] %v12653_v4 }
 0x76c   : > { %v12655_v41 = vpop.permute.xlu0 %2633  ;;  %2747 = vrot.lane.b32.xlu1 %v11072_v0, %s10404_s18  ;;  %v2815_v0 = vrot.slane %v10793_v28, 7 }
 0x76d   : > { %19940 = vst [vmem:[#allocation416_spill] sm:$0xff] %v12655_v41 }
 0x76e   : > { %2749 = vrot.lane.b32.xlu0 %v19802_v35, %s10404_s18  ;;  %v12661_v36 = vpop.permute.xlu1 %2635  ;;  %v19960_v35 = vld [vmem:[#allocation62_spill] sm:$0xff] }
 0x76f   : > { %19941 = vst [vmem:[#allocation417_spill] sm:$0xff] %v12661_v36 }
 0x770   : > { %v12663_v60 = vpop.permute.xlu0 %2637  ;;  %2751 = vrot.lane.b32.xlu1 %v19805_v59, %s10404_s18 }
 0x771   : > { %19942 = vst [vmem:[#allocation418_spill] sm:$0xff] %v12663_v60  ;;  %v19947_v60 = vld [vmem:[#allocation48_spill] sm:$0xff] }
 0x772   : > { %2753 = vrot.lane.b32.xlu0 %v19806_v16, %s10404_s18  ;;  %v12669_v39 = vpop.permute.xlu1 %2639  ;;  %v2836_v59 = vrot.slane %v19947_v60, 7 }
 0x773   : > { %19943 = vst [vmem:[#allocation419_spill] sm:$0xff] %v12669_v39 }
 0x774   : > { %v12671_v4 = vpop.permute.xlu0 %2641  ;;  %2755 = vrot.lane.b32.xlu1 %v19594_v44, %s10404_s18  ;;  %v2804_v44 = vrot.slane %v10781_v23, 7  ;;  %v12704_v23 = vrot.slane %v10842_v48, 7  ;;  %v12719_v48 = vrot.slane %v10834_v32, 7 }
 0x775   : > { %19944 = vst [vmem:[#allocation420_spill] sm:$0xff] %v12671_v4 }
 0x776   : > { %2757 = vrot.lane.b32.xlu0 %v19737_v58, %s10404_s18  ;;  %v12677_v41 = vpop.permute.xlu1 %2643 }
 0x777   : > { %19945 = vst [vmem:[#allocation421_spill] sm:$0xff] %v12677_v41  ;;  %v19950_v41 = vld [vmem:[#allocation54_spill] sm:$0xff] }
 0x778   : > { %v12679_v36 = vpop.permute.xlu0 %2645  ;;  %2759 = vrot.lane.b32.xlu1 %v19740_v38, %s10404_s18  ;;  %v2843_v58 = vrot.slane %v19950_v41, 7  ;;  %v19952_v38 = vld [vmem:[#allocation58_spill] sm:$0xff]  ;;  %v2806_v41 = vsel %vm2805_vm2, %v2804_v44, %v10779_v21 }
 0x779   : > { %19946 = vst [vmem:[#allocation422_spill] sm:$0xff] %v12679_v36  ;;  %v19951_v36 = vld [vmem:[#allocation47_spill] sm:$0xff]  ;;  %v2850_v16 = vrot.slane %v19952_v38, 7  ;;  %v2822_v38 = vrot.slane %v10825_v13, 7 }
 0x77a   : > { %2761 = vrot.lane.b32.xlu0 %v19741_v25, %s10404_s18  ;;  %v12686_v39 = vpop.permute.xlu1 %2647  ;;  %v2837_v60 = vsel %vm2805_vm2, %v2836_v59, %v19951_v36  ;;  %v2816_v36 = vsel %vm2805_vm2, %v2815_v0, %v10791_v27  ;;  %v12726_v27 = vrot.slane %v10857_v47, 7  ;;  %v19958_v13 = vld [vmem:[#allocation59_spill] sm:$0xff]  ;;  %v12740_v47 = vrot.slane %v19960_v35, 7 }
 0x77b   : > { %19948 = vst [vmem:[#allocation48_spill] sm:$0xff] %v12686_v39  ;;  %v19953_v39 = vld [vmem:[#allocation60_spill] sm:$0xff]  ;;  %v2817_v32 = vsel %vm2807_vm5, %v2815_v0, %v2816_v36 }
 0x77c   : > { %v12688_v4 = vpop.permute.xlu0 %2649  ;;  %2763 = vrot.lane.b32.xlu1 %v11123_v49, %s10404_s18  ;;  %v2838_v49 = vsel %vm2807_vm5, %v2836_v59, %v2837_v60  ;;  %v3040_v36 = vsel %vm2805_vm2, %v12726_v27, %v10855_v55 }
 0x77d   : > { %19949 = vst [vmem:[#allocation423_spill] sm:$0xff] %v12688_v4  ;;  %v2857_v4 = vrot.slane %v19953_v39, 7 }
 0x77e   : > { %2765 = vrot.lane.b32.xlu0 %v19672_v56, %s10404_s18  ;;  %v12701_v25 = vpop.permute.xlu1 %2651  ;;  %v19956_v56 = vld [vmem:[#allocation52_spill] sm:$0xff] }
 0x77f   : > { %19954 = vst [vmem:[#allocation54_spill] sm:$0xff] %v12701_v25  ;;  %v2844_v39 = vsel %vm2805_vm2, %v2843_v58, %v19956_v56  ;;  %v19957_v25 = vld [vmem:[#allocation56_spill] sm:$0xff]  ;;  %v2858_v60 = vsel %vm2805_vm2, %v2857_v4, %v19958_v13  ;;  %v2823_v13 = vsel %vm2805_vm2, %v2822_v38, %v10823_v12 }
 0x780   : > { %v12706_v28 = vpop.permute.xlu0 %2653  ;;  %2767 = vrot.lane.b32.xlu1 %v19675_v3, %s10404_s18  ;;  %v2851_v21 = vsel %vm2805_vm2, %v2850_v16, %v19957_v25  ;;  %v3033_v3 = vsel %vm2805_vm2, %v12704_v23, %v10840_v34  ;;  %v2839_v25 = vsel %vm2809_vm6, %v2836_v59, %v2838_v49  ;;  %v2830_v34 = vsel %vm2805_vm2, %v12719_v48, %v10831_v19 }
 0x781   : > { %19955 = vst [vmem:[#allocation47_spill] sm:$0xff] %v12706_v28  ;;  %v2808_v28 = vsel %vm2807_vm5, %v2804_v44, %v2806_v41  ;;  %v2852_v41 = vsel %vm2807_vm5, %v2850_v16, %v2851_v21  ;;  %v2859_v49 = vsel %vm2807_vm5, %v2857_v4, %v2858_v60  ;;  %v3034_v12 = vsel %vm2807_vm5, %v12704_v23, %v3033_v3 }
 0x782   : > { %2769 = vrot.lane.b32.xlu0 %v19676_v18, %s10404_s18  ;;  %v12730_v56 = vpop.permute.xlu1 %2655  ;;  %v2845_v18 = vsel %vm2807_vm5, %v2843_v58, %v2844_v39  ;;  %v2810_v35 = vsel %vm2809_vm6, %v2804_v44, %v2808_v28  ;;  %v2840_v39 = vsel %vm2811_vm7, %v2836_v59, %v2839_v25  ;;  %v2818_v19 = vsel %vm2809_vm6, %v2815_v0, %v2817_v32  ;;  %v19963_v28 = vld [vmem:[#allocation61_spill] sm:$0xff] }
 0x783   : > { %19959 = vst [vmem:[#allocation58_spill] sm:$0xff] %v12730_v56  ;;  %v2846_v21 = vsel %vm2809_vm6, %v2843_v58, %v2845_v18  ;;  %v2824_v60 = vsel %vm2807_vm5, %v2822_v38, %v2823_v13  ;;  %v3061_v3 = vsel %vm2805_vm2, %v12740_v47, %v19963_v28  ;;  %v2831_v18 = vsel %vm2807_vm5, %v12719_v48, %v2830_v34 }
 0x784   : > { %v12742_v37 = vpop.permute.xlu0 %2657  ;;  %2771 = vrot.lane.b32.xlu1 %v11146_v2, %s10404_s18  ;;  %v19964_v2 = vld [vmem:[#allocation118_spill] sm:$0xff]  ;;  %v2860_v59 = vsel %vm2809_vm6, %v2857_v4, %v2859_v49  ;;  %v2812_v32 = vsel %vm2811_vm7, %v2804_v44, %v2810_v35  ;;  %v3035_v25 = vsel %vm2809_vm6, %v12704_v23, %v3034_v12  ;;  %v12786_v13 = vsel %vm2807_vm5, %v12726_v27, %v3040_v36 }
 0x785   : > { %19961 = vst [vmem:[#allocation60_spill] sm:$0xff] %v12742_v37  ;;  %v2853_v37 = vsel %vm2809_vm6, %v2850_v16, %v2852_v41  ;;  %v4854_v41 = vcombine.low %v2812_v32, %v2840_v39  ;;  %v2819_v34 = vsel %vm2811_vm7, %v2815_v0, %v2818_v19  ;;  %v2825_v49 = vsel %vm2809_vm6, %v2822_v38, %v2824_v60  ;;  %v19966_v35 = vld [vmem:[#allocation182_spill] sm:$0xff]  ;;  %v19968_v39 = vld [vmem:[#allocation117_spill] sm:$0xff]  ;;  %v19969_v19 = vld [vmem:[#allocation120_spill] sm:$0xff] }
 0x786   : > { %2773 = vrot.lane.b32.xlu0 %v19607_v42, %s10404_s18  ;;  %v12763_v56 = vpop.permute.xlu1 %2659  ;;  %v12772_v42 = vrot.slane %v19964_v2, 7  ;;  %v2847_v2 = vsel %vm2811_vm7, %v2843_v58, %v2846_v21  ;;  %v2854_v28 = vsel %vm2811_vm7, %v2850_v16, %v2853_v37  ;;  %v3062_v44 = vsel %vm2807_vm5, %v12740_v47, %v3061_v3  ;;  %v19970_v16 = vld [vmem:[#allocation122_spill] sm:$0xff]  ;;  %v19972_v32 = vld [vmem:[#allocation64_spill] sm:$0xff] }
 0x787   : > { %19962 = vst [vmem:[#allocation52_spill] sm:$0xff] %v12763_v56  ;;  %v12797_v12 = vrot.slane %v19966_v35, 7  ;;  %v2832_v58 = vsel %vm2809_vm6, %v12719_v48, %v2831_v18  ;;  %v2861_v21 = vsel %vm2811_vm7, %v2857_v4, %v2860_v59  ;;  %v12808_v60 = vrot.slane %v19969_v19, 7  ;;  %v19973_v19 = vld [vmem:[#allocation7_spill] sm:$0xff] }
 0x788   : > { %v12774_v55 = vpop.permute.xlu0 %2661  ;;  %2775 = vrot.lane.b32.xlu1 %v19610_v43, %s10404_s18  ;;  %v2865_v0 = vsel %vm2805_vm2, %v12772_v42, %v19968_v39  ;;  %v12811_v37 = vrot.slane %v19970_v16, 7  ;;  %v12816_v35 = vrot.slane %v19972_v32, 7  ;;  %v4890_v18 = vcombine.low %v2819_v34, %v2847_v2  ;;  %v19975_v2 = vld [vmem:[#allocation181_spill] sm:$0xff]  ;;  %v19978_v56 = vld [vmem:[#allocation119_spill] sm:$0xff] }
 0x789   : > { %19965 = vst [vmem:[#allocation56_spill] sm:$0xff] %v12774_v55  ;;  %v2826_v4 = vsel %vm2811_vm7, %v2822_v38, %v2825_v49  ;;  %v12823_v59 = vsel %vm2811_vm7, %v12704_v23, %v3035_v25  ;;  %v3063_v39 = vsel %vm2809_vm6, %v12740_v47, %v3062_v44  ;;  %v12830_v16 = vrot.slane %v4854_v41, %v19973_v19  ;;  %v19976_v25 = vld [vmem:[#allocation310_spill] sm:$0xff] }
 0x78a   : > { %2777 = vrot.lane.b32.xlu0 %v19611_v63, %s10404_s18  ;;  %v12799_v36 = vpop.permute.xlu1 %2663  ;;  %v4926_v32 = vcombine.low %v2826_v4, %v2854_v28  ;;  %v2866_v38 = vsel %vm2807_vm5, %v12772_v42, %v2865_v0  ;;  %v2893_v23 = vsel %vm2805_vm2, %v12797_v12, %v19975_v2  ;;  %v12840_v34 = vrot.slane %v19976_v25, 7  ;;  %v19979_v28 = vld [vmem:[#allocation121_spill] sm:$0xff]  ;;  %v19981_v4 = vld [vmem:[#allocation184_spill] sm:$0xff]  ;;  %v19995_v63 = vld [vmem:[#allocation186_spill] sm:$0xff] }
 0x78b   : > { %19967 = vst [vmem:[#allocation59_spill] sm:$0xff] %v12799_v36  ;;  %19974 = vst [vmem:[#allocation61_spill] sm:$0xff] %v12830_v16  ;;  %v2833_v36 = vsel %vm2811_vm7, %v12719_v48, %v2832_v58  ;;  %v2872_v41 = vsel %vm2805_vm2, %v12808_v60, %v19978_v56  ;;  %v2879_v48 = vsel %vm2805_vm2, %v12811_v37, %v19979_v28  ;;  %v19980_v58 = vld [vmem:[#allocation124_spill] sm:$0xff] }
 0x78c   : > { %v12813_v3 = vpop.permute.xlu0 %2665  ;;  %2779 = vrot.lane.b32.xlu1 %v11165_v7, %s10404_s18  ;;  %v4962_v44 = vcombine.low %v2833_v36, %v2861_v21  ;;  %v12851_v0 = vrot.slane %v19980_v58, 7  ;;  %v12860_v25 = vsel %vm2811_vm7, %v12740_v47, %v3063_v39  ;;  %v19983_v36 = vld [vmem:[#allocation63_spill] sm:$0xff]  ;;  %v19984_v21 = vld [vmem:[#allocation246_spill] sm:$0xff]  ;;  %v12871_v28 = vrot.slane %v4890_v18, %v19973_v19 }
 0x78d   : > { %19971 = vst [vmem:[#allocation62_spill] sm:$0xff] %v12813_v3  ;;  %v12854_v3 = vrot.slane %v19981_v4, 7  ;;  %v3068_v56 = vsel %vm2805_vm2, %v12816_v35, %v19983_v36  ;;  %v2867_v58 = vsel %vm2809_vm6, %v12772_v42, %v2866_v38  ;;  %v2894_v47 = vsel %vm2807_vm5, %v12797_v12, %v2893_v23 }
 0x78e   : > { %2781 = vrot.lane.b32.xlu0 %v11170_v24, %s10404_s18  ;;  %v12842_v49 = vpop.permute.xlu1 %2667  ;;  %19985 = vst [vmem:[#allocation117_spill] sm:$0xff] %v12871_v28  ;;  %v12878_v39 = vrot.slane %v12479_v26, 7  ;;  %v12883_v4 = vrot.slane %v4926_v32, %v19973_v19  ;;  %v2873_v36 = vsel %vm2807_vm5, %v12808_v60, %v2872_v41  ;;  %v2880_v18 = vsel %vm2807_vm5, %v12811_v37, %v2879_v48  ;;  %v19989_v32 = vld [vmem:[#allocation123_spill] sm:$0xff] }
 0x78f   : > { %19977 = vst [vmem:[#allocation118_spill] sm:$0xff] %v12842_v49  ;;  %v12866_v49 = vrot.slane %v19984_v21, 7  ;;  %v19987_v21 = vld [vmem:[#allocation309_spill] sm:$0xff]  ;;  %v12893_v26 = vrot.slane %v4962_v44, %v19973_v19  ;;  %v2886_v55 = vsel %vm2805_vm2, %v12851_v0, %v19989_v32  ;;  %v19990_v41 = vld [vmem:[#allocation183_spill] sm:$0xff]  ;;  %v2868_v44 = vsel %vm2811_vm7, %v12772_v42, %v2867_v58 }
 0x790   : > { %v12856_v2 = vpop.permute.xlu0 %2669  ;;  %2783 = vrot.lane.b32.xlu1 %v11176_v50, %s10404_s18  ;;  %19986 = vst [vmem:[#allocation120_spill] sm:$0xff] %v12883_v4  ;;  %v2949_v38 = vsel %vm2805_vm2, %v12840_v34, %v19987_v21  ;;  %v2900_v48 = vsel %vm2805_vm2, %v12854_v3, %v19990_v41  ;;  %v2874_v32 = vsel %vm2809_vm6, %v12808_v60, %v2873_v36  ;;  %v19992_v58 = vld [vmem:[#allocation373_spill] sm:$0xff]  ;;  %v19993_v21 = vld [vmem:[#allocation50_spill] sm:$0xff]  ;;  %v19994_v36 = vld [vmem:[#allocation312_spill] sm:$0xff] }
 0x791   : > { %19982 = vst [vmem:[#allocation182_spill] sm:$0xff] %v12856_v2  ;;  %19988 = vst [vmem:[#allocation122_spill] sm:$0xff] %v12893_v26  ;;  %v12897_v2 = vsel %vm2807_vm5, %v12816_v35, %v3068_v56  ;;  %v19991_v56 = vld [vmem:[#allocation245_spill] sm:$0xff]  ;;  %v2881_v41 = vsel %vm2809_vm6, %v12811_v37, %v2880_v18  ;;  %v2950_v42 = vsel %vm2807_vm5, %v12840_v34, %v2949_v38 }
 0x792   : > { %2785 = vrot.lane.b32.xlu0 %v11178_v1, %s10404_s18  ;;  %v2672_v23 = vpop.permute.xlu1 %2671  ;;  %v2895_v1 = vsel %vm2809_vm6, %v12797_v12, %v2894_v47  ;;  %v2921_v7 = vsel %vm2805_vm2, %v12866_v49, %v19991_v56  ;;  %v2977_v47 = vsel %vm2805_vm2, %v12878_v39, %v19992_v58  ;;  %v2901_v56 = vsel %vm2807_vm5, %v12854_v3, %v2900_v48 }
 0x793   : > { %v2896_v38 = vsel %vm2811_vm7, %v12797_v12, %v2895_v1  ;;  %v12938_v58 = vrot.slane %v19995_v63, 7  ;;  %v12944_v48 = vrot.slane %v19996_v11, 7  ;;  %v2875_v63 = vsel %vm2811_vm7, %v12808_v60, %v2874_v32  ;;  %v19997_v12 = vld [vmem:[#allocation53_spill] sm:$0xff]  ;;  %v19998_v32 = vld [vmem:[#allocation311_spill] sm:$0xff] }
 0x794   : > { %v2674_v50 = vpop.permute.xlu0 %2673  ;;  %2787 = vrot.lane.b32.xlu1 %v11189_v29, %s10404_s18  ;;  %v12932_v29 = vrot.slane %v19994_v36, 7  ;;  %v2951_v36 = vsel %vm2809_vm6, %v12840_v34, %v2950_v42  ;;  %v12957_v1 = vrot.slane %v12487_v40, 7 }
 0x795   : > { %v3004_v43 = vrot.slane %v2674_v50, 7  ;;  %v2887_v50 = vsel %vm2807_vm5, %v12851_v0, %v2886_v55 }
 0x796   : > { %2789 = vrot.lane.b32.xlu0 %v19993_v21, %s10404_s18  ;;  %v2676_v24 = vpop.permute.xlu1 %2675  ;;  %v2922_v21 = vsel %vm2807_vm5, %v12866_v49, %v2921_v7  ;;  %v2902_v7 = vsel %vm2809_vm6, %v12854_v3, %v2901_v56  ;;  %v12968_v42 = vsel %vm2809_vm6, %v12851_v0, %v2887_v50  ;;  %v2956_v40 = vsel %vm2805_vm2, %v12932_v29, %v19998_v32 }
 0x797   : > { %v3005_v18 = vsel %vm2805_vm2, %v3004_v43, %v2672_v23  ;;  %v2978_v23 = vsel %vm2807_vm5, %v12878_v39, %v2977_v47  ;;  %v2923_v60 = vsel %vm2809_vm6, %v12866_v49, %v2922_v21  ;;  %v2952_v56 = vsel %vm2811_vm7, %v12840_v34, %v2951_v36  ;;  %v20001_v36 = vld [vmem:[#allocation188_spill] sm:$0xff] }
 0x798   : > { %v3006_v55 = vsel %vm2807_vm5, %v3004_v43, %v3005_v18  ;;  %v2678_v6 = vpop.permute.xlu0 %2677  ;;  %2791 = vrot.lane.b32.xlu1 %v11197_v22, %s10404_s18  ;;  %v2979_v18 = vsel %vm2809_vm6, %v12878_v39, %v2978_v23  ;;  %v2903_v50 = vsel %vm2811_vm7, %v12854_v3, %v2902_v7  ;;  %v19999_v22 = vld [vmem:[#allocation185_spill] sm:$0xff]  ;;  %v2957_v3 = vsel %vm2807_vm5, %v12932_v29, %v2956_v40 }
 0x799   : > { %v3011_v14 = vrot.slane %v2678_v6, 7  ;;  %v3007_v11 = vsel %vm2809_vm6, %v3004_v43, %v3006_v55  ;;  %v12964_v6 = vsel %vm2811_vm7, %v12811_v37, %v2881_v41  ;;  %v4863_v55 = vcombine.low %v2868_v44, %v2896_v38  ;;  %v20002_v38 = vld [vmem:[#allocation374_spill] sm:$0xff] }
 0x79a   : > { %2793 = vrot.lane.b32.xlu0 %v19997_v12, %s10404_s18  ;;  %v2680_v47 = vpop.permute.xlu1 %2679  ;;  %v2907_v21 = vsel %vm2805_vm2, %v12938_v58, %v19999_v22  ;;  %v20000_v12 = vld [vmem:[#allocation247_spill] sm:$0xff]  ;;  %v3008_v34 = vsel %vm2811_vm7, %v3004_v43, %v3007_v11  ;;  %v2924_v44 = vsel %vm2811_vm7, %v12866_v49, %v2923_v60  ;;  %v2984_v22 = vsel %vm2805_vm2, %v12957_v1, %v20002_v38  ;;  %v20003_v43 = vld [vmem:[#allocation314_spill] sm:$0xff] }
 0x79b   : > { %v3012_v37 = vsel %vm2805_vm2, %v3011_v14, %v2676_v24  ;;  %v2928_v32 = vsel %vm2805_vm2, %v12944_v48, %v20000_v12  ;;  %v12992_v24 = vrot.slane %v20001_v36, 7  ;;  %v13004_v23 = vrot.slane %v20003_v43, 7  ;;  %v20005_v43 = vld [vmem:[#allocation250_spill] sm:$0xff] }
 0x79c   : > { %v2682_v41 = vpop.permute.xlu0 %2681  ;;  %2795 = vrot.lane.b32.xlu1 %v11209_v8, %s10404_s18  ;;  %v2980_v7 = vsel %vm2811_vm7, %v12878_v39, %v2979_v18  ;;  %v3013_v11 = vsel %vm2807_vm5, %v3011_v14, %v3012_v37  ;;  %v4872_v49 = vcombine.low %v2924_v44, %v2952_v56  ;;  %v2929_v60 = vsel %vm2807_vm5, %v12944_v48, %v2928_v32  ;;  %v20006_v37 = vld [vmem:[#allocation126_spill] sm:$0xff]  ;;  %v20007_v32 = vld [vmem:[#allocation376_spill] sm:$0xff] }
 0x79d   : > { %v13013_v40 = vrot.slane %v2682_v41, 7  ;;  %v13016_v38 = vrot.slane %v4863_v55, %v19973_v19  ;;  %v4881_v8 = vcombine.low %v2980_v7, %v3008_v34  ;;  %v2958_v39 = vsel %vm2809_vm6, %v12932_v29, %v2957_v3  ;;  %v20008_v3 = vld [vmem:[#allocation187_spill] sm:$0xff] }
 0x79e   : > { %2797 = vrot.lane.b32.xlu0 %v11213_v57, %s10404_s18  ;;  %v13009_v12 = vpop.permute.xlu1 %2683  ;;  %v13019_v57 = vrot.slane %v20005_v43, 7  ;;  %v2985_v18 = vsel %vm2807_vm5, %v12957_v1, %v2984_v22  ;;  %v4899_v56 = vcombine.low %v2875_v63, %v2903_v50  ;;  %v13028_v41 = vrot.slane %v20006_v37, 7  ;;  %v20009_v50 = vld [vmem:[#allocation313_spill] sm:$0xff]  ;;  %s10425_s18 = smov 8  }
 0x79f   : > { %20004 = vst [vmem:[#allocation64_spill] sm:$0xff] %v13016_v38  ;;  %v2908_v55 = vsel %vm2807_vm5, %v12938_v58, %v2907_v21  ;;  %v13033_v34 = vrot.slane %v20007_v32, 7  ;;  %v3014_v44 = vsel %vm2809_vm6, %v3011_v14, %v3013_v11  ;;  %v2914_v22 = vsel %vm2805_vm2, %v12992_v24, %v20008_v3 }
 0x7a0   : > { %v2686_v36 = vpop.permute.xlu0 %2685  ;;  %6262 = vrot.lane.b32.xlu1 %v12830_v16, %s10395_s26  ;;  %v2930_v63 = vsel %vm2809_vm6, %v12944_v48, %v2929_v60  ;;  %v2963_v7 = vsel %vm2805_vm2, %v13004_v23, %v20009_v50  ;;  %v13049_v43 = vrot.slane %v4872_v49, %v19973_v19  ;;  %v2959_v11 = vsel %vm2811_vm7, %v12932_v29, %v2958_v39 }
 0x7a1   : > { %v2986_v37 = vsel %vm2809_vm6, %v12957_v1, %v2985_v18  ;;  %v3019_v32 = vsel %vm2805_vm2, %v13013_v40, %v2680_v47  ;;  %v13058_v60 = vrot.slane %v4881_v8, %v19973_v19  ;;  %v2909_v50 = vsel %vm2809_vm6, %v12938_v58, %v2908_v55  ;;  %v20014_v18 = vld [vmem:[#allocation375_spill] sm:$0xff] }
 0x7a2   : > { %6264 = vrot.lane.b32.xlu0 %v13016_v38, %s10395_s26  ;;  %v13046_v21 = vpop.permute.xlu1 %2687  ;;  %20010 = vst [vmem:[#allocation181_spill] sm:$0xff] %v13049_v43  ;;  %v2935_v49 = vsel %vm2805_vm2, %v13019_v57, %v20012_v53  ;;  %v3015_v46 = vsel %vm2811_vm7, %v3011_v14, %v3014_v44  ;;  %v13069_v29 = vrot.slane %v4899_v56, %v19973_v19  ;;  %v20015_v14 = vld [vmem:[#allocation316_spill] sm:$0xff] }
 0x7a3   : > { %20011 = vst [vmem:[#allocation310_spill] sm:$0xff] %v13058_v60  ;;  %v2915_v47 = vsel %vm2807_vm5, %v12992_v24, %v2914_v22  ;;  %v2931_v8 = vsel %vm2811_vm7, %v12944_v48, %v2930_v63  ;;  %v2964_v39 = vsel %vm2807_vm5, %v13004_v23, %v2963_v7  ;;  %v2991_v53 = vsel %vm2805_vm2, %v13033_v34, %v20014_v18 }
 0x7a4   : > { %v2690_v3 = vpop.permute.xlu0 %2689  ;;  %6266 = vrot.lane.b32.xlu1 %v13049_v43, %s10395_s26  ;;  %20013 = vst [vmem:[#allocation119_spill] sm:$0xff] %v13069_v29  ;;  %v13083_v55 = vrot.slane %v20015_v14, 7  ;;  %v2987_v56 = vsel %vm2811_vm7, %v12957_v1, %v2986_v37  ;;  %v3020_v44 = vsel %vm2807_vm5, %v13013_v40, %v3019_v32  ;;  %v4908_v22 = vcombine.low %v2931_v8, %v2959_v11  ;;  %v20016_v37 = vld [vmem:[#allocation252_spill] sm:$0xff] }
 0x7a5   : > { %v2910_v63 = vsel %vm2811_vm7, %v12938_v58, %v2909_v50  ;;  %v2936_v7 = vsel %vm2807_vm5, %v13019_v57, %v2935_v49  ;;  %v13095_v18 = vrot.slane %v2686_v36, 7  ;;  %v4917_v14 = vcombine.low %v2987_v56, %v3015_v46  ;;  %v20017_v36 = vld [vmem:[#allocation190_spill] sm:$0xff] }
 0x7a6   : > { %6268 = vrot.lane.b32.xlu0 %v13058_v60, %s10395_s26  ;;  %v13089_v48 = vpop.permute.xlu1 %2691  ;;  %v13102_v1 = vsel %vm2811_vm7, %v12851_v0, %v12968_v42  ;;  %v13105_v32 = vrot.slane %v20016_v37, 7  ;;  %v2965_v11 = vsel %vm2809_vm6, %v13004_v23, %v2964_v39  ;;  %v2992_v58 = vsel %vm2807_vm5, %v13033_v34, %v2991_v53  ;;  %v20018_v0 = vld [vmem:[#allocation378_spill] sm:$0xff]  ;;  %v20019_v39 = vld [vmem:[#allocation315_spill] sm:$0xff] }
 0x7a7   : > { %v2916_v46 = vsel %vm2809_vm6, %v12992_v24, %v2915_v47  ;;  %v13116_v50 = vrot.slane %v20017_v36, 7  ;;  %v13119_v42 = vrot.slane %v20018_v0, 7  ;;  %v3021_v49 = vsel %vm2809_vm6, %v13013_v40, %v3020_v44 }
 0x7a8   : > { %v13097_v33 = vpop.permute.xlu0 %2693  ;;  %6278 = vrot.lane.b32.xlu1 %v12871_v28, %s10395_s26  ;;  %v2937_v8 = vsel %vm2809_vm6, %v13019_v57, %v2936_v7  ;;  %v2970_v53 = vsel %vm2805_vm2, %v13083_v55, %v20019_v39  ;;  %v13133_v56 = vrot.slane %v4908_v22, %v19973_v19  ;;  %v4935_v37 = vcombine.low %v12964_v6, %v2910_v63 }
 0x7a9   : > { %v2966_v44 = vsel %vm2811_vm7, %v13004_v23, %v2965_v11  ;;  %v2993_v36 = vsel %vm2809_vm6, %v13033_v34, %v2992_v58  ;;  %v3026_v7 = vsel %vm2805_vm2, %v13095_v18, %v13009_v12  ;;  %v13146_v39 = vrot.slane %v4917_v14, %v19973_v19  ;;  %v20023_v23 = vld [vmem:[#allocation251_spill] sm:$0xff]  ;;  %v20024_v12 = vld [vmem:[#allocation189_spill] sm:$0xff] }
 0x7aa   : > { %6280 = vrot.lane.b32.xlu0 %v13069_v29, %s10395_s26  ;;  %v13130_v47 = vpop.permute.xlu1 %2695  ;;  %20020 = vst [vmem:[#allocation121_spill] sm:$0xff] %v13133_v56  ;;  %v3089_v22 = vsel %vm2805_vm2, %v13028_v41, %v20022_v54  ;;  %v2917_v6 = vsel %vm2811_vm7, %v12992_v24, %v2916_v46  ;;  %v2942_v63 = vsel %vm2805_vm2, %v13105_v32, %v20023_v23  ;;  %v20025_v58 = vld [vmem:[#allocation377_spill] sm:$0xff]  ;;  %v13183_v31 = vrot.slane %v2690_v3, 7 }
 0x7ab   : > { %20021 = vst [vmem:[#allocation124_spill] sm:$0xff] %v13146_v39  ;;  %v3022_v11 = vsel %vm2811_vm7, %v13013_v40, %v3021_v49  ;;  %v3117_v14 = vsel %vm2805_vm2, %v13116_v50, %v20024_v12  ;;  %v2938_v54 = vsel %vm2811_vm7, %v13019_v57, %v2937_v8  ;;  %v2971_v24 = vsel %vm2807_vm5, %v13083_v55, %v2970_v53  ;;  %v20026_v40 = vld [vmem:[#allocation318_spill] sm:$0xff] }
 0x7ac   : > { %v13143_v0 = vpop.permute.xlu0 %2697  ;;  %6282 = vrot.lane.b32.xlu1 %v13133_v56, %s10395_s26  ;;  %v2998_v46 = vsel %vm2805_vm2, %v13119_v42, %v20025_v58  ;;  %v13173_v49 = vrot.slane %v20026_v40, 7  ;;  %v2994_v23 = vsel %vm2811_vm7, %v13033_v34, %v2993_v36  ;;  %v3027_v12 = vsel %vm2807_vm5, %v13095_v18, %v3026_v7  ;;  %v20028_v36 = vld [vmem:[#allocation254_spill] sm:$0xff] }
 0x7ad   : > { %v4944_v8 = vcombine.low %v2938_v54, %v2966_v44  ;;  %v2943_v53 = vsel %vm2807_vm5, %v13105_v32, %v2942_v63  ;;  %v13188_v62 = vrot.slane %v4935_v37, %v19973_v19  ;;  %v4953_v40 = vcombine.low %v2994_v23, %v3022_v11  ;;  %v20029_v37 = vld [vmem:[#allocation380_spill] sm:$0xff]  ;;  %v20031_v23 = vld [vmem:[#allocation317_spill] sm:$0xff] }
 0x7ae   : > { %6284 = vrot.lane.b32.xlu0 %v13146_v39, %s10395_s26  ;;  %v13179_v57 = vpop.permute.xlu1 %2699  ;;  %v3090_v34 = vsel %vm2807_vm5, %v13028_v41, %v3089_v22  ;;  %v13193_v51 = vrot.slane %v20028_v36, 7  ;;  %v2972_v44 = vsel %vm2809_vm6, %v13083_v55, %v2971_v24  ;;  %v2999_v7 = vsel %vm2807_vm5, %v13119_v42, %v2998_v46  ;;  %v20030_v54 = vld [vmem:[#allocation192_spill] sm:$0xff] }
 0x7af   : > { %20027 = vst [vmem:[#allocation184_spill] sm:$0xff] %v13188_v62  ;;  %v3118_v3 = vsel %vm2807_vm5, %v13116_v50, %v3117_v14  ;;  %v13204_v63 = vrot.slane %v20029_v37, 7  ;;  %v3028_v22 = vsel %vm2809_vm6, %v13095_v18, %v3027_v12  ;;  %v4971_v11 = vcombine.low %v13102_v1, %v2917_v6 }
 0x7b0   : > { %v13185_v58 = vpop.permute.xlu0 %2701  ;;  %6294 = vrot.lane.b32.xlu1 %v12883_v4, %s10395_s26  ;;  %v13212_v24 = vrot.slane %v20030_v54, 7  ;;  %v2944_v46 = vsel %vm2809_vm6, %v13105_v32, %v2943_v53  ;;  %v3173_v14 = vsel %vm2805_vm2, %v13173_v49, %v20031_v23  ;;  %v13222_v37 = vrot.slane %v4944_v8, %v19973_v19  ;;  %v20036_v8 = vld [vmem:[#allocation128_spill] sm:$0xff] }
 0x7b1   : > { %v2973_v12 = vsel %vm2811_vm7, %v13083_v55, %v2972_v44  ;;  %v3000_v1 = vsel %vm2809_vm6, %v13119_v42, %v2999_v7  ;;  %v3229_v6 = vsel %vm2805_vm2, %v13183_v31, %v13046_v21  ;;  %v13234_v54 = vrot.slane %v4953_v40, %v19973_v19  ;;  %v20038_v7 = vld [vmem:[#allocation379_spill] sm:$0xff] }
 0x7b2   : > { %6296 = vrot.lane.b32.xlu0 %v13188_v62, %s10395_s26  ;;  %v13219_v36 = vpop.permute.xlu1 %2703  ;;  %20033 = vst [vmem:[#allocation246_spill] sm:$0xff] %v13222_v37  ;;  %v3091_v23 = vsel %vm2809_vm6, %v13028_v41, %v3090_v34  ;;  %v3145_v55 = vsel %vm2805_vm2, %v13193_v51, %v20037_v45  ;;  %v3029_v44 = vsel %vm2811_vm7, %v13095_v18, %v3028_v22  ;;  %v20039_v45 = vld [vmem:[#allocation320_spill] sm:$0xff] }
 0x7b3   : > { %20032 = vst [vmem:[#allocation63_spill] sm:$0xff] %v13219_v36  ;;  %20035 = vst [vmem:[#allocation123_spill] sm:$0xff] %v13234_v54  ;;  %v13239_v36 = vrot.slane %v20036_v8, 7  ;;  %v3119_v21 = vsel %vm2809_vm6, %v13116_v50, %v3118_v3  ;;  %v2945_v40 = vsel %vm2811_vm7, %v13105_v32, %v2944_v46  ;;  %v3174_v34 = vsel %vm2807_vm5, %v13173_v49, %v3173_v14  ;;  %v20040_v46 = vld [vmem:[#allocation191_spill] sm:$0xff] }
 0x7b4   : > { %v13231_v53 = vpop.permute.xlu0 %2705  ;;  %6298 = vrot.lane.b32.xlu1 %v13222_v37, %s10395_s26  ;;  %v3201_v8 = vsel %vm2805_vm2, %v13204_v63, %v20038_v7  ;;  %v3179_v18 = vrot.slane %v20039_v45, 7  ;;  %v3001_v22 = vsel %vm2811_vm7, %v13119_v42, %v3000_v1  ;;  %v3230_v3 = vsel %vm2807_vm5, %v13183_v31, %v3229_v6  ;;  %v20042_v1 = vld [vmem:[#allocation256_spill] sm:$0xff] }
 0x7b5   : > { %20034 = vst [vmem:[#allocation309_spill] sm:$0xff] %v13231_v53  ;;  %v4980_v32 = vcombine.low %v2945_v40, %v2973_v12  ;;  %v3124_v14 = vsel %vm2805_vm2, %v13212_v24, %v20040_v46  ;;  %v3146_v7 = vsel %vm2807_vm5, %v13193_v51, %v3145_v55  ;;  %v13274_v45 = vrot.slane %v4971_v11, %v19973_v19 }
 0x7b6   : > { %6300 = vrot.lane.b32.xlu0 %v13234_v54, %s10395_s26  ;;  %v13264_v15 = vpop.permute.xlu1 %2707  ;;  %v4989_v53 = vcombine.low %v3001_v22, %v3029_v44  ;;  %v3120_v42 = vsel %vm2811_vm7, %v13116_v50, %v3119_v21  ;;  %v3151_v6 = vrot.slane %v20042_v1, 7  ;;  %v3175_v12 = vsel %vm2809_vm6, %v13173_v49, %v3174_v34  ;;  %v20043_v44 = vld [vmem:[#allocation127_spill] sm:$0xff] }
 0x7b7   : > { %20041 = vst [vmem:[#allocation183_spill] sm:$0xff] %v13274_v45  ;;  %v3202_v40 = vsel %vm2807_vm5, %v13204_v63, %v3201_v8  ;;  %v3070_v11 = vsel %vm2809_vm6, %v12816_v35, %v12897_v2  ;;  %v3092_v55 = vsel %vm2811_vm7, %v13028_v41, %v3091_v23  ;;  %v3096_v50 = vsel %vm2805_vm2, %v13239_v36, %v20043_v44  ;;  %v20044_v2 = vld [vmem:[#allocation319_spill] sm:$0xff] }
 0x7b8   : > { %v13271_v10 = vpop.permute.xlu0 %2709  ;;  %6310 = vrot.lane.b32.xlu1 %v12893_v26, %s10395_s26  ;;  %v3231_v21 = vsel %vm2809_vm6, %v13183_v31, %v3230_v3  ;;  %v3125_v34 = vsel %vm2807_vm5, %v13212_v24, %v3124_v14  ;;  %v3147_v8 = vsel %vm2809_vm6, %v13193_v51, %v3146_v7  ;;  %v3180_v22 = vsel %vm2805_vm2, %v3179_v18, %v20044_v2  ;;  %v20048_v2 = vld [vmem:[#allocation255_spill] sm:$0xff] }
 0x7b9   : > { %v13306_v23 = vrot.slane %v4980_v32, %v19973_v19  ;;  %v3176_v3 = vsel %vm2811_vm7, %v13173_v49, %v3175_v12  ;;  %v3203_v46 = vsel %vm2809_vm6, %v13204_v63, %v3202_v40  ;;  %v13315_v14 = vrot.slane %v4989_v53, %v19973_v19 }
 0x7ba   : > { %6312 = vrot.lane.b32.xlu0 %v13274_v45, %s10395_s26  ;;  %v13303_v41 = vpop.permute.xlu1 %2711  ;;  %v5007_v7 = vcombine.low %v3092_v55, %v3120_v42  ;;  %v3097_v44 = vsel %vm2807_vm5, %v13239_v36, %v3096_v50  ;;  %v3232_v32 = vsel %vm2811_vm7, %v13183_v31, %v3231_v21  ;;  %v3126_v49 = vsel %vm2809_vm6, %v13212_v24, %v3125_v34 }
 0x7bb   : > { %20045 = vst [vmem:[#allocation245_spill] sm:$0xff] %v13303_v41  ;;  %20046 = vst [vmem:[#allocation373_spill] sm:$0xff] %v13306_v23  ;;  %v3152_v41 = vsel %vm2805_vm2, %v3151_v6, %v20048_v2  ;;  %v3148_v53 = vsel %vm2811_vm7, %v13193_v51, %v3147_v8  ;;  %v3181_v42 = vsel %vm2807_vm5, %v3179_v18, %v3180_v22 }
 0x7bc   : > { %v13312_v1 = vpop.permute.xlu0 %2713  ;;  %20047 = vst [vmem:[#allocation312_spill] sm:$0xff] %v13315_v14  ;;  %6314 = vrot.lane.b32.xlu1 %v13306_v23, %s10395_s26  ;;  %v3042_v12 = vsel %vm2809_vm6, %v12726_v27, %v12786_v13  ;;  %v3071_v31 = vsel %vm2811_vm7, %v12816_v35, %v3070_v11  ;;  %v3204_v40 = vsel %vm2811_vm7, %v13204_v63, %v3203_v46 }
 0x7bd   : > { %v20049_v51 = vcombine.low %v12823_v59, %v12860_v25  ;;  %v5016_v21 = vcombine.low %v3148_v53, %v3176_v3  ;;  %v3098_v34 = vsel %vm2809_vm6, %v13239_v36, %v3097_v44  ;;  %v3153_v13 = vsel %vm2807_vm5, %v3151_v6, %v3152_v41 }
 0x7be   : > { %6316 = vrot.lane.b32.xlu0 %v13315_v14, %s10395_s26  ;;  %v13339_v55 = vpop.permute.xlu1 %2715  ;;  %v13353_v35 = vrot.slane %v5007_v7, %v19973_v19  ;;  %v5025_v63 = vcombine.low %v3204_v40, %v3232_v32  ;;  %v3127_v11 = vsel %vm2811_vm7, %v13212_v24, %v3126_v49  ;;  %v3182_v22 = vsel %vm2809_vm6, %v3179_v18, %v3181_v42 }
 0x7bf   : > { %v13345_v50 = vrot.slane %v20049_v51, %v19973_v19  ;;  %v3043_v59 = vsel %vm2811_vm7, %v12726_v27, %v3042_v12  ;;  %v3099_v25 = vsel %vm2811_vm7, %v13239_v36, %v3098_v34  ;;  %v3154_v41 = vsel %vm2809_vm6, %v3151_v6, %v3153_v13 }
 0x7c0   : > { %v13350_v8 = vpop.permute.xlu0 %2717  ;;  %20051 = vst [vmem:[#allocation248_spill] sm:$0xff] %v13353_v35  ;;  %v13370_v24 = vrot.slane %v5016_v21, %v19973_v19  ;;  %v5034_v46 = vcombine.low %v3043_v59, %v3071_v31  ;;  %v3183_v7 = vsel %vm2811_vm7, %v3179_v18, %v3182_v22  ;;  %v13376_v2 = vrot.slane %v5025_v63, %v19973_v19 }
 0x7c1   : > { %20050 = vst [vmem:[#allocation186_spill] sm:$0xff] %v13345_v50  ;;  %6326 = vrot.lane.b32.xlu1 %v13345_v50, %s10395_s26  ;;  %v5043_v32 = vcombine.low %v3099_v25, %v3127_v11  ;;  %v3155_v27 = vsel %vm2811_vm7, %v3151_v6, %v3154_v41  ;;  %v20057_v40 = vmov 0.0  }
 0x7c2   : > { %6328 = vrot.lane.b32.xlu0 %v13353_v35, %s10395_s26  ;;  %v13367_v3 = vpop.permute.xlu1 %2719  ;;  %20052 = vst [vmem:[#allocation311_spill] sm:$0xff] %v13370_v24  ;;  %20053 = vst [vmem:[#allocation185_spill] sm:$0xff] %v13376_v2  ;;  %v13386_v49 = vrot.slane %v5034_v46, %v19973_v19  ;;  %v5052_v18 = vcombine.low %v3155_v27, %v3183_v7  ;;  %v13406_v51 = vcombine.high %v13016_v38, %v20057_v40 }
 0x7c3   : > { %v13391_v42 = vrot.slane %v5043_v32, %v19973_v19  ;;  %v13416_v34 = vcombine.high %v12830_v16, %v20057_v40  ;;  %v13422_v63 = vcombine.high %v13058_v60, %v20057_v40  ;;  %v13432_v22 = vcombine.high %v13049_v43, %v20057_v40  ;;  %v20084_v60 = vld [vmem:[#allocation130_spill] sm:$0xff] }
 0x7c4   : > { %v13373_v44 = vpop.permute.xlu0 %2721  ;;  %20054 = vst [vmem:[#allocation247_spill] sm:$0xff] %v13386_v49  ;;  %v13400_v12 = vrot.slane %v5052_v18, %v19973_v19  ;;  %20058 = vst [vmem:[#allocation314_spill] sm:$0xff] %v13406_v51  ;;  %v13438_v25 = vcombine.high %v13069_v29, %v20057_v40  ;;  %v13448_v46 = vcombine.high %v12871_v28, %v20057_v40  ;;  %v20080_v29 = vld [vmem:[#allocation194_spill] sm:$0xff] }
 0x7c5   : > { %6330 = vrot.lane.b32.xlu1 %v13370_v24, %s10395_s26  ;;  %20055 = vst [vmem:[#allocation188_spill] sm:$0xff] %v13391_v42  ;;  %20059 = vst [vmem:[#allocation250_spill] sm:$0xff] %v13416_v34  ;;  %v13454_v32 = vcombine.high %v13146_v39, %v20057_v40  ;;  %v13464_v18 = vcombine.high %v13133_v56, %v20057_v40  ;;  %v13538_v39 = vcombine.high %v13306_v23, %v20057_v40 }
 0x7c6   : > { %6332 = vrot.lane.b32.xlu0 %v13376_v2, %s10395_s26  ;;  %v13383_v36 = vpop.permute.xlu1 %2723  ;;  %20056 = vst [vmem:[#allocation374_spill] sm:$0xff] %v13400_v12  ;;  %20060 = vst [vmem:[#allocation126_spill] sm:$0xff] %v13422_v63 }
 0x7c7   : > { %20061 = vst [vmem:[#allocation376_spill] sm:$0xff] %v13432_v22  ;;  %20062 = vst [vmem:[#allocation187_spill] sm:$0xff] %v13438_v25 }
 0x7c8   : > { %v13388_v53 = vpop.permute.xlu0 %2725  ;;  %20063 = vst [vmem:[#allocation313_spill] sm:$0xff] %v13448_v46  ;;  %20064 = vst [vmem:[#allocation249_spill] sm:$0xff] %v13454_v32 }
 0x7c9   : > { %6342 = vrot.lane.b32.xlu1 %v13386_v49, %s10395_s26  ;;  %20065 = vst [vmem:[#allocation375_spill] sm:$0xff] %v13464_v18  ;;  %20079 = vst [vmem:[#allocation254_spill] sm:$0xff] %v13538_v39 }
 0x7ca   : > { %6344 = vrot.lane.b32.xlu0 %v13391_v42, %s10395_s26  ;;  %v13397_v6 = vpop.permute.xlu1 %2727 }
 0x7cc   : > { %v13402_v31 = vpop.permute.xlu0 %2729 }
 0x7cd   : > { %6346 = vrot.lane.b32.xlu1 %v13400_v12, %s10395_s26 }
 0x7ce   : > { %6272 = vrot.lane.b32.xlu0 %v13406_v51, %s10395_s26  ;;  %v13412_v21 = vpop.permute.xlu1 %2731 }
 0x7d0   : > { %v13418_v13 = vpop.permute.xlu0 %2733 }
 0x7d1   : > { %6270 = vrot.lane.b32.xlu1 %v13416_v34, %s10395_s26  ;;  %v13487_v34 = vcombine.high %v13234_v54, %v20057_v40  ;;  %v13506_v54 = vcombine.high %v13274_v45, %v20057_v40  ;;  %v13525_v45 = vcombine.high %v13315_v14, %v20057_v40  ;;  %v3046_v14 = vrot.slane %v10874_v9, 7 }
 0x7d2   : > { %6276 = vrot.lane.b32.xlu0 %v13422_v63, %s10395_s26  ;;  %v13428_v11 = vpop.permute.xlu1 %2735  ;;  %v13470_v63 = vcombine.high %v13188_v62, %v20057_v40  ;;  %v3102_v9 = vrot.slane %v20084_v60, 7  ;;  %v3242_v60 = vrot.slane %v13143_v0, 7 }
 0x7d3   : > { %20068 = vst [vmem:[#allocation190_spill] sm:$0xff] %v13487_v34  ;;  %20071 = vst [vmem:[#allocation315_spill] sm:$0xff] %v13506_v54 }
 0x7d4   : > { %v13434_v59 = vpop.permute.xlu0 %2737  ;;  %20066 = vst [vmem:[#allocation316_spill] sm:$0xff] %v13470_v63  ;;  %20076 = vst [vmem:[#allocation377_spill] sm:$0xff] %v13525_v45 }
 0x7d5   : > { %6274 = vrot.lane.b32.xlu1 %v13432_v22, %s10395_s26  ;;  %v3235_v22 = vrot.slane %v13097_v33, 7 }
 0x7d6   : > { %6288 = vrot.lane.b32.xlu0 %v13438_v25, %s10395_s26  ;;  %v13444_v41 = vpop.permute.xlu1 %2739 }
 0x7d7   : > { %v3236_v33 = vsel %vm2805_vm2, %v3235_v22, %v13089_v48  ;;  %v13519_v48 = vcombine.high %v12893_v26, %v20057_v40 }
 0x7d8   : > { %v13450_v7 = vpop.permute.xlu0 %2741 }
 0x7d9   : > { %6286 = vrot.lane.b32.xlu1 %v13448_v46, %s10395_s26  ;;  %20074 = vst [vmem:[#allocation251_spill] sm:$0xff] %v13519_v48 }
 0x7da   : > { %6292 = vrot.lane.b32.xlu0 %v13454_v32, %s10395_s26  ;;  %v13460_v27 = vpop.permute.xlu1 %2743  ;;  %v13480_v32 = vcombine.high %v12883_v4, %v20057_v40  ;;  %v13498_v4 = vcombine.high %v13222_v37, %v20057_v40 }
 0x7dc   : > { %v13466_v25 = vpop.permute.xlu0 %2745  ;;  %20067 = vst [vmem:[#allocation252_spill] sm:$0xff] %v13480_v32  ;;  %20070 = vst [vmem:[#allocation378_spill] sm:$0xff] %v13498_v4 }
 0x7dd   : > { %6290 = vrot.lane.b32.xlu1 %v13464_v18, %s10395_s26  ;;  %v20069_v18 = vld [vmem:[#allocation382_spill] sm:$0xff] }
 0x7de   : > { %6304 = vrot.lane.b32.xlu0 %v13470_v63, %s10395_s26  ;;  %v13476_v46 = vpop.permute.xlu1 %2747  ;;  %v3207_v62 = vrot.slane %v20069_v18, 7  ;;  %v20072_v18 = vld [vmem:[#allocation381_spill] sm:$0xff] }
 0x7e0   : > { %v13483_v51 = vpop.permute.xlu0 %2749 }
 0x7e1   : > { %6302 = vrot.lane.b32.xlu1 %v13480_v32, %s10395_s26  ;;  %v3237_v32 = vsel %vm2807_vm5, %v3235_v22, %v3236_v33 }
 0x7e2   : > { %6308 = vrot.lane.b32.xlu0 %v13487_v34, %s10395_s26  ;;  %v13494_v63 = vpop.permute.xlu1 %2751  ;;  %v3208_v34 = vsel %vm2805_vm2, %v3207_v62, %v20072_v18  ;;  %v20077_v18 = vld [vmem:[#allocation66_spill] sm:$0xff]  ;;  %v3238_v33 = vsel %vm2809_vm6, %v3235_v22, %v3237_v32  ;;  %v13547_v32 = vcombine.high %v13353_v35, %v20057_v40 }
 0x7e4   : > { %v13502_v56 = vpop.permute.xlu0 %2753  ;;  %20082 = vst [vmem:[#allocation192_spill] sm:$0xff] %v13547_v32 }
 0x7e5   : > { %6306 = vrot.lane.b32.xlu1 %v13498_v4, %s10395_s26  ;;  %v3209_v4 = vsel %vm2807_vm5, %v3207_v62, %v3208_v34  ;;  %v3130_v34 = vrot.slane %v20080_v29, 7 }
 0x7e6   : > { %6320 = vrot.lane.b32.xlu0 %v13506_v54, %s10395_s26  ;;  %v13515_v37 = vpop.permute.xlu1 %2755  ;;  %v3074_v54 = vrot.slane %v20077_v18, 7  ;;  %v3210_v43 = vsel %vm2809_vm6, %v3207_v62, %v3209_v4  ;;  %v3239_v18 = vsel %vm2811_vm7, %v3235_v22, %v3238_v33  ;;  %v20085_v4 = vld [vmem:[#allocation322_spill] sm:$0xff]  ;;  %v13563_v22 = vcombine.high %v13345_v50, %v20057_v40 }
 0x7e7   : > { %20073 = vst [vmem:[#allocation125_spill] sm:$0xff] %v13515_v37  ;;  %v3186_v29 = vrot.slane %v20085_v4, 7  ;;  %v3211_v16 = vsel %vm2811_vm7, %v3207_v62, %v3210_v43  ;;  %v3047_v33 = vsel %vm2805_vm2, %v3046_v14, %v10870_v61  ;;  %v13574_v4 = vcombine.high %v13376_v2, %v20057_v40  ;;  %v20092_v61 = vld [vmem:[#allocation129_spill] sm:$0xff] }
 0x7e8   : > { %v13521_v28 = vpop.permute.xlu0 %2757  ;;  %20087 = vst [vmem:[#allocation128_spill] sm:$0xff] %v13563_v22  ;;  %v5061_v62 = vcombine.low %v3211_v16, %v3239_v18  ;;  %v20094_v2 = vld [vmem:[#allocation321_spill] sm:$0xff] }
 0x7e9   : > { %20075 = vst [vmem:[#allocation189_spill] sm:$0xff] %v13521_v28  ;;  %6318 = vrot.lane.b32.xlu1 %v13519_v48, %s10395_s26  ;;  %20090 = vst [vmem:[#allocation379_spill] sm:$0xff] %v13574_v4  ;;  %v3187_v16 = vsel %vm2805_vm2, %v3186_v29, %v20094_v2 }
 0x7ea   : > { %6324 = vrot.lane.b32.xlu0 %v13525_v45, %s10395_s26  ;;  %v13534_v26 = vpop.permute.xlu1 %2759  ;;  %v20083_v45 = vld [vmem:[#allocation65_spill] sm:$0xff] }
 0x7eb   : > { %20078 = vst [vmem:[#allocation318_spill] sm:$0xff] %v13534_v26  ;;  %v3075_v23 = vsel %vm2805_vm2, %v3074_v54, %v20083_v45 }
 0x7ec   : > { %v13543_v48 = vpop.permute.xlu0 %2761  ;;  %v3076_v43 = vsel %vm2807_vm5, %v3074_v54, %v3075_v23  ;;  %v13592_v23 = vcombine.high %v13370_v24, %v20057_v40  ;;  %v20100_v24 = vld [vmem:[#allocation383_spill] sm:$0xff] }
 0x7ed   : > { %20081 = vst [vmem:[#allocation380_spill] sm:$0xff] %v13543_v48  ;;  %6322 = vrot.lane.b32.xlu1 %v13538_v39, %s10395_s26  ;;  %v20088_v39 = vld [vmem:[#allocation193_spill] sm:$0xff] }
 0x7ee   : > { %6336 = vrot.lane.b32.xlu0 %v13547_v32, %s10395_s26  ;;  %v13559_v38 = vpop.permute.xlu1 %2763  ;;  %v3131_v45 = vsel %vm2805_vm2, %v3130_v34, %v20088_v39  ;;  %v20091_v32 = vld [vmem:[#allocation258_spill] sm:$0xff]  ;;  %v20093_v39 = vld [vmem:[#allocation384_spill] sm:$0xff]  ;;  %20096 = vst [vmem:[#allocation191_spill] sm:$0xff] %v13592_v23 }
 0x7ef   : > { %20086 = vst [vmem:[#allocation317_spill] sm:$0xff] %v13559_v38  ;;  %v3158_v50 = vrot.slane %v20091_v32, 7  ;;  %v3103_v38 = vsel %vm2805_vm2, %v3102_v9, %v20092_v61  ;;  %v3214_v26 = vrot.slane %v20093_v39, 7  ;;  %v3132_v0 = vsel %vm2807_vm5, %v3130_v34, %v3131_v45 }
 0x7f0   : > { %v13570_v35 = vpop.permute.xlu0 %2765  ;;  %v3048_v32 = vsel %vm2807_vm5, %v3046_v14, %v3047_v33  ;;  %v3077_v61 = vsel %vm2809_vm6, %v3074_v54, %v3076_v43  ;;  %v3243_v39 = vsel %vm2805_vm2, %v3242_v60, %v13130_v47  ;;  %v13601_v45 = vrot.slane %v5061_v62, %v19973_v19 }
 0x7f1   : > { %20089 = vst [vmem:[#allocation253_spill] sm:$0xff] %v13570_v35  ;;  %6334 = vrot.lane.b32.xlu1 %v13563_v22, %s10395_s26  ;;  %v3104_v2 = vsel %vm2807_vm5, %v3102_v9, %v3103_v38  ;;  %v3133_v33 = vsel %vm2809_vm6, %v3130_v34, %v3132_v0  ;;  %v3188_v43 = vsel %vm2807_vm5, %v3186_v29, %v3187_v16 }
 0x7f2   : > { %6340 = vrot.lane.b32.xlu0 %v13574_v4, %s10395_s26  ;;  %v13588_v18 = vpop.permute.xlu1 %2767  ;;  %20098 = vst [vmem:[#allocation127_spill] sm:$0xff] %v13601_v45  ;;  %v20099_v4 = vld [vmem:[#allocation257_spill] sm:$0xff]  ;;  %v3215_v47 = vsel %vm2805_vm2, %v3214_v26, %v20100_v24  ;;  %v3049_v62 = vsel %vm2809_vm6, %v3046_v14, %v3048_v32  ;;  %v3078_v38 = vsel %vm2811_vm7, %v3074_v54, %v3077_v61 }
 0x7f3   : > { %20095 = vst [vmem:[#allocation320_spill] sm:$0xff] %v13588_v18  ;;  %v3159_v18 = vsel %vm2805_vm2, %v3158_v50, %v20099_v4  ;;  %v3105_v0 = vsel %vm2809_vm6, %v3102_v9, %v3104_v2  ;;  %v13629_v35 = vcombine.high %v13391_v42, %v20057_v40  ;;  %v3134_v54 = vsel %vm2811_vm7, %v3130_v34, %v3133_v33  ;;  %v20105_v2 = vld [vmem:[#allocation68_spill] sm:$0xff] }
 0x7f4   : > { %v13598_v22 = vpop.permute.xlu0 %2769  ;;  %v3160_v16 = vsel %vm2807_vm5, %v3158_v50, %v3159_v18  ;;  %v3189_v32 = vsel %vm2809_vm6, %v3186_v29, %v3188_v43  ;;  %v3216_v61 = vsel %vm2807_vm5, %v3214_v26, %v3215_v47  ;;  %v3106_v34 = vsel %vm2811_vm7, %v3102_v9, %v3105_v0  ;;  %v20106_v33 = vld [vmem:[#allocation196_spill] sm:$0xff] }
 0x7f5   : > { %20097 = vst [vmem:[#allocation256_spill] sm:$0xff] %v13598_v22  ;;  %6338 = vrot.lane.b32.xlu1 %v13592_v23, %s10395_s26  ;;  %v3244_v22 = vsel %vm2807_vm5, %v3242_v60, %v3243_v39  ;;  %v13621_v23 = vcombine.high %v13386_v49, %v20057_v40  ;;  %20104 = vst [vmem:[#allocation381_spill] sm:$0xff] %v13629_v35  ;;  %v3050_v39 = vsel %vm2811_vm7, %v3046_v14, %v3049_v62 }
 0x7f6   : > { %6348 = vrot.lane.b32.xlu0 %v13601_v45, %s10395_s26  ;;  %v13617_v4 = vpop.permute.xlu1 %2771  ;;  %v3081_v49 = vrot.slane %v20105_v2, 7  ;;  %v3245_v18 = vsel %vm2809_vm6, %v3242_v60, %v3244_v22  ;;  %v5070_v42 = vcombine.low %v3050_v39, %v3078_v38  ;;  %v3137_v43 = vrot.slane %v20106_v33, 7  ;;  %v20112_v2 = vld [vmem:[#allocation132_spill] sm:$0xff] }
 0x7f7   : > { %20101 = vst [vmem:[#allocation319_spill] sm:$0xff] %v13617_v4  ;;  %20102 = vst [vmem:[#allocation255_spill] sm:$0xff] %v13621_v23  ;;  %v13642_v4 = vrot.slane %v10885_v20, 7  ;;  %v3161_v47 = vsel %vm2809_vm6, %v3158_v50, %v3160_v16  ;;  %v13651_v14 = vcombine.high %v13400_v12, %v20057_v40  ;;  %v3190_v22 = vsel %vm2811_vm7, %v3186_v29, %v3189_v32  ;;  %v20111_v16 = vld [vmem:[#allocation67_spill] sm:$0xff] }
 0x7f8   : > { %v13625_v24 = vpop.permute.xlu0 %2773  ;;  %v3217_v62 = vsel %vm2809_vm6, %v3214_v26, %v3216_v61  ;;  %v13659_v20 = vcombine.high %v13601_v45, %v20057_v40  ;;  %v5079_v9 = vcombine.low %v3106_v34, %v3134_v54  ;;  %v3246_v0 = vsel %vm2811_vm7, %v3242_v60, %v3245_v18  ;;  %v20113_v54 = vld [vmem:[#allocation324_spill] sm:$0xff]  ;;  %v20127_v45 = vld [vmem:[#allocation259_spill] sm:$0xff] }
 0x7f9   : > { %20103 = vst [vmem:[#allocation382_spill] sm:$0xff] %v13625_v24  ;;  %6350 = vrot.lane.b32.xlu1 %v13621_v23, %s10395_s26  ;;  %20108 = vst [vmem:[#allocation194_spill] sm:$0xff] %v13651_v14  ;;  %v3082_v39 = vsel %vm2805_vm2, %v3081_v49, %v20111_v16  ;;  %v3109_v33 = vrot.slane %v20112_v2, 7  ;;  %v3162_v29 = vsel %vm2811_vm7, %v3158_v50, %v3161_v47  ;;  %v3193_v61 = vrot.slane %v20113_v54, 7  ;;  %v20116_v2 = vld [vmem:[#allocation195_spill] sm:$0xff] }
 0x7fa   : > { %6352 = vrot.lane.b32.xlu0 %v13629_v35, %s10395_s26  ;;  %v13647_v23 = vpop.permute.xlu1 %2775  ;;  %20110 = vst [vmem:[#allocation130_spill] sm:$0xff] %v13659_v20  ;;  %v3054_v32 = vsel %vm2805_vm2, %v13642_v4, %v10880_v17  ;;  %v3218_v60 = vsel %vm2811_vm7, %v3214_v26, %v3217_v62  ;;  %v13678_v34 = vrot.slane %v5070_v42, %v19973_v19  ;;  %v3249_v47 = vrot.slane %v13185_v58, 7  ;;  %v20119_v26 = vld [vmem:[#allocation260_spill] sm:$0xff]  ;;  %v20120_v42 = vld [vmem:[#allocation131_spill] sm:$0xff] }
 0x7fb   : > { %20107 = vst [vmem:[#allocation66_spill] sm:$0xff] %v13647_v23  ;;  %v5088_v16 = vcombine.low %v3162_v29, %v3190_v22  ;;  %v3138_v50 = vsel %vm2805_vm2, %v3137_v43, %v20116_v2  ;;  %v13686_v35 = vrot.slane %v5079_v9, %v19973_v19  ;;  %v5097_v17 = vcombine.low %v3218_v60, %v3246_v0  ;;  %v20121_v29 = vld [vmem:[#allocation386_spill] sm:$0xff]  ;;  %v20122_v9 = vld [vmem:[#allocation323_spill] sm:$0xff] }
 0x7fc   : > { %v13655_v38 = vpop.permute.xlu0 %2777  ;;  %20115 = vst [vmem:[#allocation193_spill] sm:$0xff] %v13678_v34  ;;  %v3083_v54 = vsel %vm2807_vm5, %v3081_v49, %v3082_v39  ;;  %v3165_v62 = vrot.slane %v20119_v26, 7  ;;  %v3110_v22 = vsel %vm2805_vm2, %v3109_v33, %v20120_v42  ;;  %v3221_v2 = vrot.slane %v20121_v29, 7 }
 0x7fd   : > { %20109 = vst [vmem:[#allocation65_spill] sm:$0xff] %v13655_v38  ;;  %6354 = vrot.lane.b32.xlu1 %v13651_v14, %s10395_s26  ;;  %20118 = vst [vmem:[#allocation129_spill] sm:$0xff] %v13686_v35  ;;  %v3139_v58 = vsel %vm2807_vm5, %v3137_v43, %v3138_v50  ;;  %v3194_v0 = vsel %vm2805_vm2, %v3193_v61, %v20122_v9  ;;  %v13703_v39 = vrot.slane %v5088_v16, %v19973_v19 }
 0x7fe   : > { %6356 = vrot.lane.b32.xlu0 %v13659_v20, %s10395_s26  ;;  %v13675_v18 = vpop.permute.xlu1 %2779  ;;  %v3055_v26 = vsel %vm2807_vm5, %v13642_v4, %v3054_v32  ;;  %v3084_v42 = vsel %vm2809_vm6, %v3081_v49, %v3083_v54  ;;  %v3250_v29 = vsel %vm2805_vm2, %v3249_v47, %v13179_v57  ;;  %v13713_v50 = vrot.slane %v5097_v17, %v19973_v19  ;;  %v20128_v54 = vld [vmem:[#allocation385_spill] sm:$0xff] }
 0x7ff   : > { %20114 = vst [vmem:[#allocation322_spill] sm:$0xff] %v13675_v18  ;;  %20124 = vst [vmem:[#allocation321_spill] sm:$0xff] %v13703_v39  ;;  %v3111_v9 = vsel %vm2807_vm5, %v3109_v33, %v3110_v22  ;;  %v3166_v12 = vsel %vm2805_vm2, %v3165_v62, %v20127_v45  ;;  %v13721_v32 = vrot.slane %v10897_v52, 7  ;;  %v3140_v16 = vsel %vm2809_vm6, %v3137_v43, %v3139_v58 }
 0x800   : > { %v13683_v14 = vpop.permute.xlu0 %2781  ;;  %20126 = vst [vmem:[#allocation383_spill] sm:$0xff] %v13713_v50  ;;  %v3195_v57 = vsel %vm2807_vm5, %v3193_v61, %v3194_v0  ;;  %v3056_v17 = vsel %vm2809_vm6, %v13642_v4, %v3055_v26  ;;  %v3085_v45 = vsel %vm2811_vm7, %v3081_v49, %v3084_v42  ;;  %v3251_v22 = vsel %vm2807_vm5, %v3249_v47, %v3250_v29 }
 0x801   : > { %20117 = vst [vmem:[#allocation258_spill] sm:$0xff] %v13683_v14  ;;  %6358 = vrot.lane.b32.xlu1 %v13678_v34, %s10395_s26  ;;  %v13737_v52 = vcombine.high %v13678_v34, %v20057_v40  ;;  %v3112_v58 = vsel %vm2809_vm6, %v3109_v33, %v3111_v9  ;;  %v3167_v0 = vsel %vm2807_vm5, %v3165_v62, %v3166_v12  ;;  %v20133_v9 = vld [vmem:[#allocation70_spill] sm:$0xff] }
 0x802   : > { %6360 = vrot.lane.b32.xlu0 %v13686_v35, %s10395_s26  ;;  %v13700_v60 = vpop.permute.xlu1 %2783  ;;  %v13745_v23 = vcombine.high %v13686_v35, %v20057_v40  ;;  %v3141_v49 = vsel %vm2811_vm7, %v3137_v43, %v3140_v16  ;;  %v3196_v26 = vsel %vm2809_vm6, %v3193_v61, %v3195_v57  ;;  %v3057_v29 = vsel %vm2811_vm7, %v13642_v4, %v3056_v17  ;;  %v20134_v16 = vld [vmem:[#allocation198_spill] sm:$0xff] }
 0x803   : > { %20123 = vst [vmem:[#allocation384_spill] sm:$0xff] %v13700_v60  ;;  %v3222_v60 = vsel %vm2805_vm2, %v3221_v2, %v20128_v54  ;;  %20130 = vst [vmem:[#allocation196_spill] sm:$0xff] %v13737_v52  ;;  %v13755_v12 = vrot.slane %v20133_v9, 7  ;;  %v3252_v34 = vsel %vm2809_vm6, %v3249_v47, %v3251_v22  ;;  %v5106_v35 = vcombine.low %v3057_v29, %v3085_v45 }
 0x804   : > { %v13710_v20 = vpop.permute.xlu0 %2785  ;;  %20132 = vst [vmem:[#allocation132_spill] sm:$0xff] %v13745_v23  ;;  %v3223_v42 = vsel %vm2807_vm5, %v3221_v2, %v3222_v60  ;;  %v3257_v43 = vsel %vm2805_vm2, %v13721_v32, %v10895_v5  ;;  %v3113_v60 = vsel %vm2811_vm7, %v3109_v33, %v3112_v58  ;;  %v13765_v57 = vrot.slane %v20134_v16, 7  ;;  %v20139_v16 = vld [vmem:[#allocation69_spill] sm:$0xff] }
 0x805   : > { %20125 = vst [vmem:[#allocation257_spill] sm:$0xff] %v13710_v20  ;;  %6362 = vrot.lane.b32.xlu1 %v13703_v39, %s10395_s26  ;;  %v3168_v4 = vsel %vm2809_vm6, %v3165_v62, %v3167_v0  ;;  %v13772_v22 = vcombine.high %v13703_v39, %v20057_v40  ;;  %v3197_v9 = vsel %vm2811_vm7, %v3193_v61, %v3196_v26  ;;  %v20140_v26 = vld [vmem:[#allocation134_spill] sm:$0xff] }
 0x806   : > { %6364 = vrot.lane.b32.xlu0 %v13713_v50, %s10395_s26  ;;  %v13733_v18 = vpop.permute.xlu1 %2787  ;;  %v3224_v45 = vsel %vm2809_vm6, %v3221_v2, %v3223_v42  ;;  %v13780_v5 = vcombine.high %v13713_v50, %v20057_v40  ;;  %v5115_v33 = vcombine.low %v3113_v60, %v3141_v49  ;;  %v3253_v58 = vsel %vm2811_vm7, %v3249_v47, %v3252_v34  ;;  %v20141_v47 = vld [vmem:[#allocation326_spill] sm:$0xff] }
 0x807   : > { %20129 = vst [vmem:[#allocation68_spill] sm:$0xff] %v13733_v18  ;;  %20136 = vst [vmem:[#allocation195_spill] sm:$0xff] %v13772_v22  ;;  %v3258_v0 = vsel %vm2807_vm5, %v13721_v32, %v3257_v43  ;;  %v3285_v61 = vsel %vm2805_vm2, %v13755_v12, %v20139_v16  ;;  %v13791_v42 = vrot.slane %v20140_v26, 7  ;;  %v13797_v34 = vrot.slane %v10922_v30, 7  ;;  %v20160_v18 = vld [vmem:[#allocation261_spill] sm:$0xff] }
 0x808   : > { %v13741_v54 = vpop.permute.xlu0 %2789  ;;  %20138 = vst [vmem:[#allocation131_spill] sm:$0xff] %v13780_v5  ;;  %v13800_v49 = vrot.slane %v20141_v47, 7  ;;  %v3225_v43 = vsel %vm2811_vm7, %v3221_v2, %v3224_v45  ;;  %v13806_v16 = vrot.slane %v5106_v35, %v19973_v19  ;;  %v13817_v47 = vrot.slane %v5115_v33, %v19973_v19  ;;  %v20148_v45 = vld [vmem:[#allocation262_spill] sm:$0xff] }
 0x809   : > { %20131 = vst [vmem:[#allocation67_spill] sm:$0xff] %v13741_v54  ;;  %6366 = vrot.lane.b32.xlu1 %v13737_v52, %s10395_s26  ;;  %v3169_v52 = vsel %vm2811_vm7, %v3165_v62, %v3168_v4  ;;  %v20145_v4 = vld [vmem:[#allocation309_spill] sm:$0xff]  ;;  %v3286_v2 = vsel %vm2807_vm5, %v13755_v12, %v3285_v61  ;;  %v13822_v35 = vrot.slane %v20148_v45, 7 }
 0x80a   : > { %6368 = vrot.lane.b32.xlu0 %v13745_v23, %s10395_s26  ;;  %v13768_v17 = vpop.permute.xlu1 %2791  ;;  %20143 = vst [vmem:[#allocation323_spill] sm:$0xff] %v13806_v16  ;;  %v5124_v26 = vcombine.low %v3169_v52, %v3197_v9  ;;  %20147 = vst [vmem:[#allocation385_spill] sm:$0xff] %v13817_v47  ;;  %v5133_v23 = vcombine.low %v3225_v43, %v3253_v58  ;;  %v3259_v52 = vsel %vm2809_vm6, %v13721_v32, %v3258_v0  ;;  %v20151_v58 = vld [vmem:[#allocation10_spill] sm:$0xff]  ;;  %v20152_v43 = vld [vmem:[#allocation12_spill] sm:$0xff] }
 0x80b   : > { %20135 = vst [vmem:[#allocation324_spill] sm:$0xff] %v13768_v17  ;;  %v13837_v61 = vrot.slane %v20151_v58, 7  ;;  %v13840_v45 = vrot.slane %v20152_v43, 7  ;;  %v20153_v0 = vld [vmem:[#allocation325_spill] sm:$0xff]  ;;  %v3287_v43 = vsel %vm2809_vm6, %v13755_v12, %v3286_v2  ;;  %v20161_v2 = vld [vmem:[#allocation14_spill] sm:$0xff] }
 0x80c   : > { %v13776_v29 = vpop.permute.xlu0 %2793  ;;  %v3397_v50 = vsel %vm2805_vm2, %v13800_v49, %v20153_v0  ;;  %v13863_v0 = vrot.slane %v5133_v23, %v19973_v19  ;;  %v20166_v54 = vld [vmem:[#allocation9_spill] sm:$0xff] }
 0x80d   : > { %20137 = vst [vmem:[#allocation260_spill] sm:$0xff] %v13776_v29  ;;  %6370 = vrot.lane.b32.xlu1 %v13772_v22, %s10395_s26  ;;  %v20144_v22 = vld [vmem:[#allocation197_spill] sm:$0xff] }
 0x80e   : > { %6372 = vrot.lane.b32.xlu0 %v13780_v5, %s10395_s26  ;;  %v13803_v60 = vpop.permute.xlu1 %2795  ;;  %v3341_v62 = vsel %vm2805_vm2, %v13765_v57, %v20144_v22  ;;  %v13812_v5 = vrot.slane %v20145_v4, 7  ;;  %v20149_v22 = vld [vmem:[#allocation133_spill] sm:$0xff]  ;;  %v20150_v4 = vld [vmem:[#allocation388_spill] sm:$0xff]  ;;  %20159 = vst [vmem:[#allocation134_spill] sm:$0xff] %v13863_v0 }
 0x80f   : > { %20142 = vst [vmem:[#allocation386_spill] sm:$0xff] %v13803_v60  ;;  %v3313_v9 = vsel %vm2805_vm2, %v13791_v42, %v20149_v22  ;;  %v13832_v33 = vrot.slane %v20150_v4, 7  ;;  %v3342_v39 = vsel %vm2807_vm5, %v13765_v57, %v3341_v62  ;;  %v13850_v4 = vrot.slane %v5124_v26, %v19973_v19  ;;  %v20156_v60 = vld [vmem:[#allocation8_spill] sm:$0xff] }
 0x810   : > { %v13814_v30 = vpop.permute.xlu0 %2797  ;;  %v3264_v58 = vsel %vm2805_vm2, %v13797_v34, %v20156_v60  ;;  %v3260_v26 = vsel %vm2811_vm7, %v13721_v32, %v3259_v52  ;;  %v3369_v60 = vsel %vm2805_vm2, %v13822_v35, %v20160_v18  ;;  %v3343_v23 = vsel %vm2809_vm6, %v13765_v57, %v3342_v39  ;;  %v20163_v52 = vld [vmem:[#allocation387_spill] sm:$0xff] }
 0x811   : > { %20146 = vst [vmem:[#allocation259_spill] sm:$0xff] %v13814_v30  ;;  %6374 = vrot.lane.b32.xlu1 %v13806_v16, %s10395_s26  ;;  %20155 = vst [vmem:[#allocation198_spill] sm:$0xff] %v13850_v4  ;;  %v20157_v30 = vld [vmem:[#allocation63_spill] sm:$0xff]  ;;  %v3398_v32 = vsel %vm2807_vm5, %v13800_v49, %v3397_v50  ;;  %v3265_v18 = vsel %vm2807_vm5, %v13797_v34, %v3264_v58  ;;  %v13899_v50 = vcombine.high %v13806_v16, %v20057_v40 }
 0x812   : > { %6376 = vrot.lane.b32.xlu0 %v13817_v47, %s10395_s26  ;;  %v13847_v22 = vpop.permute.xlu1 %6262  ;;  %v3453_v62 = vsel %vm2805_vm2, %v13812_v5, %v20157_v30  ;;  %v13875_v30 = vrot.slane %v20161_v2, 7  ;;  %v3370_v58 = vsel %vm2807_vm5, %v13822_v35, %v3369_v60  ;;  %v20170_v60 = vld [vmem:[#allocation18_spill] sm:$0xff] }
 0x813   : > { %20154 = vst [vmem:[#allocation70_spill] sm:$0xff] %v13847_v22  ;;  %v3314_v22 = vsel %vm2807_vm5, %v13791_v42, %v3313_v9  ;;  %v3425_v9 = vsel %vm2805_vm2, %v13832_v33, %v20163_v52  ;;  %v3454_v2 = vsel %vm2807_vm5, %v13812_v5, %v3453_v62  ;;  %20165 = vst [vmem:[#allocation197_spill] sm:$0xff] %v13899_v50  ;;  %v20169_v62 = vld [vmem:[#allocation11_spill] sm:$0xff] }
 0x814   : > { %v13860_v17 = vpop.permute.xlu0 %6264  ;;  %v3271_v52 = vsel %vm2805_vm2, %v13837_v61, %v20166_v54  ;;  %v3315_v20 = vsel %vm2809_vm6, %v13791_v42, %v3314_v22  ;;  %v3278_v16 = vsel %vm2805_vm2, %v13840_v45, %v20169_v62  ;;  %v3399_v54 = vsel %vm2809_vm6, %v13800_v49, %v3398_v32 }
 0x815   : > { %20158 = vst [vmem:[#allocation69_spill] sm:$0xff] %v13860_v17  ;;  %6378 = vrot.lane.b32.xlu1 %v13850_v4, %s10395_s26  ;;  %v20162_v17 = vld [vmem:[#allocation16_spill] sm:$0xff]  ;;  %v3426_v22 = vsel %vm2807_vm5, %v13832_v33, %v3425_v9  ;;  %v3455_v62 = vsel %vm2809_vm6, %v13812_v5, %v3454_v2  ;;  %v3316_v9 = vsel %vm2811_vm7, %v13791_v42, %v3315_v20 }
 0x816   : > { %v13878_v29 = vrot.slane %v20162_v17, 7  ;;  %6380 = vrot.lane.b32.xlu0 %v13863_v0, %s10395_s26  ;;  %v3288_v17 = vsel %vm2811_vm7, %v13755_v12, %v3287_v43  ;;  %v13895_v39 = vpop.permute.xlu1 %6266  ;;  %v13912_v43 = vcombine.high %v13817_v47, %v20057_v40  ;;  %v20171_v47 = vld [vmem:[#allocation72_spill] sm:$0xff]  ;;  %v13949_v2 = vcombine.high %v13850_v4, %v20057_v40 }
 0x817   : > { %20164 = vst [vmem:[#allocation326_spill] sm:$0xff] %v13895_v39  ;;  %v3344_v39 = vsel %vm2811_vm7, %v13765_v57, %v3343_v23  ;;  %v13929_v14 = vrot.slane %v20171_v47, 7  ;;  %v5142_v57 = vcombine.low %v3260_v26, %v3288_v17  ;;  %v20172_v23 = vld [vmem:[#allocation13_spill] sm:$0xff]  ;;  %v3371_v47 = vsel %vm2809_vm6, %v13822_v35, %v3370_v58 }
 0x818   : > { %v13908_v12 = vpop.permute.xlu0 %6268  ;;  %20168 = vst [vmem:[#allocation262_spill] sm:$0xff] %v13912_v43  ;;  %v3481_v32 = vsel %vm2805_vm2, %v13875_v30, %v20172_v23  ;;  %20175 = vst [vmem:[#allocation388_spill] sm:$0xff] %v13949_v2  ;;  %v3400_v26 = vsel %vm2811_vm7, %v13800_v49, %v3399_v54  ;;  %v3427_v17 = vsel %vm2809_vm6, %v13832_v33, %v3426_v22  ;;  %v20178_v22 = vld [vmem:[#allocation71_spill] sm:$0xff] }
 0x819   : > { %20167 = vst [vmem:[#allocation309_spill] sm:$0xff] %v13908_v12  ;;  %6382 = vrot.lane.b32.xlu1 %v13899_v50, %s10395_s26  ;;  %v13926_v12 = vrot.slane %v20170_v60, 7  ;;  %v20173_v50 = vld [vmem:[#allocation200_spill] sm:$0xff]  ;;  %v13959_v20 = vcombine.high %v13863_v0, %v20057_v40  ;;  %v5151_v42 = vcombine.low %v3316_v9, %v3344_v39  ;;  %v3266_v58 = vsel %vm2809_vm6, %v13797_v34, %v3265_v18 }
 0x81a   : > { %6384 = vrot.lane.b32.xlu0 %v13912_v43, %s10395_s26  ;;  %v13941_v60 = vrot.slane %v20173_v50, 7  ;;  %v13945_v38 = vpop.permute.xlu1 %6278  ;;  %v3456_v50 = vsel %vm2811_vm7, %v13812_v5, %v3455_v62  ;;  %v3272_v49 = vsel %vm2807_vm5, %v13837_v61, %v3271_v52  ;;  %v3279_v54 = vsel %vm2807_vm5, %v13840_v45, %v3278_v16  ;;  %v20179_v39 = vld [vmem:[#allocation136_spill] sm:$0xff]  ;;  %v20183_v43 = vld [vmem:[#allocation199_spill] sm:$0xff] }
 0x81b   : > { %20174 = vst [vmem:[#allocation133_spill] sm:$0xff] %v13945_v38  ;;  %20177 = vst [vmem:[#allocation12_spill] sm:$0xff] %v13959_v20  ;;  %v3292_v4 = vsel %vm2805_vm2, %v13929_v14, %v20178_v22  ;;  %v13975_v9 = vrot.slane %v20179_v39, 7  ;;  %v3372_v5 = vsel %vm2811_vm7, %v13822_v35, %v3371_v47  ;;  %v3482_v18 = vsel %vm2807_vm5, %v13875_v30, %v3481_v32  ;;  %v20180_v52 = vld [vmem:[#allocation328_spill] sm:$0xff] }
 0x81c   : > { %v13955_v23 = vpop.permute.xlu0 %6280  ;;  %v13984_v62 = vrot.slane %v20180_v52, 7  ;;  %v3428_v16 = vsel %vm2811_vm7, %v13832_v33, %v3427_v17  ;;  %v13991_v22 = vrot.slane %v5142_v57, %v19973_v19  ;;  %v5160_v39 = vcombine.low %v3372_v5, %v3400_v26  ;;  %v20186_v17 = vld [vmem:[#allocation264_spill] sm:$0xff]  ;;  %v20187_v26 = vld [vmem:[#allocation135_spill] sm:$0xff] }
 0x81d   : > { %20176 = vst [vmem:[#allocation10_spill] sm:$0xff] %v13955_v23  ;;  %6386 = vrot.lane.b32.xlu1 %v13949_v2, %s10395_s26  ;;  %v3348_v35 = vsel %vm2805_vm2, %v13941_v60, %v20183_v43  ;;  %v13997_v47 = vrot.slane %v13271_v10, 7  ;;  %v14002_v52 = vrot.slane %v5151_v42, %v19973_v19  ;;  %v3293_v33 = vsel %vm2807_vm5, %v13929_v14, %v3292_v4 }
 0x81e   : > { %6388 = vrot.lane.b32.xlu0 %v13959_v20, %s10395_s26  ;;  %v13988_v2 = vpop.permute.xlu1 %6282  ;;  %20182 = vst [vmem:[#allocation8_spill] sm:$0xff] %v13991_v22  ;;  %v5169_v20 = vcombine.low %v3428_v16, %v3456_v50  ;;  %v14007_v57 = vrot.slane %v20186_v17, 7  ;;  %v14013_v43 = vsel %vm2811_vm7, %v13797_v34, %v3266_v58  ;;  %v3273_v10 = vsel %vm2809_vm6, %v13837_v61, %v3272_v49  ;;  %v20188_v50 = vld [vmem:[#allocation390_spill] sm:$0xff]  ;;  %v20189_v49 = vld [vmem:[#allocation327_spill] sm:$0xff] }
 0x81f   : > { %20181 = vst [vmem:[#allocation325_spill] sm:$0xff] %v13988_v2  ;;  %20185 = vst [vmem:[#allocation261_spill] sm:$0xff] %v14002_v52  ;;  %v3320_v42 = vsel %vm2805_vm2, %v13975_v9, %v20187_v26  ;;  %v14021_v5 = vrot.slane %v20188_v50, 7  ;;  %v3280_v4 = vsel %vm2809_vm6, %v13840_v45, %v3279_v54  ;;  %v3483_v34 = vsel %vm2809_vm6, %v13875_v30, %v3482_v18  ;;  %v20192_v50 = vld [vmem:[#allocation15_spill] sm:$0xff] }
 0x820   : > { %v13999_v32 = vpop.permute.xlu0 %6284  ;;  %v3349_v58 = vsel %vm2807_vm5, %v13941_v60, %v3348_v35  ;;  %v3404_v16 = vsel %vm2805_vm2, %v13984_v62, %v20189_v49  ;;  %v14037_v26 = vrot.slane %v5160_v39, %v19973_v19  ;;  %v3488_v0 = vsel %vm2805_vm2, %v13878_v29, %v20192_v50  ;;  %v20195_v50 = vld [vmem:[#allocation263_spill] sm:$0xff] }
 0x821   : > { %20184 = vst [vmem:[#allocation63_spill] sm:$0xff] %v13999_v32  ;;  %6390 = vrot.lane.b32.xlu1 %v13991_v22, %s10395_s26  ;;  %v3294_v54 = vsel %vm2809_vm6, %v13929_v14, %v3293_v33  ;;  %v3460_v18 = vsel %vm2805_vm2, %v13997_v47, %v13264_v15  ;;  %v14050_v49 = vrot.slane %v5169_v20, %v19973_v19  ;;  %v20236_v32 = vld [vmem:[#allocation25_spill] sm:$0xff] }
 0x822   : > { %6392 = vrot.lane.b32.xlu0 %v14002_v52, %s10395_s26  ;;  %v14034_v17 = vpop.permute.xlu1 %6294  ;;  %20191 = vst [vmem:[#allocation16_spill] sm:$0xff] %v14037_v26  ;;  %v14054_v39 = vsel %vm2811_vm7, %v13837_v61, %v3273_v10  ;;  %v3376_v33 = vsel %vm2805_vm2, %v14007_v57, %v20195_v50  ;;  %v14065_v15 = vsel %vm2811_vm7, %v13840_v45, %v3280_v4 }
 0x823   : > { %20190 = vst [vmem:[#allocation14_spill] sm:$0xff] %v14034_v17  ;;  %20194 = vst [vmem:[#allocation9_spill] sm:$0xff] %v14050_v49  ;;  %v3321_v17 = vsel %vm2807_vm5, %v13975_v9, %v3320_v42  ;;  %v14069_v20 = vsel %vm2811_vm7, %v13875_v30, %v3483_v34  ;;  %v3350_v61 = vsel %vm2809_vm6, %v13941_v60, %v3349_v58  ;;  %v20196_v42 = vld [vmem:[#allocation389_spill] sm:$0xff] }
 0x824   : > { %v14047_v35 = vpop.permute.xlu0 %6296  ;;  %v3405_v10 = vsel %vm2807_vm5, %v13984_v62, %v3404_v16  ;;  %v3432_v50 = vsel %vm2805_vm2, %v14021_v5, %v20196_v42  ;;  %v3489_v45 = vsel %vm2807_vm5, %v13878_v29, %v3488_v0  ;;  %v3295_v30 = vsel %vm2811_vm7, %v13929_v14, %v3294_v54  ;;  %v20199_v16 = vld [vmem:[#allocation17_spill] sm:$0xff] }
 0x825   : > { %20193 = vst [vmem:[#allocation387_spill] sm:$0xff] %v14047_v35  ;;  %6394 = vrot.lane.b32.xlu1 %v14037_v26, %s10395_s26  ;;  %v3461_v4 = vsel %vm2807_vm5, %v13997_v47, %v3460_v18  ;;  %v14090_v58 = vcombine.high %v13991_v22, %v20057_v40  ;;  %v3495_v42 = vsel %vm2805_vm2, %v13926_v12, %v20199_v16  ;;  %v20202_v18 = vld [vmem:[#allocation20_spill] sm:$0xff] }
 0x826   : > { %6396 = vrot.lane.b32.xlu0 %v14050_v49, %s10395_s26  ;;  %v14086_v34 = vpop.permute.xlu1 %6298  ;;  %v3322_v35 = vsel %vm2809_vm6, %v13975_v9, %v3321_v17  ;;  %v3377_v0 = vsel %vm2807_vm5, %v14007_v57, %v3376_v33  ;;  %v14103_v54 = vcombine.high %v14002_v52, %v20057_v40  ;;  %v3351_v22 = vsel %vm2811_vm7, %v13941_v60, %v3350_v61  ;;  %v20203_v52 = vld [vmem:[#allocation74_spill] sm:$0xff] }
 0x827   : > { %20197 = vst [vmem:[#allocation11_spill] sm:$0xff] %v14086_v34  ;;  %20198 = vst [vmem:[#allocation18_spill] sm:$0xff] %v14090_v58  ;;  %v14106_v34 = vrot.slane %v20202_v18, 7  ;;  %v3406_v16 = vsel %vm2809_vm6, %v13984_v62, %v3405_v10  ;;  %v3433_v17 = vsel %vm2807_vm5, %v14021_v5, %v3432_v50  ;;  %v3490_v33 = vsel %vm2809_vm6, %v13878_v29, %v3489_v45  ;;  %v20204_v50 = vld [vmem:[#allocation202_spill] sm:$0xff] }
 0x828   : > { %v14099_v14 = vpop.permute.xlu0 %6300  ;;  %20201 = vst [vmem:[#allocation13_spill] sm:$0xff] %v14103_v54  ;;  %v3462_v18 = vsel %vm2809_vm6, %v13997_v47, %v3461_v4  ;;  %v5178_v60 = vcombine.low %v14013_v43, %v3295_v30  ;;  %v3496_v61 = vsel %vm2807_vm5, %v13926_v12, %v3495_v42  ;;  %v3323_v10 = vsel %vm2811_vm7, %v13975_v9, %v3322_v35 }
 0x829   : > { %20200 = vst [vmem:[#allocation72_spill] sm:$0xff] %v14099_v14  ;;  %6398 = vrot.lane.b32.xlu1 %v14090_v58, %s10395_s26  ;;  %v14119_v14 = vrot.slane %v20203_v52, 7  ;;  %v14131_v58 = vrot.slane %v20204_v50, 7  ;;  %v3378_v52 = vsel %vm2809_vm6, %v14007_v57, %v3377_v0  ;;  %v14139_v4 = vcombine.high %v14037_v26, %v20057_v40  ;;  %v20211_v26 = vld [vmem:[#allocation73_spill] sm:$0xff] }
 0x82a   : > { %6400 = vrot.lane.b32.xlu0 %v14103_v54, %s10395_s26  ;;  %v14135_v45 = vpop.permute.xlu1 %6310  ;;  %v3407_v43 = vsel %vm2811_vm7, %v13984_v62, %v3406_v16  ;;  %v3434_v30 = vsel %vm2809_vm6, %v14021_v5, %v3433_v17  ;;  %v14149_v9 = vcombine.high %v14050_v49, %v20057_v40  ;;  %v5187_v35 = vcombine.low %v3323_v10, %v3351_v22  ;;  %v20209_v62 = vld [vmem:[#allocation22_spill] sm:$0xff]  ;;  %v20210_v17 = vld [vmem:[#allocation24_spill] sm:$0xff] }
 0x82b   : > { %20205 = vst [vmem:[#allocation200_spill] sm:$0xff] %v14135_v45  ;;  %20206 = vst [vmem:[#allocation71_spill] sm:$0xff] %v14139_v4  ;;  %v3463_v0 = vsel %vm2811_vm7, %v13997_v47, %v3462_v18  ;;  %v14157_v50 = vsel %vm2811_vm7, %v13878_v29, %v3490_v33  ;;  %v14160_v16 = vrot.slane %v20209_v62, 7  ;;  %v14163_v54 = vrot.slane %v20210_v17, 7  ;;  %v20212_v10 = vld [vmem:[#allocation138_spill] sm:$0xff]  ;;  %v20213_v29 = vld [vmem:[#allocation19_spill] sm:$0xff] }
 0x82c   : > { %v14145_v42 = vpop.permute.xlu0 %6312  ;;  %20208 = vst [vmem:[#allocation328_spill] sm:$0xff] %v14149_v9  ;;  %v3299_v22 = vsel %vm2805_vm2, %v14119_v14, %v20211_v26  ;;  %v14169_v49 = vrot.slane %v20212_v10, 7  ;;  %v3379_v47 = vsel %vm2811_vm7, %v14007_v57, %v3378_v52  ;;  %v3502_v33 = vsel %vm2805_vm2, %v14106_v34, %v20213_v29  ;;  %v20214_v18 = vld [vmem:[#allocation330_spill] sm:$0xff]  ;;  %v20217_v57 = vld [vmem:[#allocation201_spill] sm:$0xff] }
 0x82d   : > { %20207 = vst [vmem:[#allocation136_spill] sm:$0xff] %v14145_v42  ;;  %6402 = vrot.lane.b32.xlu1 %v14139_v4, %s10395_s26  ;;  %v14179_v62 = vrot.slane %v20214_v18, 7  ;;  %v3435_v17 = vsel %vm2811_vm7, %v14021_v5, %v3434_v30  ;;  %v14186_v10 = vrot.slane %v5178_v60, %v19973_v19  ;;  %v5196_v4 = vcombine.low %v3379_v47, %v3407_v43  ;;  %v20220_v30 = vld [vmem:[#allocation266_spill] sm:$0xff] }
 0x82e   : > { %6404 = vrot.lane.b32.xlu0 %v14149_v9, %s10395_s26  ;;  %v14183_v26 = vpop.permute.xlu1 %6314  ;;  %v3355_v52 = vsel %vm2805_vm2, %v14131_v58, %v20217_v57  ;;  %v14192_v9 = vrot.slane %v13312_v1, 7  ;;  %v14197_v18 = vrot.slane %v5187_v35, %v19973_v19  ;;  %v5205_v45 = vcombine.low %v3435_v17, %v3463_v0  ;;  %v20221_v1 = vld [vmem:[#allocation26_spill] sm:$0xff]  ;;  %v20222_v57 = vld [vmem:[#allocation137_spill] sm:$0xff]  ;;  %v20223_v0 = vld [vmem:[#allocation392_spill] sm:$0xff] }
 0x82f   : > { %20215 = vst [vmem:[#allocation199_spill] sm:$0xff] %v14183_v26  ;;  %20216 = vst [vmem:[#allocation264_spill] sm:$0xff] %v14186_v10  ;;  %v3300_v5 = vsel %vm2807_vm5, %v14119_v14, %v3299_v22  ;;  %v14202_v60 = vrot.slane %v20220_v30, 7  ;;  %v3497_v43 = vsel %vm2809_vm6, %v13926_v12, %v3496_v61  ;;  %v14209_v47 = vrot.slane %v20221_v1, 7  ;;  %v20224_v30 = vld [vmem:[#allocation21_spill] sm:$0xff] }
 0x830   : > { %v14194_v29 = vpop.permute.xlu0 %6316  ;;  %20219 = vst [vmem:[#allocation390_spill] sm:$0xff] %v14197_v18  ;;  %v3327_v35 = vsel %vm2805_vm2, %v14169_v49, %v20222_v57  ;;  %v14215_v17 = vrot.slane %v20223_v0, 7  ;;  %v3503_v22 = vsel %vm2807_vm5, %v14106_v34, %v3502_v33  ;;  %v3705_v61 = vsel %vm2805_vm2, %v14160_v16, %v20224_v30  ;;  %v20225_v26 = vld [vmem:[#allocation329_spill] sm:$0xff] }
 0x831   : > { %20218 = vst [vmem:[#allocation135_spill] sm:$0xff] %v14194_v29  ;;  %6406 = vrot.lane.b32.xlu1 %v14186_v10, %s10395_s26  ;;  %v3356_v1 = vsel %vm2807_vm5, %v14131_v58, %v3355_v52  ;;  %v3411_v57 = vsel %vm2805_vm2, %v14179_v62, %v20225_v26  ;;  %v14232_v0 = vrot.slane %v5196_v4, %v19973_v19  ;;  %v20228_v29 = vld [vmem:[#allocation23_spill] sm:$0xff]  ;;  %v20229_v30 = vld [vmem:[#allocation245_spill] sm:$0xff] }
 0x832   : > { %6408 = vrot.lane.b32.xlu0 %v14197_v18, %s10395_s26  ;;  %v3712_v33 = vsel %vm2805_vm2, %v14163_v54, %v20228_v29  ;;  %v3301_v2 = vsel %vm2809_vm6, %v14119_v14, %v3300_v5  ;;  %v3467_v52 = vsel %vm2805_vm2, %v14192_v9, %v20229_v30  ;;  %v14245_v26 = vrot.slane %v5205_v45, %v19973_v19  ;;  %v20232_v29 = vld [vmem:[#allocation265_spill] sm:$0xff] }
 0x833   : > { %v14229_v42 = vpop.permute.xlu1 %6326  ;;  %20227 = vst [vmem:[#allocation15_spill] sm:$0xff] %v14232_v0  ;;  %v14249_v4 = vsel %vm2811_vm7, %v13926_v12, %v3497_v43  ;;  %v3383_v5 = vsel %vm2805_vm2, %v14202_v60, %v20232_v29  ;;  %v3504_v30 = vsel %vm2809_vm6, %v14106_v34, %v3503_v22  ;;  %v3706_v45 = vsel %vm2807_vm5, %v14160_v16, %v3705_v61 }
 0x834   : > { %20226 = vst [vmem:[#allocation327_spill] sm:$0xff] %v14229_v42  ;;  %v14242_v38 = vpop.permute.xlu0 %6328  ;;  %20231 = vst [vmem:[#allocation389_spill] sm:$0xff] %v14245_v26  ;;  %v3328_v42 = vsel %vm2807_vm5, %v14169_v49, %v3327_v35  ;;  %v3357_v12 = vsel %vm2809_vm6, %v14131_v58, %v3356_v1  ;;  %v3412_v43 = vsel %vm2807_vm5, %v14179_v62, %v3411_v57  ;;  %v20233_v35 = vld [vmem:[#allocation391_spill] sm:$0xff] }
 0x835   : > { %20230 = vst [vmem:[#allocation263_spill] sm:$0xff] %v14242_v38  ;;  %6410 = vrot.lane.b32.xlu1 %v14232_v0, %s10395_s26  ;;  %v3439_v38 = vsel %vm2805_vm2, %v14215_v17, %v20233_v35  ;;  %v3713_v29 = vsel %vm2807_vm5, %v14163_v54, %v3712_v33  ;;  %v3302_v22 = vsel %vm2811_vm7, %v14119_v14, %v3301_v2 }
 0x836   : > { %6412 = vrot.lane.b32.xlu0 %v14245_v26, %s10395_s26  ;;  %v3468_v61 = vsel %vm2807_vm5, %v14192_v9, %v3467_v52  ;;  %v14281_v57 = vcombine.high %v14186_v10, %v20057_v40  ;;  %v3719_v35 = vsel %vm2805_vm2, %v14209_v47, %v20236_v32  ;;  %v3329_v23 = vsel %vm2809_vm6, %v14169_v49, %v3328_v42 }
 0x837   : > { %v14277_v1 = vpop.permute.xlu1 %6330  ;;  %v3384_v33 = vsel %vm2807_vm5, %v14202_v60, %v3383_v5  ;;  %v14294_v14 = vcombine.high %v14197_v18, %v20057_v40  ;;  %v14298_v52 = vsel %vm2811_vm7, %v14106_v34, %v3504_v30  ;;  %v3358_v10 = vsel %vm2811_vm7, %v14131_v58, %v3357_v12  ;;  %v20239_v18 = vld [vmem:[#allocation76_spill] sm:$0xff] }
 0x838   : > { %20234 = vst [vmem:[#allocation17_spill] sm:$0xff] %v14277_v1  ;;  %20235 = vst [vmem:[#allocation20_spill] sm:$0xff] %v14281_v57  ;;  %v14290_v2 = vpop.permute.xlu0 %6332  ;;  %v3413_v32 = vsel %vm2809_vm6, %v14179_v62, %v3412_v43  ;;  %v3440_v42 = vsel %vm2807_vm5, %v14215_v17, %v3439_v38  ;;  %v3707_v5 = vsel %vm2809_vm6, %v14160_v16, %v3706_v45  ;;  %v14311_v1 = vrot.slane %v20239_v18, 7  ;;  %v20240_v12 = vld [vmem:[#allocation204_spill] sm:$0xff] }
 0x839   : > { %20237 = vst [vmem:[#allocation74_spill] sm:$0xff] %v14290_v2  ;;  %20238 = vst [vmem:[#allocation202_spill] sm:$0xff] %v14294_v14  ;;  %6414 = vrot.lane.b32.xlu1 %v14281_v57, %s10395_s26  ;;  %v3469_v34 = vsel %vm2809_vm6, %v14192_v9, %v3468_v61  ;;  %v5214_v58 = vcombine.low %v14054_v39, %v3302_v22  ;;  %v3720_v38 = vsel %vm2807_vm5, %v14209_v47, %v3719_v35 }
 0x83a   : > { %6416 = vrot.lane.b32.xlu0 %v14294_v14, %s10395_s26  ;;  %v3330_v30 = vsel %vm2811_vm7, %v14169_v49, %v3329_v23  ;;  %v14323_v43 = vrot.slane %v20240_v12, 7  ;;  %v3385_v18 = vsel %vm2809_vm6, %v14202_v60, %v3384_v33  ;;  %v14331_v61 = vcombine.high %v14232_v0, %v20057_v40  ;;  %v20251_v14 = vld [vmem:[#allocation203_spill] sm:$0xff]  ;;  %v20262_v0 = vld [vmem:[#allocation34_spill] sm:$0xff] }
 0x83b   : > { %v14327_v45 = vpop.permute.xlu1 %6342  ;;  %v3414_v39 = vsel %vm2811_vm7, %v14179_v62, %v3413_v32  ;;  %v3441_v22 = vsel %vm2809_vm6, %v14215_v17, %v3440_v42  ;;  %v14341_v23 = vcombine.high %v14245_v26, %v20057_v40  ;;  %v5223_v49 = vcombine.low %v3330_v30, %v3358_v10  ;;  %v20245_v42 = vld [vmem:[#allocation75_spill] sm:$0xff]  ;;  %v20246_v30 = vld [vmem:[#allocation140_spill] sm:$0xff] }
 0x83c   : > { %20241 = vst [vmem:[#allocation22_spill] sm:$0xff] %v14327_v45  ;;  %20242 = vst [vmem:[#allocation24_spill] sm:$0xff] %v14331_v61  ;;  %v14337_v35 = vpop.permute.xlu0 %6344  ;;  %v3470_v33 = vsel %vm2811_vm7, %v14192_v9, %v3469_v34  ;;  %v14349_v12 = vsel %vm2811_vm7, %v14160_v16, %v3707_v5  ;;  %v3714_v62 = vsel %vm2809_vm6, %v14163_v54, %v3713_v29  ;;  %v14359_v57 = vrot.slane %v20246_v30, 7  ;;  %v20247_v16 = vld [vmem:[#allocation28_spill] sm:$0xff] }
 0x83d   : > { %20243 = vst [vmem:[#allocation73_spill] sm:$0xff] %v14337_v35  ;;  %20244 = vst [vmem:[#allocation138_spill] sm:$0xff] %v14341_v23  ;;  %6418 = vrot.lane.b32.xlu1 %v14331_v61, %s10395_s26  ;;  %v3721_v32 = vsel %vm2809_vm6, %v14209_v47, %v3720_v38  ;;  %v3306_v10 = vsel %vm2805_vm2, %v14311_v1, %v20245_v42  ;;  %v3386_v9 = vsel %vm2811_vm7, %v14202_v60, %v3385_v18  ;;  %v20248_v29 = vld [vmem:[#allocation332_spill] sm:$0xff] }
 0x83e   : > { %6420 = vrot.lane.b32.xlu0 %v14341_v23, %s10395_s26  ;;  %v14366_v5 = vrot.slane %v20247_v16, 7  ;;  %v14369_v34 = vrot.slane %v20248_v29, 7  ;;  %v3442_v38 = vsel %vm2811_vm7, %v14215_v17, %v3441_v22  ;;  %v14376_v42 = vrot.slane %v5214_v58, %v19973_v19  ;;  %v20254_v22 = vld [vmem:[#allocation268_spill] sm:$0xff] }
 0x83f   : > { %v14373_v61 = vpop.permute.xlu1 %6346  ;;  %v5232_v30 = vcombine.low %v3386_v9, %v3414_v39  ;;  %v3362_v60 = vsel %vm2805_vm2, %v14323_v43, %v20251_v14  ;;  %v14382_v18 = vrot.slane %v13350_v8, 7  ;;  %v14387_v29 = vrot.slane %v5223_v49, %v19973_v19  ;;  %v20255_v39 = vld [vmem:[#allocation139_spill] sm:$0xff]  ;;  %v20257_v9 = vld [vmem:[#allocation30_spill] sm:$0xff] }
 0x840   : > { %20249 = vst [vmem:[#allocation19_spill] sm:$0xff] %v14373_v61  ;;  %20250 = vst [vmem:[#allocation330_spill] sm:$0xff] %v14376_v42  ;;  %v14384_v16 = vpop.permute.xlu0 %6272  ;;  %v5241_v23 = vcombine.low %v3442_v38, %v3470_v33  ;;  %v3307_v17 = vsel %vm2807_vm5, %v14311_v1, %v3306_v10  ;;  %v14392_v58 = vrot.slane %v20254_v22, 7  ;;  %v14398_v14 = vsel %vm2811_vm7, %v14163_v54, %v3714_v62  ;;  %v20256_v33 = vld [vmem:[#allocation394_spill] sm:$0xff]  ;;  %v20258_v22 = vld [vmem:[#allocation32_spill] sm:$0xff] }
 0x841   : > { %20252 = vst [vmem:[#allocation201_spill] sm:$0xff] %v14384_v16  ;;  %20253 = vst [vmem:[#allocation266_spill] sm:$0xff] %v14387_v29  ;;  %6422 = vrot.lane.b32.xlu1 %v14376_v42, %s10395_s26  ;;  %v14402_v8 = vsel %vm2811_vm7, %v14209_v47, %v3721_v32  ;;  %v3334_v49 = vsel %vm2805_vm2, %v14359_v57, %v20255_v39  ;;  %v14408_v10 = vrot.slane %v20256_v33, 7  ;;  %v14413_v38 = vrot.slane %v20257_v9, 7  ;;  %v20259_v62 = vld [vmem:[#allocation331_spill] sm:$0xff] }
 0x842   : > { %6424 = vrot.lane.b32.xlu0 %v14387_v29, %s10395_s26  ;;  %v14416_v54 = vrot.slane %v20258_v22, 7  ;;  %v3363_v47 = vsel %vm2807_vm5, %v14323_v43, %v3362_v60  ;;  %v3418_v32 = vsel %vm2805_vm2, %v14369_v34, %v20259_v62  ;;  %v14426_v33 = vrot.slane %v5232_v30, %v19973_v19  ;;  %v20265_v62 = vld [vmem:[#allocation27_spill] sm:$0xff] }
 0x843   : > { %v14423_v39 = vpop.permute.xlu1 %6270  ;;  %v14429_v26 = vrot.slane %v20262_v0, 7  ;;  %v3308_v9 = vsel %vm2809_vm6, %v14311_v1, %v3307_v17  ;;  %v3474_v22 = vsel %vm2805_vm2, %v14382_v18, %v13339_v55  ;;  %v14439_v61 = vrot.slane %v5241_v23, %v19973_v19  ;;  %v20266_v16 = vld [vmem:[#allocation267_spill] sm:$0xff]  ;;  %v20267_v55 = vld [vmem:[#allocation36_spill] sm:$0xff] }
 0x844   : > { %20260 = vst [vmem:[#allocation26_spill] sm:$0xff] %v14423_v39  ;;  %20261 = vst [vmem:[#allocation137_spill] sm:$0xff] %v14426_v33  ;;  %v14436_v60 = vpop.permute.xlu0 %6276  ;;  %v3726_v30 = vsel %vm2805_vm2, %v14366_v5, %v20265_v62  ;;  %v3335_v0 = vsel %vm2807_vm5, %v14359_v57, %v3334_v49  ;;  %v3390_v17 = vsel %vm2805_vm2, %v14392_v58, %v20266_v16  ;;  %v14452_v45 = vrot.slane %v20267_v55, 7  ;;  %v20269_v49 = vld [vmem:[#allocation393_spill] sm:$0xff]  ;;  %v20270_v16 = vld [vmem:[#allocation40_spill] sm:$0xff] }
 0x845   : > { %20263 = vst [vmem:[#allocation392_spill] sm:$0xff] %v14436_v60  ;;  %20264 = vst [vmem:[#allocation21_spill] sm:$0xff] %v14439_v61  ;;  %6426 = vrot.lane.b32.xlu1 %v14426_v33, %s10395_s26  ;;  %v20268_v60 = vld [vmem:[#allocation38_spill] sm:$0xff]  ;;  %v3364_v39 = vsel %vm2809_vm6, %v14323_v43, %v3363_v47  ;;  %v3419_v62 = vsel %vm2807_vm5, %v14369_v34, %v3418_v32  ;;  %v3446_v35 = vsel %vm2805_vm2, %v14408_v10, %v20269_v49 }
 0x846   : > { %v14455_v23 = vrot.slane %v20268_v60, 7  ;;  %6428 = vrot.lane.b32.xlu0 %v14439_v61, %s10395_s26  ;;  %v14467_v2 = vrot.slane %v20270_v16, 7  ;;  %v3309_v60 = vsel %vm2811_vm7, %v14311_v1, %v3308_v9  ;;  %v3475_v55 = vsel %vm2807_vm5, %v14382_v18, %v3474_v22  ;;  %v20275_v9 = vld [vmem:[#allocation29_spill] sm:$0xff] }
 0x847   : > { %v14473_v47 = vpop.permute.xlu1 %6274  ;;  %v14477_v32 = vcombine.high %v14376_v42, %v20057_v40  ;;  %v3727_v49 = vsel %vm2807_vm5, %v14366_v5, %v3726_v30  ;;  %v3336_v24 = vsel %vm2809_vm6, %v14359_v57, %v3335_v0  ;;  %v3391_v16 = vsel %vm2807_vm5, %v14392_v58, %v3390_v17  ;;  %v20276_v17 = vld [vmem:[#allocation31_spill] sm:$0xff] }
 0x848   : > { %20271 = vst [vmem:[#allocation329_spill] sm:$0xff] %v14473_v47  ;;  %v14485_v48 = vpop.permute.xlu0 %6288  ;;  %v14489_v1 = vcombine.high %v14387_v29, %v20057_v40  ;;  %v3929_v22 = vsel %vm2805_vm2, %v14413_v38, %v20275_v9  ;;  %v3365_v42 = vsel %vm2811_vm7, %v14323_v43, %v3364_v39  ;;  %v3420_v30 = vsel %vm2809_vm6, %v14369_v34, %v3419_v62  ;;  %v20278_v39 = vld [vmem:[#allocation33_spill] sm:$0xff] }
 0x849   : > { %20272 = vst [vmem:[#allocation23_spill] sm:$0xff] %v14477_v32  ;;  %20273 = vst [vmem:[#allocation245_spill] sm:$0xff] %v14485_v48  ;;  %v3447_v0 = vsel %vm2807_vm5, %v14408_v10, %v3446_v35  ;;  %6430 = vrot.lane.b32.xlu1 %v14477_v32, %s10395_s26  ;;  %v3936_v29 = vsel %vm2805_vm2, %v14416_v54, %v20276_v17  ;;  %v20277_v48 = vld [vmem:[#allocation78_spill] sm:$0xff]  ;;  %v3476_v9 = vsel %vm2809_vm6, %v14382_v18, %v3475_v55 }
 0x84a   : > { %20274 = vst [vmem:[#allocation265_spill] sm:$0xff] %v14489_v1  ;;  %v14506_v47 = vrot.slane %v20277_v48, 7  ;;  %6432 = vrot.lane.b32.xlu0 %v14489_v1, %s10395_s26  ;;  %v5250_v43 = vcombine.low %v14065_v15, %v3309_v60  ;;  %v3943_v35 = vsel %vm2805_vm2, %v14429_v26, %v20278_v39  ;;  %v3337_v62 = vsel %vm2811_vm7, %v14359_v57, %v3336_v24  ;;  %v20279_v32 = vld [vmem:[#allocation206_spill] sm:$0xff]  ;;  %v20289_v1 = vld [vmem:[#allocation205_spill] sm:$0xff] }
 0x84b   : > { %v14519_v17 = vrot.slane %v20279_v32, 7  ;;  %v3392_v48 = vsel %vm2809_vm6, %v14392_v58, %v3391_v16  ;;  %v14523_v37 = vpop.permute.xlu1 %6286  ;;  %v14527_v55 = vcombine.high %v14426_v33, %v20057_v40  ;;  %v3421_v15 = vsel %vm2811_vm7, %v14369_v34, %v3420_v30 }
 0x84c   : > { %20280 = vst [vmem:[#allocation391_spill] sm:$0xff] %v14523_v37  ;;  %v3448_v60 = vsel %vm2809_vm6, %v14408_v10, %v3447_v0  ;;  %v14533_v39 = vpop.permute.xlu0 %6292  ;;  %v14537_v24 = vcombine.high %v14439_v61, %v20057_v40  ;;  %v5259_v57 = vcombine.low %v3337_v62, %v3365_v42  ;;  %v3477_v32 = vsel %vm2811_vm7, %v14382_v18, %v3476_v9  ;;  %v20284_v0 = vld [vmem:[#allocation77_spill] sm:$0xff]  ;;  %v20285_v42 = vld [vmem:[#allocation142_spill] sm:$0xff] }
 0x84d   : > { %20281 = vst [vmem:[#allocation25_spill] sm:$0xff] %v14527_v55  ;;  %20282 = vst [vmem:[#allocation76_spill] sm:$0xff] %v14533_v39  ;;  %6434 = vrot.lane.b32.xlu1 %v14527_v55, %s10395_s26  ;;  %v3728_v16 = vsel %vm2809_vm6, %v14366_v5, %v3727_v49  ;;  %v3930_v34 = vsel %vm2807_vm5, %v14413_v38, %v3929_v22  ;;  %v3937_v30 = vsel %vm2807_vm5, %v14416_v54, %v3936_v29  ;;  %v20286_v22 = vld [vmem:[#allocation334_spill] sm:$0xff]  ;;  %v20373_v39 = vld [vmem:[#allocation399_spill] sm:$0xff] }
 0x84e   : > { %20283 = vst [vmem:[#allocation204_spill] sm:$0xff] %v14537_v24  ;;  %v3509_v33 = vsel %vm2805_vm2, %v14506_v47, %v20284_v0  ;;  %v14553_v62 = vrot.slane %v20285_v42, 7  ;;  %v3393_v18 = vsel %vm2811_vm7, %v14392_v58, %v3392_v48  ;;  %6436 = vrot.lane.b32.xlu0 %v14537_v24, %s10395_s26  ;;  %v3944_v49 = vsel %vm2807_vm5, %v14429_v26, %v3943_v35 }
 0x84f   : > { %v14562_v9 = vrot.slane %v20286_v22, 7  ;;  %v3449_v29 = vsel %vm2811_vm7, %v14408_v10, %v3448_v60  ;;  %v14566_v55 = vpop.permute.xlu1 %6290  ;;  %v14569_v0 = vrot.slane %v5250_v43, %v19973_v19  ;;  %v5268_v42 = vcombine.low %v3393_v18, %v3421_v15  ;;  %v20292_v60 = vld [vmem:[#allocation270_spill] sm:$0xff]  ;;  %v20293_v15 = vld [vmem:[#allocation141_spill] sm:$0xff] }
 0x850   : > { %20287 = vst [vmem:[#allocation75_spill] sm:$0xff] %v14566_v55  ;;  %v3565_v58 = vsel %vm2805_vm2, %v14519_v17, %v20289_v1  ;;  %v14575_v48 = vrot.slane %v13373_v44, 7  ;;  %v14577_v35 = vpop.permute.xlu0 %6304  ;;  %v14580_v22 = vrot.slane %v5259_v57, %v19973_v19  ;;  %v5277_v24 = vcombine.low %v3449_v29, %v3477_v32  ;;  %v20294_v32 = vld [vmem:[#allocation396_spill] sm:$0xff] }
 0x851   : > { %20288 = vst [vmem:[#allocation140_spill] sm:$0xff] %v14569_v0  ;;  %20290 = vst [vmem:[#allocation28_spill] sm:$0xff] %v14577_v35  ;;  %v3510_v10 = vsel %vm2807_vm5, %v14506_v47, %v3509_v33  ;;  %v14585_v43 = vrot.slane %v20292_v60, 7  ;;  %6438 = vrot.lane.b32.xlu1 %v14569_v0, %s10395_s26  ;;  %v14591_v1 = vsel %vm2811_vm7, %v14366_v5, %v3728_v16  ;;  %v14599_v18 = vrot.slane %v20294_v32, 7  ;;  %v20298_v32 = vld [vmem:[#allocation35_spill] sm:$0xff] }
 0x852   : > { %20291 = vst [vmem:[#allocation332_spill] sm:$0xff] %v14580_v22  ;;  %v3931_v44 = vsel %vm2809_vm6, %v14413_v38, %v3930_v34  ;;  %v3537_v57 = vsel %vm2805_vm2, %v14553_v62, %v20293_v15  ;;  %6440 = vrot.lane.b32.xlu0 %v14580_v22, %s10395_s26  ;;  %v3938_v33 = vsel %vm2809_vm6, %v14416_v54, %v3937_v30  ;;  %v20295_v34 = vld [vmem:[#allocation333_spill] sm:$0xff] }
 0x853   : > { %v3945_v5 = vsel %vm2809_vm6, %v14429_v26, %v3944_v49  ;;  %v3566_v16 = vsel %vm2807_vm5, %v14519_v17, %v3565_v58  ;;  %v3621_v29 = vsel %vm2805_vm2, %v14562_v9, %v20295_v34  ;;  %v14612_v60 = vpop.permute.xlu1 %6302  ;;  %v14615_v15 = vrot.slane %v5268_v42, %v19973_v19 }
 0x854   : > { %20296 = vst [vmem:[#allocation203_spill] sm:$0xff] %v14612_v60  ;;  %v3950_v61 = vsel %vm2805_vm2, %v14452_v45, %v20298_v32  ;;  %v3511_v30 = vsel %vm2809_vm6, %v14506_v47, %v3510_v10  ;;  %v3677_v49 = vsel %vm2805_vm2, %v14575_v48, %v13367_v3  ;;  %v14625_v58 = vpop.permute.xlu0 %6308  ;;  %v14628_v34 = vrot.slane %v5277_v24, %v19973_v19  ;;  %v20301_v32 = vld [vmem:[#allocation269_spill] sm:$0xff] }
 0x855   : > { %20297 = vst [vmem:[#allocation268_spill] sm:$0xff] %v14615_v15  ;;  %20299 = vst [vmem:[#allocation139_spill] sm:$0xff] %v14625_v58  ;;  %v14632_v42 = vsel %vm2811_vm7, %v14413_v38, %v3931_v44  ;;  %v3538_v35 = vsel %vm2807_vm5, %v14553_v62, %v3537_v57  ;;  %v3593_v10 = vsel %vm2805_vm2, %v14585_v43, %v20301_v32  ;;  %6442 = vrot.lane.b32.xlu1 %v14615_v15, %s10395_s26  ;;  %v20302_v57 = vld [vmem:[#allocation395_spill] sm:$0xff] }
 0x856   : > { %20300 = vst [vmem:[#allocation394_spill] sm:$0xff] %v14628_v34  ;;  %v14643_v3 = vsel %vm2811_vm7, %v14416_v54, %v3938_v33  ;;  %v14647_v24 = vsel %vm2811_vm7, %v14429_v26, %v3945_v5  ;;  %v3567_v38 = vsel %vm2809_vm6, %v14519_v17, %v3566_v16  ;;  %v3622_v44 = vsel %vm2807_vm5, %v14562_v9, %v3621_v29  ;;  %v20305_v29 = vld [vmem:[#allocation37_spill] sm:$0xff] }
 0x857   : > { %v3649_v32 = vsel %vm2805_vm2, %v14599_v18, %v20302_v57  ;;  %6444 = vrot.lane.b32.xlu0 %v14628_v34, %s10395_s26  ;;  %v3951_v54 = vsel %vm2807_vm5, %v14452_v45, %v3950_v61  ;;  %v3512_v26 = vsel %vm2811_vm7, %v14506_v47, %v3511_v30  ;;  %v3678_v33 = vsel %vm2807_vm5, %v14575_v48, %v3677_v49  ;;  %v14664_v5 = vpop.permute.xlu1 %6306  ;;  %v20308_v49 = vld [vmem:[#allocation39_spill] sm:$0xff] }
 0x858   : > { %20303 = vst [vmem:[#allocation30_spill] sm:$0xff] %v14664_v5  ;;  %v14668_v16 = vcombine.high %v14569_v0, %v20057_v40  ;;  %v4153_v57 = vsel %vm2805_vm2, %v14455_v23, %v20305_v29  ;;  %v3539_v58 = vsel %vm2809_vm6, %v14553_v62, %v3538_v35  ;;  %v3594_v61 = vsel %vm2807_vm5, %v14585_v43, %v3593_v10  ;;  %v14677_v47 = vpop.permute.xlu0 %6320  ;;  %v20309_v10 = vld [vmem:[#allocation42_spill] sm:$0xff] }
 0x859   : > { %20306 = vst [vmem:[#allocation331_spill] sm:$0xff] %v14677_v47  ;;  %v14681_v30 = vcombine.high %v14580_v22, %v20057_v40  ;;  %v4160_v0 = vsel %vm2805_vm2, %v14467_v2, %v20308_v49  ;;  %v3568_v5 = vsel %vm2811_vm7, %v14519_v17, %v3567_v38  ;;  %v3623_v29 = vsel %vm2809_vm6, %v14562_v9, %v3622_v44  ;;  %v20310_v22 = vld [vmem:[#allocation80_spill] sm:$0xff] }
 0x85a   : > { %20304 = vst [vmem:[#allocation32_spill] sm:$0xff] %v14668_v16  ;;  %v3650_v35 = vsel %vm2807_vm5, %v14599_v18, %v3649_v32  ;;  %6446 = vrot.lane.b32.xlu1 %v14668_v16, %s10395_s26  ;;  %v14695_v47 = vrot.slane %v20309_v10, 7  ;;  %v14698_v60 = vrot.slane %v20310_v22, 7  ;;  %v3679_v49 = vsel %vm2809_vm6, %v14575_v48, %v3678_v33  ;;  %v20311_v32 = vld [vmem:[#allocation208_spill] sm:$0xff] }
 0x85b   : > { %20307 = vst [vmem:[#allocation34_spill] sm:$0xff] %v14681_v30  ;;  %6448 = vrot.lane.b32.xlu0 %v14681_v30, %s10395_s26  ;;  %v5286_v17 = vcombine.low %v14069_v20, %v3512_v26  ;;  %v3952_v38 = vsel %vm2809_vm6, %v14452_v45, %v3951_v54  ;;  %v3540_v44 = vsel %vm2811_vm7, %v14553_v62, %v3539_v58  ;;  %v14710_v10 = vrot.slane %v20311_v32, 7  ;;  %v14714_v16 = vpop.permute.xlu1 %6318 }
 0x85c   : > { %v3595_v22 = vsel %vm2809_vm6, %v14585_v43, %v3594_v61  ;;  %20312 = vst [vmem:[#allocation27_spill] sm:$0xff] %v14714_v16  ;;  %v14718_v33 = vcombine.high %v14615_v15, %v20057_v40  ;;  %v3624_v20 = vsel %vm2811_vm7, %v14562_v9, %v3623_v29  ;;  %v3651_v54 = vsel %vm2809_vm6, %v14599_v18, %v3650_v35  ;;  %v14724_v26 = vpop.permute.xlu0 %6324  ;;  %v20316_v29 = vld [vmem:[#allocation44_spill] sm:$0xff]  ;;  %v20317_v15 = vld [vmem:[#allocation79_spill] sm:$0xff] }
 0x85d   : > { %20314 = vst [vmem:[#allocation36_spill] sm:$0xff] %v14724_v26  ;;  %v14728_v62 = vcombine.high %v14628_v34, %v20057_v40  ;;  %v5295_v58 = vcombine.low %v3540_v44, %v3568_v5  ;;  %v3680_v61 = vsel %vm2811_vm7, %v14575_v48, %v3679_v49  ;;  %v4154_v32 = vsel %vm2807_vm5, %v14455_v23, %v4153_v57  ;;  %v20318_v5 = vld [vmem:[#allocation144_spill] sm:$0xff]  ;;  %v20319_v57 = vld [vmem:[#allocation41_spill] sm:$0xff] }
 0x85e   : > { %20313 = vst [vmem:[#allocation267_spill] sm:$0xff] %v14718_v33  ;;  %6450 = vrot.lane.b32.xlu1 %v14718_v33, %s10395_s26  ;;  %v4161_v9 = vsel %vm2807_vm5, %v14467_v2, %v4160_v0  ;;  %v14739_v35 = vrot.slane %v20316_v29, 7  ;;  %v3516_v30 = vsel %vm2805_vm2, %v14698_v60, %v20317_v15  ;;  %v14745_v44 = vrot.slane %v20318_v5, 7  ;;  %v20320_v49 = vld [vmem:[#allocation336_spill] sm:$0xff] }
 0x85f   : > { %20315 = vst [vmem:[#allocation38_spill] sm:$0xff] %v14728_v62  ;;  %v3596_v48 = vsel %vm2811_vm7, %v14585_v43, %v3595_v22  ;;  %6452 = vrot.lane.b32.xlu0 %v14728_v62, %s10395_s26  ;;  %v4167_v0 = vsel %vm2805_vm2, %v14695_v47, %v20319_v57  ;;  %v14755_v29 = vrot.slane %v20320_v49, 7  ;;  %v3652_v33 = vsel %vm2811_vm7, %v14599_v18, %v3651_v54  ;;  %v14759_v15 = vpop.permute.xlu1 %6322  ;;  %v20323_v43 = vld [vmem:[#allocation207_spill] sm:$0xff]  ;;  %v20326_v54 = vld [vmem:[#allocation272_spill] sm:$0xff] }
 0x860   : > { %20321 = vst [vmem:[#allocation393_spill] sm:$0xff] %v14759_v15  ;;  %v14762_v5 = vrot.slane %v5286_v17, %v19973_v19  ;;  %v5304_v34 = vcombine.low %v3596_v48, %v3624_v20  ;;  %v3572_v22 = vsel %vm2805_vm2, %v14710_v10, %v20323_v43  ;;  %v14768_v62 = vrot.slane %v13388_v53, 7  ;;  %v14770_v57 = vpop.permute.xlu0 %6336  ;;  %v20327_v48 = vld [vmem:[#allocation143_spill] sm:$0xff] }
 0x861   : > { %20324 = vst [vmem:[#allocation29_spill] sm:$0xff] %v14770_v57  ;;  %v14773_v49 = vrot.slane %v5295_v58, %v19973_v19  ;;  %v5313_v26 = vcombine.low %v3652_v33, %v3680_v61  ;;  %v3517_v18 = vsel %vm2807_vm5, %v14698_v60, %v3516_v30  ;;  %v14778_v17 = vrot.slane %v20326_v54, 7  ;;  %v20328_v58 = vld [vmem:[#allocation398_spill] sm:$0xff] }
 0x862   : > { %20322 = vst [vmem:[#allocation40_spill] sm:$0xff] %v14762_v5  ;;  %6454 = vrot.lane.b32.xlu1 %v14762_v5, %s10395_s26  ;;  %v14784_v20 = vsel %vm2811_vm7, %v14452_v45, %v3952_v38  ;;  %v4155_v53 = vsel %vm2809_vm6, %v14455_v23, %v4154_v32  ;;  %v3544_v33 = vsel %vm2805_vm2, %v14745_v44, %v20327_v48  ;;  %v14792_v61 = vrot.slane %v20328_v58, 7  ;;  %v20329_v32 = vld [vmem:[#allocation335_spill] sm:$0xff] }
 0x863   : > { %20325 = vst [vmem:[#allocation31_spill] sm:$0xff] %v14773_v49  ;;  %6456 = vrot.lane.b32.xlu0 %v14773_v49, %s10395_s26  ;;  %v4162_v30 = vsel %vm2809_vm6, %v14467_v2, %v4161_v9  ;;  %v4168_v45 = vsel %vm2807_vm5, %v14695_v47, %v4167_v0  ;;  %v3573_v38 = vsel %vm2807_vm5, %v14710_v10, %v3572_v22  ;;  %v14805_v54 = vpop.permute.xlu1 %6334  ;;  %v20332_v58 = vld [vmem:[#allocation43_spill] sm:$0xff] }
 0x864   : > { %v3628_v43 = vsel %vm2805_vm2, %v14755_v29, %v20329_v32  ;;  %20330 = vst [vmem:[#allocation78_spill] sm:$0xff] %v14805_v54  ;;  %v14808_v48 = vrot.slane %v5304_v34, %v19973_v19  ;;  %v4174_v57 = vsel %vm2805_vm2, %v14739_v35, %v20332_v58  ;;  %v3518_v9 = vsel %vm2809_vm6, %v14698_v60, %v3517_v18  ;;  %v14818_v22 = vpop.permute.xlu0 %6340  ;;  %v20335_v58 = vld [vmem:[#allocation271_spill] sm:$0xff] }
 0x865   : > { %v3684_v0 = vsel %vm2805_vm2, %v14768_v62, %v13383_v36  ;;  %20333 = vst [vmem:[#allocation206_spill] sm:$0xff] %v14818_v22  ;;  %v14821_v32 = vrot.slane %v5313_v26, %v19973_v19  ;;  %v14825_v34 = vsel %vm2811_vm7, %v14455_v23, %v4155_v53  ;;  %v3545_v54 = vsel %vm2807_vm5, %v14745_v44, %v3544_v33  ;;  %v20336_v33 = vld [vmem:[#allocation397_spill] sm:$0xff]  ;;  %v20339_v22 = vld [vmem:[#allocation46_spill] sm:$0xff] }
 0x866   : > { %20331 = vst [vmem:[#allocation33_spill] sm:$0xff] %v14808_v48  ;;  %v3600_v18 = vsel %vm2805_vm2, %v14778_v17, %v20335_v58  ;;  %6458 = vrot.lane.b32.xlu1 %v14808_v48, %s10395_s26  ;;  %v14836_v36 = vsel %vm2811_vm7, %v14467_v2, %v4162_v30  ;;  %v4169_v26 = vsel %vm2809_vm6, %v14695_v47, %v4168_v45 }
 0x867   : > { %20334 = vst [vmem:[#allocation77_spill] sm:$0xff] %v14821_v32  ;;  %v3574_v23 = vsel %vm2809_vm6, %v14710_v10, %v3573_v38  ;;  %v3629_v53 = vsel %vm2807_vm5, %v14755_v29, %v3628_v43  ;;  %v3656_v58 = vsel %vm2805_vm2, %v14792_v61, %v20336_v33  ;;  %6460 = vrot.lane.b32.xlu0 %v14821_v32, %s10395_s26  ;;  %v14855_v38 = vpop.permute.xlu1 %6338  ;;  %v14862_v33 = vrot.slane %v20339_v22, 7 }
 0x868   : > { %v4175_v2 = vsel %vm2807_vm5, %v14739_v35, %v4174_v57  ;;  %v3519_v30 = vsel %vm2811_vm7, %v14698_v60, %v3518_v9  ;;  %v3685_v45 = vsel %vm2807_vm5, %v14768_v62, %v3684_v0  ;;  %20337 = vst [vmem:[#allocation142_spill] sm:$0xff] %v14855_v38  ;;  %v14859_v43 = vcombine.high %v14762_v5, %v20057_v40  ;;  %v14868_v16 = vpop.permute.xlu0 %6348  ;;  %v20342_v9 = vld [vmem:[#allocation50_spill] sm:$0xff]  ;;  %v20371_v38 = vld [vmem:[#allocation273_spill] sm:$0xff] }
 0x869   : > { %v3546_v15 = vsel %vm2809_vm6, %v14745_v44, %v3545_v54  ;;  %v3601_v57 = vsel %vm2807_vm5, %v14778_v17, %v3600_v18  ;;  %20340 = vst [vmem:[#allocation205_spill] sm:$0xff] %v14868_v16  ;;  %v14872_v60 = vcombine.high %v14773_v49, %v20057_v40  ;;  %v14875_v0 = vrot.slane %v20342_v9, 7  ;;  %v20343_v49 = vld [vmem:[#allocation82_spill] sm:$0xff] }
 0x86a   : > { %20338 = vst [vmem:[#allocation334_spill] sm:$0xff] %v14859_v43  ;;  %v3575_v5 = vsel %vm2811_vm7, %v14710_v10, %v3574_v23  ;;  %v3630_v22 = vsel %vm2809_vm6, %v14755_v29, %v3629_v53  ;;  %v3657_v54 = vsel %vm2807_vm5, %v14792_v61, %v3656_v58  ;;  %6462 = vrot.lane.b32.xlu1 %v14859_v43, %s10395_s26  ;;  %v14890_v16 = vrot.slane %v20343_v49, 7  ;;  %v20344_v58 = vld [vmem:[#allocation210_spill] sm:$0xff] }
 0x86b   : > { %20341 = vst [vmem:[#allocation270_spill] sm:$0xff] %v14872_v60  ;;  %v14887_v18 = vsel %vm2811_vm7, %v14695_v47, %v4169_v26  ;;  %v3686_v9 = vsel %vm2809_vm6, %v14768_v62, %v3685_v45  ;;  %6464 = vrot.lane.b32.xlu0 %v14872_v60, %s10395_s26  ;;  %v5322_v10 = vcombine.low %v14157_v50, %v3519_v30  ;;  %v14902_v47 = vrot.slane %v20344_v58, 7  ;;  %v14906_v26 = vpop.permute.xlu1 %6350  ;;  %v20349_v58 = vld [vmem:[#allocation45_spill] sm:$0xff] }
 0x86c   : > { %v4176_v23 = vsel %vm2809_vm6, %v14739_v35, %v4175_v2  ;;  %v3547_v53 = vsel %vm2811_vm7, %v14745_v44, %v3546_v15  ;;  %v3602_v49 = vsel %vm2809_vm6, %v14778_v17, %v3601_v57  ;;  %20345 = vst [vmem:[#allocation141_spill] sm:$0xff] %v14906_v26  ;;  %v14910_v45 = vcombine.high %v14808_v48, %v20057_v40  ;;  %v14916_v30 = vpop.permute.xlu0 %6352  ;;  %v20352_v48 = vld [vmem:[#allocation81_spill] sm:$0xff] }
 0x86d   : > { %v3631_v50 = vsel %vm2811_vm7, %v14755_v29, %v3630_v22  ;;  %v3658_v2 = vsel %vm2809_vm6, %v14792_v61, %v3657_v54  ;;  %20347 = vst [vmem:[#allocation333_spill] sm:$0xff] %v14916_v30  ;;  %v14920_v44 = vcombine.high %v14821_v32, %v20057_v40  ;;  %v5331_v15 = vcombine.low %v3547_v53, %v3575_v5  ;;  %v20350_v22 = vld [vmem:[#allocation53_spill] sm:$0xff]  ;;  %v20353_v53 = vld [vmem:[#allocation146_spill] sm:$0xff] }
 0x86e   : > { %20346 = vst [vmem:[#allocation396_spill] sm:$0xff] %v14910_v45  ;;  %v3687_v57 = vsel %vm2811_vm7, %v14768_v62, %v3686_v9  ;;  %6466 = vrot.lane.b32.xlu1 %v14910_v45, %s10395_s26  ;;  %v4377_v29 = vsel %vm2805_vm2, %v14862_v33, %v20349_v58  ;;  %v14930_v43 = vrot.slane %v20350_v22, 7  ;;  %v20351_v54 = vld [vmem:[#allocation57_spill] sm:$0xff]  ;;  %v3523_v5 = vsel %vm2805_vm2, %v14890_v16, %v20352_v48  ;;  %v20355_v22 = vld [vmem:[#allocation338_spill] sm:$0xff] }
 0x86f   : > { %20348 = vst [vmem:[#allocation35_spill] sm:$0xff] %v14920_v44  ;;  %v14933_v60 = vrot.slane %v20351_v54, 7  ;;  %v14939_v32 = vrot.slane %v20353_v53, 7  ;;  %v3603_v62 = vsel %vm2811_vm7, %v14778_v17, %v3602_v49  ;;  %6468 = vrot.lane.b32.xlu0 %v14920_v44, %s10395_s26  ;;  %v20354_v9 = vld [vmem:[#allocation49_spill] sm:$0xff]  ;;  %v14949_v54 = vrot.slane %v20355_v22, 7  ;;  %v14953_v48 = vpop.permute.xlu1 %6354 }
 0x870   : > { %v4384_v58 = vsel %vm2805_vm2, %v14875_v0, %v20354_v9  ;;  %v3659_v45 = vsel %vm2811_vm7, %v14792_v61, %v3658_v2  ;;  %20356 = vst [vmem:[#allocation269_spill] sm:$0xff] %v14953_v48  ;;  %v14956_v53 = vrot.slane %v5322_v10, %v19973_v19  ;;  %v5340_v26 = vcombine.low %v3603_v62, %v3631_v50  ;;  %v20358_v17 = vld [vmem:[#allocation209_spill] sm:$0xff]  ;;  %v14964_v9 = vpop.permute.xlu0 %6356  ;;  %v20361_v2 = vld [vmem:[#allocation274_spill] sm:$0xff]  ;;  %v20368_v48 = vld [vmem:[#allocation55_spill] sm:$0xff] }
 0x871   : > { %v3579_v49 = vsel %vm2805_vm2, %v14902_v47, %v20358_v17  ;;  %v14962_v44 = vrot.slane %v13402_v31, 7  ;;  %20359 = vst [vmem:[#allocation37_spill] sm:$0xff] %v14964_v9  ;;  %v14967_v22 = vrot.slane %v5331_v15, %v19973_v19  ;;  %v5349_v30 = vcombine.low %v3659_v45, %v3687_v57  ;;  %v20362_v62 = vld [vmem:[#allocation145_spill] sm:$0xff]  ;;  %v20363_v15 = vld [vmem:[#allocation400_spill] sm:$0xff]  ;;  %v20364_v17 = vld [vmem:[#allocation51_spill] sm:$0xff] }
 0x872   : > { %20357 = vst [vmem:[#allocation395_spill] sm:$0xff] %v14956_v53  ;;  %v3524_v61 = vsel %vm2807_vm5, %v14890_v16, %v3523_v5  ;;  %v14972_v10 = vrot.slane %v20361_v2, 7  ;;  %6470 = vrot.lane.b32.xlu1 %v14956_v53, %s10395_s26  ;;  %v14978_v50 = vsel %vm2811_vm7, %v14739_v35, %v4176_v23  ;;  %v4378_v31 = vsel %vm2807_vm5, %v14862_v33, %v4377_v29  ;;  %v20365_v29 = vld [vmem:[#allocation337_spill] sm:$0xff] }
 0x873   : > { %20360 = vst [vmem:[#allocation39_spill] sm:$0xff] %v14967_v22  ;;  %v3551_v45 = vsel %vm2805_vm2, %v14939_v32, %v20362_v62  ;;  %v14986_v57 = vrot.slane %v20363_v15, 7  ;;  %6472 = vrot.lane.b32.xlu0 %v14967_v22, %s10395_s26  ;;  %v4385_v5 = vsel %vm2807_vm5, %v14875_v0, %v4384_v58  ;;  %v4391_v35 = vsel %vm2805_vm2, %v14930_v43, %v20364_v17  ;;  %v15000_v62 = vpop.permute.xlu1 %6358 }
 0x874   : > { %v3580_v23 = vsel %vm2807_vm5, %v14902_v47, %v3579_v49  ;;  %v3635_v2 = vsel %vm2805_vm2, %v14949_v54, %v20365_v29  ;;  %20366 = vst [vmem:[#allocation42_spill] sm:$0xff] %v15000_v62  ;;  %v15003_v15 = vrot.slane %v5340_v26, %v19973_v19  ;;  %v4398_v58 = vsel %vm2805_vm2, %v14933_v60, %v20368_v48  ;;  %v15013_v17 = vpop.permute.xlu0 %6360 }
 0x875   : > { %v3525_v9 = vsel %vm2809_vm6, %v14890_v16, %v3524_v61  ;;  %v3691_v49 = vsel %vm2805_vm2, %v14962_v44, %v13397_v6  ;;  %20369 = vst [vmem:[#allocation208_spill] sm:$0xff] %v15013_v17  ;;  %v15016_v29 = vrot.slane %v5349_v30, %v19973_v19  ;;  %v4379_v26 = vsel %vm2809_vm6, %v14862_v33, %v4378_v31  ;;  %v20372_v61 = vld [vmem:[#allocation84_spill] sm:$0xff] }
 0x876   : > { %20367 = vst [vmem:[#allocation80_spill] sm:$0xff] %v15003_v15  ;;  %v3552_v62 = vsel %vm2807_vm5, %v14939_v32, %v3551_v45  ;;  %v3607_v48 = vsel %vm2805_vm2, %v14972_v10, %v20371_v38  ;;  %6474 = vrot.lane.b32.xlu1 %v15003_v15, %s10395_s26  ;;  %v4386_v6 = vsel %vm2809_vm6, %v14875_v0, %v4385_v5  ;;  %v15032_v17 = vrot.slane %v20372_v61, 7 }
 0x877   : > { %20370 = vst [vmem:[#allocation44_spill] sm:$0xff] %v15016_v29  ;;  %v4392_v30 = vsel %vm2807_vm5, %v14930_v43, %v4391_v35  ;;  %v3581_v31 = vsel %vm2809_vm6, %v14902_v47, %v3580_v23  ;;  %v3636_v45 = vsel %vm2807_vm5, %v14949_v54, %v3635_v2  ;;  %v3663_v38 = vsel %vm2805_vm2, %v14986_v57, %v20373_v39  ;;  %v15047_v61 = vpop.permute.xlu1 %6362 }
 0x878   : > { %6476 = vrot.lane.b32.xlu0 %v15016_v29, %s10395_s26  ;;  %v3526_v5 = vsel %vm2811_vm7, %v14890_v16, %v3525_v9  ;;  %v3692_v35 = vsel %vm2807_vm5, %v14962_v44, %v3691_v49  ;;  %20374 = vst [vmem:[#allocation79_spill] sm:$0xff] %v15047_v61  ;;  %v15051_v23 = vcombine.high %v14956_v53, %v20057_v40  ;;  %v15059_v37 = vpop.permute.xlu0 %6364  ;;  %v20378_v53 = vld [vmem:[#allocation83_spill] sm:$0xff] }
 0x879   : > { %v4399_v2 = vsel %vm2807_vm5, %v14933_v60, %v4398_v58  ;;  %v3553_v39 = vsel %vm2809_vm6, %v14939_v32, %v3552_v62  ;;  %v3608_v55 = vsel %vm2807_vm5, %v14972_v10, %v3607_v48  ;;  %20376 = vst [vmem:[#allocation41_spill] sm:$0xff] %v15059_v37  ;;  %v15063_v16 = vcombine.high %v14967_v22, %v20057_v40 }
 0x87a   : > { %20375 = vst [vmem:[#allocation144_spill] sm:$0xff] %v15051_v23  ;;  %v15067_v9 = vsel %vm2811_vm7, %v14862_v33, %v4379_v26  ;;  %v3582_v49 = vsel %vm2811_vm7, %v14902_v47, %v3581_v31  ;;  %v3637_v58 = vsel %vm2809_vm6, %v14949_v54, %v3636_v45  ;;  %v3664_v62 = vsel %vm2807_vm5, %v14986_v57, %v3663_v38  ;;  %v20379_v26 = vld [vmem:[#allocation86_spill] sm:$0xff] }
 0x87b   : > { %20377 = vst [vmem:[#allocation336_spill] sm:$0xff] %v15063_v16  ;;  %6478 = vrot.lane.b32.xlu1 %v15051_v23, %s10395_s26  ;;  %v15079_v48 = vsel %vm2811_vm7, %v14875_v0, %v4386_v6  ;;  %v3530_v33 = vsel %vm2805_vm2, %v15032_v17, %v20378_v53  ;;  %v15085_v22 = vrot.slane %v20379_v26, 7  ;;  %v3693_v47 = vsel %vm2809_vm6, %v14962_v44, %v3692_v35  ;;  %v20380_v0 = vld [vmem:[#allocation212_spill] sm:$0xff]  ;;  %v15099_v38 = vpop.permute.xlu1 %6366  ;;  %v20386_v23 = vld [vmem:[#allocation90_spill] sm:$0xff] }
 0x87c   : > { %6480 = vrot.lane.b32.xlu0 %v15063_v16, %s10395_s26  ;;  %v5358_v31 = vcombine.low %v14249_v4, %v3526_v5  ;;  %v3554_v45 = vsel %vm2811_vm7, %v14939_v32, %v3553_v39  ;;  %v15095_v6 = vrot.slane %v20380_v0, 7  ;;  %v3609_v53 = vsel %vm2809_vm6, %v14972_v10, %v3608_v55  ;;  %20381 = vst [vmem:[#allocation207_spill] sm:$0xff] %v15099_v38  ;;  %v15109_v5 = vpop.permute.xlu0 %6368  ;;  %v20385_v55 = vld [vmem:[#allocation88_spill] sm:$0xff] }
 0x87d   : > { %v15103_v26 = vcombine.high %v15003_v15, %v20057_v40  ;;  %v3638_v35 = vsel %vm2811_vm7, %v14949_v54, %v3637_v58  ;;  %v3665_v4 = vsel %vm2809_vm6, %v14986_v57, %v3664_v62  ;;  %20383 = vst [vmem:[#allocation143_spill] sm:$0xff] %v15109_v5  ;;  %v15113_v32 = vcombine.high %v15016_v29, %v20057_v40  ;;  %v20395_v29 = vld [vmem:[#allocation87_spill] sm:$0xff] }
 0x87e   : > { %v5367_v39 = vcombine.low %v3554_v45, %v3582_v49  ;;  %v15116_v0 = vrot.slane %v20385_v55, 7  ;;  %v15119_v16 = vrot.slane %v20386_v23, 7  ;;  %v3694_v15 = vsel %vm2811_vm7, %v14962_v44, %v3693_v47  ;;  %v20387_v49 = vld [vmem:[#allocation148_spill] sm:$0xff]  ;;  %v20389_v47 = vld [vmem:[#allocation85_spill] sm:$0xff] }
 0x87f   : > { %20382 = vst [vmem:[#allocation272_spill] sm:$0xff] %v15103_v26  ;;  %20384 = vst [vmem:[#allocation398_spill] sm:$0xff] %v15113_v32  ;;  %6482 = vrot.lane.b32.xlu1 %v15103_v26, %s10395_s26  ;;  %v15127_v54 = vsel %vm2809_vm6, %v14930_v43, %v4392_v30  ;;  %v3531_v58 = vsel %vm2807_vm5, %v15032_v17, %v3530_v33  ;;  %v15132_v62 = vrot.slane %v20387_v49, 7  ;;  %v20390_v45 = vld [vmem:[#allocation340_spill] sm:$0xff]  ;;  %v15149_v49 = vpop.permute.xlu1 %6370 }
 0x880   : > { %v3610_v23 = vsel %vm2811_vm7, %v14972_v10, %v3609_v53  ;;  %6484 = vrot.lane.b32.xlu0 %v15113_v32, %s10395_s26  ;;  %v15139_v44 = vrot.slane %v5358_v31, %v19973_v19  ;;  %v3733_v30 = vsel %vm2805_vm2, %v15085_v22, %v20389_v47  ;;  %v15145_v55 = vrot.slane %v20390_v45, 7  ;;  %20391 = vst [vmem:[#allocation43_spill] sm:$0xff] %v15149_v49  ;;  %v20392_v10 = vld [vmem:[#allocation211_spill] sm:$0xff]  ;;  %v15157_v32 = vpop.permute.xlu0 %6372 }
 0x881   : > { %v3666_v33 = vsel %vm2811_vm7, %v14986_v57, %v3665_v4  ;;  %v5376_v26 = vcombine.low %v3610_v23, %v3638_v35  ;;  %v3586_v53 = vsel %vm2805_vm2, %v15095_v6, %v20392_v10  ;;  %v15155_v31 = vrot.slane %v13418_v13, 7  ;;  %20393 = vst [vmem:[#allocation271_spill] sm:$0xff] %v15157_v32  ;;  %v20396_v4 = vld [vmem:[#allocation89_spill] sm:$0xff]  ;;  %v20397_v23 = vld [vmem:[#allocation276_spill] sm:$0xff]  ;;  %v20399_v10 = vld [vmem:[#allocation402_spill] sm:$0xff] }
 0x882   : > { %20388 = vst [vmem:[#allocation335_spill] sm:$0xff] %v15139_v44  ;;  %v15160_v47 = vrot.slane %v5367_v39, %v19973_v19  ;;  %v5385_v45 = vcombine.low %v3666_v33, %v3694_v15  ;;  %v3740_v57 = vsel %vm2805_vm2, %v15116_v0, %v20395_v29  ;;  %v3747_v35 = vsel %vm2805_vm2, %v15119_v16, %v20396_v4  ;;  %v20398_v39 = vld [vmem:[#allocation147_spill] sm:$0xff] }
 0x883   : > { %v15169_v49 = vrot.slane %v20397_v23, 7  ;;  %6486 = vrot.lane.b32.xlu1 %v15139_v44, %s10395_s26  ;;  %v15175_v13 = vsel %vm2809_vm6, %v14933_v60, %v4399_v2  ;;  %v3532_v15 = vsel %vm2809_vm6, %v15032_v17, %v3531_v58  ;;  %v3734_v29 = vsel %vm2807_vm5, %v15085_v22, %v3733_v30  ;;  %v20400_v23 = vld [vmem:[#allocation92_spill] sm:$0xff]  ;;  %v20401_v58 = vld [vmem:[#allocation339_spill] sm:$0xff]  ;;  %v15197_v32 = vpop.permute.xlu1 %6374 }
 0x884   : > { %20394 = vst [vmem:[#allocation397_spill] sm:$0xff] %v15160_v47  ;;  %v3558_v33 = vsel %vm2805_vm2, %v15132_v62, %v20398_v39  ;;  %v15185_v4 = vrot.slane %v20399_v10, 7  ;;  %6488 = vrot.lane.b32.xlu0 %v15160_v47, %s10395_s26  ;;  %v15190_v38 = vrot.slane %v20400_v23, 7  ;;  %v3587_v2 = vsel %vm2807_vm5, %v15095_v6, %v3586_v53  ;;  %20402 = vst [vmem:[#allocation46_spill] sm:$0xff] %v15197_v32  ;;  %v15209_v53 = vpop.permute.xlu0 %6376  ;;  %v20406_v32 = vld [vmem:[#allocation275_spill] sm:$0xff] }
 0x885   : > { %v3642_v30 = vsel %vm2805_vm2, %v15145_v55, %v20401_v58  ;;  %v15200_v39 = vrot.slane %v5376_v26, %v19973_v19  ;;  %v3741_v10 = vsel %vm2807_vm5, %v15116_v0, %v3740_v57  ;;  %v3748_v5 = vsel %vm2807_vm5, %v15119_v16, %v3747_v35  ;;  %20404 = vst [vmem:[#allocation82_spill] sm:$0xff] %v15209_v53 }
 0x886   : > { %v3698_v23 = vsel %vm2805_vm2, %v15155_v31, %v13412_v21  ;;  %v15212_v61 = vrot.slane %v5385_v45, %v19973_v19  ;;  %v3533_v58 = vsel %vm2811_vm7, %v15032_v17, %v3532_v15  ;;  %v3559_v26 = vsel %vm2807_vm5, %v15132_v62, %v3558_v33  ;;  %v20408_v15 = vld [vmem:[#allocation401_spill] sm:$0xff] }
 0x887   : > { %20403 = vst [vmem:[#allocation50_spill] sm:$0xff] %v15200_v39  ;;  %v3614_v57 = vsel %vm2805_vm2, %v15169_v49, %v20406_v32  ;;  %6490 = vrot.lane.b32.xlu1 %v15200_v39, %s10395_s26  ;;  %v15225_v21 = vcombine.high %v15139_v44, %v20057_v40  ;;  %v3735_v45 = vsel %vm2809_vm6, %v15085_v22, %v3734_v29  ;;  %v20409_v29 = vld [vmem:[#allocation91_spill] sm:$0xff]  ;;  %v15247_v53 = vpop.permute.xlu1 %6378 }
 0x888   : > { %20405 = vst [vmem:[#allocation210_spill] sm:$0xff] %v15212_v61  ;;  %v3588_v17 = vsel %vm2809_vm6, %v15095_v6, %v3587_v2  ;;  %v3643_v35 = vsel %vm2807_vm5, %v15145_v55, %v3642_v30  ;;  %v3670_v32 = vsel %vm2805_vm2, %v15185_v4, %v20408_v15  ;;  %6492 = vrot.lane.b32.xlu0 %v15212_v61, %s10395_s26  ;;  %v15253_v28 = vpop.permute.xlu0 %6380 }
 0x889   : > { %20407 = vst [vmem:[#allocation45_spill] sm:$0xff] %v15225_v21  ;;  %v3742_v33 = vsel %vm2809_vm6, %v15116_v0, %v3741_v10  ;;  %v3749_v44 = vsel %vm2809_vm6, %v15119_v16, %v3748_v5  ;;  %v3754_v2 = vsel %vm2805_vm2, %v15190_v38, %v20409_v29  ;;  %v3699_v30 = vsel %vm2807_vm5, %v15155_v31, %v3698_v23 }
 0x88a   : > { %v3560_v15 = vsel %vm2809_vm6, %v15132_v62, %v3559_v26  ;;  %v3615_v37 = vsel %vm2807_vm5, %v15169_v49, %v3614_v57  ;;  %v15257_v5 = vcombine.high %v15160_v47, %v20057_v40  ;;  %v5394_v10 = vcombine.low %v14298_v52, %v3533_v58 }
 0x88b   : > { %v3736_v29 = vsel %vm2811_vm7, %v15085_v22, %v3735_v45  ;;  %v3589_v23 = vsel %vm2811_vm7, %v15095_v6, %v3588_v17  ;;  %v3644_v26 = vsel %vm2809_vm6, %v15145_v55, %v3643_v35  ;;  %v3671_v57 = vsel %vm2807_vm5, %v15185_v4, %v3670_v32  ;;  %6494 = vrot.lane.b32.xlu1 %v15225_v21, %s10395_s26  ;;  %v20411_v45 = vld [vmem:[#allocation214_spill] sm:$0xff]  ;;  %v15287_v35 = vpop.permute.xlu1 %6382 }
 0x88c   : > { %20410 = vst [vmem:[#allocation53_spill] sm:$0xff] %v15257_v5  ;;  %v3743_v47 = vsel %vm2811_vm7, %v15116_v0, %v3742_v33  ;;  %v3750_v52 = vsel %vm2811_vm7, %v15119_v16, %v3749_v44  ;;  %v3755_v22 = vsel %vm2807_vm5, %v15190_v38, %v3754_v2  ;;  %v3700_v6 = vsel %vm2809_vm6, %v15155_v31, %v3699_v30  ;;  %v15297_v33 = vpop.permute.xlu0 %6384 }
 0x88d   : > { %6496 = vrot.lane.b32.xlu0 %v15257_v5, %s10395_s26  ;;  %v3561_v58 = vsel %vm2811_vm7, %v15132_v62, %v3560_v15  ;;  %v15283_v17 = vrot.slane %v20411_v45, 7  ;;  %v3616_v0 = vsel %vm2809_vm6, %v15169_v49, %v3615_v37  ;;  %20412 = vst [vmem:[#allocation57_spill] sm:$0xff] %v15287_v35  ;;  %v15291_v16 = vcombine.high %v15200_v39, %v20057_v40  ;;  %v20417_v45 = vld [vmem:[#allocation150_spill] sm:$0xff] }
 0x88e   : > { %v3645_v44 = vsel %vm2811_vm7, %v15145_v55, %v3644_v26  ;;  %v3672_v32 = vsel %vm2809_vm6, %v15185_v4, %v3671_v57  ;;  %v15301_v62 = vcombine.high %v15212_v61, %v20057_v40  ;;  %v5403_v2 = vcombine.low %v3561_v58, %v3589_v23  ;;  %v20416_v26 = vld [vmem:[#allocation94_spill] sm:$0xff]  ;;  %v20420_v58 = vld [vmem:[#allocation213_spill] sm:$0xff] }
 0x88f   : > { %20413 = vst [vmem:[#allocation81_spill] sm:$0xff] %v15291_v16  ;;  %v3701_v37 = vsel %vm2811_vm7, %v15155_v31, %v3700_v6  ;;  %6498 = vrot.lane.b32.xlu1 %v15291_v16, %s10395_s26  ;;  %v15308_v30 = vrot.slane %v5394_v10, %v19973_v19  ;;  %v5430_v55 = vcombine.low %v14349_v12, %v3736_v29  ;;  %v15313_v57 = vrot.slane %v20416_v26, 7  ;;  %v20418_v12 = vld [vmem:[#allocation342_spill] sm:$0xff] }
 0x890   : > { %20414 = vst [vmem:[#allocation146_spill] sm:$0xff] %v15301_v62  ;;  %v5466_v15 = vcombine.low %v14398_v14, %v3743_v47  ;;  %v15316_v21 = vrot.slane %v20417_v45, 7  ;;  %v3617_v23 = vsel %vm2811_vm7, %v15169_v49, %v3616_v0  ;;  %v5502_v31 = vcombine.low %v14402_v8, %v3750_v52  ;;  %v15330_v47 = vpop.permute.xlu1 %6386  ;;  %v15338_v8 = vpop.permute.xlu0 %6388  ;;  %v20422_v26 = vld [vmem:[#allocation278_spill] sm:$0xff] }
 0x891   : > { %20415 = vst [vmem:[#allocation49_spill] sm:$0xff] %v15308_v30  ;;  %6500 = vrot.lane.b32.xlu0 %v15301_v62, %s10395_s26  ;;  %v3756_v10 = vsel %vm2809_vm6, %v15190_v38, %v3755_v22  ;;  %v15326_v29 = vrot.slane %v20418_v12, 7  ;;  %v3673_v14 = vsel %vm2811_vm7, %v15185_v4, %v3672_v32  ;;  %20419 = vst [vmem:[#allocation338_spill] sm:$0xff] %v15330_v47  ;;  %v15336_v0 = vrot.slane %v13434_v59, 7  ;;  %v20427_v12 = vld [vmem:[#allocation404_spill] sm:$0xff] }
 0x892   : > { %v5412_v6 = vcombine.low %v3617_v23, %v3645_v44  ;;  %v3789_v49 = vsel %vm2805_vm2, %v15283_v17, %v20420_v58  ;;  %v15341_v52 = vrot.slane %v5403_v2, %v19973_v19  ;;  %v5421_v22 = vcombine.low %v3673_v14, %v3701_v37  ;;  %v20425_v2 = vld [vmem:[#allocation93_spill] sm:$0xff] }
 0x893   : > { %v15344_v45 = vrot.slane %v20422_v26, 7  ;;  %6502 = vrot.lane.b32.xlu1 %v15308_v30, %s10395_s26  ;;  %v15349_v4 = vrot.slane %v5430_v55, %v19973_v19  ;;  %v15352_v44 = vrot.slane %v5466_v15, %v19973_v19  ;;  %v15357_v59 = vsel %vm2811_vm7, %v14930_v43, %v15127_v54  ;;  %v20426_v23 = vld [vmem:[#allocation149_spill] sm:$0xff] }
 0x894   : > { %20421 = vst [vmem:[#allocation209_spill] sm:$0xff] %v15341_v52  ;;  %v3757_v32 = vsel %vm2811_vm7, %v15190_v38, %v3756_v10  ;;  %v3957_v37 = vsel %vm2805_vm2, %v15313_v57, %v20425_v2  ;;  %v3761_v55 = vsel %vm2805_vm2, %v15316_v21, %v20426_v23  ;;  %v15368_v14 = vrot.slane %v20427_v12, 7  ;;  %v20428_v54 = vld [vmem:[#allocation341_spill] sm:$0xff]  ;;  %v15377_v15 = vpop.permute.xlu1 %6390  ;;  %v15388_v2 = vpop.permute.xlu0 %6392 }
 0x895   : > { %20423 = vst [vmem:[#allocation274_spill] sm:$0xff] %v15349_v4  ;;  %20424 = vst [vmem:[#allocation145_spill] sm:$0xff] %v15352_v44  ;;  %6504 = vrot.lane.b32.xlu0 %v15341_v52, %s10395_s26  ;;  %v3790_v43 = vsel %vm2807_vm5, %v15283_v17, %v3789_v49  ;;  %v3845_v38 = vsel %vm2805_vm2, %v15326_v29, %v20428_v54  ;;  %v15380_v10 = vrot.slane %v5412_v6, %v19973_v19  ;;  %v20435_v12 = vld [vmem:[#allocation277_spill] sm:$0xff] }
 0x896   : > { %20429 = vst [vmem:[#allocation400_spill] sm:$0xff] %v15377_v15  ;;  %v15383_v58 = vrot.slane %v5502_v31, %v19973_v19  ;;  %v3901_v26 = vsel %vm2805_vm2, %v15336_v0, %v13428_v11  ;;  %20432 = vst [vmem:[#allocation55_spill] sm:$0xff] %v15388_v2  ;;  %v15391_v49 = vrot.slane %v5421_v22, %v19973_v19  ;;  %v20446_v15 = vld [vmem:[#allocation98_spill] sm:$0xff] }
 0x897   : > { %20430 = vst [vmem:[#allocation51_spill] sm:$0xff] %v15380_v10  ;;  %v15395_v23 = vcombine.high %v15308_v30, %v20057_v40  ;;  %v15400_v6 = vsel %vm2811_vm7, %v14933_v60, %v15175_v13  ;;  %v3958_v31 = vsel %vm2807_vm5, %v15313_v57, %v3957_v37  ;;  %v3762_v11 = vsel %vm2807_vm5, %v15316_v21, %v3761_v55  ;;  %v20436_v30 = vld [vmem:[#allocation96_spill] sm:$0xff]  ;;  %v20437_v37 = vld [vmem:[#allocation403_spill] sm:$0xff] }
 0x898   : > { %20431 = vst [vmem:[#allocation337_spill] sm:$0xff] %v15383_v58  ;;  %20433 = vst [vmem:[#allocation273_spill] sm:$0xff] %v15391_v49  ;;  %v3817_v22 = vsel %vm2805_vm2, %v15344_v45, %v20435_v12  ;;  %6506 = vrot.lane.b32.xlu1 %v15380_v10, %s10395_s26  ;;  %v5538_v54 = vcombine.low %v14591_v1, %v3757_v32  ;;  %v15413_v16 = vrot.slane %v20436_v30, 7  ;;  %v15426_v1 = vpop.permute.xlu1 %6394  ;;  %v15446_v5 = vpop.permute.xlu0 %6396 }
 0x899   : > { %20434 = vst [vmem:[#allocation84_spill] sm:$0xff] %v15395_v23  ;;  %v3791_v60 = vsel %vm2809_vm6, %v15283_v17, %v3790_v43  ;;  %v3846_v13 = vsel %vm2807_vm5, %v15326_v29, %v3845_v38  ;;  %v3873_v55 = vsel %vm2805_vm2, %v15368_v14, %v20437_v37  ;;  %6508 = vrot.lane.b32.xlu0 %v15391_v49, %s10395_s26  ;;  %20438 = vst [vmem:[#allocation399_spill] sm:$0xff] %v15426_v1 }
 0x89a   : > { %v3902_v12 = vsel %vm2807_vm5, %v15336_v0, %v3901_v26  ;;  %v15430_v30 = vcombine.high %v15349_v4, %v20057_v40  ;;  %v15434_v32 = vcombine.high %v15352_v44, %v20057_v40  ;;  %v15438_v43 = vcombine.high %v15383_v58, %v20057_v40  ;;  %20442 = vst [vmem:[#allocation88_spill] sm:$0xff] %v15446_v5  ;;  %v20818_v5 = vld [vmem:[#allocation182_spill] sm:$0xff] }
 0x89b   : > { %v3959_v38 = vsel %vm2809_vm6, %v15313_v57, %v3958_v31  ;;  %v3763_v26 = vsel %vm2809_vm6, %v15316_v21, %v3762_v11  ;;  %v3818_v37 = vsel %vm2807_vm5, %v15344_v45, %v3817_v22  ;;  %v15450_v62 = vcombine.high %v15341_v52, %v20057_v40  ;;  %v20445_v22 = vld [vmem:[#allocation95_spill] sm:$0xff] }
 0x89c   : > { %20439 = vst [vmem:[#allocation83_spill] sm:$0xff] %v15430_v30  ;;  %20440 = vst [vmem:[#allocation86_spill] sm:$0xff] %v15434_v32  ;;  %v3792_v39 = vsel %vm2811_vm7, %v15283_v17, %v3791_v60  ;;  %v3847_v61 = vsel %vm2809_vm6, %v15326_v29, %v3846_v13  ;;  %v3874_v31 = vsel %vm2807_vm5, %v15368_v14, %v3873_v55  ;;  %6510 = vrot.lane.b32.xlu1 %v15395_v23, %s10395_s26  ;;  %v20447_v17 = vld [vmem:[#allocation100_spill] sm:$0xff]  ;;  %v15493_v2 = vpop.permute.xlu0 %6400 }
 0x89d   : > { %20441 = vst [vmem:[#allocation212_spill] sm:$0xff] %v15438_v43  ;;  %20443 = vst [vmem:[#allocation90_spill] sm:$0xff] %v15450_v62  ;;  %v15461_v11 = vrot.slane %v5538_v54, %v19973_v19  ;;  %v3964_v52 = vsel %vm2805_vm2, %v15413_v16, %v20445_v22  ;;  %v15467_v1 = vrot.slane %v20446_v15, 7  ;;  %v15470_v60 = vrot.slane %v20447_v17, 7  ;;  %6512 = vrot.lane.b32.xlu0 %v15450_v62, %s10395_s26  ;;  %v20448_v55 = vld [vmem:[#allocation216_spill] sm:$0xff]  ;;  %v15483_v15 = vpop.permute.xlu1 %6398 }
 0x89e   : > { %v3903_v13 = vsel %vm2809_vm6, %v15336_v0, %v3902_v12  ;;  %v3764_v54 = vsel %vm2811_vm7, %v15316_v21, %v3763_v26  ;;  %v15479_v23 = vrot.slane %v20448_v55, 7  ;;  %v3819_v22 = vsel %vm2809_vm6, %v15344_v45, %v3818_v37  ;;  %20449 = vst [vmem:[#allocation85_spill] sm:$0xff] %v15483_v15  ;;  %20451 = vst [vmem:[#allocation211_spill] sm:$0xff] %v15493_v2  ;;  %v20453_v55 = vld [vmem:[#allocation102_spill] sm:$0xff] }
 0x89f   : > { %20444 = vst [vmem:[#allocation148_spill] sm:$0xff] %v15461_v11  ;;  %v15487_v17 = vcombine.high %v15380_v10, %v20057_v40  ;;  %v3848_v12 = vsel %vm2811_vm7, %v15326_v29, %v3847_v61  ;;  %v3875_v62 = vsel %vm2809_vm6, %v15368_v14, %v3874_v31  ;;  %v15497_v21 = vcombine.high %v15391_v49, %v20057_v40  ;;  %v20460_v49 = vld [vmem:[#allocation215_spill] sm:$0xff] }
 0x8a0   : > { %v5439_v26 = vcombine.low %v3764_v54, %v3792_v39  ;;  %v3960_v37 = vsel %vm2811_vm7, %v15313_v57, %v3959_v38  ;;  %v15502_v15 = vrot.slane %v20453_v55, 7  ;;  %v3904_v10 = vsel %vm2811_vm7, %v15336_v0, %v3903_v13  ;;  %v20455_v39 = vld [vmem:[#allocation97_spill] sm:$0xff]  ;;  %v20456_v38 = vld [vmem:[#allocation152_spill] sm:$0xff]  ;;  %v20457_v13 = vld [vmem:[#allocation99_spill] sm:$0xff] }
 0x8a1   : > { %20450 = vst [vmem:[#allocation340_spill] sm:$0xff] %v15487_v17  ;;  %20452 = vst [vmem:[#allocation87_spill] sm:$0xff] %v15497_v21  ;;  %6514 = vrot.lane.b32.xlu1 %v15487_v17, %s10395_s26  ;;  %v15510_v61 = vcombine.high %v15461_v11, %v20057_v40  ;;  %v3965_v29 = vsel %vm2807_vm5, %v15413_v16, %v3964_v52  ;;  %v3971_v57 = vsel %vm2805_vm2, %v15467_v1, %v20455_v39  ;;  %v20458_v55 = vld [vmem:[#allocation344_spill] sm:$0xff]  ;;  %v15532_v39 = vpop.permute.xlu1 %6402 }
 0x8a2   : > { %v15518_v31 = vrot.slane %v20456_v38, 7  ;;  %v3820_v0 = vsel %vm2811_vm7, %v15344_v45, %v3819_v22  ;;  %6516 = vrot.lane.b32.xlu0 %v15497_v21, %s10395_s26  ;;  %v3978_v54 = vsel %vm2805_vm2, %v15470_v60, %v20457_v13  ;;  %v15528_v17 = vrot.slane %v20458_v55, 7  ;;  %20459 = vst [vmem:[#allocation276_spill] sm:$0xff] %v15532_v39  ;;  %v15540_v21 = vpop.permute.xlu0 %6404 }
 0x8a3   : > { %20454 = vst [vmem:[#allocation89_spill] sm:$0xff] %v15510_v61  ;;  %v3876_v52 = vsel %vm2811_vm7, %v15368_v14, %v3875_v62  ;;  %v5448_v38 = vcombine.low %v3820_v0, %v3848_v12  ;;  %v3796_v45 = vsel %vm2805_vm2, %v15479_v23, %v20460_v49  ;;  %v15538_v22 = vrot.slane %v13450_v7, 7  ;;  %20461 = vst [vmem:[#allocation147_spill] sm:$0xff] %v15540_v21  ;;  %v20463_v62 = vld [vmem:[#allocation101_spill] sm:$0xff]  ;;  %v20464_v12 = vld [vmem:[#allocation280_spill] sm:$0xff] }
 0x8a4   : > { %v15543_v13 = vrot.slane %v5439_v26, %v19973_v19  ;;  %v5457_v55 = vcombine.low %v3876_v52, %v3904_v10  ;;  %v3966_v2 = vsel %vm2809_vm6, %v15413_v16, %v3965_v29  ;;  %v4181_v14 = vsel %vm2805_vm2, %v15502_v15, %v20463_v62  ;;  %v20465_v26 = vld [vmem:[#allocation151_spill] sm:$0xff]  ;;  %v20466_v52 = vld [vmem:[#allocation406_spill] sm:$0xff] }
 0x8a5   : > { %v15551_v0 = vrot.slane %v20464_v12, 7  ;;  %6518 = vrot.lane.b32.xlu1 %v15349_v4, %s10395_s26  ;;  %v5574_v7 = vcombine.low %v14632_v42, %v3960_v37  ;;  %v3972_v49 = vsel %vm2807_vm5, %v15467_v1, %v3971_v57  ;;  %v3979_v10 = vsel %vm2807_vm5, %v15470_v60, %v3978_v54  ;;  %v20467_v12 = vld [vmem:[#allocation104_spill] sm:$0xff]  ;;  %v20468_v37 = vld [vmem:[#allocation343_spill] sm:$0xff]  ;;  %v15576_v54 = vpop.permute.xlu1 %6406 }
 0x8a6   : > { %20462 = vst [vmem:[#allocation402_spill] sm:$0xff] %v15543_v13  ;;  %v3768_v29 = vsel %vm2805_vm2, %v15518_v31, %v20465_v26  ;;  %v15564_v62 = vrot.slane %v20466_v52, 7  ;;  %6520 = vrot.lane.b32.xlu0 %v15543_v13, %s10395_s26  ;;  %v15569_v4 = vrot.slane %v20467_v12, 7  ;;  %v3797_v42 = vsel %vm2807_vm5, %v15479_v23, %v3796_v45  ;;  %20469 = vst [vmem:[#allocation92_spill] sm:$0xff] %v15576_v54  ;;  %v15588_v45 = vpop.permute.xlu0 %6408  ;;  %v20473_v54 = vld [vmem:[#allocation279_spill] sm:$0xff] }
 0x8a7   : > { %v3852_v57 = vsel %vm2805_vm2, %v15528_v17, %v20468_v37  ;;  %v15579_v26 = vrot.slane %v5448_v38, %v19973_v19  ;;  %v3967_v52 = vsel %vm2811_vm7, %v15413_v16, %v3966_v2  ;;  %v4182_v39 = vsel %vm2807_vm5, %v15502_v15, %v4181_v14  ;;  %20471 = vst [vmem:[#allocation275_spill] sm:$0xff] %v15588_v45 }
 0x8a8   : > { %v3908_v12 = vsel %vm2805_vm2, %v15538_v22, %v13444_v41  ;;  %v15591_v21 = vrot.slane %v5457_v55, %v19973_v19  ;;  %v3973_v37 = vsel %vm2809_vm6, %v15467_v1, %v3972_v49  ;;  %v3769_v38 = vsel %vm2807_vm5, %v15518_v31, %v3768_v29  ;;  %v20475_v49 = vld [vmem:[#allocation405_spill] sm:$0xff] }
 0x8a9   : > { %20470 = vst [vmem:[#allocation339_spill] sm:$0xff] %v15579_v26  ;;  %v3824_v16 = vsel %vm2805_vm2, %v15551_v0, %v20473_v54  ;;  %6522 = vrot.lane.b32.xlu1 %v15579_v26, %s10395_s26  ;;  %v15603_v41 = vrot.slane %v5574_v7, %v19973_v19  ;;  %v3980_v2 = vsel %vm2809_vm6, %v15470_v60, %v3979_v10  ;;  %v20476_v54 = vld [vmem:[#allocation103_spill] sm:$0xff]  ;;  %v15623_v45 = vpop.permute.xlu1 %6410 }
 0x8aa   : > { %20472 = vst [vmem:[#allocation401_spill] sm:$0xff] %v15591_v21  ;;  %v3798_v55 = vsel %vm2809_vm6, %v15479_v23, %v3797_v42  ;;  %v3853_v14 = vsel %vm2807_vm5, %v15528_v17, %v3852_v57  ;;  %v3880_v29 = vsel %vm2805_vm2, %v15564_v62, %v20475_v49  ;;  %6524 = vrot.lane.b32.xlu0 %v15591_v21, %s10395_s26  ;;  %20477 = vst [vmem:[#allocation214_spill] sm:$0xff] %v15623_v45  ;;  %v15632_v35 = vpop.permute.xlu0 %6412  ;;  %v20760_v45 = vld [vmem:[#allocation303_spill] sm:$0xff] }
 0x8ab   : > { %20474 = vst [vmem:[#allocation91_spill] sm:$0xff] %v15603_v41  ;;  %v4183_v7 = vsel %vm2809_vm6, %v15502_v15, %v4182_v39  ;;  %v4188_v10 = vsel %vm2805_vm2, %v15569_v4, %v20476_v54  ;;  %v3909_v42 = vsel %vm2807_vm5, %v15538_v22, %v3908_v12  ;;  %v5610_v57 = vcombine.low %v14643_v3, %v3967_v52 }
 0x8ac   : > { %v3974_v49 = vsel %vm2811_vm7, %v15467_v1, %v3973_v37  ;;  %v3770_v47 = vsel %vm2809_vm6, %v15518_v31, %v3769_v38  ;;  %v3825_v39 = vsel %vm2807_vm5, %v15551_v0, %v3824_v16  ;;  %20478 = vst [vmem:[#allocation94_spill] sm:$0xff] %v15632_v35  ;;  %v15636_v54 = vcombine.high %v15543_v13, %v20057_v40  ;;  %v20480_v16 = vld [vmem:[#allocation106_spill] sm:$0xff] }
 0x8ad   : > { %v3981_v12 = vsel %vm2811_vm7, %v15470_v60, %v3980_v2  ;;  %v3799_v3 = vsel %vm2811_vm7, %v15479_v23, %v3798_v55  ;;  %v3854_v1 = vsel %vm2809_vm6, %v15528_v17, %v3853_v14  ;;  %v3881_v52 = vsel %vm2807_vm5, %v15564_v62, %v3880_v29  ;;  %6526 = vrot.lane.b32.xlu1 %v15430_v30, %s10395_s26  ;;  %v20481_v55 = vld [vmem:[#allocation218_spill] sm:$0xff]  ;;  %v15666_v29 = vpop.permute.xlu1 %6414 }
 0x8ae   : > { %20479 = vst [vmem:[#allocation150_spill] sm:$0xff] %v15636_v54  ;;  %v4184_v37 = vsel %vm2811_vm7, %v15502_v15, %v4183_v7  ;;  %v4189_v38 = vsel %vm2807_vm5, %v15569_v4, %v4188_v10  ;;  %v15653_v60 = vrot.slane %v20480_v16, 7  ;;  %v3910_v23 = vsel %vm2809_vm6, %v15538_v22, %v3909_v42  ;;  %6528 = vrot.lane.b32.xlu0 %v15636_v54, %s10395_s26  ;;  %v15676_v16 = vpop.permute.xlu0 %6416  ;;  %v20487_v30 = vld [vmem:[#allocation154_spill] sm:$0xff] }
 0x8af   : > { %v3771_v2 = vsel %vm2811_vm7, %v15518_v31, %v3770_v47  ;;  %v15662_v14 = vrot.slane %v20481_v55, 7  ;;  %v3826_v15 = vsel %vm2809_vm6, %v15551_v0, %v3825_v39  ;;  %20482 = vst [vmem:[#allocation342_spill] sm:$0xff] %v15666_v29  ;;  %v15670_v7 = vcombine.high %v15579_v26, %v20057_v40  ;;  %20484 = vst [vmem:[#allocation278_spill] sm:$0xff] %v15676_v16  ;;  %v20511_v26 = vld [vmem:[#allocation107_spill] sm:$0xff]  ;;  %v20536_v16 = vld [vmem:[#allocation113_spill] sm:$0xff] }
 0x8b0   : > { %v3855_v10 = vsel %vm2811_vm7, %v15528_v17, %v3854_v1  ;;  %v3882_v42 = vsel %vm2809_vm6, %v15564_v62, %v3881_v52  ;;  %v15680_v47 = vcombine.high %v15591_v21, %v20057_v40  ;;  %v5475_v31 = vcombine.low %v3771_v2, %v3799_v3 }
 0x8b1   : > { %20483 = vst [vmem:[#allocation213_spill] sm:$0xff] %v15670_v7  ;;  %v3911_v39 = vsel %vm2811_vm7, %v15538_v22, %v3910_v23  ;;  %6530 = vrot.lane.b32.xlu1 %v15670_v7, %s10395_s26  ;;  %v15687_v55 = vrot.slane %v5610_v57, %v19973_v19  ;;  %v5646_v17 = vcombine.low %v14647_v24, %v3974_v49  ;;  %v15694_v54 = vrot.slane %v20487_v30, 7  ;;  %v20488_v57 = vld [vmem:[#allocation105_spill] sm:$0xff]  ;;  %v20489_v49 = vld [vmem:[#allocation346_spill] sm:$0xff]  ;;  %v15709_v30 = vpop.permute.xlu1 %6418 }
 0x8b2   : > { %20485 = vst [vmem:[#allocation93_spill] sm:$0xff] %v15680_v47  ;;  %v5682_v1 = vcombine.low %v14784_v20, %v3981_v12  ;;  %v4190_v52 = vsel %vm2809_vm6, %v15569_v4, %v4189_v38  ;;  %v3827_v3 = vsel %vm2811_vm7, %v15551_v0, %v3826_v15  ;;  %6532 = vrot.lane.b32.xlu0 %v15680_v47, %s10395_s26  ;;  %v15705_v20 = vrot.slane %v20489_v49, 7  ;;  %v20491_v23 = vld [vmem:[#allocation217_spill] sm:$0xff] }
 0x8b3   : > { %20486 = vst [vmem:[#allocation149_spill] sm:$0xff] %v15687_v55  ;;  %v5718_v22 = vcombine.low %v14825_v34, %v4184_v37  ;;  %v4195_v24 = vsel %vm2805_vm2, %v15653_v60, %v20488_v57  ;;  %v3883_v12 = vsel %vm2811_vm7, %v15564_v62, %v3882_v42  ;;  %20490 = vst [vmem:[#allocation404_spill] sm:$0xff] %v15709_v30  ;;  %v15715_v2 = vrot.slane %v13466_v25, 7  ;;  %v15717_v34 = vpop.permute.xlu0 %6420  ;;  %v20494_v62 = vld [vmem:[#allocation282_spill] sm:$0xff] }
 0x8b4   : > { %v5484_v38 = vcombine.low %v3827_v3, %v3855_v10  ;;  %v3803_v0 = vsel %vm2805_vm2, %v15662_v14, %v20491_v23  ;;  %20492 = vst [vmem:[#allocation341_spill] sm:$0xff] %v15717_v34  ;;  %v15720_v37 = vrot.slane %v5475_v31, %v19973_v19  ;;  %v5493_v15 = vcombine.low %v3883_v12, %v3911_v39  ;;  %v20497_v3 = vld [vmem:[#allocation153_spill] sm:$0xff] }
 0x8b5   : > { %v4191_v57 = vsel %vm2811_vm7, %v15569_v4, %v4190_v52  ;;  %v15725_v42 = vrot.slane %v20494_v62, 7  ;;  %6534 = vrot.lane.b32.xlu1 %v15352_v44, %s10395_s26  ;;  %v15730_v10 = vrot.slane %v5646_v17, %v19973_v19  ;;  %v15733_v25 = vrot.slane %v5682_v1, %v19973_v19  ;;  %v20498_v4 = vld [vmem:[#allocation408_spill] sm:$0xff]  ;;  %v15756_v62 = vpop.permute.xlu1 %6422 }
 0x8b6   : > { %20493 = vst [vmem:[#allocation277_spill] sm:$0xff] %v15720_v37  ;;  %v4196_v31 = vsel %vm2807_vm5, %v15653_v60, %v4195_v24  ;;  %v3775_v39 = vsel %vm2805_vm2, %v15694_v54, %v20497_v3  ;;  %v15741_v52 = vrot.slane %v20498_v4, 7  ;;  %6536 = vrot.lane.b32.xlu0 %v15720_v37, %s10395_s26  ;;  %v15746_v49 = vrot.slane %v5718_v22, %v19973_v19  ;;  %v20500_v17 = vld [vmem:[#allocation108_spill] sm:$0xff]  ;;  %v20501_v24 = vld [vmem:[#allocation345_spill] sm:$0xff] }
 0x8b7   : > { %20495 = vst [vmem:[#allocation96_spill] sm:$0xff] %v15730_v10  ;;  %20496 = vst [vmem:[#allocation403_spill] sm:$0xff] %v15733_v25  ;;  %v15749_v12 = vrot.slane %v20500_v17, 7  ;;  %v3804_v1 = vsel %vm2807_vm5, %v15662_v14, %v3803_v0  ;;  %v3859_v23 = vsel %vm2805_vm2, %v15705_v20, %v20501_v24  ;;  %v15759_v3 = vrot.slane %v5484_v38, %v19973_v19  ;;  %v15764_v4 = vpop.permute.xlu0 %6424  ;;  %v20507_v38 = vld [vmem:[#allocation281_spill] sm:$0xff] }
 0x8b8   : > { %20499 = vst [vmem:[#allocation95_spill] sm:$0xff] %v15746_v49  ;;  %20502 = vst [vmem:[#allocation98_spill] sm:$0xff] %v15756_v62  ;;  %v3915_v22 = vsel %vm2805_vm2, %v15715_v2, %v13460_v27  ;;  %v15767_v17 = vrot.slane %v5493_v15, %v19973_v19  ;;  %v15771_v0 = vcombine.high %v15603_v41, %v20057_v40 }
 0x8b9   : > { %20503 = vst [vmem:[#allocation100_spill] sm:$0xff] %v15759_v3  ;;  %20504 = vst [vmem:[#allocation216_spill] sm:$0xff] %v15764_v4  ;;  %v5754_v24 = vcombine.low %v14836_v36, %v4191_v57  ;;  %v3776_v44 = vsel %vm2807_vm5, %v15694_v54, %v3775_v39  ;;  %v3831_v7 = vsel %vm2805_vm2, %v15725_v42, %v20507_v38  ;;  %6538 = vrot.lane.b32.xlu1 %v15759_v3, %s10395_s26  ;;  %v20510_v38 = vld [vmem:[#allocation407_spill] sm:$0xff]  ;;  %v15805_v13 = vpop.permute.xlu1 %6426 }
 0x8ba   : > { %20505 = vst [vmem:[#allocation102_spill] sm:$0xff] %v15767_v17  ;;  %20506 = vst [vmem:[#allocation97_spill] sm:$0xff] %v15771_v0  ;;  %v15783_v27 = vcombine.high %v15687_v55, %v20057_v40  ;;  %v15787_v15 = vcombine.high %v15730_v10, %v20057_v40  ;;  %v4197_v36 = vsel %vm2809_vm6, %v15653_v60, %v4196_v31  ;;  %6540 = vrot.lane.b32.xlu0 %v15767_v17, %s10395_s26 }
 0x8bb   : > { %v3805_v57 = vsel %vm2809_vm6, %v15662_v14, %v3804_v1  ;;  %v3860_v39 = vsel %vm2807_vm5, %v15705_v20, %v3859_v23  ;;  %v3887_v47 = vsel %vm2805_vm2, %v15741_v52, %v20510_v38  ;;  %v4202_v21 = vsel %vm2805_vm2, %v15749_v12, %v20511_v26  ;;  %20512 = vst [vmem:[#allocation344_spill] sm:$0xff] %v15805_v13  ;;  %v15819_v26 = vpop.permute.xlu0 %6428 }
 0x8bc   : > { %20508 = vst [vmem:[#allocation152_spill] sm:$0xff] %v15783_v27  ;;  %20509 = vst [vmem:[#allocation99_spill] sm:$0xff] %v15787_v15  ;;  %v3916_v31 = vsel %vm2807_vm5, %v15715_v2, %v3915_v22  ;;  %v15809_v1 = vcombine.high %v15733_v25, %v20057_v40  ;;  %v15813_v23 = vcombine.high %v15746_v49, %v20057_v40 }
 0x8bd   : > { %v3777_v38 = vsel %vm2809_vm6, %v15694_v54, %v3776_v44  ;;  %v3832_v62 = vsel %vm2807_vm5, %v15725_v42, %v3831_v7  ;;  %20515 = vst [vmem:[#allocation280_spill] sm:$0xff] %v15819_v26  ;;  %v15823_v22 = vcombine.high %v15720_v37, %v20057_v40  ;;  %v15826_v13 = vrot.slane %v5754_v24, %v19973_v19  ;;  %v20518_v37 = vld [vmem:[#allocation110_spill] sm:$0xff] }
 0x8be   : > { %20513 = vst [vmem:[#allocation215_spill] sm:$0xff] %v15809_v1  ;;  %20514 = vst [vmem:[#allocation101_spill] sm:$0xff] %v15813_v23  ;;  %v15830_v4 = vsel %vm2811_vm7, %v15653_v60, %v4197_v36  ;;  %v3806_v29 = vsel %vm2811_vm7, %v15662_v14, %v3805_v57  ;;  %v3861_v44 = vsel %vm2809_vm6, %v15705_v20, %v3860_v39  ;;  %6542 = vrot.lane.b32.xlu1 %v15434_v32, %s10395_s26  ;;  %v20519_v60 = vld [vmem:[#allocation112_spill] sm:$0xff] }
 0x8bf   : > { %20516 = vst [vmem:[#allocation151_spill] sm:$0xff] %v15823_v22  ;;  %20517 = vst [vmem:[#allocation406_spill] sm:$0xff] %v15826_v13  ;;  %v3888_v7 = vsel %vm2807_vm5, %v15741_v52, %v3887_v47  ;;  %v4203_v24 = vsel %vm2807_vm5, %v15749_v12, %v4202_v21  ;;  %v15843_v26 = vrot.slane %v20518_v37, 7  ;;  %v15846_v36 = vrot.slane %v20519_v60, 7  ;;  %6544 = vrot.lane.b32.xlu0 %v15823_v22, %s10395_s26  ;;  %v20520_v57 = vld [vmem:[#allocation220_spill] sm:$0xff]  ;;  %v15859_v37 = vpop.permute.xlu1 %6430  ;;  %v15869_v22 = vpop.permute.xlu0 %6432 }
 0x8c0   : > { %v3917_v14 = vsel %vm2809_vm6, %v15715_v2, %v3916_v31  ;;  %v3778_v47 = vsel %vm2811_vm7, %v15694_v54, %v3777_v38  ;;  %v15855_v39 = vrot.slane %v20520_v57, 7  ;;  %v3833_v21 = vsel %vm2809_vm6, %v15725_v42, %v3832_v62  ;;  %20521 = vst [vmem:[#allocation104_spill] sm:$0xff] %v15859_v37  ;;  %20523 = vst [vmem:[#allocation279_spill] sm:$0xff] %v15869_v22  ;;  %v20525_v62 = vld [vmem:[#allocation114_spill] sm:$0xff]  ;;  %v20526_v37 = vld [vmem:[#allocation116_spill] sm:$0xff] }
 0x8c1   : > { %v15863_v60 = vcombine.high %v15759_v3, %v20057_v40  ;;  %v3862_v31 = vsel %vm2811_vm7, %v15705_v20, %v3861_v44  ;;  %v3889_v32 = vsel %vm2809_vm6, %v15741_v52, %v3888_v7  ;;  %v15873_v54 = vcombine.high %v15767_v17, %v20057_v40  ;;  %v20533_v22 = vld [vmem:[#allocation219_spill] sm:$0xff] }
 0x8c2   : > { %v5511_v38 = vcombine.low %v3778_v47, %v3806_v29  ;;  %v15876_v57 = vrot.slane %v20525_v62, 7  ;;  %v15879_v30 = vrot.slane %v20526_v37, 7  ;;  %v3918_v3 = vsel %vm2811_vm7, %v15715_v2, %v3917_v14  ;;  %v20528_v29 = vld [vmem:[#allocation109_spill] sm:$0xff]  ;;  %v20529_v47 = vld [vmem:[#allocation156_spill] sm:$0xff]  ;;  %v20530_v14 = vld [vmem:[#allocation111_spill] sm:$0xff] }
 0x8c3   : > { %20522 = vst [vmem:[#allocation343_spill] sm:$0xff] %v15863_v60  ;;  %20524 = vst [vmem:[#allocation405_spill] sm:$0xff] %v15873_v54  ;;  %6546 = vrot.lane.b32.xlu1 %v15863_v60, %s10395_s26  ;;  %v15887_v20 = vcombine.high %v15826_v13, %v20057_v40  ;;  %v4204_v44 = vsel %vm2809_vm6, %v15749_v12, %v4203_v24  ;;  %v4405_v7 = vsel %vm2805_vm2, %v15843_v26, %v20528_v29  ;;  %v20531_v60 = vld [vmem:[#allocation348_spill] sm:$0xff]  ;;  %v15909_v29 = vpop.permute.xlu1 %6434 }
 0x8c4   : > { %v15895_v37 = vrot.slane %v20529_v47, 7  ;;  %v3834_v2 = vsel %vm2811_vm7, %v15725_v42, %v3833_v21  ;;  %6548 = vrot.lane.b32.xlu0 %v15873_v54, %s10395_s26  ;;  %v4412_v62 = vsel %vm2805_vm2, %v15846_v36, %v20530_v14  ;;  %v15905_v17 = vrot.slane %v20531_v60, 7  ;;  %20532 = vst [vmem:[#allocation106_spill] sm:$0xff] %v15909_v29  ;;  %v15917_v54 = vpop.permute.xlu0 %6436 }
 0x8c5   : > { %20527 = vst [vmem:[#allocation103_spill] sm:$0xff] %v15887_v20  ;;  %v3890_v24 = vsel %vm2811_vm7, %v15741_v52, %v3889_v32  ;;  %v5520_v47 = vcombine.low %v3834_v2, %v3862_v31  ;;  %v3810_v42 = vsel %vm2805_vm2, %v15855_v39, %v20533_v22  ;;  %v15915_v21 = vrot.slane %v13483_v51, 7  ;;  %20534 = vst [vmem:[#allocation218_spill] sm:$0xff] %v15917_v54  ;;  %v20537_v52 = vld [vmem:[#allocation115_spill] sm:$0xff]  ;;  %v20538_v2 = vld [vmem:[#allocation284_spill] sm:$0xff] }
 0x8c6   : > { %v15920_v14 = vrot.slane %v5511_v38, %v19973_v19  ;;  %v5529_v60 = vcombine.low %v3890_v24, %v3918_v3  ;;  %v4419_v32 = vsel %vm2805_vm2, %v15876_v57, %v20536_v16  ;;  %v4426_v31 = vsel %vm2805_vm2, %v15879_v30, %v20537_v52  ;;  %v20539_v16 = vld [vmem:[#allocation155_spill] sm:$0xff]  ;;  %v20540_v24 = vld [vmem:[#allocation410_spill] sm:$0xff] }
 0x8c7   : > { %v15929_v29 = vrot.slane %v20538_v2, 7  ;;  %6550 = vrot.lane.b32.xlu1 %v15383_v58, %s10395_s26  ;;  %v5790_v51 = vcombine.low %v14887_v18, %v15830_v4  ;;  %v4205_v3 = vsel %vm2811_vm7, %v15749_v12, %v4204_v44  ;;  %v4406_v22 = vsel %vm2807_vm5, %v15843_v26, %v4405_v7  ;;  %v20541_v12 = vld [vmem:[#allocation347_spill] sm:$0xff]  ;;  %v15954_v44 = vpop.permute.xlu1 %6438 }
 0x8c8   : > { %20535 = vst [vmem:[#allocation154_spill] sm:$0xff] %v15920_v14  ;;  %v3782_v38 = vsel %vm2805_vm2, %v15895_v37, %v20539_v16  ;;  %v15943_v52 = vrot.slane %v20540_v24, 7  ;;  %6552 = vrot.lane.b32.xlu0 %v15920_v14, %s10395_s26  ;;  %v4413_v2 = vsel %vm2807_vm5, %v15846_v36, %v4412_v62  ;;  %v3811_v18 = vsel %vm2807_vm5, %v15855_v39, %v3810_v42  ;;  %v15966_v42 = vpop.permute.xlu0 %6440 }
 0x8c9   : > { %v3866_v4 = vsel %vm2805_vm2, %v15905_v17, %v20541_v12  ;;  %20542 = vst [vmem:[#allocation105_spill] sm:$0xff] %v15954_v44  ;;  %v15957_v7 = vrot.slane %v5520_v47, %v19973_v19  ;;  %v4420_v16 = vsel %vm2807_vm5, %v15876_v57, %v4419_v32  ;;  %v4427_v24 = vsel %vm2807_vm5, %v15879_v30, %v4426_v31  ;;  %v20546_v44 = vld [vmem:[#allocation283_spill] sm:$0xff] }
 0x8ca   : > { %v3922_v62 = vsel %vm2805_vm2, %v15915_v21, %v13476_v46  ;;  %20544 = vst [vmem:[#allocation217_spill] sm:$0xff] %v15966_v42  ;;  %v15969_v58 = vrot.slane %v5529_v60, %v19973_v19  ;;  %v4407_v12 = vsel %vm2809_vm6, %v15843_v26, %v4406_v22  ;;  %v3783_v47 = vsel %vm2807_vm5, %v15895_v37, %v3782_v38  ;;  %v20548_v38 = vld [vmem:[#allocation409_spill] sm:$0xff] }
 0x8cb   : > { %20543 = vst [vmem:[#allocation346_spill] sm:$0xff] %v15957_v7  ;;  %v3838_v32 = vsel %vm2805_vm2, %v15929_v29, %v20546_v44  ;;  %6554 = vrot.lane.b32.xlu1 %v15957_v7, %s10395_s26  ;;  %v15981_v46 = vrot.slane %v5790_v51, %v19973_v19  ;;  %v4414_v60 = vsel %vm2809_vm6, %v15846_v36, %v4413_v2 }
 0x8cc   : > { %20545 = vst [vmem:[#allocation282_spill] sm:$0xff] %v15969_v58  ;;  %v3812_v31 = vsel %vm2809_vm6, %v15855_v39, %v3811_v18  ;;  %v3867_v22 = vsel %vm2807_vm5, %v15905_v17, %v3866_v4  ;;  %v3894_v42 = vsel %vm2805_vm2, %v15943_v52, %v20548_v38  ;;  %6556 = vrot.lane.b32.xlu0 %v15969_v58, %s10395_s26  ;;  %v16000_v18 = vpop.permute.xlu1 %6442 }
 0x8cd   : > { %20547 = vst [vmem:[#allocation153_spill] sm:$0xff] %v15981_v46  ;;  %v4421_v51 = vsel %vm2809_vm6, %v15876_v57, %v4420_v16  ;;  %v4428_v44 = vsel %vm2809_vm6, %v15879_v30, %v4427_v24  ;;  %v3923_v2 = vsel %vm2807_vm5, %v15915_v21, %v3922_v62  ;;  %20549 = vst [vmem:[#allocation408_spill] sm:$0xff] %v16000_v18  ;;  %v16009_v16 = vpop.permute.xlu0 %6444 }
 0x8ce   : > { %v5826_v4 = vcombine.low %v14978_v50, %v4205_v3  ;;  %v4408_v54 = vsel %vm2811_vm7, %v15843_v26, %v4407_v12  ;;  %v3784_v38 = vsel %vm2809_vm6, %v15895_v37, %v3783_v47  ;;  %v3839_v34 = vsel %vm2807_vm5, %v15929_v29, %v3838_v32  ;;  %20550 = vst [vmem:[#allocation108_spill] sm:$0xff] %v16009_v16  ;;  %v20552_v32 = vld [vmem:[#allocation158_spill] sm:$0xff]  ;;  %v20625_v16 = vld [vmem:[#allocation413_spill] sm:$0xff] }
 0x8cf   : > { %v16013_v24 = vcombine.high %v15920_v14, %v20057_v40  ;;  %v4415_v62 = vsel %vm2811_vm7, %v15846_v36, %v4414_v60  ;;  %v3813_v50 = vsel %vm2811_vm7, %v15855_v39, %v3812_v31  ;;  %v3868_v26 = vsel %vm2809_vm6, %v15905_v17, %v3867_v22  ;;  %6558 = vrot.lane.b32.xlu1 %v15438_v43, %s10395_s26  ;;  %v20553_v60 = vld [vmem:[#allocation222_spill] sm:$0xff]  ;;  %v20577_v43 = vld [vmem:[#allocation159_spill] sm:$0xff] }
 0x8d0   : > { %v3895_v3 = vsel %vm2807_vm5, %v15943_v52, %v3894_v42  ;;  %v4422_v12 = vsel %vm2811_vm7, %v15876_v57, %v4421_v51  ;;  %v4429_v47 = vsel %vm2811_vm7, %v15879_v30, %v4428_v44  ;;  %v16030_v36 = vrot.slane %v20552_v32, 7  ;;  %v16043_v22 = vpop.permute.xlu1 %6446 }
 0x8d1   : > { %20551 = vst [vmem:[#allocation345_spill] sm:$0xff] %v16013_v24  ;;  %v3924_v39 = vsel %vm2809_vm6, %v15915_v21, %v3923_v2  ;;  %6560 = vrot.lane.b32.xlu0 %v16013_v24, %s10395_s26  ;;  %v3785_v42 = vsel %vm2811_vm7, %v15895_v37, %v3784_v38  ;;  %v16039_v31 = vrot.slane %v20553_v60, 7  ;;  %v3840_v57 = vsel %vm2809_vm6, %v15929_v29, %v3839_v34  ;;  %v16053_v2 = vpop.permute.xlu0 %6448  ;;  %v20581_v24 = vld [vmem:[#allocation285_spill] sm:$0xff] }
 0x8d2   : > { %20554 = vst [vmem:[#allocation281_spill] sm:$0xff] %v16043_v22  ;;  %v16047_v30 = vcombine.high %v15957_v7, %v20057_v40  ;;  %v3869_v51 = vsel %vm2811_vm7, %v15905_v17, %v3868_v26  ;;  %v3896_v44 = vsel %vm2809_vm6, %v15943_v52, %v3895_v3  ;;  %20556 = vst [vmem:[#allocation107_spill] sm:$0xff] %v16053_v2  ;;  %v20559_v3 = vld [vmem:[#allocation157_spill] sm:$0xff] }
 0x8d3   : > { %v16057_v37 = vcombine.high %v15969_v58, %v20057_v40  ;;  %v5547_v38 = vcombine.low %v3785_v42, %v3813_v50  ;;  %v3925_v34 = vsel %vm2811_vm7, %v15915_v21, %v3924_v39  ;;  %v16064_v32 = vrot.slane %v5826_v4, %v19973_v19  ;;  %v20560_v4 = vld [vmem:[#allocation160_spill] sm:$0xff]  ;;  %v20586_v58 = vld [vmem:[#allocation161_spill] sm:$0xff] }
 0x8d4   : > { %20555 = vst [vmem:[#allocation407_spill] sm:$0xff] %v16047_v30  ;;  %6562 = vrot.lane.b32.xlu1 %v16047_v30, %s10395_s26  ;;  %v5862_v17 = vcombine.low %v15067_v9, %v4408_v54  ;;  %v5898_v26 = vcombine.low %v15079_v48, %v4415_v62  ;;  %v3985_v60 = vsel %vm2805_vm2, %v16030_v36, %v20559_v3  ;;  %v16078_v42 = vrot.slane %v20560_v4, 7  ;;  %v20561_v9 = vld [vmem:[#allocation350_spill] sm:$0xff]  ;;  %v16085_v62 = vpop.permute.xlu1 %6450 }
 0x8d5   : > { %20557 = vst [vmem:[#allocation110_spill] sm:$0xff] %v16057_v37  ;;  %20558 = vst [vmem:[#allocation112_spill] sm:$0xff] %v16064_v32  ;;  %v3841_v50 = vsel %vm2811_vm7, %v15929_v29, %v3840_v57  ;;  %6564 = vrot.lane.b32.xlu0 %v16057_v37, %s10395_s26  ;;  %v5934_v21 = vcombine.low %v15357_v59, %v4422_v12  ;;  %v5970_v39 = vcombine.low %v15400_v6, %v4429_v47  ;;  %v20563_v29 = vld [vmem:[#allocation221_spill] sm:$0xff]  ;;  %v16093_v6 = vpop.permute.xlu0 %6452  ;;  %v20566_v4 = vld [vmem:[#allocation286_spill] sm:$0xff] }
 0x8d6   : > { %v16081_v54 = vrot.slane %v20561_v9, 7  ;;  %v3897_v48 = vsel %vm2811_vm7, %v15943_v52, %v3896_v44  ;;  %20562 = vst [vmem:[#allocation220_spill] sm:$0xff] %v16085_v62  ;;  %v5556_v3 = vcombine.low %v3841_v50, %v3869_v51  ;;  %v4013_v57 = vsel %vm2805_vm2, %v16039_v31, %v20563_v29  ;;  %20564 = vst [vmem:[#allocation114_spill] sm:$0xff] %v16093_v6 }
 0x8d7   : > { %v16091_v59 = vrot.slane %v13502_v56, 7  ;;  %v16096_v12 = vrot.slane %v5547_v38, %v19973_v19  ;;  %v5565_v47 = vcombine.low %v3897_v48, %v3925_v34  ;;  %v16099_v9 = vrot.slane %v20566_v4, 7  ;;  %v20570_v38 = vld [vmem:[#allocation412_spill] sm:$0xff] }
 0x8d8   : > { %6566 = vrot.lane.b32.xlu1 %v15461_v11, %s10395_s26  ;;  %v16105_v52 = vcombine.high %v15981_v46, %v20057_v40  ;;  %v16108_v51 = vrot.slane %v5862_v17, %v19973_v19  ;;  %v16111_v56 = vrot.slane %v5898_v26, %v19973_v19  ;;  %v3986_v44 = vsel %vm2807_vm5, %v16030_v36, %v3985_v60  ;;  %v20573_v17 = vld [vmem:[#allocation162_spill] sm:$0xff]  ;;  %v20574_v60 = vld [vmem:[#allocation349_spill] sm:$0xff] }
 0x8d9   : > { %20565 = vst [vmem:[#allocation116_spill] sm:$0xff] %v16096_v12  ;;  %v16116_v34 = vrot.slane %v20570_v38, 7  ;;  %6568 = vrot.lane.b32.xlu0 %v16096_v12, %s10395_s26  ;;  %v16122_v50 = vcombine.high %v16064_v32, %v20057_v40  ;;  %v16125_v48 = vrot.slane %v5934_v21, %v19973_v19  ;;  %v16128_v29 = vrot.slane %v20573_v17, 7  ;;  %v16135_v38 = vpop.permute.xlu1 %6454  ;;  %v16146_v30 = vpop.permute.xlu0 %6456 }
 0x8da   : > { %20567 = vst [vmem:[#allocation109_spill] sm:$0xff] %v16105_v52  ;;  %20568 = vst [vmem:[#allocation156_spill] sm:$0xff] %v16108_v51  ;;  %v4014_v26 = vsel %vm2807_vm5, %v16039_v31, %v4013_v57  ;;  %v4069_v4 = vsel %vm2805_vm2, %v16081_v54, %v20574_v60  ;;  %v16138_v11 = vrot.slane %v5556_v3, %v19973_v19 }
 0x8db   : > { %20569 = vst [vmem:[#allocation111_spill] sm:$0xff] %v16111_v56  ;;  %20571 = vst [vmem:[#allocation348_spill] sm:$0xff] %v16122_v50  ;;  %v3992_v21 = vsel %vm2805_vm2, %v16078_v42, %v20577_v43  ;;  %v4125_v17 = vsel %vm2805_vm2, %v16091_v59, %v13494_v63  ;;  %v16149_v57 = vrot.slane %v5565_v47, %v19973_v19 }
 0x8dc   : > { %20572 = vst [vmem:[#allocation219_spill] sm:$0xff] %v16125_v48  ;;  %20575 = vst [vmem:[#allocation113_spill] sm:$0xff] %v16135_v38  ;;  %v16152_v60 = vrot.slane %v5970_v39, %v19973_v19  ;;  %v3987_v3 = vsel %vm2809_vm6, %v16030_v36, %v3986_v44  ;;  %v4041_v37 = vsel %vm2805_vm2, %v16099_v9, %v20581_v24  ;;  %6570 = vrot.lane.b32.xlu1 %v16138_v11, %s10395_s26  ;;  %v20584_v44 = vld [vmem:[#allocation411_spill] sm:$0xff] }
 0x8dd   : > { %20576 = vst [vmem:[#allocation115_spill] sm:$0xff] %v16138_v11  ;;  %20578 = vst [vmem:[#allocation284_spill] sm:$0xff] %v16146_v30  ;;  %v16163_v63 = vcombine.high %v16108_v51, %v20057_v40  ;;  %v16167_v43 = vcombine.high %v16111_v56, %v20057_v40  ;;  %v4015_v39 = vsel %vm2809_vm6, %v16039_v31, %v4014_v26  ;;  %6572 = vrot.lane.b32.xlu0 %v16149_v57, %s10395_s26  ;;  %v20587_v30 = vld [vmem:[#allocation164_spill] sm:$0xff]  ;;  %v16192_v38 = vpop.permute.xlu1 %6458  ;;  %v16198_v22 = vpop.permute.xlu0 %6460 }
 0x8de   : > { %20579 = vst [vmem:[#allocation155_spill] sm:$0xff] %v16149_v57  ;;  %20580 = vst [vmem:[#allocation410_spill] sm:$0xff] %v16152_v60  ;;  %v4070_v47 = vsel %vm2807_vm5, %v16081_v54, %v4069_v4  ;;  %v4097_v24 = vsel %vm2805_vm2, %v16116_v34, %v20584_v44  ;;  %v16180_v7 = vcombine.high %v16125_v48, %v20057_v40  ;;  %v16188_v4 = vrot.slane %v20587_v30, 7  ;;  %v20592_v30 = vld [vmem:[#allocation166_spill] sm:$0xff] }
 0x8df   : > { %20582 = vst [vmem:[#allocation347_spill] sm:$0xff] %v16163_v63  ;;  %20583 = vst [vmem:[#allocation283_spill] sm:$0xff] %v16167_v43  ;;  %v3993_v14 = vsel %vm2807_vm5, %v16078_v42, %v3992_v21  ;;  %v3999_v26 = vsel %vm2805_vm2, %v16128_v29, %v20586_v58  ;;  %v4126_v44 = vsel %vm2807_vm5, %v16091_v59, %v4125_v17  ;;  %v16209_v17 = vrot.slane %v20592_v30, 7  ;;  %v20593_v30 = vld [vmem:[#allocation168_spill] sm:$0xff] }
 0x8e0   : > { %20585 = vst [vmem:[#allocation409_spill] sm:$0xff] %v16180_v7  ;;  %20588 = vst [vmem:[#allocation158_spill] sm:$0xff] %v16192_v38  ;;  %v3988_v62 = vsel %vm2811_vm7, %v16030_v36, %v3987_v3  ;;  %v4042_v6 = vsel %vm2807_vm5, %v16099_v9, %v4041_v37  ;;  %v16202_v21 = vcombine.high %v16096_v12, %v20057_v40  ;;  %6574 = vrot.lane.b32.xlu1 %v15510_v61, %s10395_s26 }
 0x8e1   : > { %20589 = vst [vmem:[#allocation222_spill] sm:$0xff] %v16198_v22  ;;  %v16206_v58 = vcombine.high %v16152_v60, %v20057_v40  ;;  %v4016_v38 = vsel %vm2811_vm7, %v16039_v31, %v4015_v39  ;;  %v4071_v36 = vsel %vm2809_vm6, %v16081_v54, %v4070_v47  ;;  %v4098_v37 = vsel %vm2807_vm5, %v16116_v34, %v4097_v24  ;;  %v20594_v39 = vld [vmem:[#allocation163_spill] sm:$0xff]  ;;  %v20595_v24 = vld [vmem:[#allocation224_spill] sm:$0xff]  ;;  %v16248_v22 = vpop.permute.xlu0 %6464  ;;  %v20601_v60 = vld [vmem:[#allocation170_spill] sm:$0xff] }
 0x8e2   : > { %20590 = vst [vmem:[#allocation157_spill] sm:$0xff] %v16202_v21  ;;  %v3994_v3 = vsel %vm2809_vm6, %v16078_v42, %v3993_v14  ;;  %v4000_v12 = vsel %vm2807_vm5, %v16128_v29, %v3999_v26  ;;  %v4127_v31 = vsel %vm2809_vm6, %v16091_v59, %v4126_v44  ;;  %6576 = vrot.lane.b32.xlu0 %v16202_v21, %s10395_s26  ;;  %v16234_v61 = vrot.slane %v20595_v24, 7  ;;  %v16238_v26 = vpop.permute.xlu1 %6462 }
 0x8e3   : > { %20591 = vst [vmem:[#allocation160_spill] sm:$0xff] %v16206_v58  ;;  %v16224_v58 = vrot.slane %v20593_v30, 7  ;;  %v4006_v47 = vsel %vm2805_vm2, %v16188_v4, %v20594_v39  ;;  %v4043_v14 = vsel %vm2809_vm6, %v16099_v9, %v4042_v6  ;;  %20596 = vst [vmem:[#allocation350_spill] sm:$0xff] %v16238_v26  ;;  %v16242_v30 = vcombine.high %v16138_v11, %v20057_v40  ;;  %v20600_v26 = vld [vmem:[#allocation165_spill] sm:$0xff] }
 0x8e4   : > { %v4072_v44 = vsel %vm2811_vm7, %v16081_v54, %v4071_v36  ;;  %v4099_v21 = vsel %vm2809_vm6, %v16116_v34, %v4098_v37  ;;  %20598 = vst [vmem:[#allocation286_spill] sm:$0xff] %v16248_v22  ;;  %v16252_v39 = vcombine.high %v16149_v57, %v20057_v40  ;;  %v5583_v24 = vcombine.low %v3988_v62, %v4016_v38  ;;  %v20602_v38 = vld [vmem:[#allocation167_spill] sm:$0xff]  ;;  %v20609_v22 = vld [vmem:[#allocation169_spill] sm:$0xff] }
 0x8e5   : > { %20597 = vst [vmem:[#allocation221_spill] sm:$0xff] %v16242_v30  ;;  %v16256_v6 = vsel %vm2811_vm7, %v16078_v42, %v3994_v3  ;;  %v4209_v11 = vsel %vm2805_vm2, %v16209_v17, %v20600_v26  ;;  %v16262_v54 = vrot.slane %v20601_v60, 7  ;;  %v4128_v36 = vsel %vm2811_vm7, %v16091_v59, %v4127_v31  ;;  %6578 = vrot.lane.b32.xlu1 %v16242_v30, %s10395_s26  ;;  %v20603_v59 = vld [vmem:[#allocation223_spill] sm:$0xff]  ;;  %v20604_v31 = vld [vmem:[#allocation352_spill] sm:$0xff] }
 0x8e6   : > { %20599 = vst [vmem:[#allocation412_spill] sm:$0xff] %v16252_v39  ;;  %v4001_v62 = vsel %vm2809_vm6, %v16128_v29, %v4000_v12  ;;  %v4007_v42 = vsel %vm2807_vm5, %v16188_v4, %v4006_v47  ;;  %v4216_v37 = vsel %vm2805_vm2, %v16224_v58, %v20602_v38  ;;  %v4044_v60 = vsel %vm2811_vm7, %v16099_v9, %v4043_v14  ;;  %v16287_v47 = vpop.permute.xlu1 %6466  ;;  %v20606_v9 = vld [vmem:[#allocation189_spill] sm:$0xff] }
 0x8e7   : > { %6580 = vrot.lane.b32.xlu0 %v16252_v39, %s10395_s26  ;;  %v4020_v3 = vsel %vm2805_vm2, %v16234_v61, %v20603_v59  ;;  %v16283_v26 = vrot.slane %v20604_v31, 7  ;;  %v4100_v12 = vsel %vm2811_vm7, %v16116_v34, %v4099_v21  ;;  %20605 = vst [vmem:[#allocation162_spill] sm:$0xff] %v16287_v47  ;;  %v5592_v30 = vcombine.low %v4044_v60, %v4072_v44  ;;  %v16294_v39 = vpop.permute.xlu0 %6468  ;;  %v20610_v21 = vld [vmem:[#allocation172_spill] sm:$0xff]  ;;  %v20617_v47 = vld [vmem:[#allocation125_spill] sm:$0xff] }
 0x8e8   : > { %v4210_v38 = vsel %vm2807_vm5, %v16209_v17, %v4209_v11  ;;  %v16292_v14 = vrot.slane %v20606_v9, 7  ;;  %20607 = vst [vmem:[#allocation349_spill] sm:$0xff] %v16294_v39  ;;  %v16297_v57 = vrot.slane %v5583_v24, %v19973_v19  ;;  %v5601_v59 = vcombine.low %v4100_v12, %v4128_v36  ;;  %v20611_v11 = vld [vmem:[#allocation288_spill] sm:$0xff] }
 0x8e9   : > { %v4217_v31 = vsel %vm2807_vm5, %v16224_v58, %v4216_v37  ;;  %v4223_v34 = vsel %vm2805_vm2, %v16262_v54, %v20609_v22  ;;  %v16305_v44 = vrot.slane %v20610_v21, 7  ;;  %v16308_v60 = vrot.slane %v20611_v11, 7  ;;  %6582 = vrot.lane.b32.xlu1 %v15603_v41, %s10395_s26  ;;  %v20612_v37 = vld [vmem:[#allocation226_spill] sm:$0xff] }
 0x8ea   : > { %20608 = vst [vmem:[#allocation159_spill] sm:$0xff] %v16297_v57  ;;  %v16314_v24 = vsel %vm2811_vm7, %v16128_v29, %v4001_v62  ;;  %v4021_v36 = vsel %vm2807_vm5, %v16234_v61, %v4020_v3  ;;  %v16319_v12 = vrot.slane %v20612_v37, 7  ;;  %v20613_v22 = vld [vmem:[#allocation414_spill] sm:$0xff]  ;;  %v4008_v21 = vsel %vm2809_vm6, %v16188_v4, %v4007_v42  ;;  %v20614_v29 = vld [vmem:[#allocation351_spill] sm:$0xff]  ;;  %v16333_v3 = vpop.permute.xlu1 %6470 }
 0x8eb   : > { %v16322_v9 = vrot.slane %v20613_v22, 7  ;;  %6584 = vrot.lane.b32.xlu0 %v16297_v57, %s10395_s26  ;;  %v4211_v11 = vsel %vm2809_vm6, %v16209_v17, %v4210_v38  ;;  %v4076_v62 = vsel %vm2805_vm2, %v16283_v26, %v20614_v29  ;;  %20615 = vst [vmem:[#allocation285_spill] sm:$0xff] %v16333_v3  ;;  %v16336_v37 = vrot.slane %v5592_v30, %v19973_v19  ;;  %v16345_v38 = vpop.permute.xlu0 %6472  ;;  %v20620_v29 = vld [vmem:[#allocation171_spill] sm:$0xff]  ;;  %v20621_v3 = vld [vmem:[#allocation174_spill] sm:$0xff] }
 0x8ec   : > { %v4218_v22 = vsel %vm2809_vm6, %v16224_v58, %v4217_v31  ;;  %v4224_v41 = vsel %vm2807_vm5, %v16262_v54, %v4223_v34  ;;  %v4132_v42 = vsel %vm2805_vm2, %v16292_v14, %v20617_v47  ;;  %20618 = vst [vmem:[#allocation161_spill] sm:$0xff] %v16345_v38  ;;  %v16348_v39 = vrot.slane %v5601_v59, %v19973_v19  ;;  %v20622_v34 = vld [vmem:[#allocation287_spill] sm:$0xff]  ;;  %v20623_v47 = vld [vmem:[#allocation176_spill] sm:$0xff]  ;;  %v20624_v38 = vld [vmem:[#allocation225_spill] sm:$0xff] }
 0x8ed   : > { %20616 = vst [vmem:[#allocation411_spill] sm:$0xff] %v16336_v37  ;;  %v4230_v30 = vsel %vm2805_vm2, %v16305_v44, %v20620_v29  ;;  %v16354_v18 = vrot.slane %v20621_v3, 7  ;;  %v4022_v31 = vsel %vm2809_vm6, %v16234_v61, %v4021_v36  ;;  %v4048_v2 = vsel %vm2805_vm2, %v16308_v60, %v20622_v34  ;;  %6586 = vrot.lane.b32.xlu1 %v16336_v37, %s10395_s26 }
 0x8ee   : > { %20619 = vst [vmem:[#allocation164_spill] sm:$0xff] %v16348_v39  ;;  %v16364_v59 = vrot.slane %v20623_v47, 7  ;;  %v4027_v29 = vsel %vm2805_vm2, %v16319_v12, %v20624_v38  ;;  %v4077_v3 = vsel %vm2807_vm5, %v16283_v26, %v4076_v62  ;;  %v4104_v36 = vsel %vm2805_vm2, %v16322_v9, %v20625_v16  ;;  %v16390_v7 = vpop.permute.xlu1 %6474 }
 0x8ef   : > { %6588 = vrot.lane.b32.xlu0 %v16348_v39, %s10395_s26  ;;  %v16378_v34 = vsel %vm2811_vm7, %v16188_v4, %v4008_v21  ;;  %v16382_v47 = vsel %vm2811_vm7, %v16209_v17, %v4211_v11  ;;  %v16386_v38 = vsel %vm2811_vm7, %v16224_v58, %v4218_v22  ;;  %v4133_v62 = vsel %vm2807_vm5, %v16292_v14, %v4132_v42  ;;  %v16398_v17 = vpop.permute.xlu0 %6476 }
 0x8f0   : > { %20626 = vst [vmem:[#allocation166_spill] sm:$0xff] %v16390_v7  ;;  %v4225_v16 = vsel %vm2809_vm6, %v16262_v54, %v4224_v41  ;;  %v4023_v4 = vsel %vm2811_vm7, %v16234_v61, %v4022_v31  ;;  %v4049_v21 = vsel %vm2807_vm5, %v16308_v60, %v4048_v2  ;;  %20627 = vst [vmem:[#allocation168_spill] sm:$0xff] %v16398_v17  ;;  %v20629_v2 = vld [vmem:[#allocation173_spill] sm:$0xff]  ;;  %v20630_v31 = vld [vmem:[#allocation175_spill] sm:$0xff] }
 0x8f1   : > { %v16402_v58 = vcombine.high %v16297_v57, %v20057_v40  ;;  %v4231_v11 = vsel %vm2807_vm5, %v16305_v44, %v4230_v30  ;;  %v4028_v22 = vsel %vm2807_vm5, %v16319_v12, %v4027_v29  ;;  %v4078_v41 = vsel %vm2809_vm6, %v16283_v26, %v4077_v3  ;;  %6590 = vrot.lane.b32.xlu1 %v15771_v0, %s10395_s26  ;;  %v20631_v57 = vld [vmem:[#allocation178_spill] sm:$0xff]  ;;  %v20632_v3 = vld [vmem:[#allocation180_spill] sm:$0xff] }
 0x8f2   : > { %v4105_v61 = vsel %vm2807_vm5, %v16322_v9, %v4104_v36  ;;  %v4433_v42 = vsel %vm2805_vm2, %v16354_v18, %v20629_v2  ;;  %v4440_v30 = vsel %vm2805_vm2, %v16364_v59, %v20630_v31  ;;  %v16421_v7 = vrot.slane %v20631_v57, 7  ;;  %v16432_v2 = vpop.permute.xlu1 %6478 }
 0x8f3   : > { %20628 = vst [vmem:[#allocation163_spill] sm:$0xff] %v16402_v58  ;;  %v4134_v29 = vsel %vm2809_vm6, %v16292_v14, %v4133_v62  ;;  %6592 = vrot.lane.b32.xlu0 %v16402_v58, %s10395_s26  ;;  %v16428_v36 = vrot.slane %v20632_v3, 7  ;;  %v4050_v0 = vsel %vm2809_vm6, %v16308_v60, %v4049_v21  ;;  %20633 = vst [vmem:[#allocation224_spill] sm:$0xff] %v16432_v2  ;;  %v16445_v17 = vpop.permute.xlu0 %6480 }
 0x8f4   : > { %v16436_v31 = vcombine.high %v16336_v37, %v20057_v40  ;;  %v5619_v57 = vcombine.low %v16256_v6, %v4023_v4  ;;  %v4029_v62 = vsel %vm2809_vm6, %v16319_v12, %v4028_v22  ;;  %v4079_v58 = vsel %vm2811_vm7, %v16283_v26, %v4078_v41  ;;  %20635 = vst [vmem:[#allocation170_spill] sm:$0xff] %v16445_v17  ;;  %v20637_v4 = vld [vmem:[#allocation228_spill] sm:$0xff] }
 0x8f5   : > { %v4106_v3 = vsel %vm2809_vm6, %v16322_v9, %v4105_v61  ;;  %v16449_v21 = vcombine.high %v16348_v39, %v20057_v40  ;;  %v16453_v37 = vsel %vm2811_vm7, %v16262_v54, %v4225_v16  ;;  %v4232_v6 = vsel %vm2809_vm6, %v16305_v44, %v4231_v11  ;;  %v20638_v54 = vld [vmem:[#allocation177_spill] sm:$0xff]  ;;  %v20641_v39 = vld [vmem:[#allocation179_spill] sm:$0xff] }
 0x8f6   : > { %20634 = vst [vmem:[#allocation165_spill] sm:$0xff] %v16436_v31  ;;  %v16458_v22 = vrot.slane %v20637_v4, 7  ;;  %v4135_v26 = vsel %vm2811_vm7, %v16292_v14, %v4134_v29  ;;  %6594 = vrot.lane.b32.xlu1 %v16436_v31, %s10395_s26  ;;  %v4434_v41 = vsel %vm2807_vm5, %v16354_v18, %v4433_v42  ;;  %v4441_v61 = vsel %vm2807_vm5, %v16364_v59, %v4440_v30  ;;  %v20639_v29 = vld [vmem:[#allocation354_spill] sm:$0xff]  ;;  %v16482_v30 = vpop.permute.xlu1 %6482 }
 0x8f7   : > { %20636 = vst [vmem:[#allocation167_spill] sm:$0xff] %v16449_v21  ;;  %v4447_v16 = vsel %vm2805_vm2, %v16421_v7, %v20638_v54  ;;  %v4051_v11 = vsel %vm2811_vm7, %v16308_v60, %v4050_v0  ;;  %6596 = vrot.lane.b32.xlu0 %v16449_v21, %s10395_s26  ;;  %v4030_v14 = vsel %vm2811_vm7, %v16319_v12, %v4029_v62  ;;  %v16478_v4 = vrot.slane %v20639_v29, 7  ;;  %v20642_v0 = vld [vmem:[#allocation380_spill] sm:$0xff]  ;;  %v16490_v21 = vpop.permute.xlu0 %6484 }
 0x8f8   : > { %v4107_v42 = vsel %vm2811_vm7, %v16322_v9, %v4106_v3  ;;  %20640 = vst [vmem:[#allocation223_spill] sm:$0xff] %v16482_v30  ;;  %v5628_v31 = vcombine.low %v4051_v11, %v4079_v58  ;;  %v4454_v54 = vsel %vm2805_vm2, %v16428_v36, %v20641_v39  ;;  %v16488_v60 = vrot.slane %v20642_v0, 7  ;;  %20643 = vst [vmem:[#allocation352_spill] sm:$0xff] %v16490_v21  ;;  %v20645_v9 = vld [vmem:[#allocation227_spill] sm:$0xff]  ;;  %v20646_v3 = vld [vmem:[#allocation230_spill] sm:$0xff] }
 0x8f9   : > { %v16493_v12 = vrot.slane %v5619_v57, %v19973_v19  ;;  %v5637_v62 = vcombine.low %v4107_v42, %v4135_v26  ;;  %v16497_v29 = vsel %vm2811_vm7, %v16305_v44, %v4232_v6  ;;  %v4034_v58 = vsel %vm2805_vm2, %v16458_v22, %v20645_v9  ;;  %v20647_v39 = vld [vmem:[#allocation290_spill] sm:$0xff]  ;;  %v20648_v6 = vld [vmem:[#allocation416_spill] sm:$0xff] }
 0x8fa   : > { %v16503_v11 = vrot.slane %v20646_v3, 7  ;;  %v16506_v0 = vrot.slane %v20647_v39, 7  ;;  %6598 = vrot.lane.b32.xlu1 %v15687_v55, %s10395_s26  ;;  %v4435_v57 = vsel %vm2809_vm6, %v16354_v18, %v4434_v41  ;;  %v4442_v44 = vsel %vm2809_vm6, %v16364_v59, %v4441_v61  ;;  %v20649_v39 = vld [vmem:[#allocation353_spill] sm:$0xff]  ;;  %v16527_v55 = vpop.permute.xlu1 %6486  ;;  %v20652_v30 = vld [vmem:[#allocation232_spill] sm:$0xff] }
 0x8fb   : > { %20644 = vst [vmem:[#allocation189_spill] sm:$0xff] %v16493_v12  ;;  %v16515_v26 = vrot.slane %v20648_v6, 7  ;;  %6600 = vrot.lane.b32.xlu0 %v16493_v12, %s10395_s26  ;;  %v5655_v42 = vcombine.low %v16314_v24, %v4030_v14  ;;  %v4448_v9 = vsel %vm2807_vm5, %v16421_v7, %v4447_v16  ;;  %v4455_v3 = vsel %vm2807_vm5, %v16428_v36, %v4454_v54  ;;  %v20653_v14 = vld [vmem:[#allocation318_spill] sm:$0xff]  ;;  %v16540_v54 = vpop.permute.xlu0 %6488 }
 0x8fc   : > { %v4083_v41 = vsel %vm2805_vm2, %v16478_v4, %v20649_v39  ;;  %20650 = vst [vmem:[#allocation169_spill] sm:$0xff] %v16527_v55  ;;  %v16530_v61 = vrot.slane %v5628_v31, %v19973_v19  ;;  %v4035_v6 = vsel %vm2807_vm5, %v16458_v22, %v4034_v58  ;;  %v16535_v24 = vrot.slane %v20652_v30, 7  ;;  %20654 = vst [vmem:[#allocation288_spill] sm:$0xff] %v16540_v54  ;;  %v20656_v58 = vld [vmem:[#allocation229_spill] sm:$0xff] }
 0x8fd   : > { %v4139_v16 = vsel %vm2805_vm2, %v16488_v60, %v20653_v14  ;;  %v16543_v2 = vrot.slane %v5637_v62, %v19973_v19  ;;  %v16547_v39 = vsel %vm2811_vm7, %v16354_v18, %v4435_v57  ;;  %v16551_v31 = vsel %vm2811_vm7, %v16364_v59, %v4442_v44  ;;  %v20657_v55 = vld [vmem:[#allocation289_spill] sm:$0xff]  ;;  %v20658_v57 = vld [vmem:[#allocation415_spill] sm:$0xff] }
 0x8fe   : > { %20651 = vst [vmem:[#allocation172_spill] sm:$0xff] %v16530_v61  ;;  %v4237_v30 = vsel %vm2805_vm2, %v16503_v11, %v20656_v58  ;;  %v4055_v14 = vsel %vm2805_vm2, %v16506_v0, %v20657_v55  ;;  %6602 = vrot.lane.b32.xlu1 %v16530_v61, %s10395_s26  ;;  %v4449_v62 = vsel %vm2809_vm6, %v16421_v7, %v4448_v9 }
 0x8ff   : > { %20655 = vst [vmem:[#allocation226_spill] sm:$0xff] %v16543_v2  ;;  %v4084_v18 = vsel %vm2807_vm5, %v16478_v4, %v4083_v41  ;;  %v4111_v59 = vsel %vm2805_vm2, %v16515_v26, %v20658_v57  ;;  %6604 = vrot.lane.b32.xlu0 %v16543_v2, %s10395_s26  ;;  %v16571_v44 = vrot.slane %v5655_v42, %v19973_v19  ;;  %v16579_v41 = vpop.permute.xlu1 %6490  ;;  %v20662_v42 = vld [vmem:[#allocation231_spill] sm:$0xff] }
 0x900   : > { %v4456_v55 = vsel %vm2809_vm6, %v16428_v36, %v4455_v3  ;;  %v4036_v58 = vsel %vm2809_vm6, %v16458_v22, %v4035_v6  ;;  %v4140_v9 = vsel %vm2807_vm5, %v16488_v60, %v4139_v16  ;;  %20660 = vst [vmem:[#allocation351_spill] sm:$0xff] %v16579_v41  ;;  %v16583_v57 = vcombine.high %v16493_v12, %v20057_v40  ;;  %v20663_v3 = vld [vmem:[#allocation234_spill] sm:$0xff]  ;;  %v16595_v16 = vpop.permute.xlu0 %6492  ;;  %v20665_v12 = vld [vmem:[#allocation236_spill] sm:$0xff] }
 0x901   : > { %20659 = vst [vmem:[#allocation414_spill] sm:$0xff] %v16571_v44  ;;  %v4238_v54 = vsel %vm2807_vm5, %v16503_v11, %v4237_v30  ;;  %v4244_v21 = vsel %vm2805_vm2, %v16535_v24, %v20662_v42  ;;  %v16591_v17 = vrot.slane %v20663_v3, 7  ;;  %v4056_v6 = vsel %vm2807_vm5, %v16506_v0, %v4055_v14  ;;  %20664 = vst [vmem:[#allocation171_spill] sm:$0xff] %v16595_v16 }
 0x902   : > { %20661 = vst [vmem:[#allocation125_spill] sm:$0xff] %v16583_v57  ;;  %v16599_v41 = vsel %vm2811_vm7, %v16421_v7, %v4449_v62  ;;  %v16602_v48 = vrot.slane %v20665_v12, 7  ;;  %v4085_v30 = vsel %vm2809_vm6, %v16478_v4, %v4084_v18  ;;  %v4112_v42 = vsel %vm2807_vm5, %v16515_v26, %v4111_v59  ;;  %6606 = vrot.lane.b32.xlu1 %v15783_v27, %s10395_s26  ;;  %v20672_v27 = vld [vmem:[#allocation235_spill] sm:$0xff] }
 0x903   : > { %v16612_v14 = vsel %vm2811_vm7, %v16428_v36, %v4456_v55  ;;  %v4037_v7 = vsel %vm2811_vm7, %v16458_v22, %v4036_v58  ;;  %v4141_v12 = vsel %vm2809_vm6, %v16488_v60, %v4140_v9  ;;  %6608 = vrot.lane.b32.xlu0 %v16583_v57, %s10395_s26  ;;  %v16622_v62 = vcombine.high %v16571_v44, %v20057_v40  ;;  %v16630_v22 = vpop.permute.xlu1 %6494  ;;  %v20669_v58 = vld [vmem:[#allocation233_spill] sm:$0xff] }
 0x904   : > { %v4239_v18 = vsel %vm2809_vm6, %v16503_v11, %v4238_v54  ;;  %v4245_v36 = vsel %vm2807_vm5, %v16535_v24, %v4244_v21  ;;  %v4057_v59 = vsel %vm2809_vm6, %v16506_v0, %v4056_v6  ;;  %20667 = vst [vmem:[#allocation287_spill] sm:$0xff] %v16630_v22  ;;  %v16634_v55 = vcombine.high %v16530_v61, %v20057_v40  ;;  %v16643_v21 = vpop.permute.xlu0 %6496  ;;  %v20673_v61 = vld [vmem:[#allocation238_spill] sm:$0xff] }
 0x905   : > { %20666 = vst [vmem:[#allocation174_spill] sm:$0xff] %v16622_v62  ;;  %v4251_v9 = vsel %vm2805_vm2, %v16591_v17, %v20669_v58  ;;  %v4086_v3 = vsel %vm2811_vm7, %v16478_v4, %v4085_v30  ;;  %v4113_v54 = vsel %vm2809_vm6, %v16515_v26, %v4112_v42  ;;  %20670 = vst [vmem:[#allocation225_spill] sm:$0xff] %v16643_v21  ;;  %v16653_v22 = vrot.slane %v20673_v61, 7  ;;  %v20675_v61 = vld [vmem:[#allocation356_spill] sm:$0xff] }
 0x906   : > { %20668 = vst [vmem:[#allocation176_spill] sm:$0xff] %v16634_v55  ;;  %v16647_v6 = vcombine.high %v16543_v2, %v20057_v40  ;;  %v4258_v57 = vsel %vm2805_vm2, %v16602_v48, %v20672_v27  ;;  %v4142_v58 = vsel %vm2811_vm7, %v16488_v60, %v4141_v12  ;;  %6610 = vrot.lane.b32.xlu1 %v16634_v55, %s10395_s26  ;;  %v20674_v2 = vld [vmem:[#allocation240_spill] sm:$0xff] }
 0x907   : > { %v5691_v4 = vcombine.low %v16378_v34, %v4037_v7  ;;  %v4240_v30 = vsel %vm2811_vm7, %v16503_v11, %v4239_v18  ;;  %v4246_v42 = vsel %vm2809_vm6, %v16535_v24, %v4245_v36  ;;  %v16665_v21 = vrot.slane %v20674_v2, 7  ;;  %v16678_v7 = vpop.permute.xlu1 %6498  ;;  %v20677_v18 = vld [vmem:[#allocation242_spill] sm:$0xff]  ;;  %v20678_v36 = vld [vmem:[#allocation253_spill] sm:$0xff] }
 0x908   : > { %20671 = vst [vmem:[#allocation413_spill] sm:$0xff] %v16647_v6  ;;  %v4058_v27 = vsel %vm2811_vm7, %v16506_v0, %v4057_v59  ;;  %6612 = vrot.lane.b32.xlu0 %v16647_v6, %s10395_s26  ;;  %v4252_v60 = vsel %vm2807_vm5, %v16591_v17, %v4251_v9  ;;  %v16674_v34 = vrot.slane %v20675_v61, 7  ;;  %v4114_v11 = vsel %vm2811_vm7, %v16515_v26, %v4113_v54  ;;  %v16688_v55 = vpop.permute.xlu0 %6500  ;;  %v20680_v61 = vld [vmem:[#allocation237_spill] sm:$0xff]  ;;  %v20681_v26 = vld [vmem:[#allocation244_spill] sm:$0xff] }
 0x909   : > { %20676 = vst [vmem:[#allocation173_spill] sm:$0xff] %v16678_v7  ;;  %v5664_v12 = vcombine.low %v4058_v27, %v4086_v3  ;;  %v4259_v2 = vsel %vm2807_vm5, %v16602_v48, %v4258_v57  ;;  %v16683_v0 = vrot.slane %v20677_v18, 7  ;;  %v16686_v59 = vrot.slane %v20678_v36, 7  ;;  %20679 = vst [vmem:[#allocation175_spill] sm:$0xff] %v16688_v55  ;;  %v20682_v3 = vld [vmem:[#allocation292_spill] sm:$0xff]  ;;  %v20685_v36 = vld [vmem:[#allocation418_spill] sm:$0xff] }
 0x90a   : > { %v5673_v9 = vcombine.low %v4114_v11, %v4142_v58  ;;  %v4461_v6 = vsel %vm2805_vm2, %v16653_v22, %v20680_v61  ;;  %v16694_v54 = vrot.slane %v20681_v26, 7  ;;  %v16697_v27 = vrot.slane %v20682_v3, 7  ;;  %6614 = vrot.lane.b32.xlu1 %v15730_v10, %s10395_s26  ;;  %v20684_v58 = vld [vmem:[#allocation239_spill] sm:$0xff] }
 0x90b   : > { %v16702_v57 = vrot.slane %v5691_v4, %v19973_v19  ;;  %v4247_v18 = vsel %vm2811_vm7, %v16535_v24, %v4246_v42  ;;  %v4468_v11 = vsel %vm2805_vm2, %v16665_v21, %v20684_v58  ;;  %v16710_v61 = vrot.slane %v20685_v36, 7  ;;  %v20686_v10 = vld [vmem:[#allocation355_spill] sm:$0xff]  ;;  %v16722_v42 = vpop.permute.xlu1 %6502 }
 0x90c   : > { %6616 = vrot.lane.b32.xlu0 %v16571_v44, %s10395_s26  ;;  %v5727_v26 = vcombine.low %v16382_v47, %v4240_v30  ;;  %v4253_v3 = vsel %vm2809_vm6, %v16591_v17, %v4252_v60  ;;  %v4260_v4 = vsel %vm2809_vm6, %v16602_v48, %v4259_v2  ;;  %v4090_v24 = vsel %vm2805_vm2, %v16674_v34, %v20686_v10  ;;  %v20689_v44 = vld [vmem:[#allocation241_spill] sm:$0xff]  ;;  %v16735_v2 = vpop.permute.xlu0 %6504  ;;  %v20694_v7 = vld [vmem:[#allocation291_spill] sm:$0xff] }
 0x90d   : > { %20683 = vst [vmem:[#allocation178_spill] sm:$0xff] %v16702_v57  ;;  %20687 = vst [vmem:[#allocation180_spill] sm:$0xff] %v16722_v42  ;;  %v16725_v58 = vrot.slane %v5664_v12, %v19973_v19  ;;  %v4462_v36 = vsel %vm2807_vm5, %v16653_v22, %v4461_v6  ;;  %v4475_v47 = vsel %vm2805_vm2, %v16683_v0, %v20689_v44  ;;  %v20690_v30 = vld [vmem:[#allocation317_spill] sm:$0xff]  ;;  %v20693_v42 = vld [vmem:[#allocation243_spill] sm:$0xff] }
 0x90e   : > { %v4146_v60 = vsel %vm2805_vm2, %v16686_v59, %v20690_v30  ;;  %20691 = vst [vmem:[#allocation177_spill] sm:$0xff] %v16735_v2  ;;  %v16738_v10 = vrot.slane %v5673_v9, %v19973_v19  ;;  %v4469_v12 = vsel %vm2807_vm5, %v16665_v21, %v4468_v11  ;;  %v4482_v6 = vsel %vm2805_vm2, %v16694_v54, %v20693_v42  ;;  %v20695_v11 = vld [vmem:[#allocation417_spill] sm:$0xff] }
 0x90f   : > { %20688 = vst [vmem:[#allocation228_spill] sm:$0xff] %v16725_v58  ;;  %v4062_v44 = vsel %vm2805_vm2, %v16697_v27, %v20694_v7  ;;  %6618 = vrot.lane.b32.xlu1 %v16725_v58, %s10395_s26  ;;  %v5763_v30 = vcombine.low %v16386_v38, %v4247_v18  ;;  %v4254_v9 = vsel %vm2811_vm7, %v16591_v17, %v4253_v3 }
 0x910   : > { %20692 = vst [vmem:[#allocation354_spill] sm:$0xff] %v16738_v10  ;;  %v4091_v2 = vsel %vm2807_vm5, %v16674_v34, %v4090_v24  ;;  %v4118_v55 = vsel %vm2805_vm2, %v16710_v61, %v20695_v11  ;;  %6620 = vrot.lane.b32.xlu0 %v16738_v10, %s10395_s26  ;;  %v16762_v7 = vcombine.high %v16702_v57, %v20057_v40  ;;  %v16772_v24 = vpop.permute.xlu1 %6506 }
 0x911   : > { %v4261_v38 = vsel %vm2811_vm7, %v16602_v48, %v4260_v4  ;;  %v4463_v17 = vsel %vm2809_vm6, %v16653_v22, %v4462_v36  ;;  %v4476_v18 = vsel %vm2807_vm5, %v16683_v0, %v4475_v47  ;;  %v4147_v3 = vsel %vm2807_vm5, %v16686_v59, %v4146_v60  ;;  %20697 = vst [vmem:[#allocation380_spill] sm:$0xff] %v16772_v24  ;;  %v16780_v4 = vpop.permute.xlu0 %6508 }
 0x912   : > { %20696 = vst [vmem:[#allocation179_spill] sm:$0xff] %v16762_v7  ;;  %v4470_v42 = vsel %vm2809_vm6, %v16665_v21, %v4469_v12  ;;  %v4483_v11 = vsel %vm2807_vm5, %v16694_v54, %v4482_v6  ;;  %v4063_v48 = vsel %vm2807_vm5, %v16697_v27, %v4062_v44  ;;  %20698 = vst [vmem:[#allocation227_spill] sm:$0xff] %v16780_v4  ;;  %v20745_v4 = vld [vmem:[#allocation299_spill] sm:$0xff] }
 0x913   : > { %v16783_v36 = vrot.slane %v5727_v26, %v19973_v19  ;;  %v4092_v47 = vsel %vm2809_vm6, %v16674_v34, %v4091_v2  ;;  %v4119_v60 = vsel %vm2807_vm5, %v16710_v61, %v4118_v55  ;;  %6622 = vrot.lane.b32.xlu1 %v15787_v15, %s10395_s26  ;;  %v16792_v12 = vrot.slane %v5763_v30, %v19973_v19  ;;  %v20733_v15 = vld [vmem:[#allocation360_spill] sm:$0xff] }
 0x914   : > { %v5799_v6 = vcombine.low %v16453_v37, %v4254_v9  ;;  %v4464_v44 = vsel %vm2811_vm7, %v16653_v22, %v4463_v17  ;;  %v4477_v26 = vsel %vm2809_vm6, %v16683_v0, %v4476_v18  ;;  %v4148_v2 = vsel %vm2809_vm6, %v16686_v59, %v4147_v3  ;;  %6624 = vrot.lane.b32.xlu0 %v16622_v62, %s10395_s26  ;;  %v16810_v9 = vpop.permute.xlu1 %6510  ;;  %v20703_v18 = vld [vmem:[#allocation294_spill] sm:$0xff] }
 0x915   : > { %20699 = vst [vmem:[#allocation230_spill] sm:$0xff] %v16783_v36  ;;  %20700 = vst [vmem:[#allocation290_spill] sm:$0xff] %v16792_v12  ;;  %v5835_v55 = vcombine.low %v16497_v29, %v4261_v38  ;;  %v4471_v30 = vsel %vm2811_vm7, %v16665_v21, %v4470_v42  ;;  %v4484_v37 = vsel %vm2809_vm6, %v16694_v54, %v4483_v11  ;;  %v16817_v3 = vrot.slane %v20703_v18, 7  ;;  %v16823_v38 = vpop.permute.xlu0 %6512 }
 0x916   : > { %v4064_v22 = vsel %vm2809_vm6, %v16697_v27, %v4063_v48  ;;  %20701 = vst [vmem:[#allocation416_spill] sm:$0xff] %v16810_v9  ;;  %v16814_v17 = vcombine.high %v16725_v58, %v20057_v40  ;;  %v4093_v29 = vsel %vm2811_vm7, %v16674_v34, %v4092_v47  ;;  %v4120_v21 = vsel %vm2809_vm6, %v16710_v61, %v4119_v60  ;;  %v20706_v48 = vld [vmem:[#allocation296_spill] sm:$0xff]  ;;  %v20734_v58 = vld [vmem:[#allocation419_spill] sm:$0xff] }
 0x917   : > { %20704 = vst [vmem:[#allocation232_spill] sm:$0xff] %v16823_v38  ;;  %v16827_v42 = vcombine.high %v16738_v10, %v20057_v40  ;;  %v4478_v11 = vsel %vm2811_vm7, %v16683_v0, %v4477_v26  ;;  %v16832_v62 = vrot.slane %v20706_v48, 7  ;;  %v4149_v18 = vsel %vm2811_vm7, %v16686_v59, %v4148_v2  ;;  %v20709_v59 = vld [vmem:[#allocation358_spill] sm:$0xff] }
 0x918   : > { %20702 = vst [vmem:[#allocation353_spill] sm:$0xff] %v16814_v17  ;;  %6626 = vrot.lane.b32.xlu1 %v16814_v17, %s10395_s26  ;;  %v5871_v34 = vcombine.low %v16547_v39, %v4464_v44  ;;  %v4485_v47 = vsel %vm2811_vm7, %v16694_v54, %v4484_v37  ;;  %v4065_v60 = vsel %vm2811_vm7, %v16697_v27, %v4064_v22  ;;  %v16852_v2 = vrot.slane %v20709_v59, 7  ;;  %v16856_v44 = vpop.permute.xlu1 %6514  ;;  %v20711_v37 = vld [vmem:[#allocation293_spill] sm:$0xff]  ;;  %v20714_v17 = vld [vmem:[#allocation295_spill] sm:$0xff] }
 0x919   : > { %20705 = vst [vmem:[#allocation318_spill] sm:$0xff] %v16827_v42  ;;  %6628 = vrot.lane.b32.xlu0 %v16827_v42, %s10395_s26  ;;  %v16846_v0 = vrot.slane %v5799_v6, %v19973_v19  ;;  %v16849_v26 = vrot.slane %v5835_v55, %v19973_v19  ;;  %v4121_v39 = vsel %vm2811_vm7, %v16710_v61, %v4120_v21  ;;  %20710 = vst [vmem:[#allocation415_spill] sm:$0xff] %v16856_v44  ;;  %v20712_v6 = vld [vmem:[#allocation256_spill] sm:$0xff]  ;;  %v16865_v55 = vpop.permute.xlu0 %6516  ;;  %v20715_v21 = vld [vmem:[#allocation298_spill] sm:$0xff] }
 0x91a   : > { %v5700_v54 = vcombine.low %v4065_v60, %v4093_v29  ;;  %v5907_v27 = vcombine.low %v16551_v31, %v4471_v30  ;;  %v4265_v22 = vsel %vm2805_vm2, %v16817_v3, %v20711_v37  ;;  %v16863_v48 = vrot.slane %v20712_v6, 7  ;;  %20713 = vst [vmem:[#allocation231_spill] sm:$0xff] %v16865_v55  ;;  %v20717_v60 = vld [vmem:[#allocation420_spill] sm:$0xff] }
 0x91b   : > { %20707 = vst [vmem:[#allocation229_spill] sm:$0xff] %v16846_v0  ;;  %20708 = vst [vmem:[#allocation289_spill] sm:$0xff] %v16849_v26  ;;  %v5709_v42 = vcombine.low %v4121_v39, %v4149_v18  ;;  %v5943_v59 = vcombine.low %v16599_v41, %v4478_v11  ;;  %v4272_v61 = vsel %vm2805_vm2, %v16832_v62, %v20714_v17  ;;  %v16872_v29 = vrot.slane %v20715_v21, 7  ;;  %v20721_v18 = vld [vmem:[#allocation357_spill] sm:$0xff] }
 0x91c   : > { %6630 = vrot.lane.b32.xlu1 %v15733_v25, %s10395_s26  ;;  %v16877_v31 = vrot.slane %v5871_v34, %v19973_v19  ;;  %v5979_v30 = vcombine.low %v16612_v14, %v4485_v47  ;;  %v16881_v37 = vrot.slane %v20717_v60, 7  ;;  %v16887_v41 = vcombine.high %v16783_v36, %v20057_v40  ;;  %v16902_v47 = vpop.permute.xlu1 %6518  ;;  %v20725_v60 = vld [vmem:[#allocation320_spill] sm:$0xff] }
 0x91d   : > { %6632 = vrot.lane.b32.xlu0 %v16702_v57, %s10395_s26  ;;  %v16891_v17 = vcombine.high %v16792_v12, %v20057_v40  ;;  %v16895_v11 = vcombine.high %v16846_v0, %v20057_v40  ;;  %v4266_v14 = vsel %vm2807_vm5, %v16817_v3, %v4265_v22  ;;  %v4293_v34 = vsel %vm2805_vm2, %v16852_v2, %v20721_v18  ;;  %v16915_v22 = vpop.permute.xlu0 %6520 }
 0x91e   : > { %20716 = vst [vmem:[#allocation234_spill] sm:$0xff] %v16877_v31  ;;  %20718 = vst [vmem:[#allocation236_spill] sm:$0xff] %v16887_v41  ;;  %v16905_v39 = vrot.slane %v5700_v54, %v19973_v19  ;;  %v16908_v6 = vrot.slane %v5907_v27, %v19973_v19  ;;  %v4273_v21 = vsel %vm2807_vm5, %v16832_v62, %v4272_v61  ;;  %v20729_v54 = vld [vmem:[#allocation297_spill] sm:$0xff]  ;;  %v16944_v10 = vrot.slane %v20733_v15, 7 }
 0x91f   : > { %20719 = vst [vmem:[#allocation233_spill] sm:$0xff] %v16891_v17  ;;  %20720 = vst [vmem:[#allocation235_spill] sm:$0xff] %v16895_v11  ;;  %v4349_v57 = vsel %vm2805_vm2, %v16863_v48, %v20725_v60  ;;  %v16918_v25 = vrot.slane %v5709_v42, %v19973_v19  ;;  %v16921_v18 = vrot.slane %v5943_v59, %v19973_v19 }
 0x920   : > { %20722 = vst [vmem:[#allocation238_spill] sm:$0xff] %v16902_v47  ;;  %20723 = vst [vmem:[#allocation240_spill] sm:$0xff] %v16905_v39  ;;  %v4279_v27 = vsel %vm2805_vm2, %v16872_v29, %v20729_v54  ;;  %6634 = vrot.lane.b32.xlu1 %v16905_v39, %s10395_s26  ;;  %v16930_v61 = vcombine.high %v16849_v26, %v20057_v40  ;;  %v16934_v60 = vcombine.high %v16877_v31, %v20057_v40  ;;  %v20735_v47 = vld [vmem:[#allocation300_spill] sm:$0xff] }
 0x921   : > { %20724 = vst [vmem:[#allocation356_spill] sm:$0xff] %v16908_v6  ;;  %20726 = vst [vmem:[#allocation242_spill] sm:$0xff] %v16915_v22  ;;  %v16937_v42 = vrot.slane %v5979_v30, %v19973_v19  ;;  %v4267_v59 = vsel %vm2809_vm6, %v16817_v3, %v4266_v14  ;;  %v4294_v54 = vsel %vm2807_vm5, %v16852_v2, %v4293_v34  ;;  %6636 = vrot.lane.b32.xlu0 %v16918_v25, %s10395_s26  ;;  %v20736_v14 = vld [vmem:[#allocation362_spill] sm:$0xff]  ;;  %v16961_v34 = vpop.permute.xlu1 %6522  ;;  %v16968_v24 = vpop.permute.xlu0 %6524 }
 0x922   : > { %20727 = vst [vmem:[#allocation253_spill] sm:$0xff] %v16918_v25  ;;  %20728 = vst [vmem:[#allocation237_spill] sm:$0xff] %v16921_v18  ;;  %v4321_v9 = vsel %vm2805_vm2, %v16881_v37, %v20734_v58  ;;  %v4274_v30 = vsel %vm2809_vm6, %v16832_v62, %v4273_v21  ;;  %v16954_v38 = vrot.slane %v20735_v47, 7  ;;  %v16957_v44 = vrot.slane %v20736_v14, 7  ;;  %v20738_v22 = vld [vmem:[#allocation302_spill] sm:$0xff] }
 0x923   : > { %20730 = vst [vmem:[#allocation244_spill] sm:$0xff] %v16930_v61  ;;  %20731 = vst [vmem:[#allocation292_spill] sm:$0xff] %v16934_v60  ;;  %v4350_v15 = vsel %vm2807_vm5, %v16863_v48, %v4349_v57  ;;  %v4280_v58 = vsel %vm2807_vm5, %v16872_v29, %v4279_v27  ;;  %v16966_v55 = vrot.slane %v20738_v22, 7  ;;  %v16972_v47 = vcombine.high %v16908_v6, %v20057_v40 }
 0x924   : > { %20732 = vst [vmem:[#allocation239_spill] sm:$0xff] %v16937_v42  ;;  %20737 = vst [vmem:[#allocation418_spill] sm:$0xff] %v16961_v34  ;;  %v16976_v21 = vcombine.high %v16921_v18, %v20057_v40  ;;  %v4268_v57 = vsel %vm2811_vm7, %v16817_v3, %v4267_v59  ;;  %v4295_v14 = vsel %vm2809_vm6, %v16852_v2, %v4294_v54  ;;  %6638 = vrot.lane.b32.xlu1 %v15809_v1, %s10395_s26  ;;  %v20744_v59 = vld [vmem:[#allocation364_spill] sm:$0xff] }
 0x925   : > { %20739 = vst [vmem:[#allocation355_spill] sm:$0xff] %v16968_v24  ;;  %20740 = vst [vmem:[#allocation241_spill] sm:$0xff] %v16972_v47  ;;  %v4322_v22 = vsel %vm2807_vm5, %v16881_v37, %v4321_v9  ;;  %v16988_v27 = vcombine.high %v16937_v42, %v20057_v40  ;;  %v16992_v34 = vsel %vm2811_vm7, %v16832_v62, %v4274_v30  ;;  %v20743_v24 = vld [vmem:[#allocation359_spill] sm:$0xff]  ;;  %v16998_v54 = vrot.slane %v20744_v59, 7  ;;  %v20746_v30 = vld [vmem:[#allocation361_spill] sm:$0xff]  ;;  %v17012_v16 = vpop.permute.xlu1 %6526 }
 0x926   : > { %20741 = vst [vmem:[#allocation317_spill] sm:$0xff] %v16976_v21  ;;  %v4300_v3 = vsel %vm2805_vm2, %v16944_v10, %v20743_v24  ;;  %v4351_v9 = vsel %vm2809_vm6, %v16863_v48, %v4350_v15  ;;  %6640 = vrot.lane.b32.xlu0 %v16762_v7, %s10395_s26  ;;  %v4281_v1 = vsel %vm2809_vm6, %v16872_v29, %v4280_v58  ;;  %20747 = vst [vmem:[#allocation291_spill] sm:$0xff] %v17012_v16  ;;  %v20749_v15 = vld [vmem:[#allocation301_spill] sm:$0xff]  ;;  %v20752_v16 = vld [vmem:[#allocation304_spill] sm:$0xff] }
 0x927   : > { %20742 = vst [vmem:[#allocation243_spill] sm:$0xff] %v16988_v27  ;;  %v4286_v62 = vsel %vm2805_vm2, %v16954_v38, %v20745_v4  ;;  %v4307_v24 = vsel %vm2805_vm2, %v16957_v44, %v20746_v30  ;;  %v17016_v59 = vcombine.high %v16905_v39, %v20057_v40  ;;  %v4489_v7 = vsel %vm2805_vm2, %v16966_v55, %v20749_v15  ;;  %v17025_v27 = vpop.permute.xlu0 %6528  ;;  %v20753_v39 = vld [vmem:[#allocation306_spill] sm:$0xff] }
 0x928   : > { %v4296_v58 = vsel %vm2811_vm7, %v16852_v2, %v4295_v14  ;;  %v4323_v4 = vsel %vm2809_vm6, %v16881_v37, %v4322_v22  ;;  %20750 = vst [vmem:[#allocation294_spill] sm:$0xff] %v17025_v27  ;;  %v17029_v30 = vcombine.high %v16918_v25, %v20057_v40  ;;  %v17032_v42 = vrot.slane %v20752_v16, 7  ;;  %v20754_v14 = vld [vmem:[#allocation308_spill] sm:$0xff]  ;;  %v20755_v16 = vld [vmem:[#allocation363_spill] sm:$0xff]  ;;  %v20756_v27 = vld [vmem:[#allocation366_spill] sm:$0xff] }
 0x929   : > { %20748 = vst [vmem:[#allocation417_spill] sm:$0xff] %v17016_v59  ;;  %v17035_v21 = vrot.slane %v20753_v39, 7  ;;  %v4301_v15 = vsel %vm2807_vm5, %v16944_v10, %v4300_v3  ;;  %v4352_v2 = vsel %vm2811_vm7, %v16863_v48, %v4351_v9  ;;  %6642 = vrot.lane.b32.xlu1 %v17016_v59, %s10395_s26  ;;  %v17044_v22 = vrot.slane %v20754_v14, 7  ;;  %v20758_v59 = vld [vmem:[#allocation382_spill] sm:$0xff] }
 0x92a   : > { %20751 = vst [vmem:[#allocation296_spill] sm:$0xff] %v17029_v30  ;;  %v4308_v25 = vsel %vm2807_vm5, %v16957_v44, %v4307_v24  ;;  %v4314_v39 = vsel %vm2805_vm2, %v16998_v54, %v20755_v16  ;;  %v17052_v18 = vrot.slane %v20756_v27, 7  ;;  %6644 = vrot.lane.b32.xlu0 %v17029_v30, %s10395_s26  ;;  %v17058_v48 = vsel %vm2811_vm7, %v16872_v29, %v4281_v1  ;;  %v17064_v24 = vpop.permute.xlu1 %6530 }
 0x92b   : > { %v4287_v3 = vsel %vm2807_vm5, %v16954_v38, %v4286_v62  ;;  %v4324_v9 = vsel %vm2811_vm7, %v16881_v37, %v4323_v4  ;;  %20757 = vst [vmem:[#allocation358_spill] sm:$0xff] %v17064_v24  ;;  %v5736_v14 = vcombine.low %v4268_v57, %v4296_v58  ;;  %v4490_v27 = vsel %vm2807_vm5, %v16966_v55, %v4489_v7  ;;  %v17073_v1 = vpop.permute.xlu0 %6532  ;;  %v20761_v37 = vld [vmem:[#allocation305_spill] sm:$0xff] }
 0x92c   : > { %v4302_v16 = vsel %vm2809_vm6, %v16944_v10, %v4301_v15  ;;  %v17071_v30 = vrot.slane %v20758_v59, 7  ;;  %20759 = vst [vmem:[#allocation293_spill] sm:$0xff] %v17073_v1  ;;  %v5745_v29 = vcombine.low %v4324_v9, %v4352_v2  ;;  %v4496_v62 = vsel %vm2805_vm2, %v17032_v42, %v20760_v45  ;;  %v20762_v59 = vld [vmem:[#allocation307_spill] sm:$0xff]  ;;  %v20763_v15 = vld [vmem:[#allocation365_spill] sm:$0xff]  ;;  %v20764_v2 = vld [vmem:[#allocation368_spill] sm:$0xff] }
 0x92d   : > { %v4503_v57 = vsel %vm2805_vm2, %v17035_v21, %v20761_v37  ;;  %v4309_v7 = vsel %vm2809_vm6, %v16957_v44, %v4308_v25  ;;  %v4315_v58 = vsel %vm2807_vm5, %v16998_v54, %v4314_v39  ;;  %6646 = vrot.lane.b32.xlu1 %v15746_v49, %s10395_s26  ;;  %v4510_v4 = vsel %vm2805_vm2, %v17044_v22, %v20762_v59  ;;  %v20765_v37 = vld [vmem:[#allocation422_spill] sm:$0xff] }
 0x92e   : > { %v4517_v45 = vsel %vm2805_vm2, %v17052_v18, %v20763_v15  ;;  %v17094_v9 = vrot.slane %v20764_v2, 7  ;;  %v17097_v24 = vrot.slane %v20765_v37, 7  ;;  %6648 = vrot.lane.b32.xlu0 %v16783_v36, %s10395_s26  ;;  %v4288_v25 = vsel %vm2809_vm6, %v16954_v38, %v4287_v3  ;;  %v17107_v49 = vpop.permute.xlu1 %6534  ;;  %v20768_v36 = vld [vmem:[#allocation319_spill] sm:$0xff] }
 0x92f   : > { %v4491_v39 = vsel %vm2809_vm6, %v16966_v55, %v4490_v27  ;;  %v4303_v59 = vsel %vm2811_vm7, %v16944_v10, %v4302_v16  ;;  %20766 = vst [vmem:[#allocation256_spill] sm:$0xff] %v17107_v49  ;;  %v17110_v15 = vrot.slane %v5736_v14, %v19973_v19  ;;  %v4310_v2 = vsel %vm2811_vm7, %v16957_v44, %v4309_v7  ;;  %v17119_v1 = vpop.permute.xlu0 %6536  ;;  %v20772_v7 = vld [vmem:[#allocation370_spill] sm:$0xff]  ;;  %v20774_v49 = vld [vmem:[#allocation372_spill] sm:$0xff] }
 0x930   : > { %v4316_v37 = vsel %vm2809_vm6, %v16998_v54, %v4315_v58  ;;  %v4356_v3 = vsel %vm2805_vm2, %v17071_v30, %v20768_v36  ;;  %20769 = vst [vmem:[#allocation298_spill] sm:$0xff] %v17119_v1  ;;  %v17122_v27 = vrot.slane %v5745_v29, %v19973_v19  ;;  %v4497_v10 = vsel %vm2807_vm5, %v17032_v42, %v4496_v62  ;;  %v20771_v36 = vld [vmem:[#allocation367_spill] sm:$0xff]  ;;  %v20773_v62 = vld [vmem:[#allocation421_spill] sm:$0xff] }
 0x931   : > { %20767 = vst [vmem:[#allocation295_spill] sm:$0xff] %v17110_v15  ;;  %v4504_v14 = vsel %vm2807_vm5, %v17035_v21, %v4503_v57  ;;  %v4511_v44 = vsel %vm2807_vm5, %v17044_v22, %v4510_v4  ;;  %v4518_v16 = vsel %vm2807_vm5, %v17052_v18, %v4517_v45  ;;  %6650 = vrot.lane.b32.xlu1 %v17110_v15, %s10395_s26  ;;  %v17138_v58 = vrot.slane %v20772_v7, 7 }
 0x932   : > { %20770 = vst [vmem:[#allocation420_spill] sm:$0xff] %v17122_v27  ;;  %v4524_v29 = vsel %vm2805_vm2, %v17094_v9, %v20771_v36  ;;  %v4328_v57 = vsel %vm2805_vm2, %v17097_v24, %v20773_v62  ;;  %6652 = vrot.lane.b32.xlu0 %v17122_v27, %s10395_s26  ;;  %v5772_v4 = vcombine.low %v16992_v34, %v4303_v59  ;;  %v17149_v1 = vrot.slane %v20774_v49, 7  ;;  %v17153_v7 = vpop.permute.xlu1 %6538 }
 0x933   : > { %v4317_v45 = vsel %vm2811_vm7, %v16998_v54, %v4316_v37  ;;  %v4357_v36 = vsel %vm2807_vm5, %v17071_v30, %v4356_v3  ;;  %20775 = vst [vmem:[#allocation357_spill] sm:$0xff] %v17153_v7  ;;  %v5808_v35 = vcombine.low %v17058_v48, %v4310_v2  ;;  %v4289_v62 = vsel %vm2811_vm7, %v16954_v38, %v4288_v25  ;;  %v17164_v54 = vpop.permute.xlu0 %6540  ;;  %v20777_v25 = vld [vmem:[#allocation369_spill] sm:$0xff] }
 0x934   : > { %v4492_v47 = vsel %vm2811_vm7, %v16966_v55, %v4491_v39  ;;  %v4498_v34 = vsel %vm2809_vm6, %v17032_v42, %v4497_v10  ;;  %v4519_v49 = vsel %vm2809_vm6, %v17052_v18, %v4518_v16  ;;  %20776 = vst [vmem:[#allocation320_spill] sm:$0xff] %v17164_v54  ;;  %v4505_v59 = vsel %vm2809_vm6, %v17035_v21, %v4504_v14  ;;  %v20779_v14 = vld [vmem:[#allocation371_spill] sm:$0xff] }
 0x935   : > { %v4512_v48 = vsel %vm2809_vm6, %v17044_v22, %v4511_v44  ;;  %v4525_v38 = vsel %vm2807_vm5, %v17094_v9, %v4524_v29  ;;  %v4329_v55 = vsel %vm2807_vm5, %v17097_v24, %v4328_v57  ;;  %6654 = vrot.lane.b32.xlu1 %v15813_v23, %s10395_s26  ;;  %v4531_v39 = vsel %vm2805_vm2, %v17138_v58, %v20777_v25  ;;  %v20794_v23 = vld [vmem:[#allocation258_spill] sm:$0xff] }
 0x936   : > { %v4358_v2 = vsel %vm2809_vm6, %v17071_v30, %v4357_v36  ;;  %6656 = vrot.lane.b32.xlu0 %v16887_v41, %s10395_s26  ;;  %v17185_v37 = vcombine.high %v17110_v15, %v20057_v40  ;;  %v5844_v3 = vcombine.low %v4289_v62, %v4317_v45  ;;  %v4520_v10 = vsel %vm2811_vm7, %v17052_v18, %v4519_v49  ;;  %v17192_v16 = vpop.permute.xlu1 %6542  ;;  %v20783_v62 = vld [vmem:[#allocation423_spill] sm:$0xff] }
 0x937   : > { %v4538_v44 = vsel %vm2805_vm2, %v17149_v1, %v20779_v14  ;;  %20780 = vst [vmem:[#allocation360_spill] sm:$0xff] %v17192_v16  ;;  %v17195_v29 = vrot.slane %v5772_v4, %v19973_v19  ;;  %v17198_v57 = vrot.slane %v5808_v35, %v19973_v19  ;;  %v4526_v36 = vsel %vm2809_vm6, %v17094_v9, %v4525_v38  ;;  %v17207_v49 = vpop.permute.xlu0 %6544 }
 0x938   : > { %20778 = vst [vmem:[#allocation297_spill] sm:$0xff] %v17185_v37  ;;  %v4330_v45 = vsel %vm2809_vm6, %v17097_v24, %v4329_v55  ;;  %v17205_v18 = vrot.slane %v20783_v62, 7  ;;  %20784 = vst [vmem:[#allocation362_spill] sm:$0xff] %v17207_v49  ;;  %v17211_v25 = vcombine.high %v17122_v27, %v20057_v40  ;;  %v17215_v4 = vsel %vm2811_vm7, %v17032_v42, %v4498_v34  ;;  %v20813_v49 = vld [vmem:[#allocation324_spill] sm:$0xff] }
 0x939   : > { %20781 = vst [vmem:[#allocation419_spill] sm:$0xff] %v17195_v29  ;;  %20782 = vst [vmem:[#allocation300_spill] sm:$0xff] %v17198_v57  ;;  %v17219_v35 = vsel %vm2811_vm7, %v17035_v21, %v4505_v59  ;;  %v4532_v38 = vsel %vm2807_vm5, %v17138_v58, %v4531_v39  ;;  %v4359_v55 = vsel %vm2811_vm7, %v17071_v30, %v4358_v2  ;;  %6658 = vrot.lane.b32.xlu1 %v17185_v37, %s10395_s26  ;;  %v20790_v2 = vld [vmem:[#allocation48_spill] sm:$0xff] }
 0x93a   : > { %20785 = vst [vmem:[#allocation302_spill] sm:$0xff] %v17211_v25  ;;  %v17229_v14 = vsel %vm2811_vm7, %v17044_v22, %v4512_v48  ;;  %v4539_v42 = vsel %vm2807_vm5, %v17149_v1, %v4538_v44  ;;  %6660 = vrot.lane.b32.xlu0 %v17211_v25, %s10395_s26  ;;  %v17236_v21 = vrot.slane %v5844_v3, %v19973_v19  ;;  %v17244_v39 = vpop.permute.xlu1 %6546  ;;  %v20791_v3 = vld [vmem:[#allocation65_spill] sm:$0xff]  ;;  %v17270_v37 = vrot.slane %v20794_v23, 7  ;;  %v20797_v25 = vld [vmem:[#allocation67_spill] sm:$0xff] }
 0x93b   : > { %v5880_v34 = vcombine.low %v4492_v47, %v4520_v10  ;;  %v17240_v30 = vsel %vm2811_vm7, %v17094_v9, %v4526_v36  ;;  %v4331_v59 = vsel %vm2811_vm7, %v17097_v24, %v4330_v45  ;;  %20787 = vst [vmem:[#allocation364_spill] sm:$0xff] %v17244_v39  ;;  %v17248_v22 = vcombine.high %v17195_v29, %v20057_v40  ;;  %v17262_v24 = vpop.permute.xlu0 %6548  ;;  %v20793_v45 = vld [vmem:[#allocation47_spill] sm:$0xff] }
 0x93c   : > { %20786 = vst [vmem:[#allocation359_spill] sm:$0xff] %v17236_v21  ;;  %v17252_v48 = vcombine.high %v17198_v57, %v20057_v40  ;;  %v4533_v47 = vsel %vm2809_vm6, %v17138_v58, %v4532_v38  ;;  %v4335_v9 = vsel %vm2805_vm2, %v17205_v18, %v20790_v2  ;;  %v17260_v10 = vrot.slane %v20791_v3, 7  ;;  %20792 = vst [vmem:[#allocation301_spill] sm:$0xff] %v17262_v24  ;;  %v20795_v38 = vld [vmem:[#allocation257_spill] sm:$0xff]  ;;  %v20796_v2 = vld [vmem:[#allocation60_spill] sm:$0xff] }
 0x93d   : > { %20788 = vst [vmem:[#allocation299_spill] sm:$0xff] %v17248_v22  ;;  %v5781_v44 = vcombine.low %v4331_v59, %v4359_v55  ;;  %v4540_v36 = vsel %vm2809_vm6, %v17149_v1, %v4539_v42  ;;  %v17267_v62 = vrot.slane %v20793_v45, 7  ;;  %v17273_v41 = vrot.slane %v20795_v38, 7  ;;  %6662 = vrot.lane.b32.xlu1 %v15826_v13, %s10395_s26  ;;  %v20800_v38 = vld [vmem:[#allocation56_spill] sm:$0xff]  ;;  %v20814_v24 = vld [vmem:[#allocation259_spill] sm:$0xff] }
 0x93e   : > { %20789 = vst [vmem:[#allocation361_spill] sm:$0xff] %v17252_v48  ;;  %v17278_v3 = vrot.slane %v20796_v2, 7  ;;  %v17281_v55 = vrot.slane %v20797_v25, 7  ;;  %6664 = vrot.lane.b32.xlu0 %v16792_v12, %s10395_s26  ;;  %v17287_v42 = vcombine.high %v17236_v21, %v20057_v40  ;;  %v17290_v23 = vrot.slane %v5880_v34, %v19973_v19  ;;  %v20801_v2 = vld [vmem:[#allocation260_spill] sm:$0xff]  ;;  %v17304_v12 = vpop.permute.xlu1 %6550  ;;  %v20803_v34 = vld [vmem:[#allocation66_spill] sm:$0xff] }
 0x93f   : > { %v17294_v59 = vsel %vm2811_vm7, %v17138_v58, %v4533_v47  ;;  %v4336_v45 = vsel %vm2807_vm5, %v17205_v18, %v4335_v9  ;;  %v17299_v25 = vrot.slane %v20800_v38, 7  ;;  %v17302_v13 = vrot.slane %v20801_v2, 7  ;;  %20802 = vst [vmem:[#allocation308_spill] sm:$0xff] %v17304_v12  ;;  %v17313_v47 = vpop.permute.xlu0 %6552  ;;  %v20806_v2 = vld [vmem:[#allocation54_spill] sm:$0xff] }
 0x940   : > { %20798 = vst [vmem:[#allocation304_spill] sm:$0xff] %v17287_v42  ;;  %20799 = vst [vmem:[#allocation306_spill] sm:$0xff] %v17290_v23  ;;  %v17308_v15 = vsel %vm2811_vm7, %v17149_v1, %v4540_v36  ;;  %v4363_v58 = vsel %vm2805_vm2, %v17260_v10, %v20803_v34  ;;  %v17316_v9 = vrot.slane %v5781_v44, %v19973_v19  ;;  %v20807_v12 = vld [vmem:[#allocation62_spill] sm:$0xff]  ;;  %v20809_v34 = vld [vmem:[#allocation384_spill] sm:$0xff]  ;;  %v17355_v7 = vrot.slane %v20814_v24, 7 }
 0x941   : > { %20804 = vst [vmem:[#allocation363_spill] sm:$0xff] %v17313_v47  ;;  %v4342_v27 = vsel %vm2805_vm2, %v17267_v62, %v20806_v2  ;;  %v17324_v16 = vrot.slane %v20807_v12, 7  ;;  %v20808_v1 = vld [vmem:[#allocation322_spill] sm:$0xff]  ;;  %v4573_v47 = vsel %vm2805_vm2, %v17273_v41, %v20809_v34  ;;  %6666 = vrot.lane.b32.xlu1 %v17195_v29, %s10395_s26  ;;  %v4337_v44 = vsel %vm2809_vm6, %v17205_v18, %v4336_v45  ;;  %v20811_v12 = vld [vmem:[#allocation68_spill] sm:$0xff]  ;;  %v20817_v24 = vld [vmem:[#allocation59_spill] sm:$0xff] }
 0x942   : > { %20805 = vst [vmem:[#allocation366_spill] sm:$0xff] %v17316_v9  ;;  %v4370_v36 = vsel %vm2805_vm2, %v17270_v37, %v20808_v1  ;;  %v20810_v38 = vld [vmem:[#allocation58_spill] sm:$0xff]  ;;  %v4580_v39 = vsel %vm2805_vm2, %v17281_v55, %v20811_v12  ;;  %6668 = vrot.lane.b32.xlu0 %v17316_v9, %s10395_s26  ;;  %v20812_v34 = vld [vmem:[#allocation52_spill] sm:$0xff]  ;;  %v4364_v45 = vsel %vm2807_vm5, %v17260_v10, %v4363_v58  ;;  %v17357_v12 = vpop.permute.xlu1 %6554 }
 0x943   : > { %v4545_v2 = vsel %vm2805_vm2, %v17278_v3, %v20810_v38  ;;  %v4552_v29 = vsel %vm2805_vm2, %v17299_v25, %v20812_v34  ;;  %v4587_v38 = vsel %vm2805_vm2, %v17302_v13, %v20813_v49  ;;  %20815 = vst [vmem:[#allocation382_spill] sm:$0xff] %v17357_v12  ;;  %v4343_v54 = vsel %vm2807_vm5, %v17267_v62, %v4342_v27  ;;  %v17365_v43 = vpop.permute.xlu0 %6556 }
 0x944   : > { %v4371_v1 = vsel %vm2807_vm5, %v17270_v37, %v4370_v36  ;;  %v4574_v34 = vsel %vm2807_vm5, %v17273_v41, %v4573_v47  ;;  %20816 = vst [vmem:[#allocation303_spill] sm:$0xff] %v17365_v43  ;;  %v5988_v58 = vcombine.low %v17229_v14, %v17308_v15  ;;  %v4546_v49 = vsel %vm2807_vm5, %v17278_v3, %v4545_v2  ;;  %v20881_v43 = vld [vmem:[#allocation185_spill] sm:$0xff] }
 0x945   : > { %v4559_v12 = vsel %vm2805_vm2, %v17324_v16, %v20817_v24  ;;  %v17375_v27 = vrot.slane %v20818_v5, 7  ;;  %v4581_v36 = vsel %vm2807_vm5, %v17281_v55, %v4580_v39  ;;  %6670 = vrot.lane.b32.xlu1 %v15887_v20, %s10395_s26  ;;  %v4338_v47 = vsel %vm2811_vm7, %v17205_v18, %v4337_v44  ;;  %v20819_v44 = vld [vmem:[#allocation386_spill] sm:$0xff] }
 0x946   : > { %v4553_v15 = vsel %vm2807_vm5, %v17299_v25, %v4552_v29  ;;  %v4365_v14 = vsel %vm2809_vm6, %v17260_v10, %v4364_v45  ;;  %v4588_v2 = vsel %vm2807_vm5, %v17302_v13, %v4587_v38  ;;  %6672 = vrot.lane.b32.xlu0 %v16891_v17, %s10395_s26  ;;  %v4344_v5 = vsel %vm2809_vm6, %v17267_v62, %v4343_v54  ;;  %v17400_v45 = vpop.permute.xlu1 %6558 }
 0x947   : > { %v4372_v39 = vsel %vm2809_vm6, %v17270_v37, %v4371_v1  ;;  %v4575_v18 = vsel %vm2809_vm6, %v17273_v41, %v4574_v34  ;;  %v4594_v29 = vsel %vm2805_vm2, %v17355_v7, %v20819_v44  ;;  %20820 = vst [vmem:[#allocation305_spill] sm:$0xff] %v17400_v45  ;;  %v4547_v38 = vsel %vm2809_vm6, %v17278_v3, %v4546_v49  ;;  %v17408_v20 = vpop.permute.xlu0 %6560  ;;  %v20823_v44 = vld [vmem:[#allocation118_spill] sm:$0xff] }
 0x948   : > { %v4560_v24 = vsel %vm2807_vm5, %v17324_v16, %v4559_v12  ;;  %v4582_v54 = vsel %vm2809_vm6, %v17281_v55, %v4581_v36  ;;  %20821 = vst [vmem:[#allocation307_spill] sm:$0xff] %v17408_v20  ;;  %v17412_v1 = vcombine.high %v17316_v9, %v20057_v40  ;;  %v4554_v34 = vsel %vm2809_vm6, %v17299_v25, %v4553_v15  ;;  %v20880_v20 = vld [vmem:[#allocation199_spill] sm:$0xff] }
 0x949   : > { %v4566_v17 = vsel %vm2805_vm2, %v17375_v27, %v20823_v44  ;;  %v4366_v49 = vsel %vm2811_vm7, %v17260_v10, %v4365_v14  ;;  %v4589_v12 = vsel %vm2809_vm6, %v17302_v13, %v4588_v2  ;;  %6674 = vrot.lane.b32.xlu1 %v17248_v22, %s10395_s26  ;;  %v4345_v36 = vsel %vm2811_vm7, %v17267_v62, %v4344_v5  ;;  %v20824_v2 = vld [vmem:[#allocation64_spill] sm:$0xff]  ;;  %v20831_v22 = vld [vmem:[#allocation309_spill] sm:$0xff] }
 0x94a   : > { %20822 = vst [vmem:[#allocation365_spill] sm:$0xff] %v17412_v1  ;;  %v4373_v9 = vsel %vm2811_vm7, %v17270_v37, %v4372_v39  ;;  %v4576_v15 = vsel %vm2811_vm7, %v17273_v41, %v4575_v18  ;;  %v4595_v44 = vsel %vm2807_vm5, %v17355_v7, %v4594_v29  ;;  %6676 = vrot.lane.b32.xlu0 %v17412_v1, %s10395_s26  ;;  %v20825_v37 = vld [vmem:[#allocation69_spill] sm:$0xff]  ;;  %v17443_v39 = vpop.permute.xlu1 %6562 }
 0x94b   : > { %v4548_v10 = vsel %vm2811_vm7, %v17278_v3, %v4547_v38  ;;  %v4561_v14 = vsel %vm2809_vm6, %v17324_v16, %v4560_v24  ;;  %v4583_v62 = vsel %vm2811_vm7, %v17281_v55, %v4582_v54  ;;  %v7031_v5 = vadd.f32 %v20825_v37, %v20824_v2  ;;  %20826 = vst [vmem:[#allocation368_spill] sm:$0xff] %v17443_v39  ;;  %v17451_v29 = vpop.permute.xlu0 %6564  ;;  %v20828_v24 = vld [vmem:[#allocation61_spill] sm:$0xff]  ;;  %v20829_v54 = vld [vmem:[#allocation70_spill] sm:$0xff] }
 0x94c   : > { %v4555_v41 = vsel %vm2811_vm7, %v17299_v25, %v4554_v34  ;;  %v4567_v18 = vsel %vm2807_vm5, %v17375_v27, %v4566_v17  ;;  %v4590_v3 = vsel %vm2811_vm7, %v17302_v13, %v4589_v12  ;;  %20827 = vst [vmem:[#allocation422_spill] sm:$0xff] %v17451_v29  ;;  %v5817_v38 = vcombine.low %v4338_v47, %v4366_v49  ;;  %v20830_v34 = vld [vmem:[#allocation310_spill] sm:$0xff]  ;;  %v20879_v39 = vld [vmem:[#allocation373_spill] sm:$0xff] }
 0x94d   : > { %v4596_v55 = vsel %vm2809_vm6, %v17355_v7, %v4595_v44  ;;  %v7030_v2 = vadd.f32 %v20829_v54, %v20828_v24  ;;  %6678 = vrot.lane.b32.xlu1 %v15981_v46, %s10395_s26  ;;  %v5853_v37 = vcombine.low %v4345_v36, %v4373_v9  ;;  %v5889_v25 = vcombine.low %v4548_v10, %v4576_v15  ;;  %v20866_v46 = vld [vmem:[#allocation6_spill] sm:$0xff] }
 0x94e   : > { %v4562_v17 = vsel %vm2811_vm7, %v17324_v16, %v4561_v14  ;;  %v7033_v13 = vadd.f32 %v20831_v22, %v20830_v34  ;;  %6680 = vrot.lane.b32.xlu0 %v16846_v0, %s10395_s26  ;;  %v20832_v47 = vcombine.low %v17215_v4, %v17240_v30  ;;  %v5925_v12 = vcombine.low %v4555_v41, %v4583_v62  ;;  %v17473_v15 = vpop.permute.xlu1 %6566  ;;  %v20837_v4 = vld [vmem:[#allocation181_spill] sm:$0xff]  ;;  %v20838_v30 = vld [vmem:[#allocation326_spill] sm:$0xff]  ;;  %v20867_v0 = vld [vmem:[#allocation312_spill] sm:$0xff] }
 0x94f   : > { %v4568_v9 = vsel %vm2809_vm6, %v17375_v27, %v4567_v18  ;;  %v7287_v36 = vmul.f32 0.25, %v7031_v5  ;;  %20834 = vst [vmem:[#allocation367_spill] sm:$0xff] %v17473_v15  ;;  %v20835_v16 = vcombine.low %v17219_v35, %v17294_v59  ;;  %v5961_v44 = vcombine.low %v4562_v17, %v4590_v3  ;;  %v17485_v62 = vpop.permute.xlu0 %6568  ;;  %v20850_v17 = vld [vmem:[#allocation119_spill] sm:$0xff]  ;;  %v20851_v34 = vld [vmem:[#allocation10_spill] sm:$0xff] }
 0x950   : > { %v17469_v49 = vrot.slane %v20832_v47, %v19973_v19  ;;  %v4597_v10 = vsel %vm2811_vm7, %v17355_v7, %v4596_v55  ;;  %v7032_v14 = vadd.f32 %v20838_v30, %v20837_v4  ;;  %20839 = vst [vmem:[#allocation421_spill] sm:$0xff] %v17485_v62  ;;  %v17488_v41 = vrot.slane %v5817_v38, %v19973_v19  ;;  %v20852_v47 = vld [vmem:[#allocation124_spill] sm:$0xff]  ;;  %v20857_v4 = vld [vmem:[#allocation133_spill] sm:$0xff] }
 0x951   : > { %v17479_v22 = vrot.slane %v20835_v16, %v19973_v19  ;;  %v17491_v5 = vrot.slane %v5988_v58, %v19973_v19  ;;  %v7286_v18 = vmul.f32 0.25, %v7030_v2  ;;  %6682 = vrot.lane.b32.xlu1 %v17198_v57, %s10395_s26  ;;  %v17496_v35 = vrot.slane %v5853_v37, %v19973_v19 }
 0x952   : > { %20833 = vst [vmem:[#allocation319_spill] sm:$0xff] %v17469_v49  ;;  %20840 = vst [vmem:[#allocation372_spill] sm:$0xff] %v17488_v41  ;;  %v17499_v7 = vrot.slane %v5889_v25, %v19973_v19  ;;  %v17503_v59 = vcombine.high %v17290_v23, %v20057_v40  ;;  %v4569_v3 = vsel %vm2811_vm7, %v17375_v27, %v4568_v9  ;;  %v7289_v38 = vmul.f32 0.25, %v7033_v13  ;;  %v17516_v54 = vpop.permute.xlu1 %6570 }
 0x953   : > { %20836 = vst [vmem:[#allocation370_spill] sm:$0xff] %v17479_v22  ;;  %20841 = vst [vmem:[#allocation369_spill] sm:$0xff] %v17491_v5  ;;  %6684 = vrot.lane.b32.xlu0 %v17488_v41, %s10395_s26  ;;  %v17510_v58 = vrot.slane %v5925_v12, %v19973_v19  ;;  %v17514_v55 = vcombine.high %v17469_v49, %v20057_v40  ;;  %v7798_v24 = vcombine.low %v7286_v18, %v7287_v36  ;;  %v20853_v12 = vld [vmem:[#allocation63_spill] sm:$0xff]  ;;  %v17529_v16 = vpop.permute.xlu0 %6572 }
 0x954   : > { %20842 = vst [vmem:[#allocation371_spill] sm:$0xff] %v17496_v35  ;;  %20843 = vst [vmem:[#allocation423_spill] sm:$0xff] %v17499_v7  ;;  %v17519_v2 = vrot.slane %v5961_v44, %v19973_v19  ;;  %v17523_v27 = vcombine.high %v17479_v22, %v20057_v40  ;;  %v5997_v37 = vcombine.low %v4569_v3, %v4597_v10  ;;  %v7288_v25 = vmul.f32 0.25, %v7032_v14  ;;  %v20856_v44 = vld [vmem:[#allocation117_spill] sm:$0xff] }
 0x955   : > { %20844 = vst [vmem:[#allocation48_spill] sm:$0xff] %v17503_v59  ;;  %20845 = vst [vmem:[#allocation65_spill] sm:$0xff] %v17510_v58  ;;  %v7039_v13 = vadd.f32 %v20851_v34, %v20850_v17  ;;  %v7041_v9 = vadd.f32 %v20853_v12, %v20852_v47  ;;  %v17533_v36 = vcombine.high %v17491_v5, %v20057_v40  ;;  %6686 = vrot.lane.b32.xlu1 %v16105_v52, %s10395_s26  ;;  %v20861_v17 = vld [vmem:[#allocation121_spill] sm:$0xff]  ;;  %v20863_v12 = vld [vmem:[#allocation123_spill] sm:$0xff] }
 0x956   : > { %20846 = vst [vmem:[#allocation47_spill] sm:$0xff] %v17514_v55  ;;  %20847 = vst [vmem:[#allocation258_spill] sm:$0xff] %v17516_v54  ;;  %v7038_v30 = vadd.f32 %v20857_v4, %v20856_v44  ;;  %v17541_v10 = vcombine.high %v17488_v41, %v20057_v40  ;;  %v17545_v14 = vcombine.high %v17496_v35, %v20057_v40  ;;  %v20862_v34 = vld [vmem:[#allocation325_spill] sm:$0xff]  ;;  %v20864_v44 = vld [vmem:[#allocation72_spill] sm:$0xff] }
 0x957   : > { %20848 = vst [vmem:[#allocation257_spill] sm:$0xff] %v17519_v2  ;;  %20849 = vst [vmem:[#allocation60_spill] sm:$0xff] %v17523_v27  ;;  %v17549_v18 = vcombine.high %v17499_v7, %v20057_v40  ;;  %v7799_v3 = vcombine.low %v7288_v25, %v7289_v38  ;;  %v7040_v47 = vadd.f32 %v20862_v34, %v20861_v17  ;;  %6688 = vrot.lane.b32.xlu0 %v16895_v11, %s10395_s26  ;;  %v20868_v41 = vld [vmem:[#allocation135_spill] sm:$0xff]  ;;  %v17566_v38 = vpop.permute.xlu1 %6574  ;;  %v20874_v54 = vld [vmem:[#allocation246_spill] sm:$0xff] }
 0x958   : > { %20854 = vst [vmem:[#allocation67_spill] sm:$0xff] %v17529_v16  ;;  %20855 = vst [vmem:[#allocation56_spill] sm:$0xff] %v17533_v36  ;;  %v7049_v4 = vadd.f32 %v20864_v44, %v20863_v12  ;;  %v17559_v52 = vcombine.high %v17510_v58, %v20057_v40  ;;  %v17562_v57 = vrot.slane %v7798_v24, %v20866_v46  ;;  %v7295_v34 = vmul.f32 0.25, %v7039_v13  ;;  %v20872_v44 = vld [vmem:[#allocation184_spill] sm:$0xff]  ;;  %v20873_v11 = vld [vmem:[#allocation387_spill] sm:$0xff]  ;;  %v17579_v16 = vpop.permute.xlu0 %6576 }
 0x959   : > { %20858 = vst [vmem:[#allocation260_spill] sm:$0xff] %v17541_v10  ;;  %20859 = vst [vmem:[#allocation66_spill] sm:$0xff] %v17545_v14  ;;  %v7057_v1 = vadd.f32 %v20868_v41, %v20867_v0  ;;  %v17570_v25 = vcombine.high %v17519_v2, %v20057_v40  ;;  %v17573_v17 = vrot.slane %v5997_v37, %v19973_v19  ;;  %v7297_v12 = vmul.f32 0.25, %v7041_v9  ;;  %v20875_v24 = vld [vmem:[#allocation11_spill] sm:$0xff]  ;;  %v20882_v37 = vld [vmem:[#allocation74_spill] sm:$0xff] }
 0x95a   : > { %20860 = vst [vmem:[#allocation54_spill] sm:$0xff] %v17549_v18  ;;  %20865 = vst [vmem:[#allocation62_spill] sm:$0xff] %v17559_v52  ;;  %v7047_v15 = vadd.f32 %v20873_v11, %v20872_v44  ;;  %v7048_v62 = vadd.f32 %v20875_v24, %v20874_v54  ;;  %v7294_v0 = vmul.f32 0.25, %v7038_v30  ;;  %v20877_v41 = vld [vmem:[#allocation183_spill] sm:$0xff]  ;;  %v7056_v29 = vadd.f32 %v20880_v20, %v20879_v39  ;;  %v20883_v54 = vld [vmem:[#allocation120_spill] sm:$0xff] }
 0x95b   : > { %20869 = vst [vmem:[#allocation322_spill] sm:$0xff] %v17566_v38  ;;  %20870 = vst [vmem:[#allocation384_spill] sm:$0xff] %v17570_v25  ;;  %v20878_v38 = vld [vmem:[#allocation136_spill] sm:$0xff]  ;;  %v7065_v19 = vadd.f32 %v20882_v37, %v20881_v43  ;;  %6690 = vrot.lane.b32.xlu1 %v17252_v48, %s10395_s26  ;;  %v17590_v11 = vrot.slane %v7799_v3, %v20866_v46  ;;  %v7296_v13 = vmul.f32 0.25, %v7040_v47  ;;  %v20884_v9 = vld [vmem:[#allocation14_spill] sm:$0xff]  ;;  %v7305_v30 = vmul.f32 0.25, %v7049_v4  ;;  %v17602_v3 = vpop.permute.xlu1 %6578 }
 0x95c   : > { %20871 = vst [vmem:[#allocation58_spill] sm:$0xff] %v17573_v17  ;;  %20876 = vst [vmem:[#allocation68_spill] sm:$0xff] %v17579_v16  ;;  %v7055_v45 = vadd.f32 %v20878_v38, %v20877_v41  ;;  %v7046_v44 = vadd.f32 %v20884_v9, %v20883_v54  ;;  %6692 = vrot.lane.b32.xlu0 %v17541_v10, %s10395_s26  ;;  %v20885_v38 = vld [vmem:[#allocation122_spill] sm:$0xff]  ;;  %v20886_v24 = vld [vmem:[#allocation200_spill] sm:$0xff]  ;;  %v7313_v39 = vmul.f32 0.25, %v7057_v1  ;;  %v7303_v25 = vmul.f32 0.25, %v7047_v15  ;;  %v17604_v4 = vpop.permute.xlu0 %6580 }
 0x95d   : > { %v7054_v20 = vadd.f32 %v20886_v24, %v20885_v38  ;;  %v20887_v41 = vld [vmem:[#allocation248_spill] sm:$0xff]  ;;  %v20888_v43 = vld [vmem:[#allocation263_spill] sm:$0xff]  ;;  %v20890_v48 = vld [vmem:[#allocation17_spill] sm:$0xff]  ;;  %20891 = vst [vmem:[#allocation52_spill] sm:$0xff] %v17602_v3  ;;  %v7832_v47 = vcombine.low %v7294_v0, %v7295_v34  ;;  %v7833_v5 = vcombine.low %v7296_v13, %v7297_v12  ;;  %v7304_v54 = vmul.f32 0.25, %v7048_v62 }
 0x95e   : > { %v7063_v37 = vadd.f32 %v20888_v43, %v20887_v41  ;;  %v20889_v16 = vld [vmem:[#allocation311_spill] sm:$0xff]  ;;  %20892 = vst [vmem:[#allocation324_spill] sm:$0xff] %v17604_v4  ;;  %v7311_v9 = vmul.f32 0.25, %v7055_v45  ;;  %v7312_v10 = vmul.f32 0.25, %v7056_v29  ;;  %v20893_v27 = vld [vmem:[#allocation186_spill] sm:$0xff]  ;;  %v7321_v1 = vmul.f32 0.25, %v7065_v19 }
 0x95f   : > { %v7064_v36 = vadd.f32 %v20890_v48, %v20889_v16  ;;  %v20894_v2 = vld [vmem:[#allocation327_spill] sm:$0xff]  ;;  %6694 = vrot.lane.b32.xlu1 %v16064_v32, %s10395_s26  ;;  %v7302_v24 = vmul.f32 0.25, %v7046_v44  ;;  %v7867_v41 = vcombine.low %v7304_v54, %v7305_v30  ;;  %v20895_v48 = vld [vmem:[#allocation188_spill] sm:$0xff]  ;;  %v20896_v16 = vld [vmem:[#allocation73_spill] sm:$0xff]  ;;  %v7310_v45 = vmul.f32 0.25, %v7054_v20 }
 0x960   : > { %v7062_v38 = vadd.f32 %v20894_v2, %v20893_v27  ;;  %v7071_v43 = vadd.f32 %v20896_v16, %v20895_v48  ;;  %v20897_v34 = vld [vmem:[#allocation250_spill] sm:$0xff]  ;;  %6696 = vrot.lane.b32.xlu0 %v16849_v26, %s10395_s26  ;;  %v7901_v29 = vcombine.low %v7312_v10, %v7313_v39  ;;  %v7319_v62 = vmul.f32 0.25, %v7063_v37  ;;  %v17616_v2 = vpop.permute.xlu1 %6582  ;;  %v20900_v19 = vld [vmem:[#allocation247_spill] sm:$0xff]  ;;  %v20903_v30 = vld [vmem:[#allocation201_spill] sm:$0xff]  ;;  %v17622_v32 = vpop.permute.xlu0 %6584 }
 0x961   : > { %v20898_v12 = vld [vmem:[#allocation26_spill] sm:$0xff]  ;;  %v7320_v0 = vmul.f32 0.25, %v7064_v36  ;;  %20899 = vst [vmem:[#allocation259_spill] sm:$0xff] %v17616_v2  ;;  %20904 = vst [vmem:[#allocation59_spill] sm:$0xff] %v17622_v32  ;;  %v17626_v48 = vcombine.high %v17573_v17, %v20057_v40  ;;  %v7866_v10 = vcombine.low %v7302_v24, %v7303_v25  ;;  %v7900_v39 = vcombine.low %v7310_v45, %v7311_v9  ;;  %v20933_v4 = vld [vmem:[#allocation251_spill] sm:$0xff] }
 0x962   : > { %v7034_v15 = vadd.f32 %v20898_v12, %v20897_v34  ;;  %v20901_v27 = vld [vmem:[#allocation22_spill] sm:$0xff]  ;;  %v7318_v36 = vmul.f32 0.25, %v7062_v38  ;;  %v17633_v16 = vrot.slane %v7832_v47, %v20866_v46  ;;  %v7327_v34 = vmul.f32 0.25, %v7071_v43  ;;  %v20942_v32 = vld [vmem:[#allocation331_spill] sm:$0xff] }
 0x963   : > { %v7070_v13 = vadd.f32 %v20901_v27, %v20900_v19  ;;  %v20902_v44 = vld [vmem:[#allocation314_spill] sm:$0xff]  ;;  %20905 = vst [vmem:[#allocation182_spill] sm:$0xff] %v17626_v48  ;;  %v7935_v37 = vcombine.low %v7320_v0, %v7321_v1  ;;  %6698 = vrot.lane.b32.xlu1 %v17236_v21, %s10395_s26  ;;  %v20906_v19 = vld [vmem:[#allocation376_spill] sm:$0xff]  ;;  %v20907_v27 = vld [vmem:[#allocation329_spill] sm:$0xff]  ;;  %v17640_v40 = vrot.slane %v7833_v5, %v20866_v46 }
 0x964   : > { %v7035_v54 = vadd.f32 %v20903_v30, %v20902_v44  ;;  %v7290_v12 = vmul.f32 0.25, %v7034_v15  ;;  %v7036_v44 = vadd.f32 %v20907_v27, %v20906_v19  ;;  %6700 = vrot.lane.b32.xlu0 %v17496_v35, %s10395_s26  ;;  %v17643_v25 = vrot.slane %v7867_v41, %v20866_v46  ;;  %v17648_v47 = vpop.permute.xlu1 %6586  ;;  %v20909_v43 = vld [vmem:[#allocation126_spill] sm:$0xff]  ;;  %v20910_v15 = vld [vmem:[#allocation392_spill] sm:$0xff]  ;;  %v20911_v0 = vld [vmem:[#allocation313_spill] sm:$0xff]  ;;  %v17654_v27 = vpop.permute.xlu0 %6588 }
 0x965   : > { %v17646_v9 = vrot.slane %v7901_v29, %v20866_v46  ;;  %v7934_v38 = vcombine.low %v7318_v36, %v7319_v62  ;;  %20908 = vst [vmem:[#allocation386_spill] sm:$0xff] %v17648_v47  ;;  %v7326_v1 = vmul.f32 0.25, %v7070_v13  ;;  %v7037_v45 = vadd.f32 %v20910_v15, %v20909_v43  ;;  %v20912_v30 = vld [vmem:[#allocation391_spill] sm:$0xff]  ;;  %20913 = vst [vmem:[#allocation118_spill] sm:$0xff] %v17654_v27  ;;  %v20915_v62 = vld [vmem:[#allocation374_spill] sm:$0xff] }
 0x966   : > { %v7291_v24 = vmul.f32 0.25, %v7035_v54  ;;  %v7042_v19 = vadd.f32 %v20912_v30, %v20911_v0  ;;  %v17657_v5 = vrot.slane %v7866_v10, %v20866_v46  ;;  %v17660_v41 = vrot.slane %v7900_v39, %v20866_v46  ;;  %v20916_v13 = vld [vmem:[#allocation19_spill] sm:$0xff]  ;;  %v20918_v30 = vld [vmem:[#allocation245_spill] sm:$0xff]  ;;  %v20936_v2 = vld [vmem:[#allocation254_spill] sm:$0xff] }
 0x967   : > { %v17663_v29 = vrot.slane %v7935_v37, %v20866_v46  ;;  %v7072_v54 = vadd.f32 %v20916_v13, %v20915_v62  ;;  %6702 = vrot.lane.b32.xlu1 %v16122_v50, %s10395_s26  ;;  %v7968_v36 = vcombine.low %v7326_v1, %v7327_v34  ;;  %v7292_v15 = vmul.f32 0.25, %v7036_v44  ;;  %v20917_v0 = vld [vmem:[#allocation187_spill] sm:$0xff]  ;;  %v20922_v1 = vld [vmem:[#allocation249_spill] sm:$0xff]  ;;  %v20928_v62 = vld [vmem:[#allocation30_spill] sm:$0xff] }
 0x968   : > { %v7815_v43 = vcombine.low %v7290_v12, %v7291_v24  ;;  %v7043_v20 = vadd.f32 %v20918_v30, %v20917_v0  ;;  %6704 = vrot.lane.b32.xlu0 %v16930_v61, %s10395_s26  ;;  %v17674_v10 = vrot.slane %v7934_v38, %v20866_v46  ;;  %v20919_v39 = vld [vmem:[#allocation375_spill] sm:$0xff]  ;;  %v17678_v26 = vpop.permute.xlu1 %6590  ;;  %v7293_v12 = vmul.f32 0.25, %v7037_v45  ;;  %v20923_v24 = vld [vmem:[#allocation76_spill] sm:$0xff]  ;;  %v17686_v0 = vpop.permute.xlu0 %6592  ;;  %v20927_v61 = vld [vmem:[#allocation378_spill] sm:$0xff] }
 0x969   : > { %20914 = vst [vmem:[#allocation64_spill] sm:$0xff] %v17663_v29  ;;  %v20920_v37 = vld [vmem:[#allocation75_spill] sm:$0xff]  ;;  %20921 = vst [vmem:[#allocation69_spill] sm:$0xff] %v17678_v26  ;;  %v7298_v44 = vmul.f32 0.25, %v7042_v19  ;;  %v7045_v13 = vadd.f32 %v20923_v24, %v20922_v1  ;;  %v17690_v30 = vmul.f32 0.25, %v7072_v54  ;;  %v7052_v35 = vadd.f32 %v20928_v62, %v20927_v61  ;;  %v20930_v61 = vld [vmem:[#allocation28_spill] sm:$0xff] }
 0x96a   : > { %v7044_v21 = vadd.f32 %v20920_v37, %v20919_v39  ;;  %20924 = vst [vmem:[#allocation61_spill] sm:$0xff] %v17686_v0  ;;  %v20925_v39 = vld [vmem:[#allocation252_spill] sm:$0xff]  ;;  %v20926_v37 = vld [vmem:[#allocation203_spill] sm:$0xff]  ;;  %v17701_v19 = vrot.slane %v7968_v36, %v20866_v46  ;;  %v17704_v1 = vrot.slane %v7815_v43, %v20866_v46  ;;  %v7816_v54 = vcombine.low %v7292_v15, %v7293_v12  ;;  %v20931_v38 = vld [vmem:[#allocation190_spill] sm:$0xff] }
 0x96b   : > { %v7050_v50 = vadd.f32 %v20926_v37, %v20925_v39  ;;  %6706 = vrot.lane.b32.xlu1 %v17287_v42, %s10395_s26  ;;  %v7299_v24 = vmul.f32 0.25, %v7043_v20  ;;  %v20929_v37 = vld [vmem:[#allocation316_spill] sm:$0xff]  ;;  %v20932_v34 = vld [vmem:[#allocation139_spill] sm:$0xff]  ;;  %v7301_v43 = vmul.f32 0.25, %v7045_v13  ;;  %v20937_v15 = vld [vmem:[#allocation393_spill] sm:$0xff] }
 0x96c   : > { %6708 = vrot.lane.b32.xlu0 %v17545_v14, %s10395_s26  ;;  %v7300_v39 = vmul.f32 0.25, %v7044_v21  ;;  %v7051_v62 = vadd.f32 %v20930_v61, %v20929_v37  ;;  %v7053_v42 = vadd.f32 %v20932_v34, %v20931_v38  ;;  %v20934_v45 = vld [vmem:[#allocation27_spill] sm:$0xff]  ;;  %v17714_v36 = vpop.permute.xlu1 %6594  ;;  %v7060_v20 = vadd.f32 %v20937_v15, %v20936_v2  ;;  %v20939_v0 = vld [vmem:[#allocation142_spill] sm:$0xff]  ;;  %v17720_v21 = vpop.permute.xlu0 %6596  ;;  %v20943_v38 = vld [vmem:[#allocation377_spill] sm:$0xff] }
 0x96d   : > { %v7058_v3 = vadd.f32 %v20934_v45, %v20933_v4  ;;  %20935 = vst [vmem:[#allocation70_spill] sm:$0xff] %v17714_v36  ;;  %v7849_v26 = vcombine.low %v7298_v44, %v7299_v24  ;;  %v20938_v12 = vld [vmem:[#allocation191_spill] sm:$0xff]  ;;  %20940 = vst [vmem:[#allocation310_spill] sm:$0xff] %v17720_v21  ;;  %v7306_v47 = vmul.f32 0.25, %v7050_v50  ;;  %v7308_v37 = vmul.f32 0.25, %v7052_v35  ;;  %v20944_v27 = vld [vmem:[#allocation36_spill] sm:$0xff] }
 0x96e   : > { %v7068_v14 = vadd.f32 %v20939_v0, %v20938_v12  ;;  %v20941_v61 = vld [vmem:[#allocation315_spill] sm:$0xff]  ;;  %v7061_v4 = vadd.f32 %v20944_v27, %v20943_v38  ;;  %v17729_v44 = vrot.slane %v7816_v54, %v20866_v46  ;;  %v20945_v2 = vld [vmem:[#allocation128_spill] sm:$0xff]  ;;  %v20946_v13 = vld [vmem:[#allocation78_spill] sm:$0xff]  ;;  %v7307_v27 = vmul.f32 0.25, %v7051_v62 }
 0x96f   : > { %v7059_v34 = vadd.f32 %v20942_v32, %v20941_v61  ;;  %6710 = vrot.lane.b32.xlu1 %v16108_v51, %s10395_s26  ;;  %v7066_v45 = vadd.f32 %v20946_v13, %v20945_v2  ;;  %v20947_v0 = vld [vmem:[#allocation379_spill] sm:$0xff]  ;;  %v20948_v24 = vld [vmem:[#allocation206_spill] sm:$0xff]  ;;  %v20950_v35 = vld [vmem:[#allocation205_spill] sm:$0xff]  ;;  %v7850_v32 = vcombine.low %v7300_v39, %v7301_v43  ;;  %v7309_v61 = vmul.f32 0.25, %v7053_v42 }
 0x970   : > { %v7069_v15 = vadd.f32 %v20948_v24, %v20947_v0  ;;  %v20949_v50 = vld [vmem:[#allocation127_spill] sm:$0xff]  ;;  %6712 = vrot.lane.b32.xlu0 %v16877_v31, %s10395_s26  ;;  %v7314_v38 = vmul.f32 0.25, %v7058_v3  ;;  %v17739_v51 = vpop.permute.xlu1 %6598  ;;  %v17742_v54 = vrot.slane %v7849_v26, %v20866_v46  ;;  %v7316_v36 = vmul.f32 0.25, %v7060_v20  ;;  %v20952_v2 = vld [vmem:[#allocation192_spill] sm:$0xff]  ;;  %v20953_v13 = vld [vmem:[#allocation29_spill] sm:$0xff]  ;;  %v17746_v24 = vpop.permute.xlu0 %6600 }
 0x971   : > { %v7073_v12 = vadd.f32 %v20950_v35, %v20949_v50  ;;  %20951 = vst [vmem:[#allocation309_spill] sm:$0xff] %v17739_v51  ;;  %v7067_v21 = vadd.f32 %v20953_v13, %v20952_v2  ;;  %v7324_v0 = vmul.f32 0.25, %v7068_v14  ;;  %20954 = vst [vmem:[#allocation181_spill] sm:$0xff] %v17746_v24  ;;  %v7883_v50 = vcombine.low %v7306_v47, %v7307_v27  ;;  %v20955_v62 = vld [vmem:[#allocation130_spill] sm:$0xff]  ;;  %v20956_v26 = vld [vmem:[#allocation37_spill] sm:$0xff] }
 0x972   : > { %v7884_v35 = vcombine.low %v7308_v37, %v7309_v61  ;;  %v7315_v29 = vmul.f32 0.25, %v7059_v34  ;;  %v7317_v31 = vmul.f32 0.25, %v7061_v4  ;;  %v7322_v42 = vmul.f32 0.25, %v7066_v45  ;;  %v20957_v47 = vld [vmem:[#allocation381_spill] sm:$0xff]  ;;  %v20959_v4 = vld [vmem:[#allocation383_spill] sm:$0xff]  ;;  %v20962_v13 = vld [vmem:[#allocation194_spill] sm:$0xff] }
 0x973   : > { %6714 = vrot.lane.b32.xlu1 %v17290_v23, %s10395_s26  ;;  %v7325_v3 = vmul.f32 0.25, %v7069_v15  ;;  %v7329_v39 = vmul.f32 0.25, %v7073_v12  ;;  %v7077_v43 = vadd.f32 %v20956_v26, %v20955_v62  ;;  %v17755_v14 = vrot.slane %v7850_v32, %v20866_v46  ;;  %v20958_v37 = vld [vmem:[#allocation333_spill] sm:$0xff] }
 0x974   : > { %6716 = vrot.lane.b32.xlu0 %v17499_v7, %s10395_s26  ;;  %v7917_v20 = vcombine.low %v7314_v38, %v7315_v29  ;;  %v7075_v34 = vadd.f32 %v20958_v37, %v20957_v47  ;;  %v20960_v27 = vld [vmem:[#allocation41_spill] sm:$0xff]  ;;  %v17761_v2 = vpop.permute.xlu1 %6602  ;;  %v7918_v45 = vcombine.low %v7316_v36, %v7317_v31  ;;  %v7323_v15 = vmul.f32 0.25, %v7067_v21  ;;  %v17765_v23 = vpop.permute.xlu0 %6604  ;;  %v20965_v29 = vld [vmem:[#allocation255_spill] sm:$0xff]  ;;  %v20968_v37 = vld [vmem:[#allocation208_spill] sm:$0xff] }
 0x975   : > { %v7081_v61 = vadd.f32 %v20960_v27, %v20959_v4  ;;  %20961 = vst [vmem:[#allocation326_spill] sm:$0xff] %v17761_v2  ;;  %v7952_v12 = vcombine.low %v7324_v0, %v7325_v3  ;;  %v20963_v62 = vld [vmem:[#allocation269_spill] sm:$0xff]  ;;  %20964 = vst [vmem:[#allocation119_spill] sm:$0xff] %v17765_v23  ;;  %v17768_v32 = vrot.slane %v7883_v50, %v20866_v46  ;;  %v20970_v27 = vld [vmem:[#allocation79_spill] sm:$0xff]  ;;  %v7333_v0 = vmul.f32 0.25, %v7077_v43 }
 0x976   : > { %v7076_v26 = vadd.f32 %v20963_v62, %v20962_v13  ;;  %v20966_v38 = vld [vmem:[#allocation141_spill] sm:$0xff]  ;;  %v17779_v31 = vrot.slane %v7884_v35, %v20866_v46  ;;  %v7951_v36 = vcombine.low %v7322_v42, %v7323_v15  ;;  %v7969_v21 = vcombine.low %v17690_v30, %v7329_v39  ;;  %v20972_v62 = vld [vmem:[#allocation42_spill] sm:$0xff]  ;;  %v20974_v39 = vld [vmem:[#allocation132_spill] sm:$0xff] }
 0x977   : > { %v7074_v7 = vadd.f32 %v20966_v38, %v20965_v29  ;;  %v20967_v47 = vld [vmem:[#allocation129_spill] sm:$0xff]  ;;  %6718 = vrot.lane.b32.xlu1 %v16163_v63, %s10395_s26  ;;  %v17785_v50 = vrot.slane %v7917_v20, %v20866_v46  ;;  %v7331_v3 = vmul.f32 0.25, %v7075_v34  ;;  %v7337_v38 = vmul.f32 0.25, %v7081_v61  ;;  %v20975_v43 = vld [vmem:[#allocation143_spill] sm:$0xff]  ;;  %v21028_v23 = vld [vmem:[#allocation94_spill] sm:$0xff] }
 0x978   : > { %v7079_v51 = vadd.f32 %v20968_v37, %v20967_v47  ;;  %v20969_v4 = vld [vmem:[#allocation321_spill] sm:$0xff]  ;;  %6720 = vrot.lane.b32.xlu0 %v16934_v60, %s10395_s26  ;;  %v17789_v47 = vpop.permute.xlu1 %6606  ;;  %v17792_v35 = vrot.slane %v7918_v45, %v20866_v46  ;;  %v17795_v42 = vrot.slane %v7952_v12, %v20866_v46  ;;  %v7332_v30 = vmul.f32 0.25, %v7076_v26  ;;  %v17799_v37 = vpop.permute.xlu0 %6608 }
 0x979   : > { %v7080_v2 = vadd.f32 %v20970_v27, %v20969_v4  ;;  %v20971_v13 = vld [vmem:[#allocation193_spill] sm:$0xff]  ;;  %20973 = vst [vmem:[#allocation10_spill] sm:$0xff] %v17789_v47  ;;  %v7083_v15 = vadd.f32 %v20975_v43, %v20974_v39  ;;  %20976 = vst [vmem:[#allocation124_spill] sm:$0xff] %v17799_v37  ;;  %v7330_v20 = vmul.f32 0.25, %v7074_v7  ;;  %v20977_v27 = vld [vmem:[#allocation131_spill] sm:$0xff]  ;;  %v17806_v45 = vrot.slane %v7951_v36, %v20866_v46 }
 0x97a   : > { %v7078_v29 = vadd.f32 %v20972_v62, %v20971_v13  ;;  %v7335_v34 = vmul.f32 0.25, %v7079_v51  ;;  %v20978_v13 = vld [vmem:[#allocation271_spill] sm:$0xff]  ;;  %v17809_v12 = vrot.slane %v7969_v21, %v20866_v46  ;;  %v7986_v26 = vcombine.low %v7332_v30, %v7333_v0  ;;  %v20979_v62 = vld [vmem:[#allocation196_spill] sm:$0xff]  ;;  %v20992_v0 = vld [vmem:[#allocation262_spill] sm:$0xff] }
 0x97b   : > { %v7336_v4 = vmul.f32 0.25, %v7080_v2  ;;  %v7085_v61 = vadd.f32 %v20978_v13, %v20977_v27  ;;  %6722 = vrot.lane.b32.xlu1 %v17503_v59, %s10395_s26  ;;  %v20980_v39 = vld [vmem:[#allocation207_spill] sm:$0xff]  ;;  %v7985_v51 = vcombine.low %v7330_v20, %v7331_v3  ;;  %v7339_v36 = vmul.f32 0.25, %v7083_v15  ;;  %v20988_v15 = vld [vmem:[#allocation134_spill] sm:$0xff] }
 0x97c   : > { %v7082_v43 = vadd.f32 %v20980_v39, %v20979_v62  ;;  %6724 = vrot.lane.b32.xlu0 %v17549_v18, %s10395_s26  ;;  %v7334_v7 = vmul.f32 0.25, %v7078_v29  ;;  %v20981_v27 = vld [vmem:[#allocation195_spill] sm:$0xff]  ;;  %v17817_v59 = vpop.permute.xlu1 %6610  ;;  %v17819_v63 = vpop.permute.xlu0 %6612  ;;  %v17834_v20 = vrot.slane %v7986_v26, %v20866_v46  ;;  %v20985_v62 = vld [vmem:[#allocation385_spill] sm:$0xff]  ;;  %v20986_v39 = vld [vmem:[#allocation82_spill] sm:$0xff]  ;;  %v7089_v26 = vadd.f32 %v15253_v28, %v20988_v15 }
 0x97d   : > { %v8003_v2 = vcombine.low %v7336_v4, %v7337_v38  ;;  %v20982_v13 = vld [vmem:[#allocation43_spill] sm:$0xff]  ;;  %20983 = vst [vmem:[#allocation63_spill] sm:$0xff] %v17817_v59  ;;  %20984 = vst [vmem:[#allocation117_spill] sm:$0xff] %v17819_v63  ;;  %v7341_v29 = vmul.f32 0.25, %v7085_v61  ;;  %v17843_v61 = vrot.slane %v7985_v51, %v20866_v46  ;;  %v7091_v21 = vadd.f32 %v15297_v33, %v20992_v0  ;;  %v20997_v15 = vld [vmem:[#allocation9_spill] sm:$0xff] }
 0x97e   : > { %v7084_v60 = vadd.f32 %v20982_v13, %v20981_v27  ;;  %v8002_v3 = vcombine.low %v7334_v7, %v7335_v34  ;;  %v7338_v4 = vmul.f32 0.25, %v7082_v43  ;;  %v7087_v27 = vadd.f32 %v20986_v39, %v20985_v62  ;;  %v20990_v62 = vld [vmem:[#allocation323_spill] sm:$0xff]  ;;  %v20991_v39 = vld [vmem:[#allocation46_spill] sm:$0xff]  ;;  %v20993_v34 = vld [vmem:[#allocation12_spill] sm:$0xff] }
 0x97f   : > { %6726 = vrot.lane.b32.xlu1 %v16111_v56, %s10395_s26  ;;  %v17846_v7 = vrot.slane %v8003_v2, %v20866_v46  ;;  %v7086_v30 = vadd.f32 %v20991_v39, %v20990_v62  ;;  %v7093_v51 = vadd.f32 %v15338_v8, %v20993_v34  ;;  %v20996_v56 = vld [vmem:[#allocation198_spill] sm:$0xff]  ;;  %v20999_v33 = vld [vmem:[#allocation197_spill] sm:$0xff]  ;;  %v21001_v8 = vld [vmem:[#allocation388_spill] sm:$0xff] }
 0x980   : > { %6728 = vrot.lane.b32.xlu0 %v16908_v6, %s10395_s26  ;;  %v7340_v13 = vmul.f32 0.25, %v7084_v60  ;;  %v17850_v43 = vpop.permute.xlu1 %6614  ;;  %v8019_v38 = vcombine.low %v7338_v4, %v7339_v36  ;;  %v17858_v6 = vpop.permute.xlu0 %6616  ;;  %v17861_v2 = vrot.slane %v8002_v3, %v20866_v46  ;;  %v7088_v28 = vadd.f32 %v15247_v53, %v20996_v56  ;;  %v20998_v36 = vld [vmem:[#allocation88_spill] sm:$0xff]  ;;  %v21000_v0 = vld [vmem:[#allocation57_spill] sm:$0xff]  ;;  %v21002_v34 = vld [vmem:[#allocation338_spill] sm:$0xff] }
 0x981   : > { %20987 = vst [vmem:[#allocation133_spill] sm:$0xff] %v17846_v7  ;;  %20989 = vst [vmem:[#allocation121_spill] sm:$0xff] %v17850_v43  ;;  %v7097_v4 = vadd.f32 %v20998_v36, %v20997_v15  ;;  %v7343_v62 = vmul.f32 0.25, %v7087_v27  ;;  %v7090_v39 = vadd.f32 %v21000_v0, %v20999_v33  ;;  %v7092_v18 = vadd.f32 %v21002_v34, %v21001_v8  ;;  %v21003_v56 = vld [vmem:[#allocation261_spill] sm:$0xff]  ;;  %v21005_v15 = vld [vmem:[#allocation16_spill] sm:$0xff] }
 0x982   : > { %20994 = vst [vmem:[#allocation325_spill] sm:$0xff] %v17858_v6  ;;  %20995 = vst [vmem:[#allocation123_spill] sm:$0xff] %v17861_v2  ;;  %v8020_v60 = vcombine.low %v7340_v13, %v7341_v29  ;;  %v7345_v53 = vmul.f32 0.25, %v7089_v26  ;;  %v21004_v29 = vld [vmem:[#allocation55_spill] sm:$0xff]  ;;  %v17886_v0 = vrot.slane %v8019_v38, %v20866_v46  ;;  %v7342_v8 = vmul.f32 0.25, %v7086_v30  ;;  %v21012_v3 = vld [vmem:[#allocation400_spill] sm:$0xff] }
 0x983   : > { %6730 = vrot.lane.b32.xlu1 %v17469_v49, %s10395_s26  ;;  %v7095_v13 = vadd.f32 %v21004_v29, %v21003_v56  ;;  %v21006_v36 = vld [vmem:[#allocation399_spill] sm:$0xff]  ;;  %v7347_v34 = vmul.f32 0.25, %v7091_v21  ;;  %v7344_v56 = vmul.f32 0.25, %v7088_v28  ;;  %v21011_v29 = vld [vmem:[#allocation8_spill] sm:$0xff]  ;;  %v7346_v43 = vmul.f32 0.25, %v7090_v39  ;;  %v21014_v59 = vld [vmem:[#allocation13_spill] sm:$0xff] }
 0x984   : > { %6732 = vrot.lane.b32.xlu0 %v17510_v58, %s10395_s26  ;;  %v7096_v49 = vadd.f32 %v21006_v36, %v21005_v15  ;;  %v17881_v27 = vpop.permute.xlu1 %6618  ;;  %21008 = vst [vmem:[#allocation6_spill] sm:$0xff] %v17886_v0  ;;  %v7349_v58 = vmul.f32 0.25, %v7093_v51  ;;  %v17888_v6 = vpop.permute.xlu0 %6620  ;;  %v17891_v26 = vrot.slane %v8020_v60, %v20866_v46  ;;  %v7094_v15 = vadd.f32 %v21012_v3, %v21011_v29  ;;  %v21015_v30 = vld [vmem:[#allocation211_spill] sm:$0xff]  ;;  %v21016_v51 = vld [vmem:[#allocation241_spill] sm:$0xff]  ;;  %v21017_v28 = vld [vmem:[#allocation328_spill] sm:$0xff] }
 0x985   : > { %21007 = vst [vmem:[#allocation72_spill] sm:$0xff] %v17881_v27  ;;  %21009 = vst [vmem:[#allocation312_spill] sm:$0xff] %v17888_v6  ;;  %v7353_v36 = vmul.f32 0.25, %v7097_v4  ;;  %v21013_v27 = vld [vmem:[#allocation283_spill] sm:$0xff]  ;;  %v8036_v33 = vcombine.low %v7342_v8, %v7343_v62  ;;  %v7348_v38 = vmul.f32 0.25, %v7092_v18  ;;  %v7099_v21 = vadd.f32 %v21015_v30, %v21014_v59  ;;  %v21021_v62 = vld [vmem:[#allocation85_spill] sm:$0xff] }
 0x986   : > { %21010 = vst [vmem:[#allocation135_spill] sm:$0xff] %v17891_v26  ;;  %v8037_v6 = vcombine.low %v7344_v56, %v7345_v53  ;;  %v7351_v60 = vmul.f32 0.25, %v7095_v13  ;;  %v7352_v63 = vmul.f32 0.25, %v7096_v49  ;;  %v21018_v47 = vld [vmem:[#allocation147_spill] sm:$0xff]  ;;  %v8053_v4 = vcombine.low %v7346_v43, %v7347_v34  ;;  %v21022_v18 = vld [vmem:[#allocation390_spill] sm:$0xff]  ;;  %v21026_v13 = vld [vmem:[#allocation276_spill] sm:$0xff] }
 0x987   : > { %6734 = vrot.lane.b32.xlu1 %v21013_v27, %s10395_s26  ;;  %v7101_v37 = vadd.f32 %v21018_v47, %v21017_v28  ;;  %v8054_v29 = vcombine.low %v7348_v38, %v7349_v58  ;;  %v21020_v27 = vld [vmem:[#allocation18_spill] sm:$0xff]  ;;  %v21023_v8 = vld [vmem:[#allocation275_spill] sm:$0xff]  ;;  %v7350_v30 = vmul.f32 0.25, %v7094_v15  ;;  %v21027_v56 = vld [vmem:[#allocation389_spill] sm:$0xff]  ;;  %v17918_v58 = vrot.slane %v8036_v33, %v20866_v46 }
 0x988   : > { %6736 = vrot.lane.b32.xlu0 %v21016_v51, %s10395_s26  ;;  %v17903_v3 = vpop.permute.xlu1 %6622  ;;  %v7098_v39 = vadd.f32 %v21021_v62, %v21020_v27  ;;  %v7103_v24 = vadd.f32 %v21023_v8, %v21022_v18  ;;  %v17909_v59 = vpop.permute.xlu0 %6624  ;;  %v8071_v51 = vcombine.low %v7352_v63, %v7353_v36  ;;  %v21025_v53 = vld [vmem:[#allocation71_spill] sm:$0xff]  ;;  %v7105_v47 = vadd.f32 %v21028_v23, %v21027_v56  ;;  %v21030_v27 = vld [vmem:[#allocation264_spill] sm:$0xff]  ;;  %v21034_v62 = vld [vmem:[#allocation214_spill] sm:$0xff] }
 0x989   : > { %21019 = vst [vmem:[#allocation184_spill] sm:$0xff] %v17903_v3  ;;  %21024 = vst [vmem:[#allocation387_spill] sm:$0xff] %v17909_v59  ;;  %v7100_v49 = vadd.f32 %v21026_v13, %v21025_v53  ;;  %v7355_v43 = vmul.f32 0.25, %v7099_v21  ;;  %v21031_v34 = vld [vmem:[#allocation92_spill] sm:$0xff]  ;;  %v17927_v15 = vrot.slane %v8037_v6, %v20866_v46  ;;  %v8070_v23 = vcombine.low %v7350_v30, %v7351_v60  ;;  %v21033_v28 = vld [vmem:[#allocation15_spill] sm:$0xff] }
 0x98a   : > { %21029 = vst [vmem:[#allocation246_spill] sm:$0xff] %v17918_v58  ;;  %v7102_v38 = vadd.f32 %v21031_v34, %v21030_v27  ;;  %v7357_v36 = vmul.f32 0.25, %v7101_v37  ;;  %v7104_v18 = vadd.f32 %v21034_v62, %v21033_v28  ;;  %v17934_v21 = vrot.slane %v8054_v29, %v20866_v46  ;;  %v21037_v13 = vld [vmem:[#allocation138_spill] sm:$0xff]  ;;  %v21038_v56 = vld [vmem:[#allocation341_spill] sm:$0xff]  ;;  %v21042_v28 = vld [vmem:[#allocation219_spill] sm:$0xff] }
 0x98b   : > { %6738 = vrot.lane.b32.xlu1 %v17514_v55, %s10395_s26  ;;  %21032 = vst [vmem:[#allocation11_spill] sm:$0xff] %v17927_v15  ;;  %v7354_v8 = vmul.f32 0.25, %v7098_v39  ;;  %v7359_v53 = vmul.f32 0.25, %v7103_v24  ;;  %v7109_v27 = vadd.f32 %v21038_v56, %v21037_v13  ;;  %v17941_v6 = vrot.slane %v8053_v4, %v20866_v46  ;;  %v21043_v39 = vld [vmem:[#allocation202_spill] sm:$0xff]  ;;  %v21046_v13 = vld [vmem:[#allocation404_spill] sm:$0xff]  ;;  %v21092_v58 = vld [vmem:[#allocation281_spill] sm:$0xff] }
 0x98c   : > { %6740 = vrot.lane.b32.xlu0 %v17559_v52, %s10395_s26  ;;  %v17931_v33 = vpop.permute.xlu1 %6626  ;;  %21036 = vst [vmem:[#allocation136_spill] sm:$0xff] %v17934_v21  ;;  %v17938_v34 = vpop.permute.xlu0 %6628  ;;  %v17944_v37 = vrot.slane %v8071_v51, %v20866_v46  ;;  %v7356_v60 = vmul.f32 0.25, %v7100_v49  ;;  %v7361_v30 = vmul.f32 0.25, %v7105_v47  ;;  %v7358_v62 = vmul.f32 0.25, %v7102_v38  ;;  %v21044_v24 = vld [vmem:[#allocation278_spill] sm:$0xff]  ;;  %v21045_v52 = vld [vmem:[#allocation24_spill] sm:$0xff] }
 0x98d   : > { %21035 = vst [vmem:[#allocation183_spill] sm:$0xff] %v17931_v33  ;;  %21039 = vst [vmem:[#allocation373_spill] sm:$0xff] %v17938_v34  ;;  %v8087_v29 = vcombine.low %v7354_v8, %v7355_v43  ;;  %v7107_v63 = vadd.f32 %v21044_v24, %v21043_v39  ;;  %v7108_v56 = vadd.f32 %v21046_v13, %v21045_v52  ;;  %v21047_v34 = vld [vmem:[#allocation237_spill] sm:$0xff]  ;;  %v7360_v49 = vmul.f32 0.25, %v7104_v18  ;;  %v21050_v8 = vld [vmem:[#allocation20_spill] sm:$0xff] }
 0x98e   : > { %21040 = vst [vmem:[#allocation199_spill] sm:$0xff] %v17941_v6  ;;  %21041 = vst [vmem:[#allocation185_spill] sm:$0xff] %v17944_v37  ;;  %v17955_v4 = vrot.slane %v8070_v23, %v20866_v46  ;;  %v8088_v51 = vcombine.low %v7356_v60, %v7357_v36  ;;  %v8104_v38 = vcombine.low %v7358_v62, %v7359_v53  ;;  %v7365_v24 = vmul.f32 0.25, %v7109_v27  ;;  %v21053_v23 = vld [vmem:[#allocation266_spill] sm:$0xff]  ;;  %v21055_v18 = vld [vmem:[#allocation21_spill] sm:$0xff] }
 0x98f   : > { %6742 = vrot.lane.b32.xlu1 %v21042_v28, %s10395_s26  ;;  %v21051_v28 = vld [vmem:[#allocation342_spill] sm:$0xff]  ;;  %v8105_v13 = vcombine.low %v7360_v49, %v7361_v30  ;;  %v21056_v60 = vld [vmem:[#allocation280_spill] sm:$0xff]  ;;  %v17976_v27 = vrot.slane %v8087_v29, %v20866_v46  ;;  %v7364_v62 = vmul.f32 0.25, %v7108_v56  ;;  %v21059_v52 = vld [vmem:[#allocation279_spill] sm:$0xff] }
 0x990   : > { %6744 = vrot.lane.b32.xlu0 %v21047_v34, %s10395_s26  ;;  %21048 = vst [vmem:[#allocation74_spill] sm:$0xff] %v17955_v4  ;;  %v17957_v47 = vpop.permute.xlu1 %6630  ;;  %v7106_v39 = vadd.f32 %v21051_v28, %v21050_v8  ;;  %v17963_v33 = vpop.permute.xlu0 %6632  ;;  %v21054_v34 = vld [vmem:[#allocation216_spill] sm:$0xff]  ;;  %v7363_v28 = vmul.f32 0.25, %v7107_v63  ;;  %v21058_v8 = vld [vmem:[#allocation265_spill] sm:$0xff]  ;;  %v21067_v29 = vld [vmem:[#allocation218_spill] sm:$0xff]  ;;  %v17994_v56 = vrot.slane %v8104_v38, %v20866_v46 }
 0x991   : > { %21049 = vst [vmem:[#allocation120_spill] sm:$0xff] %v17957_v47  ;;  %21052 = vst [vmem:[#allocation14_spill] sm:$0xff] %v17963_v33  ;;  %v7111_v36 = vadd.f32 %v21054_v34, %v21053_v23  ;;  %v7113_v47 = vadd.f32 %v21056_v60, %v21055_v18  ;;  %v7115_v30 = vadd.f32 %v21059_v52, %v21058_v8  ;;  %v21060_v49 = vld [vmem:[#allocation257_spill] sm:$0xff]  ;;  %v21062_v23 = vld [vmem:[#allocation330_spill] sm:$0xff] }
 0x992   : > { %21057 = vst [vmem:[#allocation122_spill] sm:$0xff] %v17976_v27  ;;  %v17983_v34 = vrot.slane %v8088_v51, %v20866_v46  ;;  %v21063_v18 = vld [vmem:[#allocation98_spill] sm:$0xff]  ;;  %v21064_v43 = vld [vmem:[#allocation137_spill] sm:$0xff]  ;;  %v21065_v33 = vld [vmem:[#allocation344_spill] sm:$0xff]  ;;  %v7362_v52 = vmul.f32 0.25, %v7106_v39  ;;  %v8122_v8 = vcombine.low %v7364_v62, %v7365_v24 }
 0x993   : > { %6746 = vrot.lane.b32.xlu1 %v17479_v22, %s10395_s26  ;;  %v7110_v60 = vadd.f32 %v21063_v18, %v21062_v23  ;;  %v7112_v53 = vadd.f32 %v21065_v33, %v21064_v43  ;;  %v21066_v22 = vld [vmem:[#allocation204_spill] sm:$0xff]  ;;  %21069 = vst [vmem:[#allocation263_spill] sm:$0xff] %v17994_v56  ;;  %v18001_v23 = vrot.slane %v8105_v13, %v20866_v46  ;;  %v7367_v18 = vmul.f32 0.25, %v7111_v36  ;;  %v21074_v43 = vld [vmem:[#allocation25_spill] sm:$0xff]  ;;  %v21075_v37 = vld [vmem:[#allocation106_spill] sm:$0xff] }
 0x994   : > { %6748 = vrot.lane.b32.xlu0 %v21060_v49, %s10395_s26  ;;  %21061 = vst [vmem:[#allocation200_spill] sm:$0xff] %v17983_v34  ;;  %v7117_v55 = vadd.f32 %v21067_v29, %v21066_v22  ;;  %v17991_v63 = vpop.permute.xlu1 %6634  ;;  %v21070_v49 = vld [vmem:[#allocation23_spill] sm:$0xff]  ;;  %v21071_v59 = vld [vmem:[#allocation104_spill] sm:$0xff]  ;;  %v17998_v3 = vpop.permute.xlu0 %6636  ;;  %v7369_v33 = vmul.f32 0.25, %v7113_v47  ;;  %v7116_v22 = vadd.f32 %v21075_v37, %v21074_v43  ;;  %v21076_v29 = vld [vmem:[#allocation409_spill] sm:$0xff]  ;;  %v8121_v38 = vcombine.low %v7362_v52, %v7363_v28 }
 0x995   : > { %21068 = vst [vmem:[#allocation248_spill] sm:$0xff] %v17991_v63  ;;  %v7114_v51 = vadd.f32 %v21071_v59, %v21070_v49  ;;  %21072 = vst [vmem:[#allocation311_spill] sm:$0xff] %v17998_v3  ;;  %v7371_v63 = vmul.f32 0.25, %v7115_v30  ;;  %v21077_v39 = vld [vmem:[#allocation332_spill] sm:$0xff]  ;;  %v21078_v24 = vld [vmem:[#allocation217_spill] sm:$0xff]  ;;  %v7366_v13 = vmul.f32 0.25, %v7110_v60  ;;  %v18018_v28 = vrot.slane %v8122_v8, %v20866_v46 }
 0x996   : > { %21073 = vst [vmem:[#allocation17_spill] sm:$0xff] %v18001_v23  ;;  %v7119_v62 = vadd.f32 %v21078_v24, %v21077_v39  ;;  %v21079_v4 = vld [vmem:[#allocation394_spill] sm:$0xff]  ;;  %v21080_v59 = vld [vmem:[#allocation108_spill] sm:$0xff]  ;;  %v21081_v3 = vld [vmem:[#allocation317_spill] sm:$0xff]  ;;  %v7368_v36 = vmul.f32 0.25, %v7112_v53  ;;  %v7373_v47 = vmul.f32 0.25, %v7117_v55 }
 0x997   : > { %6750 = vrot.lane.b32.xlu1 %v21076_v29, %s10395_s26  ;;  %v7121_v49 = vadd.f32 %v21080_v59, %v21079_v4  ;;  %v21082_v21 = vld [vmem:[#allocation34_spill] sm:$0xff]  ;;  %v21083_v6 = vld [vmem:[#allocation107_spill] sm:$0xff]  ;;  %21085 = vst [vmem:[#allocation327_spill] sm:$0xff] %v18018_v28  ;;  %v7370_v30 = vmul.f32 0.25, %v7114_v51  ;;  %v21086_v52 = vld [vmem:[#allocation140_spill] sm:$0xff]  ;;  %v8138_v60 = vcombine.low %v7366_v13, %v7367_v18  ;;  %v7372_v55 = vmul.f32 0.25, %v7116_v22 }
 0x998   : > { %6752 = vrot.lane.b32.xlu0 %v21081_v3, %s10395_s26  ;;  %v7123_v37 = vadd.f32 %v21083_v6, %v21082_v21  ;;  %v18015_v43 = vpop.permute.xlu1 %6638  ;;  %v21087_v39 = vld [vmem:[#allocation105_spill] sm:$0xff]  ;;  %v21088_v29 = vld [vmem:[#allocation268_spill] sm:$0xff]  ;;  %v18024_v15 = vpop.permute.xlu0 %6640  ;;  %v8139_v53 = vcombine.low %v7368_v36, %v7369_v33  ;;  %v21094_v26 = vld [vmem:[#allocation38_spill] sm:$0xff] }
 0x999   : > { %21084 = vst [vmem:[#allocation186_spill] sm:$0xff] %v18015_v43  ;;  %v7118_v24 = vadd.f32 %v21087_v39, %v21086_v52  ;;  %v21089_v4 = vld [vmem:[#allocation408_spill] sm:$0xff]  ;;  %21090 = vst [vmem:[#allocation188_spill] sm:$0xff] %v18024_v15  ;;  %v8155_v8 = vcombine.low %v7370_v30, %v7371_v63  ;;  %v7375_v43 = vmul.f32 0.25, %v7119_v62  ;;  %v7377_v51 = vmul.f32 0.25, %v7121_v49  ;;  %v21095_v0 = vld [vmem:[#allocation114_spill] sm:$0xff] }
 0x99a   : > { %v7120_v59 = vadd.f32 %v21089_v4, %v21088_v29  ;;  %v21091_v3 = vld [vmem:[#allocation32_spill] sm:$0xff]  ;;  %v7125_v52 = vadd.f32 %v21095_v0, %v21094_v26  ;;  %v18035_v29 = vrot.slane %v8121_v38, %v20866_v46  ;;  %v8156_v18 = vcombine.low %v7372_v55, %v7373_v47  ;;  %v21099_v62 = vld [vmem:[#allocation267_spill] sm:$0xff] }
 0x99b   : > { %v7122_v21 = vadd.f32 %v21092_v58, %v21091_v3  ;;  %v21093_v6 = vld [vmem:[#allocation60_spill] sm:$0xff]  ;;  %v7379_v33 = vmul.f32 0.25, %v7123_v37  ;;  %v7374_v58 = vmul.f32 0.25, %v7118_v24  ;;  %v18048_v26 = vrot.slane %v8138_v60, %v20866_v46  ;;  %v21102_v37 = vld [vmem:[#allocation410_spill] sm:$0xff]  ;;  %v21106_v3 = vld [vmem:[#allocation35_spill] sm:$0xff] }
 0x99c   : > { %6754 = vrot.lane.b32.xlu1 %v21093_v6, %s10395_s26  ;;  %v21096_v39 = vld [vmem:[#allocation384_spill] sm:$0xff]  ;;  %21097 = vst [vmem:[#allocation73_spill] sm:$0xff] %v18035_v29  ;;  %v18037_v22 = vpop.permute.xlu1 %6642  ;;  %v7376_v63 = vmul.f32 0.25, %v7120_v59  ;;  %v18043_v36 = vpop.permute.xlu0 %6644  ;;  %v18051_v38 = vrot.slane %v8139_v53, %v20866_v46  ;;  %v18058_v24 = vrot.slane %v8155_v8, %v20866_v46  ;;  %v7381_v55 = vmul.f32 0.25, %v7125_v52  ;;  %v21111_v52 = vld [vmem:[#allocation31_spill] sm:$0xff]  ;;  %v21119_v6 = vld [vmem:[#allocation286_spill] sm:$0xff] }
 0x99d   : > { %6756 = vrot.lane.b32.xlu0 %v21096_v39, %s10395_s26  ;;  %21098 = vst [vmem:[#allocation250_spill] sm:$0xff] %v18037_v22  ;;  %v21100_v49 = vld [vmem:[#allocation220_spill] sm:$0xff]  ;;  %21101 = vst [vmem:[#allocation26_spill] sm:$0xff] %v18043_v36  ;;  %v7378_v47 = vmul.f32 0.25, %v7122_v21  ;;  %v8172_v4 = vcombine.low %v7374_v58, %v7375_v43  ;;  %v18063_v60 = vrot.slane %v8156_v18, %v20866_v46  ;;  %v21104_v21 = vld [vmem:[#allocation77_spill] sm:$0xff] }
 0x99e   : > { %v7124_v13 = vadd.f32 %v21100_v49, %v21099_v62  ;;  %v8173_v59 = vcombine.low %v7376_v63, %v7377_v51  ;;  %v21103_v62 = vld [vmem:[#allocation239_spill] sm:$0xff]  ;;  %v21105_v49 = vld [vmem:[#allocation222_spill] sm:$0xff]  ;;  %v21107_v22 = vld [vmem:[#allocation349_spill] sm:$0xff] }
 0x99f   : > { %v8189_v53 = vcombine.low %v7378_v47, %v7379_v33  ;;  %v7129_v0 = vadd.f32 %v21105_v49, %v21104_v21  ;;  %v7133_v15 = vadd.f32 %v21107_v22, %v21106_v3  ;;  %v21109_v36 = vld [vmem:[#allocation40_spill] sm:$0xff]  ;;  %v21110_v43 = vld [vmem:[#allocation113_spill] sm:$0xff]  ;;  %v21117_v47 = vld [vmem:[#allocation158_spill] sm:$0xff] }
 0x9a0   : > { %6758 = vrot.lane.b32.xlu1 %v21102_v37, %s10395_s26  ;;  %v18069_v30 = vpop.permute.xlu1 %6646  ;;  %v7380_v8 = vmul.f32 0.25, %v7124_v13  ;;  %v7126_v51 = vadd.f32 %v21110_v43, %v21109_v36  ;;  %v21112_v58 = vld [vmem:[#allocation284_spill] sm:$0xff]  ;;  %v18077_v39 = vpop.permute.xlu0 %6648  ;;  %v21116_v33 = vld [vmem:[#allocation33_spill] sm:$0xff]  ;;  %v21118_v49 = vld [vmem:[#allocation270_spill] sm:$0xff] }
 0x9a1   : > { %6760 = vrot.lane.b32.xlu0 %v21103_v62, %s10395_s26  ;;  %21108 = vst [vmem:[#allocation247_spill] sm:$0xff] %v18069_v30  ;;  %v7127_v63 = vadd.f32 %v21112_v58, %v21111_v52  ;;  %v21113_v62 = vld [vmem:[#allocation44_spill] sm:$0xff]  ;;  %21115 = vst [vmem:[#allocation22_spill] sm:$0xff] %v18077_v39  ;;  %v7128_v21 = vadd.f32 %v21117_v47, %v21116_v33  ;;  %v7131_v22 = vadd.f32 %v21119_v6, %v21118_v49  ;;  %v21121_v30 = vld [vmem:[#allocation162_spill] sm:$0xff] }
 0x9a2   : > { %v21114_v37 = vld [vmem:[#allocation168_spill] sm:$0xff]  ;;  %v21122_v28 = vld [vmem:[#allocation39_spill] sm:$0xff]  ;;  %v21123_v29 = vld [vmem:[#allocation161_spill] sm:$0xff]  ;;  %v18090_v52 = vrot.slane %v8172_v4, %v20866_v46  ;;  %v7385_v6 = vmul.f32 0.25, %v7129_v0 }
 0x9a3   : > { %v7137_v18 = vadd.f32 %v21114_v37, %v21113_v62  ;;  %v21120_v3 = vld [vmem:[#allocation396_spill] sm:$0xff]  ;;  %v7135_v36 = vadd.f32 %v21123_v29, %v21122_v28  ;;  %v21124_v43 = vld [vmem:[#allocation369_spill] sm:$0xff]  ;;  %v18093_v37 = vrot.slane %v8173_v59, %v20866_v46  ;;  %v8190_v62 = vcombine.low %v7380_v8, %v7381_v55  ;;  %v21126_v33 = vld [vmem:[#allocation166_spill] sm:$0xff] }
 0x9a4   : > { %v7132_v13 = vadd.f32 %v21121_v30, %v21120_v3  ;;  %6762 = vrot.lane.b32.xlu1 %v21124_v43, %s10395_s26  ;;  %v21125_v58 = vld [vmem:[#allocation80_spill] sm:$0xff]  ;;  %v21127_v30 = vld [vmem:[#allocation334_spill] sm:$0xff]  ;;  %v7389_v29 = vmul.f32 0.25, %v7133_v15  ;;  %v21129_v3 = vld [vmem:[#allocation395_spill] sm:$0xff]  ;;  %v18103_v4 = vpop.permute.xlu1 %6650  ;;  %v18106_v59 = vrot.slane %v8189_v53, %v20866_v46  ;;  %v7382_v55 = vmul.f32 0.25, %v7126_v51 }
 0x9a5   : > { %v7136_v47 = vadd.f32 %v21126_v33, %v21125_v58  ;;  %6764 = vrot.lane.b32.xlu0 %v17573_v17, %s10395_s26  ;;  %v21128_v49 = vld [vmem:[#allocation350_spill] sm:$0xff]  ;;  %v21130_v43 = vld [vmem:[#allocation285_spill] sm:$0xff]  ;;  %21131 = vst [vmem:[#allocation314_spill] sm:$0xff] %v18103_v4  ;;  %v7383_v8 = vmul.f32 0.25, %v7127_v63  ;;  %v7393_v23 = vmul.f32 0.25, %v7137_v18  ;;  %v18108_v58 = vpop.permute.xlu0 %6652  ;;  %v7384_v33 = vmul.f32 0.25, %v7128_v21 }
 0x9a6   : > { %v7130_v28 = vadd.f32 %v21128_v49, %v21127_v30  ;;  %v7134_v39 = vadd.f32 %v21130_v43, %v21129_v3  ;;  %21132 = vst [vmem:[#allocation201_spill] sm:$0xff] %v18108_v58  ;;  %v7387_v17 = vmul.f32 0.25, %v7131_v22  ;;  %v7388_v0 = vmul.f32 0.25, %v7132_v13  ;;  %v21133_v30 = vld [vmem:[#allocation160_spill] sm:$0xff]  ;;  %v21135_v3 = vld [vmem:[#allocation170_spill] sm:$0xff]  ;;  %v21138_v18 = vld [vmem:[#allocation243_spill] sm:$0xff] }
 0x9a7   : > { %v7391_v56 = vmul.f32 0.25, %v7135_v36  ;;  %v18113_v15 = vrot.slane %v8190_v62, %v20866_v46  ;;  %v7392_v43 = vmul.f32 0.25, %v7136_v47  ;;  %v21134_v49 = vld [vmem:[#allocation336_spill] sm:$0xff]  ;;  %v21136_v4 = vld [vmem:[#allocation398_spill] sm:$0xff]  ;;  %v8207_v21 = vcombine.low %v7384_v33, %v7385_v6  ;;  %v21143_v2 = vld [vmem:[#allocation223_spill] sm:$0xff] }
 0x9a8   : > { %6766 = vrot.lane.b32.xlu1 %v21133_v30, %s10395_s26  ;;  %v7139_v53 = vadd.f32 %v21135_v3, %v21134_v49  ;;  %v21137_v51 = vld [vmem:[#allocation352_spill] sm:$0xff]  ;;  %v7386_v22 = vmul.f32 0.25, %v7130_v28  ;;  %v8224_v13 = vcombine.low %v7388_v0, %v7389_v29  ;;  %v7390_v36 = vmul.f32 0.25, %v7134_v39  ;;  %v18121_v58 = vpop.permute.xlu1 %6654  ;;  %v21148_v33 = vld [vmem:[#allocation171_spill] sm:$0xff] }
 0x9a9   : > { %v7141_v63 = vadd.f32 %v21137_v51, %v21136_v4  ;;  %6768 = vrot.lane.b32.xlu0 %v21138_v18, %s10395_s26  ;;  %21139 = vst [vmem:[#allocation376_spill] sm:$0xff] %v18121_v58  ;;  %v8206_v30 = vcombine.low %v7382_v55, %v7383_v8  ;;  %v8241_v34 = vcombine.low %v7392_v43, %v7393_v23  ;;  %v21140_v62 = vld [vmem:[#allocation144_spill] sm:$0xff]  ;;  %v18127_v3 = vpop.permute.xlu0 %6656  ;;  %v21147_v8 = vld [vmem:[#allocation210_spill] sm:$0xff]  ;;  %v21156_v6 = vld [vmem:[#allocation175_spill] sm:$0xff] }
 0x9aa   : > { %v21141_v27 = vld [vmem:[#allocation224_spill] sm:$0xff]  ;;  %v8223_v4 = vcombine.low %v7386_v22, %v7387_v17  ;;  %v8240_v51 = vcombine.low %v7390_v36, %v7391_v56  ;;  %v7395_v23 = vmul.f32 0.25, %v7139_v53  ;;  %v21145_v56 = vld [vmem:[#allocation397_spill] sm:$0xff]  ;;  %v7145_v0 = vadd.f32 %v21148_v33, %v21147_v8  ;;  %v21152_v33 = vld [vmem:[#allocation50_spill] sm:$0xff] }
 0x9ab   : > { %v7138_v47 = vadd.f32 %v21141_v27, %v21140_v62  ;;  %v21142_v7 = vld [vmem:[#allocation272_spill] sm:$0xff]  ;;  %v7397_v28 = vmul.f32 0.25, %v7141_v63  ;;  %v18145_v27 = vrot.slane %v8224_v13, %v20866_v46  ;;  %v18154_v53 = vrot.slane %v8206_v30, %v20866_v46  ;;  %v21153_v17 = vld [vmem:[#allocation351_spill] sm:$0xff] }
 0x9ac   : > { %v7140_v49 = vadd.f32 %v21143_v2, %v21142_v7  ;;  %v21144_v18 = vld [vmem:[#allocation56_spill] sm:$0xff]  ;;  %v18142_v2 = vrot.slane %v8207_v21, %v20866_v46  ;;  %v18151_v43 = vpop.permute.xlu1 %6658  ;;  %v18157_v63 = vrot.slane %v8241_v34, %v20866_v46  ;;  %v18162_v13 = vrot.slane %v8223_v4, %v20866_v46  ;;  %v21155_v7 = vld [vmem:[#allocation146_spill] sm:$0xff]  ;;  %v21157_v4 = vld [vmem:[#allocation273_spill] sm:$0xff] }
 0x9ad   : > { %6770 = vrot.lane.b32.xlu1 %v21144_v18, %s10395_s26  ;;  %6772 = vrot.lane.b32.xlu0 %v17626_v48, %s10395_s26  ;;  %v21146_v29 = vld [vmem:[#allocation288_spill] sm:$0xff]  ;;  %21149 = vst [vmem:[#allocation329_spill] sm:$0xff] %v18151_v43  ;;  %v7394_v22 = vmul.f32 0.25, %v7138_v47  ;;  %v18159_v36 = vpop.permute.xlu0 %6660  ;;  %v18165_v62 = vrot.slane %v8240_v51, %v20866_v46  ;;  %v7144_v30 = vadd.f32 %v21153_v17, %v21152_v33  ;;  %v21158_v48 = vld [vmem:[#allocation227_spill] sm:$0xff]  ;;  %s10424_s26 = smov 16  }
 0x9ae   : > { %v7143_v55 = vadd.f32 %v21146_v29, %v21145_v56  ;;  %v7396_v21 = vmul.f32 0.25, %v7140_v49  ;;  %v21150_v56 = vld [vmem:[#allocation335_spill] sm:$0xff]  ;;  %v21151_v29 = vld [vmem:[#allocation169_spill] sm:$0xff]  ;;  %v21154_v34 = vcombine.low %v17562_v57, %v17590_v11  ;;  %v7149_v39 = vadd.f32 %v21156_v6, %v21155_v7 }
 0x9af   : > { %v7142_v8 = vadd.f32 %v21151_v29, %v21150_v56  ;;  %v8257_v47 = vcombine.low %v7394_v22, %v7395_v23  ;;  %v7153_v18 = vadd.f32 %v21158_v48, %v21157_v4  ;;  %v21159_v51 = vcombine.low %v17704_v1, %v17729_v44  ;;  %v21161_v23 = vld [vmem:[#allocation53_spill] sm:$0xff]  ;;  %v21166_v1 = vld [vmem:[#allocation380_spill] sm:$0xff] }
 0x9b0   : > { %v8258_v49 = vcombine.low %v7396_v21, %v7397_v28  ;;  %v18181_v56 = vmul.f32 0.25, %v7143_v55  ;;  %v7401_v29 = vmul.f32 0.25, %v7145_v0  ;;  %v18183_v17 = vpop.permute.xlu1 %6662  ;;  %v21162_v6 = vld [vmem:[#allocation225_spill] sm:$0xff]  ;;  %v21165_v21 = vld [vmem:[#allocation51_spill] sm:$0xff] }
 0x9b1   : > { %8887 = vperm.xlu1 %10280, %v21154_v34   ;;  %8890 = vperm.xlu0 %10239, %v21159_v51   ;;  %21160 = vst [vmem:[#allocation126_spill] sm:$0xff] %v18183_v17  ;;  %v7147_v28 = vadd.f32 %v21162_v6, %v21161_v23  ;;  %v21163_v7 = vld [vmem:[#allocation81_spill] sm:$0xff]  ;;  %v7152_v44 = vadd.f32 %v21166_v1, %v21165_v21  ;;  %v18195_v55 = vpop.permute.xlu0 %6664  ;;  %v7398_v33 = vmul.f32 0.25, %v7142_v8  ;;  %v7400_v34 = vmul.f32 0.25, %v7144_v30  ;;  %v21169_v51 = vld [vmem:[#allocation287_spill] sm:$0xff] }
 0x9b2   : > { %v21164_v48 = vld [vmem:[#allocation173_spill] sm:$0xff]  ;;  %21167 = vst [vmem:[#allocation392_spill] sm:$0xff] %v18195_v55  ;;  %v21172_v23 = vcombine.low %v17633_v16, %v17640_v40  ;;  %v18207_v6 = vrot.slane %v8257_v47, %v20866_v46  ;;  %v7409_v21 = vmul.f32 0.25, %v7153_v18  ;;  %v21173_v8 = vcombine.low %v17742_v54, %v17755_v14  ;;  %v21176_v16 = vld [vmem:[#allocation87_spill] sm:$0xff]  ;;  %v21180_v18 = vld [vmem:[#allocation242_spill] sm:$0xff] }
 0x9b3   : > { %v7148_v22 = vadd.f32 %v21164_v48, %v21163_v7  ;;  %v21168_v4 = vld [vmem:[#allocation45_spill] sm:$0xff]  ;;  %v18210_v7 = vrot.slane %v8258_v49, %v20866_v46  ;;  %v7405_v48 = vmul.f32 0.25, %v7149_v39  ;;  %v8274_v30 = vcombine.low %v7398_v33, %v18181_v56  ;;  %v21177_v40 = vld [vmem:[#allocation231_spill] sm:$0xff]  ;;  %v21179_v39 = vld [vmem:[#allocation402_spill] sm:$0xff] }
 0x9b4   : > { %v7146_v57 = vadd.f32 %v21169_v51, %v21168_v4  ;;  %v21170_v11 = vld [vmem:[#allocation209_spill] sm:$0xff]  ;;  %v8275_v1 = vcombine.low %v7400_v34, %v7401_v29  ;;  %v7157_v51 = vadd.f32 %v21177_v40, %v21176_v16  ;;  %v18220_v47 = vpop.permute.xlu1 %6666  ;;  %v7408_v0 = vmul.f32 0.25, %v7152_v44  ;;  %v21182_v56 = vld [vmem:[#allocation340_spill] sm:$0xff]  ;;  %v21183_v29 = vld [vmem:[#allocation415_spill] sm:$0xff] }
 0x9b5   : > { %v21171_v17 = vld [vmem:[#allocation177_spill] sm:$0xff]  ;;  %8893 = vperm.xlu1 %10280, %v21172_v23   ;;  %8896 = vperm.xlu0 %10239, %v21173_v8   ;;  %21178 = vst [vmem:[#allocation313_spill] sm:$0xff] %v18220_v47  ;;  %v7403_v23 = vmul.f32 0.25, %v7147_v28  ;;  %v7404_v49 = vmul.f32 0.25, %v7148_v22  ;;  %v7159_v55 = vadd.f32 %v21180_v18, %v21179_v39  ;;  %v18224_v43 = vpop.permute.xlu0 %6668  ;;  %v7156_v33 = vadd.f32 %v21183_v29, %v21182_v56  ;;  %v21185_v8 = vld [vmem:[#allocation355_spill] sm:$0xff]  ;;  %v21187_v44 = vld [vmem:[#allocation90_spill] sm:$0xff] }
 0x9b6   : > { %v7151_v58 = vadd.f32 %v21171_v17, %v21170_v11  ;;  %v21174_v17 = vld [vmem:[#allocation49_spill] sm:$0xff]  ;;  %v21175_v11 = vld [vmem:[#allocation180_spill] sm:$0xff]  ;;  %21181 = vst [vmem:[#allocation391_spill] sm:$0xff] %v18224_v43  ;;  %v7402_v54 = vmul.f32 0.25, %v7146_v57  ;;  %v8309_v22 = vcombine.low %v7408_v0, %v7409_v21  ;;  %v21189_v39 = vld [vmem:[#allocation274_spill] sm:$0xff]  ;;  %v7413_v56 = vmul.f32 0.25, %v7157_v51 }
 0x9b7   : > { %v7150_v4 = vadd.f32 %v21175_v11, %v21174_v17  ;;  %v21184_v34 = vld [vmem:[#allocation401_spill] sm:$0xff]  ;;  %v21186_v11 = vcombine.low %v17657_v5, %v17643_v25  ;;  %v8292_v28 = vcombine.low %v7404_v49, %v7405_v48  ;;  %v21188_v16 = vld [vmem:[#allocation232_spill] sm:$0xff]  ;;  %v21190_v18 = vld [vmem:[#allocation238_spill] sm:$0xff]  ;;  %v18247_v5 = vrot.slane %v8275_v1, %v20866_v46 }
 0x9b8   : > { %v7407_v14 = vmul.f32 0.25, %v7151_v58  ;;  %v7161_v17 = vadd.f32 %v21185_v8, %v21184_v34  ;;  %v7155_v40 = vadd.f32 %v21188_v16, %v21187_v44  ;;  %v7158_v47 = vadd.f32 %v21190_v18, %v21189_v39  ;;  %v21192_v29 = vld [vmem:[#allocation339_spill] sm:$0xff]  ;;  %v21193_v34 = vld [vmem:[#allocation418_spill] sm:$0xff]  ;;  %v18242_v43 = vpop.permute.xlu1 %6670  ;;  %v21195_v48 = vld [vmem:[#allocation84_spill] sm:$0xff] }
 0x9b9   : > { %8899 = vperm.xlu1 %10280, %v21186_v11   ;;  %v21191_v58 = vcombine.low %v17768_v32, %v17779_v31  ;;  %v7406_v57 = vmul.f32 0.25, %v7150_v4  ;;  %v7160_v8 = vadd.f32 %v21193_v34, %v21192_v29  ;;  %21194 = vst [vmem:[#allocation374_spill] sm:$0xff] %v18242_v43  ;;  %v8291_v0 = vcombine.low %v7402_v54, %v7403_v23  ;;  %v21196_v21 = vld [vmem:[#allocation416_spill] sm:$0xff]  ;;  %v18251_v32 = vpop.permute.xlu0 %6672  ;;  %v21197_v44 = vld [vmem:[#allocation150_spill] sm:$0xff] }
 0x9ba   : > { %v7154_v49 = vadd.f32 %v21196_v21, %v21195_v48  ;;  %v7415_v11 = vmul.f32 0.25, %v7159_v55  ;;  %v7412_v4 = vmul.f32 0.25, %v7156_v33  ;;  %v7417_v51 = vmul.f32 0.25, %v7161_v17  ;;  %v21198_v16 = vld [vmem:[#allocation294_spill] sm:$0xff]  ;;  %v21209_v21 = vld [vmem:[#allocation213_spill] sm:$0xff] }
 0x9bb   : > { %8902 = vperm.xlu0 %10239, %v21191_v58   ;;  %v8308_v31 = vcombine.low %v7406_v57, %v7407_v14  ;;  %v7163_v39 = vadd.f32 %v21198_v16, %v21197_v44  ;;  %v21199_v18 = vcombine.low %v17660_v41, %v17646_v9  ;;  %v18259_v1 = vrot.slane %v8292_v28, %v20866_v46  ;;  %v21203_v58 = vld [vmem:[#allocation83_spill] sm:$0xff]  ;;  %v21205_v9 = vld [vmem:[#allocation93_spill] sm:$0xff] }
 0x9bc   : > { %v18262_v23 = vrot.slane %v8309_v22, %v20866_v46  ;;  %v18264_v54 = vmul.f32 0.25, %v7155_v40  ;;  %v7414_v55 = vmul.f32 0.25, %v7158_v47  ;;  %v21202_v14 = vcombine.low %v17785_v50, %v17792_v35  ;;  %v21204_v57 = vld [vmem:[#allocation291_spill] sm:$0xff]  ;;  %v21206_v41 = vld [vmem:[#allocation293_spill] sm:$0xff]  ;;  %v18273_v28 = vpop.permute.xlu1 %6674 }
 0x9bd   : > { %8905 = vperm.xlu1 %10280, %v21199_v18   ;;  %v8326_v33 = vcombine.low %v7412_v4, %v7413_v56  ;;  %v7416_v17 = vmul.f32 0.25, %v7160_v8  ;;  %v7162_v29 = vadd.f32 %v21204_v57, %v21203_v58  ;;  %v7165_v34 = vadd.f32 %v21206_v41, %v21205_v9  ;;  %v18283_v35 = vpop.permute.xlu0 %6676  ;;  %v21210_v4 = vld [vmem:[#allocation358_spill] sm:$0xff]  ;;  %v21220_v41 = vld [vmem:[#allocation100_spill] sm:$0xff] }
 0x9be   : > { %21200 = vst [vmem:[#allocation19_spill] sm:$0xff] %v18262_v23  ;;  %21201 = vst [vmem:[#allocation187_spill] sm:$0xff] %v18264_v54  ;;  %v18276_v22 = vrot.slane %v8274_v30, %v20866_v46  ;;  %v18279_v40 = vrot.slane %v8291_v0, %v20866_v46  ;;  %v18281_v47 = vmul.f32 0.25, %v7154_v49  ;;  %v8342_v50 = vcombine.low %v7414_v55, %v7415_v11  ;;  %v21211_v30 = vld [vmem:[#allocation64_spill] sm:$0xff]  ;;  %v21213_v49 = vld [vmem:[#allocation102_spill] sm:$0xff] }
 0x9bf   : > { %8908 = vperm.xlu0 %10239, %v21202_v14   ;;  %v18286_v56 = vrot.slane %v8308_v31, %v20866_v46  ;;  %v8343_v8 = vcombine.low %v7416_v17, %v7417_v51  ;;  %v18288_v48 = vmul.f32 0.25, %v7163_v39  ;;  %v7164_v44 = vadd.f32 %v21210_v4, %v21209_v21  ;;  %v21214_v11 = vld [vmem:[#allocation320_spill] sm:$0xff]  ;;  %v21219_v57 = vld [vmem:[#allocation298_spill] sm:$0xff]  ;;  %v21221_v21 = vld [vmem:[#allocation357_spill] sm:$0xff] }
 0x9c0   : > { %21207 = vst [vmem:[#allocation245_spill] sm:$0xff] %v18281_v47  ;;  %v21212_v16 = vcombine.low %v17674_v10, %v21211_v30  ;;  %v7169_v18 = vadd.f32 %v21214_v11, %v21213_v49  ;;  %v21215_v31 = vcombine.low %v17806_v45, %v17795_v42  ;;  %v18307_v55 = vrot.slane %v8326_v33, %v20866_v46  ;;  %v18311_v17 = vpop.permute.xlu1 %6678  ;;  %v21218_v45 = vld [vmem:[#allocation277_spill] sm:$0xff]  ;;  %v21231_v58 = vld [vmem:[#allocation362_spill] sm:$0xff]  ;;  %v21233_v51 = vld [vmem:[#allocation364_spill] sm:$0xff] }
 0x9c1   : > { %21208 = vst [vmem:[#allocation375_spill] sm:$0xff] %v18286_v56  ;;  %v18309_v10 = vmul.f32 0.25, %v7162_v29  ;;  %v7421_v14 = vmul.f32 0.25, %v7165_v34  ;;  %21217 = vst [vmem:[#allocation249_spill] sm:$0xff] %v18311_v17  ;;  %v18316_v42 = vrot.slane %v8342_v50, %v20866_v46  ;;  %v7167_v9 = vadd.f32 %v21219_v57, %v21218_v45  ;;  %v21222_v30 = vld [vmem:[#allocation405_spill] sm:$0xff]  ;;  %v18324_v29 = vpop.permute.xlu0 %6680  ;;  %v21225_v50 = vld [vmem:[#allocation282_spill] sm:$0xff] }
 0x9c2   : > { %8911 = vperm.xlu1 %10280, %v21212_v16   ;;  %21216 = vst [vmem:[#allocation75_spill] sm:$0xff] %v18307_v55  ;;  %v7168_v4 = vadd.f32 %v21221_v21, %v21220_v41  ;;  %v21223_v33 = vld [vmem:[#allocation301_spill] sm:$0xff]  ;;  %21224 = vst [vmem:[#allocation76_spill] sm:$0xff] %v18324_v29  ;;  %v18327_v34 = vrot.slane %v8343_v8, %v20866_v46  ;;  %v7420_v11 = vmul.f32 0.25, %v7164_v44  ;;  %v21229_v41 = vld [vmem:[#allocation256_spill] sm:$0xff] }
 0x9c3   : > { %8914 = vperm.xlu0 %10239, %v21215_v31   ;;  %v7173_v16 = vadd.f32 %v21223_v33, %v21222_v30  ;;  %v8359_v49 = vcombine.low %v18309_v10, %v18288_v48  ;;  %v21226_v31 = vld [vmem:[#allocation303_spill] sm:$0xff]  ;;  %v21227_v45 = vcombine.low %v17701_v19, %v17809_v12  ;;  %v21228_v57 = vld [vmem:[#allocation145_spill] sm:$0xff]  ;;  %v7425_v30 = vmul.f32 0.25, %v7169_v18  ;;  %v21235_v10 = vld [vmem:[#allocation154_spill] sm:$0xff] }
 0x9c4   : > { %v7177_v0 = vadd.f32 %v21226_v31, %v21225_v50  ;;  %v7166_v21 = vadd.f32 %v21229_v41, %v21228_v57  ;;  %v21230_v33 = vld [vmem:[#allocation151_spill] sm:$0xff]  ;;  %v21234_v48 = vcombine.low %v17843_v61, %v17834_v20  ;;  %v8360_v44 = vcombine.low %v7420_v11, %v7421_v14  ;;  %v21237_v19 = vld [vmem:[#allocation346_spill] sm:$0xff]  ;;  %v18351_v41 = vpop.permute.xlu1 %6682  ;;  %v21245_v61 = vld [vmem:[#allocation337_spill] sm:$0xff] }
 0x9c5   : > { %v7171_v39 = vadd.f32 %v21231_v58, %v21230_v33  ;;  %v21232_v8 = vld [vmem:[#allocation343_spill] sm:$0xff]  ;;  %v21238_v12 = vld [vmem:[#allocation382_spill] sm:$0xff]  ;;  %21241 = vst [vmem:[#allocation252_spill] sm:$0xff] %v18351_v41  ;;  %v7423_v58 = vmul.f32 0.25, %v7167_v9  ;;  %v7424_v33 = vmul.f32 0.25, %v7168_v4  ;;  %v7429_v47 = vmul.f32 0.25, %v7173_v16  ;;  %v18355_v20 = vpop.permute.xlu0 %6684 }
 0x9c6   : > { %8917 = vperm.xlu1 %10280, %v21227_v45   ;;  %v7172_v25 = vadd.f32 %v21233_v51, %v21232_v8  ;;  %v21236_v50 = vld [vmem:[#allocation363_spill] sm:$0xff]  ;;  %v7176_v45 = vadd.f32 %v21238_v12, %v21237_v19  ;;  %v21239_v55 = vld [vmem:[#allocation110_spill] sm:$0xff]  ;;  %v21243_v51 = vld [vmem:[#allocation360_spill] sm:$0xff]  ;;  %21244 = vst [vmem:[#allocation203_spill] sm:$0xff] %v18355_v20  ;;  %v7422_v4 = vmul.f32 0.25, %v7166_v21 }
 0x9c7   : > { %8920 = vperm.xlu0 %10239, %v21234_v48   ;;  %v7175_v31 = vadd.f32 %v21236_v50, %v21235_v10  ;;  %v21240_v57 = vld [vmem:[#allocation422_spill] sm:$0xff]  ;;  %v21246_v14 = vld [vmem:[#allocation308_spill] sm:$0xff]  ;;  %v7433_v48 = vmul.f32 0.25, %v7177_v0  ;;  %v21247_v10 = vld [vmem:[#allocation345_spill] sm:$0xff]  ;;  %v8377_v17 = vcombine.low %v7424_v33, %v7425_v30 }
 0x9c8   : > { %v7181_v18 = vadd.f32 %v21240_v57, %v21239_v55  ;;  %v21242_v54 = vld [vmem:[#allocation86_spill] sm:$0xff]  ;;  %v7174_v11 = vadd.f32 %v21246_v14, %v21245_v61  ;;  %v21248_v50 = vld [vmem:[#allocation307_spill] sm:$0xff]  ;;  %v21250_v23 = vld [vmem:[#allocation368_spill] sm:$0xff]  ;;  %v7428_v16 = vmul.f32 0.25, %v7172_v25  ;;  %v7432_v0 = vmul.f32 0.25, %v7176_v45  ;;  %v18371_v43 = vpop.permute.xlu1 %6686 }
 0x9c9   : > { %v7170_v8 = vadd.f32 %v21243_v51, %v21242_v54  ;;  %v7179_v19 = vadd.f32 %v21248_v50, %v21247_v10  ;;  %v21249_v12 = vld [vmem:[#allocation407_spill] sm:$0xff]  ;;  %v21252_v56 = vld [vmem:[#allocation133_spill] sm:$0xff]  ;;  %v7427_v54 = vmul.f32 0.25, %v7171_v39  ;;  %v21254_v51 = vld [vmem:[#allocation6_spill] sm:$0xff]  ;;  %v7431_v61 = vmul.f32 0.25, %v7175_v31  ;;  %21259 = vst [vmem:[#allocation378_spill] sm:$0xff] %v18371_v43  ;;  %v18375_v39 = vpop.permute.xlu0 %6688 }
 0x9ca   : > { %v7180_v55 = vadd.f32 %v21250_v23, %v21249_v12  ;;  %v21251_v57 = vld [vmem:[#allocation123_spill] sm:$0xff]  ;;  %v21257_v14 = vld [vmem:[#allocation212_spill] sm:$0xff]  ;;  %v21258_v20 = vld [vmem:[#allocation305_spill] sm:$0xff]  ;;  %v7437_v50 = vmul.f32 0.25, %v7181_v18  ;;  %v8376_v23 = vcombine.low %v7422_v4, %v7423_v58  ;;  %21262 = vst [vmem:[#allocation30_spill] sm:$0xff] %v18375_v39  ;;  %v7430_v25 = vmul.f32 0.25, %v7174_v11 }
 0x9cb   : > { %v21253_v9 = vcombine.low %v21251_v57, %v21252_v56  ;;  %v21255_v41 = vld [vmem:[#allocation135_spill] sm:$0xff]  ;;  %v7178_v10 = vadd.f32 %v21258_v20, %v21257_v14  ;;  %v7426_v12 = vmul.f32 0.25, %v7170_v8  ;;  %v8394_v56 = vcombine.low %v7428_v16, %v7429_v47  ;;  %v21263_v31 = vld [vmem:[#allocation246_spill] sm:$0xff]  ;;  %v21266_v58 = vld [vmem:[#allocation116_spill] sm:$0xff] }
 0x9cc   : > { %v21256_v29 = vcombine.low %v21254_v51, %v21255_v41  ;;  %v21260_v57 = vld [vmem:[#allocation155_spill] sm:$0xff]  ;;  %v8411_v33 = vcombine.low %v7432_v0, %v7433_v48  ;;  %v7435_v41 = vmul.f32 0.25, %v7179_v19  ;;  %v18381_v18 = vrot.slane %v8360_v44, %v20866_v46  ;;  %v21267_v8 = vld [vmem:[#allocation421_spill] sm:$0xff]  ;;  %v21269_v16 = vld [vmem:[#allocation258_spill] sm:$0xff] }
 0x9cd   : > { %8923 = vperm.xlu1 %10280, %v21253_v9   ;;  %v21261_v21 = vld [vmem:[#allocation67_spill] sm:$0xff]  ;;  %v8393_v20 = vcombine.low %v7426_v12, %v7427_v54  ;;  %v7183_v47 = vadd.f32 %v21267_v8, %v21266_v58  ;;  %v18391_v48 = vrot.slane %v8377_v17, %v20866_v46  ;;  %v8410_v19 = vcombine.low %v7430_v25, %v7431_v61  ;;  %v21275_v12 = vld [vmem:[#allocation148_spill] sm:$0xff]  ;;  %v21280_v25 = vld [vmem:[#allocation185_spill] sm:$0xff] }
 0x9ce   : > { %8926 = vperm.xlu0 %10239, %v21256_v29   ;;  %v7185_v30 = vadd.f32 %v21261_v21, %v21260_v57  ;;  %v7436_v29 = vmul.f32 0.25, %v7180_v55  ;;  %v21264_v45 = vld [vmem:[#allocation11_spill] sm:$0xff]  ;;  %v21271_v57 = vld [vmem:[#allocation136_spill] sm:$0xff]  ;;  %v7434_v55 = vmul.f32 0.25, %v7178_v10  ;;  %v18393_v21 = vpop.permute.xlu1 %6690  ;;  %v18396_v44 = vrot.slane %v8359_v49, %v20866_v46  ;;  %v18403_v58 = vpop.permute.xlu0 %6692 }
 0x9cf   : > { %v21265_v9 = vcombine.low %v21263_v31, %v21264_v45  ;;  %v21268_v4 = vld [vmem:[#allocation115_spill] sm:$0xff]  ;;  %21273 = vst [vmem:[#allocation316_spill] sm:$0xff] %v18393_v21  ;;  %v18399_v54 = vrot.slane %v8394_v56, %v20866_v46  ;;  %21277 = vst [vmem:[#allocation190_spill] sm:$0xff] %v18403_v58  ;;  %v18406_v17 = vrot.slane %v8376_v23, %v20866_v46  ;;  %v21307_v21 = vld [vmem:[#allocation61_spill] sm:$0xff] }
 0x9d0   : > { %v7184_v51 = vadd.f32 %v21269_v16, %v21268_v4  ;;  %v21270_v14 = vld [vmem:[#allocation199_spill] sm:$0xff]  ;;  %v8428_v0 = vcombine.low %v7436_v29, %v7437_v50  ;;  %v18409_v61 = vrot.slane %v8411_v33, %v20866_v46  ;;  %v8427_v10 = vcombine.low %v7434_v55, %v7435_v41  ;;  %v21279_v50 = vld [vmem:[#allocation74_spill] sm:$0xff]  ;;  %v21284_v16 = vld [vmem:[#allocation200_spill] sm:$0xff] }
 0x9d1   : > { %8929 = vperm.xlu1 %10280, %v21265_v9   ;;  %v21272_v11 = vcombine.low %v21270_v14, %v21271_v57  ;;  %21274 = vst [vmem:[#allocation28_spill] sm:$0xff] %v18399_v54  ;;  %v21276_v31 = vld [vmem:[#allocation367_spill] sm:$0xff]  ;;  %v7441_v9 = vmul.f32 0.25, %v7185_v30  ;;  %v21281_v49 = vcombine.low %v21279_v50, %v21280_v25  ;;  %v18417_v29 = vrot.slane %v8393_v20, %v20866_v46  ;;  %v21283_v4 = vld [vmem:[#allocation122_spill] sm:$0xff]  ;;  %v21288_v57 = vld [vmem:[#allocation89_spill] sm:$0xff] }
 0x9d2   : > { %v7182_v45 = vadd.f32 %v21276_v31, %v21275_v12  ;;  %21278 = vst [vmem:[#allocation139_spill] sm:$0xff] %v18409_v61  ;;  %v7439_v30 = vmul.f32 0.25, %v7183_v47  ;;  %v7440_v8 = vmul.f32 0.25, %v7184_v51  ;;  %v21285_v23 = vcombine.low %v21283_v4, %v21284_v16  ;;  %v18432_v20 = vpop.permute.xlu1 %6694  ;;  %v21291_v31 = vld [vmem:[#allocation164_spill] sm:$0xff]  ;;  %v21292_v50 = vld [vmem:[#allocation118_spill] sm:$0xff]  ;;  %v21295_v4 = vld [vmem:[#allocation157_spill] sm:$0xff] }
 0x9d3   : > { %8932 = vperm.xlu0 %10239, %v21272_v11   ;;  %21282 = vst [vmem:[#allocation251_spill] sm:$0xff] %v18417_v29  ;;  %v18425_v41 = vrot.slane %v8410_v19, %v20866_v46  ;;  %v18428_v14 = vrot.slane %v8428_v0, %v20866_v46  ;;  %v21289_v11 = vld [vmem:[#allocation322_spill] sm:$0xff]  ;;  %21290 = vst [vmem:[#allocation393_spill] sm:$0xff] %v18432_v20  ;;  %v7193_v25 = vadd.f32 %v21292_v50, %v21291_v31  ;;  %v21296_v16 = vld [vmem:[#allocation68_spill] sm:$0xff] }
 0x9d4   : > { %v7186_v55 = vadd.f32 %v21289_v11, %v21288_v57  ;;  %v7438_v51 = vmul.f32 0.25, %v7182_v45  ;;  %v8445_v12 = vcombine.low %v7440_v8, %v7441_v9  ;;  %v18443_v0 = vrot.slane %v8427_v10, %v20866_v46  ;;  %v21297_v57 = vld [vmem:[#allocation167_spill] sm:$0xff]  ;;  %v21298_v11 = vld [vmem:[#allocation310_spill] sm:$0xff]  ;;  %v21300_v45 = vld [vmem:[#allocation17_spill] sm:$0xff] }
 0x9d5   : > { %8935 = vperm.xlu1 %10280, %v21281_v49   ;;  %21286 = vst [vmem:[#allocation27_spill] sm:$0xff] %v18425_v41  ;;  %21287 = vst [vmem:[#allocation254_spill] sm:$0xff] %v18428_v14  ;;  %v18438_v49 = vpop.permute.xlu0 %6696  ;;  %v7197_v33 = vadd.f32 %v21298_v11, %v21297_v57  ;;  %v21299_v47 = vld [vmem:[#allocation263_spill] sm:$0xff]  ;;  %v21305_v10 = vld [vmem:[#allocation386_spill] sm:$0xff] }
 0x9d6   : > { %21293 = vst [vmem:[#allocation191_spill] sm:$0xff] %v18438_v49  ;;  %21294 = vst [vmem:[#allocation142_spill] sm:$0xff] %v18443_v0  ;;  %v21301_v9 = vcombine.low %v21299_v47, %v21300_v45  ;;  %v8444_v31 = vcombine.low %v7438_v51, %v7439_v30  ;;  %v21302_v50 = vld [vmem:[#allocation159_spill] sm:$0xff]  ;;  %v18463_v11 = vmul.f32 0.25, %v7186_v55  ;;  %v21311_v47 = vld [vmem:[#allocation165_spill] sm:$0xff]  ;;  %v18469_v61 = vpop.permute.xlu1 %6698 }
 0x9d7   : > { %8938 = vperm.xlu0 %10239, %v21285_v23   ;;  %v7187_v23 = vadd.f32 %v21296_v16, %v21295_v4  ;;  %v21303_v56 = vld [vmem:[#allocation59_spill] sm:$0xff]  ;;  %v21308_v16 = vld [vmem:[#allocation73_spill] sm:$0xff]  ;;  %v21312_v45 = vld [vmem:[#allocation70_spill] sm:$0xff]  ;;  %21315 = vst [vmem:[#allocation315_spill] sm:$0xff] %v18469_v61 }
 0x9d8   : > { %v7191_v19 = vadd.f32 %v21303_v56, %v21302_v50  ;;  %v21304_v20 = vld [vmem:[#allocation411_spill] sm:$0xff]  ;;  %v21313_v8 = vld [vmem:[#allocation226_spill] sm:$0xff]  ;;  %v7449_v50 = vmul.f32 0.25, %v7193_v25  ;;  %v21318_v55 = vld [vmem:[#allocation97_spill] sm:$0xff] }
 0x9d9   : > { %8941 = vperm.xlu1 %10280, %v21301_v9   ;;  %v7192_v49 = vadd.f32 %v21305_v10, %v21304_v20  ;;  %v21306_v43 = vld [vmem:[#allocation163_spill] sm:$0xff]  ;;  %v7196_v9 = vadd.f32 %v21312_v45, %v21311_v47  ;;  %v18474_v20 = vrot.slane %v8445_v12, %v20866_v46  ;;  %v21319_v10 = vld [vmem:[#allocation69_spill] sm:$0xff]  ;;  %v18482_v47 = vmul.f32 0.25, %v7187_v23  ;;  %v21323_v41 = vld [vmem:[#allocation172_spill] sm:$0xff] }
 0x9da   : > { %v7195_v4 = vadd.f32 %v21307_v21, %v21306_v43  ;;  %v21309_v39 = vld [vmem:[#allocation327_spill] sm:$0xff]  ;;  %v21321_v45 = vld [vmem:[#allocation189_spill] sm:$0xff]  ;;  %v21324_v56 = vld [vmem:[#allocation326_spill] sm:$0xff]  ;;  %v21325_v12 = vcombine.low %v18048_v26, %v18051_v38  ;;  %v7447_v0 = vmul.f32 0.25, %v7191_v19  ;;  %v21328_v23 = vcombine.low %v18058_v24, %v18063_v60  ;;  %v18500_v26 = vpop.permute.xlu1 %6702 }
 0x9db   : > { %v21310_v57 = vcombine.low %v21308_v16, %v21309_v39  ;;  %v21314_v30 = vld [vmem:[#allocation119_spill] sm:$0xff]  ;;  %v7194_v16 = vadd.f32 %v21319_v10, %v21318_v55  ;;  %v7200_v14 = vadd.f32 %v21324_v56, %v21323_v41  ;;  %v21327_v25 = vld [vmem:[#allocation52_spill] sm:$0xff]  ;;  %v7448_v55 = vmul.f32 0.25, %v7192_v49  ;;  %v21331_v41 = vld [vmem:[#allocation125_spill] sm:$0xff] }
 0x9dc   : > { %v7201_v51 = vadd.f32 %v21314_v30, %v21313_v8  ;;  %v21316_v43 = vld [vmem:[#allocation91_spill] sm:$0xff]  ;;  %v7453_v8 = vmul.f32 0.25, %v7197_v33  ;;  %v21322_v30 = vld [vmem:[#allocation181_spill] sm:$0xff]  ;;  %v7451_v10 = vmul.f32 0.25, %v7195_v4  ;;  %v7452_v33 = vmul.f32 0.25, %v7196_v9  ;;  %v21332_v56 = vld [vmem:[#allocation124_spill] sm:$0xff] }
 0x9dd   : > { %8944 = vperm.xlu0 %10239, %v21310_v57   ;;  %v21317_v21 = vld [vmem:[#allocation259_spill] sm:$0xff]  ;;  %v18480_v57 = vpop.permute.xlu0 %6700  ;;  %v7199_v61 = vadd.f32 %v21322_v30, %v21321_v45  ;;  %8947 = vperm.xlu1 %10280, %v21325_v12   ;;  %v21330_v45 = vld [vmem:[#allocation309_spill] sm:$0xff]  ;;  %v7203_v54 = vadd.f32 %v21332_v56, %v21331_v41  ;;  %v21333_v38 = vld [vmem:[#allocation412_spill] sm:$0xff]  ;;  %v8479_v49 = vcombine.low %v7448_v55, %v7449_v50  ;;  %v7450_v4 = vmul.f32 0.25, %v7194_v16 }
 0x9de   : > { %v7190_v39 = vadd.f32 %v21317_v21, %v21316_v43  ;;  %21320 = vst [vmem:[#allocation331_spill] sm:$0xff] %v18480_v57  ;;  %v21326_v43 = vld [vmem:[#allocation221_spill] sm:$0xff]  ;;  %v7457_v58 = vmul.f32 0.25, %v7201_v51  ;;  %v21334_v12 = vld [vmem:[#allocation324_spill] sm:$0xff]  ;;  %v8496_v24 = vcombine.low %v7452_v33, %v7453_v8  ;;  %v7456_v9 = vmul.f32 0.25, %v7200_v14  ;;  %v21336_v29 = vld [vmem:[#allocation10_spill] sm:$0xff] }
 0x9df   : > { %v7188_v21 = vadd.f32 %v21327_v25, %v21326_v43  ;;  %v21329_v57 = vld [vmem:[#allocation149_spill] sm:$0xff]  ;;  %v7189_v43 = vadd.f32 %v21334_v12, %v21333_v38  ;;  %v7455_v60 = vmul.f32 0.25, %v7199_v61  ;;  %v21337_v51 = vcombine.low %v18090_v52, %v18093_v37  ;;  %v18521_v52 = vpop.permute.xlu1 %6706 }
 0x9e0   : > { %v7198_v30 = vadd.f32 %v21330_v45, %v21329_v57  ;;  %v7446_v19 = vmul.f32 0.25, %v7190_v39  ;;  %v18512_v45 = vrot.slane %v8444_v31, %v20866_v46  ;;  %v8495_v56 = vcombine.low %v7450_v4, %v7451_v10  ;;  %v21338_v39 = vld [vmem:[#allocation413_spill] sm:$0xff]  ;;  %v21342_v10 = vld [vmem:[#allocation63_spill] sm:$0xff]  ;;  %v21344_v4 = vld [vmem:[#allocation420_spill] sm:$0xff] }
 0x9e1   : > { %8950 = vperm.xlu0 %10239, %v21328_v23   ;;  %v18504_v25 = vpop.permute.xlu0 %6704  ;;  %v21335_v23 = vld [vmem:[#allocation152_spill] sm:$0xff]  ;;  %8953 = vperm.xlu1 %10280, %v21337_v51   ;;  %v21339_v50 = vld [vmem:[#allocation117_spill] sm:$0xff]  ;;  %v21340_v8 = vcombine.low %v18106_v59, %v18113_v15  ;;  %v8461_v61 = vcombine.low %v18463_v11, %v18482_v47  ;;  %v8513_v14 = vcombine.low %v7456_v9, %v7457_v58  ;;  %v7459_v55 = vmul.f32 0.25, %v7203_v54  ;;  %v21349_v51 = vld [vmem:[#allocation230_spill] sm:$0xff] }
 0x9e2   : > { %v7202_v57 = vadd.f32 %v21336_v29, %v21335_v23  ;;  %v8478_v41 = vcombine.low %v7446_v19, %v7447_v0  ;;  %v7205_v16 = vadd.f32 %v21339_v50, %v21338_v39  ;;  %v7454_v29 = vmul.f32 0.25, %v7198_v30  ;;  %v21341_v0 = vld [vmem:[#allocation176_spill] sm:$0xff]  ;;  %v21345_v9 = vld [vmem:[#allocation201_spill] sm:$0xff] }
 0x9e3   : > { %v18523_v37 = vmul.f32 0.25, %v7188_v21  ;;  %v18525_v31 = vmul.f32 0.25, %v7189_v43  ;;  %v7204_v33 = vadd.f32 %v21342_v10, %v21341_v0  ;;  %v8460_v59 = vcombine.low %v18512_v45, %v18474_v20  ;;  %v21353_v0 = vld [vmem:[#allocation295_spill] sm:$0xff]  ;;  %v21354_v10 = vld [vmem:[#allocation314_spill] sm:$0xff] }
 0x9e4   : > { %v18534_v15 = vrot.slane %v8479_v49, %v20866_v46  ;;  %v18537_v58 = vrot.slane %v8496_v24, %v20866_v46  ;;  %v8512_v54 = vcombine.low %v7454_v29, %v7455_v60  ;;  %v7458_v30 = vmul.f32 0.25, %v7202_v57 }
 0x9e5   : > { %8956 = vperm.xlu0 %10239, %v21340_v8   ;;  %v18529_v38 = vpop.permute.xlu0 %6708  ;;  %v21343_v21 = vcombine.low %v18154_v53, %v18142_v2  ;;  %v18543_v12 = vrot.slane %v8478_v41, %v20866_v46  ;;  %v18546_v43 = vrot.slane %v8495_v56, %v20866_v46  ;;  %v7461_v19 = vmul.f32 0.25, %v7205_v16  ;;  %v21347_v2 = vld [vmem:[#allocation96_spill] sm:$0xff]  ;;  %v21348_v53 = vld [vmem:[#allocation121_spill] sm:$0xff]  ;;  %v21350_v41 = vld [vmem:[#allocation22_spill] sm:$0xff]  ;;  %v6711_v56 = vpop.permute.xlu1 %6710 }
 0x9e6   : > { %v7225_v49 = vadd.f32 %v21345_v9, %v21344_v4  ;;  %v21346_v24 = vcombine.low %v18162_v13, %v18145_v27  ;;  %v18554_v60 = vrot.slane %v8513_v14, %v20866_v46  ;;  %v8529_v23 = vcombine.low %v7458_v30, %v7459_v55  ;;  %v21351_v16 = vld [vmem:[#allocation414_spill] sm:$0xff]  ;;  %v21352_v8 = vld [vmem:[#allocation325_spill] sm:$0xff]  ;;  %v21356_v30 = vld [vmem:[#allocation95_spill] sm:$0xff] }
 0x9e7   : > { %8959 = vperm.xlu1 %10280, %v21343_v21   ;;  %v7206_v57 = vadd.f32 %v21348_v53, %v21347_v2  ;;  %v7223_v39 = vadd.f32 %v21350_v41, %v21349_v51  ;;  %v7460_v50 = vmul.f32 0.25, %v7204_v33  ;;  %v7207_v29 = vadd.f32 %v21352_v8, %v21351_v16  ;;  %v21355_v27 = vld [vmem:[#allocation302_spill] sm:$0xff]  ;;  %v21357_v4 = vld [vmem:[#allocation247_spill] sm:$0xff]  ;;  %v21361_v16 = vld [vmem:[#allocation329_spill] sm:$0xff] }
 0x9e8   : > { %v7224_v21 = vadd.f32 %v21354_v10, %v21353_v0  ;;  %v7229_v13 = vadd.f32 %v18159_v36, %v21355_v27  ;;  %v18567_v55 = vrot.slane %v8512_v54, %v20866_v46  ;;  %v7222_v9 = vadd.f32 %v21357_v4, %v21356_v30  ;;  %v21359_v36 = vld [vmem:[#allocation236_spill] sm:$0xff]  ;;  %v21360_v54 = vld [vmem:[#allocation297_spill] sm:$0xff] }
 0x9e9   : > { %8962 = vperm.xlu0 %10239, %v21346_v24   ;;  %v6713_v14 = vpop.permute.xlu0 %6712  ;;  %v21358_v24 = vcombine.low %v18165_v62, %v18157_v63  ;;  %v8494_v33 = vcombine.low %v18543_v12, %v18534_v15  ;;  %v8511_v2 = vcombine.low %v18546_v43, %v18537_v58  ;;  %v8530_v53 = vcombine.low %v7460_v50, %v7461_v19  ;;  %v6715_v12 = vpop.permute.xlu1 %6714  ;;  %v21363_v50 = vld [vmem:[#allocation101_spill] sm:$0xff]  ;;  %v21364_v10 = vld [vmem:[#allocation376_spill] sm:$0xff]  ;;  %v21391_v43 = vld [vmem:[#allocation99_spill] sm:$0xff] }
 0x9ea   : > { %v7481_v51 = vmul.f32 0.25, %v7225_v49  ;;  %v7227_v41 = vadd.f32 %v18127_v3, %v21359_v36  ;;  %v7228_v8 = vadd.f32 %v21361_v16, %v21360_v54  ;;  %v21362_v0 = vcombine.low %v18207_v6, %v18210_v7  ;;  %v21365_v7 = vld [vmem:[#allocation234_spill] sm:$0xff] }
 0x9eb   : > { %8965 = vperm.xlu1 %10280, %v21358_v24   ;;  %v18586_v63 = vrot.slane %v8529_v23, %v20866_v46  ;;  %v18588_v62 = vmul.f32 0.25, %v7206_v57  ;;  %v7479_v15 = vmul.f32 0.25, %v7223_v39  ;;  %v8528_v19 = vcombine.low %v18567_v55, %v18554_v60  ;;  %v21366_v23 = vld [vmem:[#allocation306_spill] sm:$0xff]  ;;  %v21367_v57 = vld [vmem:[#allocation423_spill] sm:$0xff]  ;;  %v21416_v55 = vld [vmem:[#allocation373_spill] sm:$0xff] }
 0x9ec   : > { %v18592_v49 = vmul.f32 0.25, %v7207_v29  ;;  %v7480_v3 = vmul.f32 0.25, %v7224_v21  ;;  %v7226_v27 = vadd.f32 %v21364_v10, %v21363_v50  ;;  %v7485_v30 = vmul.f32 0.25, %v7229_v13  ;;  %v21372_v10 = vld [vmem:[#allocation156_spill] sm:$0xff]  ;;  %v21415_v60 = vld [vmem:[#allocation318_spill] sm:$0xff] }
 0x9ed   : > { %8968 = vperm.xlu0 %10239, %v21362_v0   ;;  %v6717_v4 = vpop.permute.xlu0 %6716  ;;  %v7478_v6 = vmul.f32 0.25, %v7222_v9  ;;  %v7255_v24 = vadd.f32 %v6713_v14, %v21365_v7  ;;  %v7256_v36 = vadd.f32 %v6715_v12, %v21366_v23  ;;  %v21368_v39 = vcombine.low %v18276_v22, %v18247_v5  ;;  %v21370_v9 = vld [vmem:[#allocation228_spill] sm:$0xff]  ;;  %v6719_v23 = vpop.permute.xlu1 %6718  ;;  %v21373_v22 = vld [vmem:[#allocation354_spill] sm:$0xff] }
 0x9ee   : > { %v7257_v54 = vadd.f32 %v6717_v4, %v21367_v57  ;;  %v18603_v29 = vrot.slane %v8530_v53, %v20866_v46  ;;  %v8615_v21 = vcombine.low %v7480_v3, %v7481_v51  ;;  %v7483_v16 = vmul.f32 0.25, %v7227_v41  ;;  %v21371_v14 = vld [vmem:[#allocation72_spill] sm:$0xff] }
 0x9ef   : > { %8971 = vperm.xlu1 %10280, %v21368_v39   ;;  %v7484_v0 = vmul.f32 0.25, %v7228_v8  ;;  %v21369_v13 = vcombine.low %v18279_v40, %v18259_v1  ;;  %v7208_v50 = vadd.f32 %v21371_v14, %v21370_v9  ;;  %v8614_v12 = vcombine.low %v7478_v6, %v7479_v15  ;;  %v21374_v53 = vld [vmem:[#allocation312_spill] sm:$0xff]  ;;  %v21375_v40 = vld [vmem:[#allocation347_spill] sm:$0xff] }
 0x9f0   : > { %v7254_v4 = vadd.f32 %v6711_v56, %v21372_v10  ;;  %v7513_v7 = vmul.f32 0.25, %v7257_v54  ;;  %v8546_v5 = vcombine.low %v18588_v62, %v18592_v49  ;;  %v7209_v51 = vadd.f32 %v21374_v53, %v21373_v22  ;;  %v21378_v54 = vld [vmem:[#allocation366_spill] sm:$0xff]  ;;  %v21379_v14 = vld [vmem:[#allocation391_spill] sm:$0xff] }
 0x9f1   : > { %8974 = vperm.xlu0 %10239, %v21369_v13   ;;  %v7482_v41 = vmul.f32 0.25, %v7226_v27  ;;  %v8632_v8 = vcombine.low %v7484_v0, %v7485_v30  ;;  %v6721_v3 = vpop.permute.xlu0 %6720  ;;  %v7511_v57 = vmul.f32 0.25, %v7255_v24  ;;  %v7512_v1 = vmul.f32 0.25, %v7256_v36  ;;  %v21376_v13 = vld [vmem:[#allocation292_spill] sm:$0xff]  ;;  %v21383_v53 = vld [vmem:[#allocation419_spill] sm:$0xff] }
 0x9f2   : > { %v7258_v39 = vadd.f32 %v6719_v23, %v21375_v40  ;;  %v7259_v9 = vadd.f32 %v6721_v3, %v21376_v13  ;;  %v21377_v56 = vcombine.low %v18316_v42, %v18327_v34  ;;  %v8629_v15 = vrot.slane %v8615_v21, %v20866_v46  ;;  %v6723_v42 = vpop.permute.xlu1 %6722  ;;  %v21381_v21 = vld [vmem:[#allocation290_spill] sm:$0xff]  ;;  %v21385_v40 = vld [vmem:[#allocation48_spill] sm:$0xff] }
 0x9f3   : > { %v8631_v6 = vcombine.low %v7482_v41, %v7483_v16  ;;  %v7233_v10 = vadd.f32 %v21379_v14, %v21378_v54  ;;  %v21380_v27 = vcombine.low %v18396_v44, %v18381_v18  ;;  %v8545_v30 = vcombine.low %v18586_v63, %v18603_v29  ;;  %v21382_v16 = vld [vmem:[#allocation392_spill] sm:$0xff]  ;;  %v21384_v41 = vld [vmem:[#allocation313_spill] sm:$0xff]  ;;  %v21386_v14 = vld [vmem:[#allocation54_spill] sm:$0xff] }
 0x9f4   : > { %8983 = vperm.xlu1 %10280, %v21377_v56   ;;  %v8622_v24 = vrot.slane %v8614_v12, %v20866_v46  ;;  %v7510_v36 = vmul.f32 0.25, %v7254_v4  ;;  %v8751_v0 = vcombine.low %v7512_v1, %v7513_v7  ;;  %v7515_v23 = vmul.f32 0.25, %v7259_v9  ;;  %v21387_v7 = vld [vmem:[#allocation406_spill] sm:$0xff] }
 0x9f5   : > { %8986 = vperm.xlu0 %10239, %v21380_v27   ;;  %v8646_v34 = vrot.slane %v8632_v8, %v20866_v46  ;;  %v7231_v22 = vadd.f32 %v21382_v16, %v21381_v21  ;;  %v7232_v3 = vadd.f32 %v21384_v41, %v21383_v53  ;;  %v7260_v18 = vadd.f32 %v6723_v42, %v21385_v40  ;;  %v6725_v44 = vpop.permute.xlu0 %6724  ;;  %v21388_v1 = vld [vmem:[#allocation126_spill] sm:$0xff] }
 0x9f6   : > { %v7464_v13 = vmul.f32 0.25, %v7208_v50  ;;  %v8750_v56 = vcombine.low %v7510_v36, %v7511_v57  ;;  %v7514_v54 = vmul.f32 0.25, %v7258_v39  ;;  %v7261_v12 = vadd.f32 %v6725_v44, %v21386_v14  ;;  %v6727_v39 = vpop.permute.xlu1 %6726  ;;  %v21390_v14 = vld [vmem:[#allocation356_spill] sm:$0xff]  ;;  %v21434_v29 = vld [vmem:[#allocation178_spill] sm:$0xff] }
 0x9f7   : > { %v8639_v4 = vrot.slane %v8631_v6, %v20866_v46  ;;  %v7230_v8 = vadd.f32 %v21388_v1, %v21387_v7  ;;  %v7489_v9 = vmul.f32 0.25, %v7233_v10  ;;  %v8630_v27 = vcombine.low %v8622_v24, %v8629_v15  ;;  %v21389_v10 = vld [vmem:[#allocation111_spill] sm:$0xff] }
 0x9f8   : > { %9007 = vperm.xlu1 %10280, %v8494_v33   ;;  %v8765_v42 = vrot.slane %v8751_v0, %v20866_v46  ;;  %v8767_v21 = vcombine.low %v7514_v54, %v7515_v23  ;;  %v7516_v50 = vmul.f32 0.25, %v7260_v18  ;;  %v7517_v57 = vmul.f32 0.25, %v7261_v12  ;;  %v21393_v23 = vld [vmem:[#allocation365_spill] sm:$0xff]  ;;  %v21395_v7 = vld [vmem:[#allocation299_spill] sm:$0xff] }
 0x9f9   : > { %9010 = vperm.xlu0 %10239, %v8511_v2   ;;  %v7465_v36 = vmul.f32 0.25, %v7209_v51  ;;  %v7487_v16 = vmul.f32 0.25, %v7231_v22  ;;  %v7488_v33 = vmul.f32 0.25, %v7232_v3  ;;  %v6729_v53 = vpop.permute.xlu0 %6728  ;;  %v8647_v6 = vcombine.low %v8639_v4, %v8646_v34  ;;  %v21392_v2 = vld [vmem:[#allocation184_spill] sm:$0xff]  ;;  %v21394_v12 = vld [vmem:[#allocation233_spill] sm:$0xff] }
 0x9fa   : > { %v8758_v41 = vrot.slane %v8750_v56, %v20866_v46  ;;  %v8768_v40 = vcombine.low %v7516_v50, %v7517_v57  ;;  %v7262_v44 = vadd.f32 %v6727_v39, %v21389_v10  ;;  %v7263_v58 = vadd.f32 %v6729_v53, %v21390_v14  ;;  %v6731_v18 = vpop.permute.xlu1 %6730  ;;  %v21397_v39 = vld [vmem:[#allocation65_spill] sm:$0xff] }
 0x9fb   : > { %v7210_v15 = vadd.f32 %v21392_v2, %v21391_v43  ;;  %v7486_v24 = vmul.f32 0.25, %v7230_v8  ;;  %v8649_v0 = vcombine.low %v7488_v33, %v7489_v9  ;;  %v7237_v51 = vadd.f32 %v18283_v35, %v21393_v23  ;;  %v21396_v8 = vld [vmem:[#allocation319_spill] sm:$0xff] }
 0x9fc   : > { %9031 = vperm.xlu1 %10280, %v8630_v27   ;;  %v8775_v22 = vrot.slane %v8767_v21, %v20866_v46  ;;  %v8782_v34 = vrot.slane %v8768_v40, %v20866_v46  ;;  %v7519_v3 = vmul.f32 0.25, %v7263_v58  ;;  %v8766_v56 = vcombine.low %v8758_v41, %v8765_v42  ;;  %v21398_v42 = vld [vmem:[#allocation174_spill] sm:$0xff]  ;;  %v21400_v33 = vld [vmem:[#allocation103_spill] sm:$0xff] }
 0x9fd   : > { %9034 = vperm.xlu0 %10239, %v8647_v6   ;;  %v8547_v54 = vcombine.low %v7464_v13, %v7465_v36  ;;  %v7235_v4 = vadd.f32 %v18251_v32, %v21394_v12  ;;  %v7236_v1 = vadd.f32 %v18273_v28, %v21395_v7  ;;  %v7264_v9 = vadd.f32 %v6731_v18, %v21396_v8  ;;  %v6733_v27 = vpop.permute.xlu0 %6732  ;;  %v21399_v32 = vld [vmem:[#allocation387_spill] sm:$0xff]  ;;  %v21401_v28 = vld [vmem:[#allocation374_spill] sm:$0xff] }
 0x9fe   : > { %v8648_v50 = vcombine.low %v7486_v24, %v7487_v16  ;;  %v8783_v35 = vcombine.low %v8775_v22, %v8782_v34  ;;  %v7518_v57 = vmul.f32 0.25, %v7262_v44  ;;  %v7265_v21 = vadd.f32 %v6733_v27, %v21397_v39  ;;  %v6735_v44 = vpop.permute.xlu1 %6734  ;;  %v21402_v24 = vld [vmem:[#allocation283_spill] sm:$0xff] }
 0x9ff   : > { %v18662_v13 = vrot.slane %v8546_v5, %v20866_v46  ;;  %v7211_v36 = vadd.f32 %v21399_v32, %v21398_v42  ;;  %v7234_v53 = vadd.f32 %v21401_v28, %v21400_v33  ;;  %v7493_v6 = vmul.f32 0.25, %v7237_v51  ;;  %v21403_v51 = vld [vmem:[#allocation241_spill] sm:$0xff]  ;;  %v21411_v39 = vld [vmem:[#allocation47_spill] sm:$0xff] }
 0xa00   : > { %9055 = vperm.xlu1 %10280, %v8766_v56   ;;  %v8663_v16 = vrot.slane %v8649_v0, %v20866_v46  ;;  %v8784_v41 = vcombine.low %v7518_v57, %v7519_v3  ;;  %v7520_v40 = vmul.f32 0.25, %v7264_v9  ;;  %v7521_v10 = vmul.f32 0.25, %v7265_v21  ;;  %v21405_v56 = vld [vmem:[#allocation372_spill] sm:$0xff]  ;;  %v21412_v32 = vld [vmem:[#allocation353_spill] sm:$0xff] }
 0xa01   : > { %9058 = vperm.xlu0 %10239, %v8783_v35   ;;  %v18670_v14 = vrot.slane %v8547_v54, %v20866_v46  ;;  %v18672_v62 = vmul.f32 0.25, %v7210_v15  ;;  %v7491_v49 = vmul.f32 0.25, %v7235_v4  ;;  %v7492_v5 = vmul.f32 0.25, %v7236_v1  ;;  %v6737_v58 = vpop.permute.xlu0 %6736  ;;  %v21406_v15 = vld [vmem:[#allocation203_spill] sm:$0xff]  ;;  %v21410_v35 = vld [vmem:[#allocation252_spill] sm:$0xff] }
 0xa02   : > { %v8656_v43 = vrot.slane %v8648_v50, %v20866_v46  ;;  %v8785_v2 = vcombine.low %v7520_v40, %v7521_v10  ;;  %v7266_v23 = vadd.f32 %v6735_v44, %v21402_v24  ;;  %v7267_v0 = vadd.f32 %v6737_v58, %v21403_v51  ;;  %v6739_v1 = vpop.permute.xlu1 %6738  ;;  %v21409_v50 = vld [vmem:[#allocation300_spill] sm:$0xff]  ;;  %v21417_v40 = vld [vmem:[#allocation153_spill] sm:$0xff] }
 0xa03   : > { %v21404_v22 = vcombine.low %v18406_v17, %v18391_v48  ;;  %v7467_v34 = vmul.f32 0.25, %v7211_v36  ;;  %v7490_v3 = vmul.f32 0.25, %v7234_v53  ;;  %v8666_v18 = vcombine.low %v7492_v5, %v7493_v6  ;;  %v21407_v48 = vld [vmem:[#allocation229_spill] sm:$0xff]  ;;  %v21408_v17 = vld [vmem:[#allocation76_spill] sm:$0xff]  ;;  %v21413_v36 = vld [vmem:[#allocation183_spill] sm:$0xff] }
 0xa04   : > { %v7241_v54 = vadd.f32 %v21406_v15, %v21405_v56  ;;  %v8792_v12 = vrot.slane %v8784_v41, %v20866_v46  ;;  %v8799_v4 = vrot.slane %v8785_v2, %v20866_v46  ;;  %v7523_v7 = vmul.f32 0.25, %v7267_v0  ;;  %v21414_v6 = vld [vmem:[#allocation62_spill] sm:$0xff]  ;;  %v21418_v10 = vld [vmem:[#allocation249_spill] sm:$0xff]  ;;  %v21419_v15 = vld [vmem:[#allocation219_spill] sm:$0xff] }
 0xa05   : > { %8989 = vperm.xlu1 %10280, %v21404_v22   ;;  %9013 = vperm.xlu0 %10239, %v8528_v19   ;;  %v8664_v8 = vcombine.low %v8656_v43, %v8663_v16  ;;  %v8665_v9 = vcombine.low %v7490_v3, %v7491_v49  ;;  %v7239_v27 = vadd.f32 %v21408_v17, %v21407_v48  ;;  %v6741_v42 = vpop.permute.xlu0 %6740  ;;  %v7522_v53 = vmul.f32 0.25, %v7266_v23  ;;  %v21424_v17 = vld [vmem:[#allocation260_spill] sm:$0xff] }
 0xa06   : > { %v7240_v57 = vadd.f32 %v21410_v35, %v21409_v50  ;;  %v7268_v21 = vadd.f32 %v6739_v1, %v21411_v39  ;;  %v7212_v33 = vadd.f32 %v21413_v36, %v21412_v32  ;;  %v8800_v28 = vcombine.low %v8792_v12, %v8799_v4  ;;  %v6743_v24 = vpop.permute.xlu1 %6742  ;;  %v21426_v39 = vld [vmem:[#allocation403_spill] sm:$0xff] }
 0xa07   : > { %v7269_v41 = vadd.f32 %v6741_v42, %v21414_v6  ;;  %v7213_v19 = vadd.f32 %v21416_v55, %v21415_v60  ;;  %v8680_v16 = vrot.slane %v8666_v18, %v20866_v46  ;;  %v7238_v44 = vadd.f32 %v21418_v10, %v21417_v40  ;;  %v21428_v36 = vld [vmem:[#allocation235_spill] sm:$0xff]  ;;  %v21431_v60 = vld [vmem:[#allocation361_spill] sm:$0xff]  ;;  %v21432_v55 = vld [vmem:[#allocation316_spill] sm:$0xff] }
 0xa08   : > { %v7497_v49 = vmul.f32 0.25, %v7241_v54  ;;  %v8563_v5 = vcombine.low %v18672_v62, %v7467_v34  ;;  %v8801_v58 = vcombine.low %v7522_v53, %v7523_v7  ;;  %v7524_v43 = vmul.f32 0.25, %v7268_v21  ;;  %v21420_v54 = vld [vmem:[#allocation237_spill] sm:$0xff]  ;;  %v21421_v62 = vld [vmem:[#allocation251_spill] sm:$0xff]  ;;  %v21422_v34 = vld [vmem:[#allocation28_spill] sm:$0xff] }
 0xa09   : > { %9037 = vperm.xlu1 %10280, %v8664_v8   ;;  %v7525_v2 = vmul.f32 0.25, %v7269_v41  ;;  %9061 = vperm.xlu0 %10239, %v8800_v28   ;;  %v8673_v23 = vrot.slane %v8665_v9, %v20866_v46  ;;  %v7495_v51 = vmul.f32 0.25, %v7239_v27  ;;  %v7496_v0 = vmul.f32 0.25, %v7240_v57  ;;  %v6745_v22 = vpop.permute.xlu0 %6744  ;;  %v21425_v27 = vld [vmem:[#allocation190_spill] sm:$0xff]  ;;  %v21427_v21 = vld [vmem:[#allocation120_spill] sm:$0xff]  ;;  %v21433_v10 = vld [vmem:[#allocation257_spill] sm:$0xff] }
 0xa0a   : > { %v8562_v3 = vcombine.low %v18662_v13, %v18670_v14  ;;  %v7468_v18 = vmul.f32 0.25, %v7212_v33  ;;  %v7270_v12 = vadd.f32 %v6743_v24, %v21419_v15  ;;  %v7271_v4 = vadd.f32 %v6745_v22, %v21420_v54  ;;  %v6747_v57 = vpop.permute.xlu1 %6746  ;;  %v21429_v33 = vld [vmem:[#allocation30_spill] sm:$0xff] }
 0xa0b   : > { %v8802_v56 = vcombine.low %v7524_v43, %v7525_v2  ;;  %v21423_v7 = vcombine.low %v21421_v62, %v21422_v34  ;;  %v7469_v1 = vmul.f32 0.25, %v7213_v19  ;;  %v7494_v8 = vmul.f32 0.25, %v7238_v44  ;;  %v21430_v53 = vld [vmem:[#allocation370_spill] sm:$0xff]  ;;  %v21436_v43 = vld [vmem:[#allocation109_spill] sm:$0xff] }
 0xa0c   : > { %v8683_v48 = vcombine.low %v7496_v0, %v7497_v49  ;;  %v8681_v9 = vcombine.low %v8673_v23, %v8680_v16  ;;  %v7245_v50 = vadd.f32 %v21425_v27, %v21424_v17  ;;  %v8809_v35 = vrot.slane %v8801_v58, %v20866_v46  ;;  %v21437_v2 = vld [vmem:[#allocation378_spill] sm:$0xff]  ;;  %v21440_v17 = vld [vmem:[#allocation27_spill] sm:$0xff] }
 0xa0d   : > { %8992 = vperm.xlu1 %10280, %v21423_v7   ;;  %v8816_v13 = vrot.slane %v8802_v56, %v20866_v46  ;;  %v7527_v14 = vmul.f32 0.25, %v7271_v4  ;;  %9016 = vperm.xlu0 %10239, %v8545_v30   ;;  %v7214_v42 = vadd.f32 %v21427_v21, %v21426_v39  ;;  %v8682_v32 = vcombine.low %v7494_v8, %v7495_v51  ;;  %v6749_v41 = vpop.permute.xlu0 %6748  ;;  %v21435_v30 = vld [vmem:[#allocation14_spill] sm:$0xff]  ;;  %v21438_v7 = vld [vmem:[#allocation409_spill] sm:$0xff]  ;;  %v21441_v27 = vld [vmem:[#allocation139_spill] sm:$0xff] }
 0xa0e   : > { %v7243_v28 = vadd.f32 %v21429_v33, %v21428_v36  ;;  %v7272_v6 = vadd.f32 %v6747_v57, %v21430_v53  ;;  %v7244_v19 = vadd.f32 %v21432_v55, %v21431_v60  ;;  %v7526_v40 = vmul.f32 0.25, %v7270_v12  ;;  %v6751_v56 = vpop.permute.xlu1 %6750  ;;  %v21446_v53 = vld [vmem:[#allocation248_spill] sm:$0xff]  ;;  %v21448_v60 = vld [vmem:[#allocation331_spill] sm:$0xff] }
 0xa0f   : > { %v8817_v16 = vcombine.low %v8809_v35, %v8816_v13  ;;  %v7273_v44 = vadd.f32 %v6749_v41, %v21433_v10  ;;  %v18725_v63 = vrot.slane %v8563_v5, %v20866_v46  ;;  %v7215_v49 = vadd.f32 %v21435_v30, %v21434_v29  ;;  %v21443_v13 = vld [vmem:[#allocation253_spill] sm:$0xff]  ;;  %v21447_v41 = vld [vmem:[#allocation371_spill] sm:$0xff]  ;;  %v21450_v30 = vld [vmem:[#allocation384_spill] sm:$0xff] }
 0xa10   : > { %v8697_v58 = vrot.slane %v8683_v48, %v20866_v46  ;;  %v7242_v24 = vadd.f32 %v21437_v2, %v21436_v43  ;;  %v7501_v23 = vmul.f32 0.25, %v7245_v50  ;;  %v8818_v51 = vcombine.low %v7526_v40, %v7527_v14  ;;  %v21439_v48 = vld [vmem:[#allocation317_spill] sm:$0xff]  ;;  %v21452_v2 = vld [vmem:[#allocation191_spill] sm:$0xff] }
 0xa11   : > { %9040 = vperm.xlu1 %10280, %v8681_v9   ;;  %v7528_v0 = vmul.f32 0.25, %v7272_v6  ;;  %v7529_v22 = vmul.f32 0.25, %v7273_v44  ;;  %9064 = vperm.xlu0 %10239, %v8817_v16   ;;  %v8564_v15 = vcombine.low %v7468_v18, %v7469_v1  ;;  %v18732_v12 = vmul.f32 0.25, %v7214_v42  ;;  %v6753_v4 = vpop.permute.xlu0 %6752  ;;  %v21444_v18 = vld [vmem:[#allocation311_spill] sm:$0xff]  ;;  %v21451_v43 = vld [vmem:[#allocation289_spill] sm:$0xff] }
 0xa12   : > { %v8690_v5 = vrot.slane %v8682_v32, %v20866_v46  ;;  %v7499_v54 = vmul.f32 0.25, %v7243_v28  ;;  %v7500_v62 = vmul.f32 0.25, %v7244_v19  ;;  %v7274_v8 = vadd.f32 %v6751_v56, %v21438_v7  ;;  %v6755_v36 = vpop.permute.xlu1 %6754  ;;  %v21445_v28 = vld [vmem:[#allocation240_spill] sm:$0xff] }
 0xa13   : > { %v8819_v34 = vcombine.low %v7528_v0, %v7529_v22  ;;  %v7275_v9 = vadd.f32 %v6753_v4, %v21439_v48  ;;  %v21442_v50 = vcombine.low %v21440_v17, %v21441_v27  ;;  %v18740_v35 = vmul.f32 0.25, %v7215_v49  ;;  %v21449_v19 = vld [vmem:[#allocation60_spill] sm:$0xff]  ;;  %v21457_v27 = vld [vmem:[#allocation410_spill] sm:$0xff] }
 0xa14   : > { %v7217_v1 = vadd.f32 %v21444_v18, %v21443_v13  ;;  %v7498_v14 = vmul.f32 0.25, %v7242_v24  ;;  %v8698_v57 = vcombine.low %v8690_v5, %v8697_v58  ;;  %v8700_v39 = vcombine.low %v7500_v62, %v7501_v23  ;;  %v21453_v23 = vld [vmem:[#allocation359_spill] sm:$0xff]  ;;  %v21455_v62 = vld [vmem:[#allocation112_spill] sm:$0xff]  ;;  %v21459_v18 = vld [vmem:[#allocation142_spill] sm:$0xff] }
 0xa15   : > { %8995 = vperm.xlu1 %10280, %v21442_v50   ;;  %v8826_v21 = vrot.slane %v8818_v51, %v20866_v46  ;;  %v8833_v42 = vrot.slane %v8819_v34, %v20866_v46  ;;  %v7531_v32 = vmul.f32 0.25, %v7275_v9  ;;  %9019 = vperm.xlu0 %10239, %v8562_v3   ;;  %v8578_v33 = vrot.slane %v8564_v15, %v20866_v46  ;;  %v6757_v40 = vpop.permute.xlu0 %6756  ;;  %v21454_v51 = vld [vmem:[#allocation315_spill] sm:$0xff]  ;;  %v21456_v34 = vld [vmem:[#allocation393_spill] sm:$0xff] }
 0xa16   : > { %v7216_v6 = vadd.f32 %v21446_v53, %v21445_v28  ;;  %v7249_v55 = vadd.f32 %v21448_v60, %v21447_v41  ;;  %v7276_v16 = vadd.f32 %v6755_v36, %v21449_v19  ;;  %v8699_v10 = vcombine.low %v7498_v14, %v7499_v54  ;;  %v6759_v54 = vpop.permute.xlu1 %6758  ;;  %v21464_v41 = vld [vmem:[#allocation296_spill] sm:$0xff]  ;;  %v21465_v60 = vld [vmem:[#allocation26_spill] sm:$0xff] }
 0xa17   : > { %v8834_v44 = vcombine.low %v8826_v21, %v8833_v42  ;;  %v7530_v29 = vmul.f32 0.25, %v7274_v8  ;;  %v7277_v49 = vadd.f32 %v6757_v40, %v21450_v30  ;;  %v8580_v3 = vcombine.low %v18732_v12, %v18740_v35  ;;  %v21458_v35 = vld [vmem:[#allocation239_spill] sm:$0xff]  ;;  %v21463_v21 = vld [vmem:[#allocation186_spill] sm:$0xff]  ;;  %v21466_v40 = vld [vmem:[#allocation369_spill] sm:$0xff] }
 0xa18   : > { %v7473_v58 = vmul.f32 0.25, %v7217_v1  ;;  %v7247_v24 = vadd.f32 %v21452_v2, %v21451_v43  ;;  %v7248_v0 = vadd.f32 %v21454_v51, %v21453_v23  ;;  %v8714_v22 = vrot.slane %v8700_v39, %v20866_v46  ;;  %v21460_v1 = vld [vmem:[#allocation254_spill] sm:$0xff]  ;;  %v21462_v39 = vld [vmem:[#allocation215_spill] sm:$0xff]  ;;  %v21468_v30 = vld [vmem:[#allocation188_spill] sm:$0xff] }
 0xa19   : > { %9043 = vperm.xlu1 %10280, %v8698_v57   ;;  %v8835_v56 = vcombine.low %v7530_v29, %v7531_v32  ;;  %v7532_v15 = vmul.f32 0.25, %v7276_v16  ;;  %v7533_v5 = vmul.f32 0.25, %v7277_v49  ;;  %9067 = vperm.xlu0 %10239, %v8834_v44   ;;  %v7472_v4 = vmul.f32 0.25, %v7216_v6  ;;  %v6761_v12 = vpop.permute.xlu0 %6760  ;;  %v21467_v29 = vld [vmem:[#allocation179_spill] sm:$0xff]  ;;  %v21469_v2 = vld [vmem:[#allocation58_spill] sm:$0xff] }
 0xa1a   : > { %v7246_v7 = vadd.f32 %v21456_v34, %v21455_v62  ;;  %v7505_v8 = vmul.f32 0.25, %v7249_v55  ;;  %v8579_v48 = vcombine.low %v18725_v63, %v8578_v33  ;;  %v8707_v9 = vrot.slane %v8699_v10, %v20866_v46  ;;  %v6763_v53 = vpop.permute.xlu1 %6762 }
 0xa1b   : > { %v8836_v17 = vcombine.low %v7532_v15, %v7533_v5  ;;  %v7278_v50 = vadd.f32 %v6759_v54, %v21457_v27  ;;  %v7279_v13 = vadd.f32 %v6761_v12, %v21458_v35  ;;  %v21461_v14 = vcombine.low %v21459_v18, %v21460_v1  ;;  %v21472_v5 = vld [vmem:[#allocation66_spill] sm:$0xff]  ;;  %v21476_v18 = vld [vmem:[#allocation19_spill] sm:$0xff] }
 0xa1c   : > { %v8581_v57 = vcombine.low %v7472_v4, %v7473_v58  ;;  %v7218_v42 = vadd.f32 %v21463_v21, %v21462_v39  ;;  %v7503_v32 = vmul.f32 0.25, %v7247_v24  ;;  %v7504_v36 = vmul.f32 0.25, %v7248_v0  ;;  %v21470_v0 = vld [vmem:[#allocation417_spill] sm:$0xff] }
 0xa1d   : > { %8998 = vperm.xlu1 %10280, %v21461_v14   ;;  %v8843_v28 = vrot.slane %v8835_v56, %v20866_v46  ;;  %v8850_v63 = vrot.slane %v8836_v17, %v20866_v46  ;;  %v7535_v33 = vmul.f32 0.25, %v7279_v13  ;;  %9022 = vperm.xlu0 %10239, %v8579_v48   ;;  %v8715_v6 = vcombine.low %v8707_v9, %v8714_v22  ;;  %v6765_v44 = vpop.permute.xlu0 %6764  ;;  %v21471_v22 = vld [vmem:[#allocation250_spill] sm:$0xff]  ;;  %v21475_v13 = vld [vmem:[#allocation375_spill] sm:$0xff] }
 0xa1e   : > { %v7221_v55 = vadd.f32 %v21465_v60, %v21464_v41  ;;  %v7502_v19 = vmul.f32 0.25, %v7246_v7  ;;  %v8717_v16 = vcombine.low %v7504_v36, %v7505_v8  ;;  %v7280_v10 = vadd.f32 %v6763_v53, %v21466_v40  ;;  %v6767_v7 = vpop.permute.xlu1 %6766  ;;  %v21479_v36 = vld [vmem:[#allocation243_spill] sm:$0xff]  ;;  %v21480_v53 = vld [vmem:[#allocation56_spill] sm:$0xff]  ;;  %v21482_v40 = vld [vmem:[#allocation182_spill] sm:$0xff] }
 0xa1f   : > { %v7219_v49 = vadd.f32 %v21468_v30, %v21467_v29  ;;  %v8851_v58 = vcombine.low %v8843_v28, %v8850_v63  ;;  %v7534_v43 = vmul.f32 0.25, %v7278_v50  ;;  %v7281_v24 = vadd.f32 %v6765_v44, %v21469_v2  ;;  %v21474_v50 = vld [vmem:[#allocation304_spill] sm:$0xff]  ;;  %v21483_v44 = vld [vmem:[#allocation245_spill] sm:$0xff]  ;;  %v21484_v29 = vld [vmem:[#allocation187_spill] sm:$0xff] }
 0xa20   : > { %v8462_v23 = vcombine.low %v18523_v37, %v18525_v31  ;;  %v8595_v51 = vrot.slane %v8581_v57, %v20866_v46  ;;  %v7220_v56 = vadd.f32 %v21471_v22, %v21470_v0  ;;  %v8716_v15 = vcombine.low %v7502_v19, %v7503_v32  ;;  %v21473_v37 = vld [vmem:[#allocation244_spill] sm:$0xff]  ;;  %v21486_v0 = vld [vmem:[#allocation75_spill] sm:$0xff] }
 0xa21   : > { %9046 = vperm.xlu1 %10280, %v8715_v6   ;;  %v7253_v54 = vadd.f32 %v18529_v38, %v21472_v5  ;;  %v8852_v4 = vcombine.low %v7534_v43, %v7535_v33  ;;  %v7536_v62 = vmul.f32 0.25, %v7280_v10  ;;  %v7537_v34 = vmul.f32 0.25, %v7281_v24  ;;  %9070 = vperm.xlu0 %10239, %v8851_v58   ;;  %v6769_v9 = vpop.permute.xlu0 %6768  ;;  %v21478_v57 = vld [vmem:[#allocation348_spill] sm:$0xff] }
 0xa22   : > { %v8588_v8 = vrot.slane %v8580_v3, %v20866_v46  ;;  %v7477_v12 = vmul.f32 0.25, %v7221_v55  ;;  %v8731_v48 = vrot.slane %v8717_v16, %v20866_v46  ;;  %v7251_v31 = vadd.f32 %v18504_v25, %v21473_v37  ;;  %v21481_v19 = vld [vmem:[#allocation160_spill] sm:$0xff]  ;;  %v21487_v37 = vld [vmem:[#allocation5_spill] sm:$0xff] }
 0xa23   : > { %v7474_v17 = vmul.f32 0.25, %v7218_v42  ;;  %v7475_v27 = vmul.f32 0.25, %v7219_v49  ;;  %v7252_v35 = vadd.f32 %v18521_v52, %v21474_v50  ;;  %v8853_v38 = vcombine.low %v7536_v62, %v7537_v34  ;;  %v6771_v52 = vpop.permute.xlu1 %6770 }
 0xa24   : > { %v21477_v1 = vcombine.low %v21475_v13, %v21476_v18  ;;  %v7476_v14 = vmul.f32 0.25, %v7220_v56  ;;  %v8724_v3 = vrot.slane %v8716_v15, %v20866_v46  ;;  %v7250_v39 = vadd.f32 %v18500_v26, %v21478_v57 }
 0xa25   : > { %v8596_v21 = vcombine.low %v8588_v8, %v8595_v51  ;;  %v7509_v32 = vmul.f32 0.25, %v7253_v54  ;;  %v8860_v25 = vrot.slane %v8852_v4, %v20866_v46  ;;  %v8867_v42 = vrot.slane %v8853_v38, %v20866_v46  ;;  %9001 = vperm.xlu0 %10239, %v8460_v59   ;;  %v6773_v41 = vpop.permute.xlu0 %6772 }
 0xa26   : > { %8977 = vperm.xlu1 %10280, %v21477_v1   ;;  %v7283_v28 = vadd.f32 %v6769_v9, %v21479_v36  ;;  %v8598_v63 = vcombine.low %v7476_v14, %v7477_v12  ;;  %v7507_v33 = vmul.f32 0.25, %v7251_v31  ;;  %v7284_v6 = vadd.f32 %v6771_v52, %v21480_v53 }
 0xa27   : > { %v8732_v60 = vcombine.low %v8724_v3, %v8731_v48  ;;  %v7508_v26 = vmul.f32 0.25, %v7252_v35  ;;  %v8868_v55 = vcombine.low %v8860_v25, %v8867_v42  ;;  %v7282_v16 = vadd.f32 %v6767_v7, %v21481_v19 }
 0xa28   : > { %v7285_v10 = vadd.f32 %v6773_v41, %v21482_v40  ;;  %v21485_v30 = vcombine.low %v21483_v44, %v21484_v29  ;;  %v8476_v20 = vrot.slane %v8462_v23, %v20866_v46  ;;  %v8597_v45 = vcombine.low %v7474_v17, %v7475_v27 }
 0xa29   : > { %v7506_v59 = vmul.f32 0.25, %v7250_v39  ;;  %v8734_v58 = vcombine.low %v7508_v26, %v7509_v32  ;;  %v7539_v43 = vmul.f32 0.25, %v7283_v28  ;;  %v7540_v2 = vmul.f32 0.25, %v7284_v6  ;;  %9049 = vperm.xlu0 %10239, %v8732_v60  }
 0xa2a   : > { %9025 = vperm.xlu1 %10280, %v8596_v21   ;;  %v8333_v49 = vrot.slane %v21485_v30, %v20866_v46  ;;  %v7541_v24 = vmul.f32 0.25, %v7285_v10  ;;  %v8469_v51 = vrot.slane %v8461_v61, %v20866_v46  ;;  %v8612_v56 = vrot.slane %v8598_v63, %v20866_v46 }
 0xa2b   : > { %v8733_v15 = vcombine.low %v7506_v59, %v7507_v33  ;;  %v7538_v5 = vmul.f32 0.25, %v7282_v16  ;;  %v8605_v23 = vrot.slane %v8597_v45, %v20866_v46  ;;  %v8748_v4 = vrot.slane %v8734_v58, %v20866_v46 }
 0xa2c   : > { %v8341_v22 = vcombine.low %v8333_v49, %v21486_v0  ;;  %v8870_v54 = vcombine.low %v7540_v2, %v7541_v24  ;;  %v8477_v34 = vcombine.low %v8469_v51, %v8476_v20 }
 0xa2d   : > { %v8869_v62 = vcombine.low %v7538_v5, %v7539_v43  ;;  %v8741_v7 = vrot.slane %v8733_v15, %v20866_v46  ;;  %v8613_v47 = vcombine.low %v8605_v23, %v8612_v56 }
 0xa2e   : > { %9073 = vperm.xlu1 %10280, %v8868_v55   ;;  %8980 = vperm.xlu0 %10239, %v8341_v22   ;;  %v8884_v11 = vrot.slane %v8870_v54, %v20866_v46 }
 0xa2f   : > { %v8877_v61 = vrot.slane %v8869_v62, %v20866_v46  ;;  %v8749_v8 = vcombine.low %v8741_v7, %v8748_v4 }
 0xa30   : > { %v8888_v48 = vpop.permute.xlu1 %8887  ;;  %v8891_v9 = vpop.permute.xlu0 %8890 }
 0xa31   : > { %v8885_v12 = vcombine.low %v8877_v61, %v8884_v11  ;;  %v9083_v31 = vrot.slane %v8888_v48, %v21487_v37  ;;  %v9087_v17 = vrot.slane %v8891_v9, %v21487_v37 }
 0xa32   : > { %9004 = vperm.xlu1 %10280, %v8477_v34   ;;  %9028 = vperm.xlu0 %10239, %v8613_v47  }
 0xa33   : > { %v9336_v27 = vsel %vm2805_vm2, %v9087_v17, %v9083_v31 }
 0xa34   : > { %v8894_v50 = vpop.permute.xlu1 %8893  ;;  %v8897_v38 = vpop.permute.xlu0 %8896 }
 0xa35   : > { %v9091_v35 = vrot.slane %v8894_v50, %v21487_v37  ;;  %v9095_v13 = vrot.slane %v8897_v38, %v21487_v37 }
 0xa36   : > { %9052 = vperm.xlu1 %10280, %v8749_v8   ;;  %9076 = vperm.xlu0 %10239, %v8885_v12  }
 0xa37   : > { %v9337_v18 = vsel %vm2799_vm8, %v9091_v35, %v9336_v27 }
 0xa38   : > { %v9338_v1 = vsel %vm2807_vm5, %v9095_v13, %v9337_v18  ;;  %v8900_v14 = vpop.permute.xlu1 %8899 }
 0xa39   : > { %v9099_v3 = vrot.slane %v8900_v14, %v21487_v37 }
 0xa3a   : > { %v8903_v57 = vpop.permute.xlu0 %8902 }
 0xa3b   : > { %v9103_v39 = vrot.slane %v8903_v57, %v21487_v37  ;;  %v9339_v21 = vsel %vm2800_vm9, %v9099_v3, %v9338_v1 }
 0xa3c   : > { %v8906_v25 = vpop.permute.xlu1 %8905 }
 0xa3d   : > { %v9340_v32 = vsel %vm2809_vm6, %v9103_v39, %v9339_v21  ;;  %v9107_v42 = vrot.slane %v8906_v25, %v21487_v37 }
 0xa3e   : > { %v8909_v36 = vpop.permute.xlu0 %8908 }
 0xa3f   : > { %v9111_v28 = vrot.slane %v8909_v36, %v21487_v37  ;;  %v9341_v52 = vsel %vm2802_vm10, %v9107_v42, %v9340_v32 }
 0xa41   : > { %v9342_v63 = vsel %vm2811_vm7, %v9111_v28, %v9341_v52  ;;  %v8912_v33 = vpop.permute.xlu1 %8911 }
 0xa42   : > { %v9115_v53 = vrot.slane %v8912_v33, %v21487_v37  ;;  %v8915_v6 = vpop.permute.xlu0 %8914  ;;  %v9392_v24 = vcombine.high %v9342_v63, %v9342_v63  ;;  %v18854_v56 = vrot.slane %v9342_v63, %v20866_v46 }
 0xa43   : > { %v9119_v41 = vrot.slane %v8915_v6, %v21487_v37 }
 0xa44   : > { %v18862_v62 = vrot.slane %v9392_v24, %v20866_v46 }
 0xa45   : > { %v9343_v60 = vsel %vm2805_vm2, %v9119_v41, %v9115_v53  ;;  %v8918_v26 = vpop.permute.xlu1 %8917 }
 0xa46   : > { %v9123_v55 = vrot.slane %v8918_v26, %v21487_v37  ;;  %v8921_v19 = vpop.permute.xlu0 %8920 }
 0xa47   : > { %v9127_v16 = vrot.slane %v8921_v19, %v21487_v37 }
 0xa48   : > { %v9344_v40 = vsel %vm2799_vm8, %v9123_v55, %v9343_v60 }
 0xa49   : > { %v9345_v10 = vsel %vm2807_vm5, %v9127_v16, %v9344_v40 }
 0xa4c   : > { %v8924_v44 = vpop.permute.xlu1 %8923 }
 0xa4d   : > { %v9131_v29 = vrot.slane %v8924_v44, %v21487_v37  ;;  %v8927_v30 = vpop.permute.xlu0 %8926 }
 0xa4e   : > { %v9135_v49 = vrot.slane %v8927_v30, %v21487_v37 }
 0xa4f   : > { %v9346_v20 = vsel %vm2800_vm9, %v9131_v29, %v9345_v10 }
 0xa50   : > { %v9347_v45 = vsel %vm2809_vm6, %v9135_v49, %v9346_v20  ;;  %v8930_v59 = vpop.permute.xlu1 %8929 }
 0xa51   : > { %v9139_v58 = vrot.slane %v8930_v59, %v21487_v37 }
 0xa52   : > { %v8933_v43 = vpop.permute.xlu0 %8932 }
 0xa53   : > { %v9143_v2 = vrot.slane %v8933_v43, %v21487_v37  ;;  %v9348_v51 = vsel %vm2802_vm10, %v9139_v58, %v9347_v45 }
 0xa54   : > { %v8936_v22 = vpop.permute.xlu1 %8935 }
 0xa55   : > { %v9349_v0 = vsel %vm2811_vm7, %v9143_v2, %v9348_v51  ;;  %v9147_v54 = vrot.slane %v8936_v22, %v21487_v37 }
 0xa56   : > { %v9409_v15 = vcombine.high %v9349_v0, %v9349_v0  ;;  %v18857_v5 = vrot.slane %v9349_v0, %v20866_v46  ;;  %v8939_v23 = vpop.permute.xlu0 %8938 }
 0xa57   : > { %v9151_v4 = vrot.slane %v8939_v23, %v21487_v37 }
 0xa58   : > { %v18865_v34 = vrot.slane %v9409_v15, %v20866_v46  ;;  %v9560_v7 = vcombine.low %v18854_v56, %v18857_v5  ;;  %v10085_v11 = vcombine.high %v18854_v56, %v18857_v5  ;;  %v8942_v61 = vpop.permute.xlu1 %8941 }
 0xa59   : > { %v9350_v47 = vsel %vm2805_vm2, %v9151_v4, %v9147_v54  ;;  %v9155_v31 = vrot.slane %v8942_v61, %v21487_v37 }
 0xa5a   : > { %v9632_v8 = vcombine.low %v18862_v62, %v18865_v34  ;;  %v10089_v12 = vcombine.high %v18862_v62, %v18865_v34 }
 0xa5b   : > { %v9351_v17 = vsel %vm2799_vm8, %v9155_v31, %v9350_v47 }
 0xa5c   : > { %v8945_v48 = vpop.permute.xlu0 %8944  ;;  %v8948_v27 = vpop.permute.xlu1 %8947 }
 0xa5d   : > { %v9159_v9 = vrot.slane %v8945_v48, %v21487_v37  ;;  %v9163_v35 = vrot.slane %v8948_v27, %v21487_v37 }
 0xa5f   : > { %v9352_v50 = vsel %vm2807_vm5, %v9159_v9, %v9351_v17 }
 0xa60   : > { %v8951_v38 = vpop.permute.xlu0 %8950  ;;  %v9353_v18 = vsel %vm2800_vm9, %v9163_v35, %v9352_v50  ;;  %v8954_v14 = vpop.permute.xlu1 %8953 }
 0xa61   : > { %v9167_v13 = vrot.slane %v8951_v38, %v21487_v37  ;;  %v9171_v3 = vrot.slane %v8954_v14, %v21487_v37  ;;  %v21488_v38 = vld [vmem:[#allocation7_spill] sm:$0xff] }
 0xa63   : > { %v9354_v1 = vsel %vm2809_vm6, %v9167_v13, %v9353_v18  ;;  %v18908_v13 = vrot.slane %v9560_v7, %v21488_v38  ;;  %v18914_v18 = vrot.slane %v10085_v11, %v21488_v38 }
 0xa64   : > { %v8957_v57 = vpop.permute.xlu0 %8956  ;;  %v9355_v21 = vsel %vm2802_vm10, %v9171_v3, %v9354_v1 }
 0xa65   : > { %v9175_v39 = vrot.slane %v8957_v57, %v21487_v37 }
 0xa66   : > { %v8960_v25 = vpop.permute.xlu1 %8959 }
 0xa67   : > { %v9356_v32 = vsel %vm2811_vm7, %v9175_v39, %v9355_v21  ;;  %v9179_v42 = vrot.slane %v8960_v25, %v21487_v37 }
 0xa68   : > { %v8963_v36 = vpop.permute.xlu0 %8962  ;;  %v9426_v27 = vcombine.high %v9356_v32, %v9356_v32  ;;  %v18919_v3 = vrot.slane %v9356_v32, %v20866_v46 }
 0xa69   : > { %v9183_v28 = vrot.slane %v8963_v36, %v21487_v37 }
 0xa6a   : > { %v8966_v63 = vpop.permute.xlu1 %8965 }
 0xa6b   : > { %v9357_v52 = vsel %vm2805_vm2, %v9183_v28, %v9179_v42  ;;  %v9187_v33 = vrot.slane %v8966_v63, %v21487_v37  ;;  %v18929_v42 = vrot.slane %v9426_v27, %v20866_v46 }
 0xa6c   : > { %v8969_v53 = vpop.permute.xlu0 %8968 }
 0xa6d   : > { %v9191_v6 = vrot.slane %v8969_v53, %v21487_v37  ;;  %v9358_v41 = vsel %vm2799_vm8, %v9187_v33, %v9357_v52 }
 0xa6e   : > { %v8972_v26 = vpop.permute.xlu1 %8971 }
 0xa6f   : > { %v9359_v60 = vsel %vm2807_vm5, %v9191_v6, %v9358_v41  ;;  %v9195_v55 = vrot.slane %v8972_v26, %v21487_v37 }
 0xa70   : > { %v8975_v19 = vpop.permute.xlu0 %8974 }
 0xa71   : > { %v9199_v16 = vrot.slane %v8975_v19, %v21487_v37  ;;  %v9360_v40 = vsel %vm2800_vm9, %v9195_v55, %v9359_v60 }
 0xa73   : > { %v9361_v10 = vsel %vm2809_vm6, %v9199_v16, %v9360_v40  ;;  %v8984_v44 = vpop.permute.xlu1 %8983 }
 0xa74   : > { %v8987_v29 = vpop.permute.xlu0 %8986  ;;  %v9211_v57 = vrot.slane %v8984_v44, %v21487_v37 }
 0xa75   : > { %v9215_v50 = vrot.slane %v8987_v29, %v21487_v37 }
 0xa77   : > { %v9008_v30 = vpop.permute.xlu1 %9007  ;;  %v9364_v32 = vsel %vm2805_vm2, %v9215_v50, %v9211_v57 }
 0xa78   : > { %v9011_v49 = vpop.permute.xlu0 %9010  ;;  %v9243_v25 = vrot.slane %v9008_v30, %v21487_v37 }
 0xa79   : > { %v9247_v1 = vrot.slane %v9011_v49, %v21487_v37 }
 0xa7b   : > { %v9032_v20 = vpop.permute.xlu1 %9031  ;;  %v9371_v63 = vsel %vm2805_vm2, %v9247_v1, %v9243_v25 }
 0xa7c   : > { %v9035_v45 = vpop.permute.xlu0 %9034  ;;  %v9275_v36 = vrot.slane %v9032_v20, %v21487_v37 }
 0xa7d   : > { %v9279_v39 = vrot.slane %v9035_v45, %v21487_v37 }
 0xa7f   : > { %v9056_v59 = vpop.permute.xlu1 %9055  ;;  %v9378_v41 = vsel %vm2805_vm2, %v9279_v39, %v9275_v36 }
 0xa80   : > { %v9059_v58 = vpop.permute.xlu0 %9058  ;;  %v9307_v28 = vrot.slane %v9056_v59, %v21487_v37 }
 0xa81   : > { %v9311_v7 = vrot.slane %v9059_v58, %v21487_v37 }
 0xa83   : > { %v9385_v60 = vsel %vm2805_vm2, %v9311_v7, %v9307_v28 }
 0xa84   : > { %v8990_v43 = vpop.permute.xlu1 %8989  ;;  %v9014_v2 = vpop.permute.xlu0 %9013 }
 0xa85   : > { %v9219_v56 = vrot.slane %v8990_v43, %v21487_v37  ;;  %v9251_v5 = vrot.slane %v9014_v2, %v21487_v37 }
 0xa87   : > { %v9365_v16 = vsel %vm2799_vm8, %v9219_v56, %v9364_v32  ;;  %v9372_v40 = vsel %vm2799_vm8, %v9251_v5, %v9371_v63 }
 0xa88   : > { %v9038_v24 = vpop.permute.xlu1 %9037  ;;  %v9062_v51 = vpop.permute.xlu0 %9061 }
 0xa89   : > { %v9283_v33 = vrot.slane %v9038_v24, %v21487_v37  ;;  %v9315_v53 = vrot.slane %v9062_v51, %v21487_v37 }
 0xa8b   : > { %v9379_v59 = vsel %vm2799_vm8, %v9283_v33, %v9378_v41  ;;  %v9386_v58 = vsel %vm2799_vm8, %v9315_v53, %v9385_v60 }
 0xa8c   : > { %v8993_v0 = vpop.permute.xlu1 %8992  ;;  %v9017_v22 = vpop.permute.xlu0 %9016 }
 0xa8d   : > { %v9223_v6 = vrot.slane %v8993_v0, %v21487_v37  ;;  %v9255_v26 = vrot.slane %v9017_v22, %v21487_v37 }
 0xa8f   : > { %v9366_v43 = vsel %vm2807_vm5, %v9223_v6, %v9365_v16  ;;  %v9373_v24 = vsel %vm2807_vm5, %v9255_v26, %v9372_v40 }
 0xa90   : > { %v9041_v15 = vpop.permute.xlu1 %9040  ;;  %v9065_v54 = vpop.permute.xlu0 %9064 }
 0xa91   : > { %v9287_v55 = vrot.slane %v9041_v15, %v21487_v37 }
 0xa93   : > { %v9380_v51 = vsel %vm2807_vm5, %v9287_v55, %v9379_v59 }
 0xa94   : > { %v8996_v23 = vpop.permute.xlu1 %8995  ;;  %v9020_v4 = vpop.permute.xlu0 %9019 }
 0xa95   : > { %v9227_v44 = vrot.slane %v8996_v23, %v21487_v37  ;;  %v9259_v29 = vrot.slane %v9020_v4, %v21487_v37 }
 0xa97   : > { %v9367_v23 = vsel %vm2800_vm9, %v9227_v44, %v9366_v43 }
 0xa98   : > { %v9044_v47 = vpop.permute.xlu1 %9043  ;;  %v9068_v61 = vpop.permute.xlu0 %9067 }
 0xa99   : > { %v9291_v30 = vrot.slane %v9044_v47, %v21487_v37  ;;  %v9323_v49 = vrot.slane %v9068_v61, %v21487_v37  ;;  %v9374_v61 = vsel %vm2800_vm9, %v9259_v29, %v9373_v24 }
 0xa9c   : > { %v8999_v48 = vpop.permute.xlu1 %8998  ;;  %v9023_v31 = vpop.permute.xlu0 %9022 }
 0xa9d   : > { %v9231_v20 = vrot.slane %v8999_v48, %v21487_v37  ;;  %v9263_v2 = vrot.slane %v9023_v31, %v21487_v37  ;;  %v9381_v48 = vsel %vm2800_vm9, %v9291_v30, %v9380_v51 }
 0xa9f   : > { %v9368_v27 = vsel %vm2809_vm6, %v9231_v20, %v9367_v23  ;;  %v9375_v50 = vsel %vm2809_vm6, %v9263_v2, %v9374_v61 }
 0xaa0   : > { %v18899_v9 = vpop.permute.xlu1 %9046  ;;  %v18901_v17 = vpop.permute.xlu0 %9070 }
 0xaa1   : > { %v9295_v0 = vrot.slane %v18899_v9, %v21487_v37  ;;  %v9327_v56 = vrot.slane %v18901_v17, %v21487_v37 }
 0xaa3   : > { %v9382_v57 = vsel %vm2809_vm6, %v9295_v0, %v9381_v48  ;;  %v9639_v0 = vrot.slane %v9632_v8, %v21488_v38 }
 0xaa4   : > { %v9002_v21 = vpop.permute.xlu0 %9001 }
 0xaa5   : > { %v8978_v35 = vpop.permute.xlu1 %8977  ;;  %v9235_v22 = vrot.slane %v9002_v21, %v21487_v37 }
 0xaa6   : > { %v9203_v14 = vrot.slane %v8978_v35, %v21487_v37 }
 0xaa7   : > { %v9369_v39 = vsel %vm2802_vm10, %v9235_v22, %v9368_v27  ;;  %v9675_v22 = vrot.slane %v10089_v12, %v21488_v38 }
 0xaa8   : > { %v9362_v11 = vsel %vm2802_vm10, %v9203_v14, %v9361_v10  ;;  %v9050_v19 = vpop.permute.xlu0 %9049  ;;  %v9319_v10 = vrot.slane %v9065_v54, %v21487_v37 }
 0xaa9   : > { %v9026_v52 = vpop.permute.xlu1 %9025  ;;  %v9299_v35 = vrot.slane %v9050_v19, %v21487_v37 }
 0xaaa   : > { %v9387_v54 = vsel %vm2807_vm5, %v9319_v10, %v9386_v58  ;;  %v9267_v4 = vrot.slane %v9026_v52, %v21487_v37 }
 0xaab   : > { %v9388_v31 = vsel %vm2800_vm9, %v9323_v49, %v9387_v54  ;;  %v9383_v53 = vsel %vm2802_vm10, %v9299_v35, %v9382_v57 }
 0xaac   : > { %v9376_v5 = vsel %vm2802_vm10, %v9267_v4, %v9375_v50  ;;  %v9389_v29 = vsel %vm2809_vm6, %v9327_v56, %v9388_v31 }
 0xaad   : > { %v18950_v45 = vpop.permute.xlu1 %9073  ;;  %v8981_v15 = vpop.permute.xlu0 %8980 }
 0xaae   : > { %v9207_v47 = vrot.slane %v8981_v15, %v21487_v37  ;;  %v9331_v6 = vrot.slane %v18950_v45, %v21487_v37 }
 0xab0   : > { %v9363_v1 = vsel %vm2811_vm7, %v9207_v47, %v9362_v11 }
 0xab1   : > { %v9005_v9 = vpop.permute.xlu1 %9004  ;;  %v9443_v7 = vcombine.high %v9363_v1, %v9363_v1  ;;  %v9450_v21 = vrot.slane %v9363_v1, %v20866_v46  ;;  %v9029_v25 = vpop.permute.xlu0 %9028 }
 0xab2   : > { %v9239_v14 = vrot.slane %v9005_v9, %v21487_v37  ;;  %v9271_v36 = vrot.slane %v9029_v25, %v21487_v37 }
 0xab3   : > { %v9457_v11 = vrot.slane %v9443_v7, %v20866_v46  ;;  %v9569_v28 = vcombine.low %v18919_v3, %v9450_v21  ;;  %v10086_v52 = vcombine.high %v18919_v3, %v9450_v21 }
 0xab4   : > { %v9370_v32 = vsel %vm2811_vm7, %v9239_v14, %v9369_v39  ;;  %v9377_v17 = vsel %vm2811_vm7, %v9271_v36, %v9376_v5 }
 0xab5   : > { %v9460_v63 = vcombine.high %v9370_v32, %v9370_v32  ;;  %v9053_v33 = vpop.permute.xlu1 %9052  ;;  %v9576_v60 = vrot.slane %v9569_v28, %v21488_v38  ;;  %v9612_v26 = vrot.slane %v10086_v52, %v21488_v38  ;;  %v9641_v55 = vcombine.low %v18929_v42, %v9457_v11  ;;  %v9077_v3 = vpop.permute.xlu0 %9076 }
 0xab6   : > { %v9303_v41 = vrot.slane %v9053_v33, %v21487_v37  ;;  %v10090_v19 = vcombine.high %v18929_v42, %v9457_v11  ;;  %v9467_v16 = vrot.slane %v9370_v32, %v20866_v46  ;;  %v9477_v40 = vcombine.high %v9377_v17, %v9377_v17 }
 0xab7   : > { %v9484_v10 = vrot.slane %v9377_v17, %v20866_v46  ;;  %v9648_v30 = vrot.slane %v9641_v55, %v21488_v38  ;;  %v9474_v49 = vrot.slane %v9460_v63, %v20866_v46  ;;  %v9335_v42 = vrot.slane %v9077_v3, %v21487_v37 }
 0xab8   : > { %v9384_v44 = vsel %vm2811_vm7, %v9303_v41, %v9383_v53  ;;  %v9491_v45 = vrot.slane %v9477_v40, %v20866_v46  ;;  %v9684_v43 = vrot.slane %v10090_v19, %v21488_v38  ;;  %v9754_v2 = vcombine.low %v18914_v18, %v9612_v26 }
 0xab9   : > { %v9494_v20 = vcombine.high %v9384_v44, %v9384_v44  ;;  %v9578_v59 = vcombine.low %v9467_v16, %v9484_v10  ;;  %v10087_v58 = vcombine.high %v9467_v16, %v9484_v10  ;;  %v10093_v24 = vcombine.high %v18908_v13, %v9576_v60 }
 0xaba   : > { %v10095_v51 = vcombine.high %v18914_v18, %v9612_v26  ;;  %v9390_v37 = vsel %vm2802_vm10, %v9331_v6, %v9389_v29  ;;  %v9501_v15 = vrot.slane %v9384_v44, %v20866_v46  ;;  %v9650_v23 = vcombine.low %v9474_v49, %v9491_v45 }
 0xabb   : > { %v9585_v54 = vrot.slane %v9578_v59, %v21488_v38  ;;  %v9508_v4 = vrot.slane %v9494_v20, %v20866_v46  ;;  %v9391_v18 = vsel %vm2811_vm7, %v9335_v42, %v9390_v37  ;;  %v9621_v47 = vrot.slane %v10087_v58, %v21488_v38 }
 0xabc   : > { %v10091_v61 = vcombine.high %v9474_v49, %v9491_v45  ;;  %v9511_v8 = vcombine.high %v9391_v18, %v9391_v18  ;;  %v9518_v48 = vrot.slane %v9391_v18, %v20866_v46  ;;  %v9802_v31 = vcombine.low %v9639_v0, %v9648_v30 }
 0xabd   : > { %v10097_v62 = vcombine.high %v9639_v0, %v9648_v30  ;;  %v9850_v34 = vcombine.low %v9675_v22, %v9684_v43  ;;  %v10099_v12 = vcombine.high %v9675_v22, %v9684_v43  ;;  %v9708_v35 = vcombine.low %v18908_v13, %v9576_v60 }
 0xabe   : > { %v9525_v27 = vrot.slane %v9511_v8, %v20866_v46  ;;  %v9587_v9 = vcombine.low %v9501_v15, %v9518_v48  ;;  %v10088_v50 = vcombine.high %v9501_v15, %v9518_v48  ;;  %v9657_v1 = vrot.slane %v9650_v23, %v21488_v38 }
 0xabf   : > { %v9762_v14 = vrot.slane %v9754_v2, %v20866_v46  ;;  %v9738_v57 = vrot.slane %v10093_v24, %v20866_v46  ;;  %v9786_v39 = vrot.slane %v10095_v51, %v20866_v46  ;;  %v9693_v5 = vrot.slane %v10091_v61, %v21488_v38 }
 0xac0   : > { %v9594_v7 = vrot.slane %v9587_v9, %v21488_v38  ;;  %v9630_v21 = vrot.slane %v10088_v50, %v21488_v38  ;;  %v9659_v25 = vcombine.low %v9508_v4, %v9525_v27  ;;  %v10092_v56 = vcombine.high %v9508_v4, %v9525_v27 }
 0xac1   : > { %v9810_v32 = vrot.slane %v9802_v31, %v20866_v46  ;;  %v9834_v13 = vrot.slane %v10097_v62, %v20866_v46  ;;  %v9858_v36 = vrot.slane %v9850_v34, %v20866_v46  ;;  %v9882_v53 = vrot.slane %v10099_v12, %v20866_v46 }
 0xac2   : > { %v9666_v11 = vrot.slane %v9659_v25, %v21488_v38  ;;  %v9702_v28 = vrot.slane %v10092_v56, %v21488_v38  ;;  %v9755_v52 = vcombine.low %v9621_v47, %v9630_v21  ;;  %v10094_v63 = vcombine.high %v9585_v54, %v9594_v7 }
 0xac3   : > { %v10096_v33 = vcombine.high %v9621_v47, %v9630_v21  ;;  %v9716_v6 = vrot.slane %v9708_v35, %v20866_v46  ;;  %v9709_v17 = vcombine.low %v9585_v54, %v9594_v7 }
 0xac4   : > { %v9769_v41 = vrot.slane %v9755_v52, %v20866_v46  ;;  %v9745_v60 = vrot.slane %v10094_v63, %v20866_v46  ;;  %v9803_v26 = vcombine.low %v9657_v1, %v9666_v11  ;;  %v10098_v55 = vcombine.high %v9657_v1, %v9666_v11 }
 0xac5   : > { %v9793_v19 = vrot.slane %v10096_v33, %v20866_v46  ;;  %v9851_v3 = vcombine.low %v9693_v5, %v9702_v28  ;;  %v10100_v16 = vcombine.high %v9693_v5, %v9702_v28  ;;  %v9723_v38 = vrot.slane %v9709_v17, %v20866_v46 }
 0xac6   : > { %v9770_v40 = vcombine.low %v9762_v14, %v9769_v41  ;;  %v9746_v10 = vcombine.low %v9738_v57, %v9745_v60  ;;  %v9817_v44 = vrot.slane %v9803_v26, %v20866_v46  ;;  %v9841_v29 = vrot.slane %v10098_v55, %v20866_v46 }
 0xac7   : > { %v9794_v30 = vcombine.low %v9786_v39, %v9793_v19  ;;  %v9865_v49 = vrot.slane %v9851_v3, %v20866_v46  ;;  %v9889_v20 = vrot.slane %v10100_v16, %v20866_v46  ;;  %v9724_v45 = vcombine.low %v9716_v6, %v9723_v38 }
 0xac8   : > { %9771 = vrot.lane.b32.xlu0 %v9770_v40, %s10424_s26  ;;  %9747 = vrot.lane.b32.xlu1 %v9746_v10, %s10425_s18  ;;  %v9818_v59 = vcombine.low %v9810_v32, %v9817_v44  ;;  %v9842_v58 = vcombine.low %v9834_v13, %v9841_v29  ;;  %s9911_s26 = scalar_lea.sflag [#allocation3], %s296_s21  ;;  %s10429_s18 = smov [#allocation2]  }
 0xac9   : > { %v9866_v42 = vcombine.low %v9858_v36, %v9865_v49  ;;  %v9890_v43 = vcombine.low %v9882_v53, %v9889_v20 }
 0xacc   : > { %9795 = vrot.lane.b32.xlu1 %v9794_v30, %s10426_s13  ;;  %9819 = vrot.lane.b32.xlu0 %v9818_v59, %s10427_s24  ;;  %s10331_s13 = sshll.u32 %s10429_s18, 4  ;;  %s10332_s13 = int_to_ptr.vmem [resolvable:$false] %s10331_s13 }
 0xacd   : > { %s10333_s24 = scalar_lea.vmem %s10332_s13, 256 }
 0xad0   : > { %9843 = vrot.lane.b32.xlu1 %v9842_v58, %s10415_s20  ;;  %9867 = vrot.lane.b32.xlu0 %v9866_v42, %s10428_s12  ;;  %s298_s20 = scalar_lea.vmem [#allocation2], %s9987_s17 }
 0xad1   : > { %s9924_s25 = sshll.u32 %s298_s20, 4  ;;  %s19053_s25 = int_to_ptr.vmem [resolvable:$true] %s9924_s25 }
 0xad2   : > { %p10334_p0 = scmp.lt.s32.totalorder %s19053_s25, %s10332_s13 }
 0xad4   : > { %9891 = vrot.lane.b32.xlu1 %v9890_v43, %s10406_s19  ;;  %s10102_s19 = sshll.u32 %s10496_s9, 7  ;;  %s10327_s9 = scalar_lea.vmem %s19053_s25, 128 }
 0xad5   : > { %s19051_s10 = scalar_lea.hbm %s19101_s8, %s10102_s19  ;;  %p10328_p11 = scmp.ne.s32.totalorder %s19053_s25, %s10327_s9 }
 0xad6   : > { %p10335_p1 = scmp.lt.s32.totalorder %s10333_s24, %s10327_s9 }
 0xad7   : > { %p10329_p12 = pnand %p10328_p11, %p10513_p5 }
 0xad8   : > { %p10336_p2 = por %p10335_p1, %p10334_p0 }
 0xad9   : > { %p10330_p13 = pneg %p10329_p12 }
 0xadb   : > { %p10337_p3 = pnand %p10336_p2, %p10330_p13 }
 0xb3a   : > { %v9772_v46 = vpop.permute.xlu0 %9771  ;;  %v9748_v2 = vpop.permute.xlu1 %9747 }
 0xb3b   : > { %v9895_v24 = vsel %vm9894_vm12, %v9724_v45, %v9748_v2 }
 0xb3c   : > { %v9897_v0 = vsel %vm9896_vm13, %v9895_v24, %v9772_v46 }
 0xb3e   : > { %v9796_v51 = vpop.permute.xlu1 %9795  ;;  %v9820_v22 = vpop.permute.xlu0 %9819 }
 0xb3f   : > { %v9899_v37 = vsel %vm9898_vm14, %v9897_v0, %v9796_v51 }
 0xb40   : > { %v9901_v15 = vsel %vm9900_vm15, %v9899_v37, %v9820_v22 }
 0xb42   : > { %v9844_v54 = vpop.permute.xlu1 %9843  ;;  %v9868_v4 = vpop.permute.xlu0 %9867 }
 0xb43   : > { %v9903_v23 = vsel %vm9902_vm0, %v9901_v15, %v9844_v54 }
 0xb44   : > { %v9905_v18 = vsel %vm9904_vm1, %v9903_v23, %v9868_v4 }
 0xb46   : > { %v9892_v47 = vpop.permute.xlu1 %9891 }
 0xb47   : > { %v9907_v61 = vsel %vm9906_vm11, %v9905_v18, %v9892_v47 }
 0xb48   : > { %9909 = vst.msk [vmem:[%s298_s20] sm:$0xff] %vm9908_vm3, %v9907_v61 }
 0xb49   : > { %10340 = shalt.err (!%p10337_p3)
}
 0xb4a   : > { %s10341_s12 = scalar_lea.hbm %s19051_s10, 128  ;;  %s10345_s19 = scalar_lea.hbm %s19101_s8, 256 }
 0xb4b   : > { %p10342_p4 = scmp.ne.s32.totalorder %s19051_s10, %s10341_s12  ;;  %p10346_p9 = scmp.lt.u32.totalorder %s19051_s10, %s19101_s8 }
 0xb4c   : > { %p10347_p10 = scmp.lt.u32.totalorder %s10345_s19, %s10341_s12  ;;  %p10349_p12 = scmp.lt.u32.totalorder %s10341_s12, %s19051_s10 }
 0xb4d   : > { %p10343_p7 = pnand %p10342_p4, %p10513_p5 }
 0xb4e   : > { %p10348_p11 = por %p10347_p10, %p10346_p9 }
 0xb4f   : > { %p10344_p8 = pneg %p10343_p7 }
 0xb50   : > { %p10350_p13 = por %p10349_p12, %p10348_p11 }
 0xb52   : > { %p10351_p0 = pnand %p10350_p13, %p10344_p8 }
 0xb54   : > { %10354 = shalt.err (!%p10351_p0)
}
 0xb55   : > { %10162 = dma.vmem_to_hbm [thread:$0]  (%p10513_p5), %s19053_s25, 128, %s19051_s10, %s9911_s26  }
 0xb56 PF: > { %p10168_p1 = scmp.ge.s32.totalorder %s10389_s30, 2  ;;  %s9936_s23 = sand.u32 1, %s10377_s27  }
 0xb57   : > { %s9937_s9 = scalar_lea.sflag [#allocation3], %s9936_s23 }
 0xb58   : > { %p10165_p2 = pnand %p10168_p1, %p10517_p6 }
 0xb5a   : > { %10372 = dma.done.wait (!%p10165_p2), %s9937_s9, 128  }
 0xb5b   : > { %10374 = vsyncadd (!%p10165_p2), %s9937_s9, 4294967168  ;;  %p18_p3 = scmp.ge.s32.totalorder %s10500_s11, 4   ;;  %s21489_s27 = smov %s10381_s28 }
 0xb5c   : > { %s21490_s28 = smov %s10385_s29  ;;  %s21491_s29 = smov %s10511_s14 }
 0xb5d   : > { %s21492_s30 = smov %s10500_s11  ;;  %20 = sbr.rel (!%p18_p3) target bundleno = 3 (0x3), region = 87 }
 0xb64   :  { %9942 = vsyncpa [#allocation3], 1 }
 0xb65   :  { %9944 = vsyncpa [#allocation3 + $0x1], 1 }

</bundles_post_ra>
